<compile_context>
chip_gen: v7x
topology: tpu7x:2x2x1
jax: 0.10.0
libtpu: 0.0.40
codegen_flags: <defaults>
</compile_context>

<pallas_src>
import functools

import numpy as np
import jax
import jax.numpy as jnp
from jax.experimental import pallas as pl
from jax.experimental.pallas import tpu as pltpu


# ----------------------------------------------------------------------------
# Pallas kernel: fused Conv3x3(VALID) -> ReLU -> Conv3x3(VALID)
# ----------------------------------------------------------------------------
def _block_kernel(x_ref, w1_ref, b1_ref, w2_ref, b2_ref, o_ref, mid_ref,
                  *, H, W, TM):
    # x_ref  : (1, H*W-2, 3*Ci) bf16  dj-folded input (full-width rows, stride W)
    # w1_ref : (3, 3*Ci, Cm)    bf16  per-di conv1 weights (dj folded into K)
    # b1_ref : (1, Cm)          f32
    # w2_ref : (9, Cm, Cm)      bf16  per-tap conv2 weights (t = 3*di + dj)
    # b2_ref : (1, Cm)          f32
    # o_ref  : (1, Ho2*W, Cm)   f32   uncropped conv2 slab (full-width rows);
    #                                 cols >= W-4 and the last 4 rows are
    #                                 wrap-around garbage, cropped in XLA.
    # mid_ref: VMEM (M1, Cm)    bf16  conv1+ReLU, full-width rows (stride W)
    Ho2 = H - 4
    M1 = (H - 2) * W - 2     # every valid conv1 pixel; fits inside H*W-2 input rows
    M2 = Ho2 * W - 4         # every valid conv2 pixel; fits inside M1

    b1 = b1_ref[...]         # (1, Cm), hoisted
    b2 = b2_ref[...]

    # ---- conv1: chunked register accumulation, 3 K-folded taps (K = 3*Ci) ----
    for s in range(0, M1, TM):
        m = min(TM, M1 - s)
        acc = jnp.dot(x_ref[0, pl.ds(s, m), :], w1_ref[0],
                      preferred_element_type=jnp.float32)
        for di in (1, 2):
            acc += jnp.dot(x_ref[0, pl.ds(s + di * W, m), :], w1_ref[di],
                           preferred_element_type=jnp.float32)
        # fused bias + ReLU + bf16 cast, single store per chunk
        mid_ref[pl.ds(s, m), :] = jnp.maximum(acc + b1, 0.0).astype(mid_ref.dtype)

    # ---- conv2: chunked register accumulation, 9 taps (K = Cm) ----
    for s in range(0, M2, TM):
        m = min(TM, M2 - s)
        acc = jnp.dot(mid_ref[pl.ds(s, m), :], w2_ref[0],
                      preferred_element_type=jnp.float32)
        for t in range(1, 9):
            di, dj = divmod(t, 3)
            acc += jnp.dot(mid_ref[pl.ds(s + di * W + dj, m), :], w2_ref[t],
                           preferred_element_type=jnp.float32)
        # fused bias + single contiguous store straight to the output slab
        o_ref[0, pl.ds(s, m), :] = (acc + b2).astype(o_ref.dtype)


# ----------------------------------------------------------------------------
# Pallas wrapper
# ----------------------------------------------------------------------------
def pallas_block(x, w1, b1, w2, b2, *, tm=256):
    """Block = Conv3x3 -> ReLU -> Conv3x3 (both VALID).  x: (B, H, W, Ci) NHWC f32."""
    B, H, W, Ci = x.shape
    Cm = w1.shape[-1]
    Ho2, Wo2 = H - 4, W - 4
    M1 = (H - 2) * W - 2
    N = H * W - 2

    # dj-folded (im2col along K) input slab, bf16 for the MXU: (B, N, 3*Ci)
    x_flat = x.reshape(B, H * W, Ci)
    x_col = jnp.concatenate([x_flat[:, d:d + N, :] for d in range(3)],
                            axis=-1).astype(jnp.bfloat16)

    # flat 2-D matmul weight layouts, bf16
    w1f = w1.reshape(3, 3 * Ci, Cm).astype(jnp.bfloat16)   # row dj*Ci + c
    w2f = w2.reshape(9, Cm, Cm).astype(jnp.bfloat16)       # tap t = 3*di + dj

    kernel = functools.partial(_block_kernel, H=H, W=W, TM=tm)

    out_full = pl.pallas_call(
        kernel,
        out_shape=jax.ShapeDtypeStruct((B, Ho2 * W, Cm), jnp.float32),
        grid=(B,),
        in_specs=[
            pl.BlockSpec((1, N, 3 * Ci), lambda b: (b, 0, 0)),
            pl.BlockSpec((3, 3 * Ci, Cm), lambda b: (0, 0, 0)),
            pl.BlockSpec((1, Cm), lambda b: (0, 0)),
            pl.BlockSpec((9, Cm, Cm), lambda b: (0, 0, 0)),
            pl.BlockSpec((1, Cm), lambda b: (0, 0)),
        ],
        out_specs=pl.BlockSpec((1, Ho2 * W, Cm), lambda b: (b, 0, 0)),
        scratch_shapes=[pltpu.VMEM((M1, Cm), jnp.bfloat16)],
        compiler_params=pltpu.CompilerParams(
            dimension_semantics=("parallel",)),   # batch split across TCs (v7x)
    )(x_col, w1f, b1.reshape(1, Cm).astype(jnp.float32),
      w2f, b2.reshape(1, Cm).astype(jnp.float32))

    # crop full-width rows to the valid Wo2 columns (index-only XLA glue,
    # fused with the transpose / maxpool that consume it)
    return out_full.reshape(B, Ho2, W, Cm)[:, :, :Wo2, :]


def maxpool2x2(x):
    """MaxPool2d(kernel=2, stride=2), floor mode.  x: (B, H, W, C) NHWC. XLA glue."""
    B, H, W, C = x.shape
    Hp, Wp = H // 2, W // 2
    x = x[:, :2 * Hp, :2 * Wp, :].reshape(B, Hp, 2, Wp, 2, C)
    return jnp.max(x, axis=(2, 4))


def encoder_forward_pallas(x_nchw, params):
    """Mirrors Encoder.forward.  Input NCHW; returns list of NCHW block outputs."""
    x = jnp.transpose(x_nchw, (0, 2, 3, 1)).astype(jnp.float32)   # NCHW -> NHWC
    feats = []
    for p in params:
        x = pallas_block(x, p["w1"], p["b1"], p["w2"], p["b2"])
        feats.append(jnp.transpose(x, (0, 3, 1, 2)))              # NHWC -> NCHW
        x = maxpool2x2(x)                                          # pool after every block
    return feats


# ----------------------------------------------------------------------------
# Pure-JAX reference (full f32, for numeric verification)
# ----------------------------------------------------------------------------
_HI = jax.lax.Precision.HIGHEST


def _conv3x3_valid_ref(x, w, b):
    B, H, W, _ = x.shape
    Co = w.shape[-1]
    Ho, Wo = H - 2, W - 2
    acc = jnp.zeros((B, Ho, Wo, Co), jnp.float32)
    for di in range(3):
        for dj in range(3):
            acc = acc + jnp.einsum("nhwc,cd->nhwd",
                                   x[:, di:di + Ho, dj:dj + Wo, :], w[di, dj],
                                   precision=_HI)
    return acc + b


def encoder_forward_ref(x_nchw, params):
    x = jnp.transpose(x_nchw, (0, 2, 3, 1)).astype(jnp.float32)
    feats = []
    for p in params:
        x = jnp.maximum(_conv3x3_valid_ref(x, p["w1"], p["b1"]), 0.0)
        x = _conv3x3_valid_ref(x, p["w2"], p["b2"])
        feats.append(jnp.transpose(x, (0, 3, 1, 2)))
        x = maxpool2x2(x)
    return feats


# ----------------------------------------------------------------------------
# Deterministic synthetic parameters
# ----------------------------------------------------------------------------
def init_params(key, channels):
    params = []
    for i in range(len(channels) - 1):
        cin, cout = channels[i], channels[i + 1]
        key, k1, k2, k3, k4 = jax.random.split(key, 5)
        params.append(dict(
            w1=0.1 * jax.random.normal(k1, (3, 3, cin, cout), jnp.float32),
            b1=0.1 * jax.random.normal(k2, (cout,), jnp.float32),
            w2=0.1 * jax.random.normal(k3, (3, 3, cout, cout), jnp.float32),
            b2=0.1 * jax.random.normal(k4, (cout,), jnp.float32),
        ))
    return params


# ----------------------------------------------------------------------------
if __name__ == "__main__":
    channels = (3, 16, 32, 64)            # Encoder default
    B, H, W = 2, 36, 36                   # small spatial size surviving all 3 levels
    key = jax.random.PRNGKey(0)
    kx, kp = jax.random.split(key)

    x = jax.random.normal(kx, (B, channels[0], H, W), jnp.float32)   # NCHW
    params = init_params(kp, channels)

    feats = encoder_forward_pallas(x, params)
    feats = jax.block_until_ready(feats)

    refs = jax.block_until_ready(encoder_forward_ref(x, params))

    expected = [(B, 16, 32, 32), (B, 32, 12, 12), (B, 64, 2, 2)]
    assert [tuple(f.shape) for f in feats] == expected, [f.shape for f in feats]
    # Tolerance reflects the bf16 MXU path (f32 accumulation) vs. an f32
    # HIGHEST-precision reference across three stacked blocks.
    for f, r in zip(feats, refs):
        np.testing.assert_allclose(np.asarray(f), np.asarray(r),
                                   rtol=5e-2, atol=5e-2)

    print("KERNEL_OK")
</pallas_src>

<mosaic_0001>
module attributes {stable_mosaic.version = 11 : i64} {
  func.func @_block_kernel(%arg0: i32, %arg1: memref<1x1294x9xbf16, #tpu.memory_space<vmem>>, %arg2: memref<3x9x16xbf16, #tpu.memory_space<vmem>>, %arg3: memref<1x16xf32, #tpu.memory_space<vmem>>, %arg4: memref<9x16x16xbf16, #tpu.memory_space<vmem>>, %arg5: memref<1x16xf32, #tpu.memory_space<vmem>>, %arg6: memref<1x1152x16xf32, #tpu.memory_space<vmem>>, %arg7: memref<1222x16xbf16, #tpu.memory_space<vmem>>) attributes {dimension_semantics = [#tpu.dimension_semantics<parallel>], iteration_bounds = array<i64: 2>, scalar_prefetch = 0 : i64, scratch_operands = 1 : i64, tpu.core_type = #tpu.core_type<tc>, window_params = [{transform_indices = @transform_0, window_bounds = array<i64: 1, 1294, 9>}, {pipeline_mode = #tpu.pipeline_mode<synchronous>, transform_indices = @transform_1, window_bounds = array<i64: 3, 9, 16>}, {pipeline_mode = #tpu.pipeline_mode<synchronous>, transform_indices = @transform_2, window_bounds = array<i64: 1, 16>}, {pipeline_mode = #tpu.pipeline_mode<synchronous>, transform_indices = @transform_3, window_bounds = array<i64: 9, 16, 16>}, {pipeline_mode = #tpu.pipeline_mode<synchronous>, transform_indices = @transform_4, window_bounds = array<i64: 1, 16>}, {transform_indices = @transform_5, window_bounds = array<i64: 1, 1152, 16>}]} {
    %c0 = arith.constant 0 : index
    %c0_0 = arith.constant 0 : index
    %0 = vector.load %arg3[%c0, %c0_0] : memref<1x16xf32, #tpu.memory_space<vmem>>, vector<1x16xf32>
    %c0_1 = arith.constant 0 : index
    %c0_2 = arith.constant 0 : index
    %1 = vector.load %arg5[%c0_1, %c0_2] : memref<1x16xf32, #tpu.memory_space<vmem>>, vector<1x16xf32>
    %c0_3 = arith.constant 0 : index
    %c0_4 = arith.constant 0 : index
    %c0_5 = arith.constant 0 : index
    %2 = vector.load %arg1[%c0_3, %c0_4, %c0_5] : memref<1x1294x9xbf16, #tpu.memory_space<vmem>>, vector<1x256x9xbf16>
    %3 = vector.shape_cast %2 : vector<1x256x9xbf16> to vector<256x9xbf16>
    %c0_6 = arith.constant 0 : index
    %c0_7 = arith.constant 0 : index
    %c0_8 = arith.constant 0 : index
    %4 = vector.load %arg2[%c0_6, %c0_7, %c0_8] : memref<3x9x16xbf16, #tpu.memory_space<vmem>>, vector<1x9x16xbf16>
    %5 = vector.shape_cast %4 : vector<1x9x16xbf16> to vector<9x16xbf16>
    %cst = arith.constant dense<0.000000e+00> : vector<256x16xf32>
    %6 = tpu.matmul %3, %5, %cst {dimension_numbers = #tpu.dot_dimension_numbers<[1], [0], [0], [1], [0, 0, 1, 1], [], []>} : vector<256x9xbf16>, vector<9x16xbf16>, vector<256x16xf32> -> vector<256x16xf32>
    %c0_9 = arith.constant 0 : index
    %c36 = arith.constant 36 : index
    %c0_10 = arith.constant 0 : index
    %7 = vector.load %arg1[%c0_9, %c36, %c0_10] : memref<1x1294x9xbf16, #tpu.memory_space<vmem>>, vector<1x256x9xbf16>
    %8 = vector.shape_cast %7 : vector<1x256x9xbf16> to vector<256x9xbf16>
    %c1 = arith.constant 1 : index
    %c0_11 = arith.constant 0 : index
    %c0_12 = arith.constant 0 : index
    %9 = vector.load %arg2[%c1, %c0_11, %c0_12] : memref<3x9x16xbf16, #tpu.memory_space<vmem>>, vector<1x9x16xbf16>
    %10 = vector.shape_cast %9 : vector<1x9x16xbf16> to vector<9x16xbf16>
    %cst_13 = arith.constant dense<0.000000e+00> : vector<256x16xf32>
    %11 = tpu.matmul %8, %10, %cst_13 {dimension_numbers = #tpu.dot_dimension_numbers<[1], [0], [0], [1], [0, 0, 1, 1], [], []>} : vector<256x9xbf16>, vector<9x16xbf16>, vector<256x16xf32> -> vector<256x16xf32>
    %12 = arith.addf %6, %11 : vector<256x16xf32>
    %c0_14 = arith.constant 0 : index
    %c72 = arith.constant 72 : index
    %c0_15 = arith.constant 0 : index
    %13 = vector.load %arg1[%c0_14, %c72, %c0_15] : memref<1x1294x9xbf16, #tpu.memory_space<vmem>>, vector<1x256x9xbf16>
    %14 = vector.shape_cast %13 : vector<1x256x9xbf16> to vector<256x9xbf16>
    %c2 = arith.constant 2 : index
    %c0_16 = arith.constant 0 : index
    %c0_17 = arith.constant 0 : index
    %15 = vector.load %arg2[%c2, %c0_16, %c0_17] : memref<3x9x16xbf16, #tpu.memory_space<vmem>>, vector<1x9x16xbf16>
    %16 = vector.shape_cast %15 : vector<1x9x16xbf16> to vector<9x16xbf16>
    %cst_18 = arith.constant dense<0.000000e+00> : vector<256x16xf32>
    %17 = tpu.matmul %14, %16, %cst_18 {dimension_numbers = #tpu.dot_dimension_numbers<[1], [0], [0], [1], [0, 0, 1, 1], [], []>} : vector<256x9xbf16>, vector<9x16xbf16>, vector<256x16xf32> -> vector<256x16xf32>
    %18 = arith.addf %12, %17 : vector<256x16xf32>
    %19 = vector.broadcast %0 : vector<1x16xf32> to vector<256x16xf32>
    %20 = arith.addf %18, %19 : vector<256x16xf32>
    %cst_19 = arith.constant 0.000000e+00 : f32
    %21 = vector.broadcast %cst_19 : f32 to vector<256x16xf32>
    %22 = arith.maximumf %20, %21 : vector<256x16xf32>
    %23 = arith.truncf %22 : vector<256x16xf32> to vector<256x16xbf16>
    %c0_20 = arith.constant 0 : index
    %c0_21 = arith.constant 0 : index
    %24 = vector.load %arg7[%c0_20, %c0_21] : memref<1222x16xbf16, #tpu.memory_space<vmem>>, vector<256x16xbf16>
    tpu.vector_store %arg7[%c0_20, %c0_21], %23 {strides = array<i32>} : memref<1222x16xbf16, #tpu.memory_space<vmem>>, vector<256x16xbf16>,
    %c0_22 = arith.constant 0 : index
    %c256 = arith.constant 256 : index
    %c0_23 = arith.constant 0 : index
    %25 = vector.load %arg1[%c0_22, %c256, %c0_23] : memref<1x1294x9xbf16, #tpu.memory_space<vmem>>, vector<1x256x9xbf16>
    %26 = vector.shape_cast %25 : vector<1x256x9xbf16> to vector<256x9xbf16>
    %c0_24 = arith.constant 0 : index
    %c0_25 = arith.constant 0 : index
    %c0_26 = arith.constant 0 : index
    %27 = vector.load %arg2[%c0_24, %c0_25, %c0_26] : memref<3x9x16xbf16, #tpu.memory_space<vmem>>, vector<1x9x16xbf16>
    %28 = vector.shape_cast %27 : vector<1x9x16xbf16> to vector<9x16xbf16>
    %cst_27 = arith.constant dense<0.000000e+00> : vector<256x16xf32>
    %29 = tpu.matmul %26, %28, %cst_27 {dimension_numbers = #tpu.dot_dimension_numbers<[1], [0], [0], [1], [0, 0, 1, 1], [], []>} : vector<256x9xbf16>, vector<9x16xbf16>, vector<256x16xf32> -> vector<256x16xf32>
    %c0_28 = arith.constant 0 : index
    %c292 = arith.constant 292 : index
    %c0_29 = arith.constant 0 : index
    %30 = vector.load %arg1[%c0_28, %c292, %c0_29] : memref<1x1294x9xbf16, #tpu.memory_space<vmem>>, vector<1x256x9xbf16>
    %31 = vector.shape_cast %30 : vector<1x256x9xbf16> to vector<256x9xbf16>
    %c1_30 = arith.constant 1 : index
    %c0_31 = arith.constant 0 : index
    %c0_32 = arith.constant 0 : index
    %32 = vector.load %arg2[%c1_30, %c0_31, %c0_32] : memref<3x9x16xbf16, #tpu.memory_space<vmem>>, vector<1x9x16xbf16>
    %33 = vector.shape_cast %32 : vector<1x9x16xbf16> to vector<9x16xbf16>
    %cst_33 = arith.constant dense<0.000000e+00> : vector<256x16xf32>
    %34 = tpu.matmul %31, %33, %cst_33 {dimension_numbers = #tpu.dot_dimension_numbers<[1], [0], [0], [1], [0, 0, 1, 1], [], []>} : vector<256x9xbf16>, vector<9x16xbf16>, vector<256x16xf32> -> vector<256x16xf32>
    %35 = arith.addf %29, %34 : vector<256x16xf32>
    %c0_34 = arith.constant 0 : index
    %c328 = arith.constant 328 : index
    %c0_35 = arith.constant 0 : index
    %36 = vector.load %arg1[%c0_34, %c328, %c0_35] : memref<1x1294x9xbf16, #tpu.memory_space<vmem>>, vector<1x256x9xbf16>
    %37 = vector.shape_cast %36 : vector<1x256x9xbf16> to vector<256x9xbf16>
    %c2_36 = arith.constant 2 : index
    %c0_37 = arith.constant 0 : index
    %c0_38 = arith.constant 0 : index
    %38 = vector.load %arg2[%c2_36, %c0_37, %c0_38] : memref<3x9x16xbf16, #tpu.memory_space<vmem>>, vector<1x9x16xbf16>
    %39 = vector.shape_cast %38 : vector<1x9x16xbf16> to vector<9x16xbf16>
    %cst_39 = arith.constant dense<0.000000e+00> : vector<256x16xf32>
    %40 = tpu.matmul %37, %39, %cst_39 {dimension_numbers = #tpu.dot_dimension_numbers<[1], [0], [0], [1], [0, 0, 1, 1], [], []>} : vector<256x9xbf16>, vector<9x16xbf16>, vector<256x16xf32> -> vector<256x16xf32>
    %41 = arith.addf %35, %40 : vector<256x16xf32>
    %42 = vector.broadcast %0 : vector<1x16xf32> to vector<256x16xf32>
    %43 = arith.addf %41, %42 : vector<256x16xf32>
    %cst_40 = arith.constant 0.000000e+00 : f32
    %44 = vector.broadcast %cst_40 : f32 to vector<256x16xf32>
    %45 = arith.maximumf %43, %44 : vector<256x16xf32>
    %46 = arith.truncf %45 : vector<256x16xf32> to vector<256x16xbf16>
    %c256_41 = arith.constant 256 : index
    %c0_42 = arith.constant 0 : index
    %47 = vector.load %arg7[%c256_41, %c0_42] : memref<1222x16xbf16, #tpu.memory_space<vmem>>, vector<256x16xbf16>
    tpu.vector_store %arg7[%c256_41, %c0_42], %46 {strides = array<i32>} : memref<1222x16xbf16, #tpu.memory_space<vmem>>, vector<256x16xbf16>,
    %c0_43 = arith.constant 0 : index
    %c512 = arith.constant 512 : index
    %c0_44 = arith.constant 0 : index
    %48 = vector.load %arg1[%c0_43, %c512, %c0_44] : memref<1x1294x9xbf16, #tpu.memory_space<vmem>>, vector<1x256x9xbf16>
    %49 = vector.shape_cast %48 : vector<1x256x9xbf16> to vector<256x9xbf16>
    %c0_45 = arith.constant 0 : index
    %c0_46 = arith.constant 0 : index
    %c0_47 = arith.constant 0 : index
    %50 = vector.load %arg2[%c0_45, %c0_46, %c0_47] : memref<3x9x16xbf16, #tpu.memory_space<vmem>>, vector<1x9x16xbf16>
    %51 = vector.shape_cast %50 : vector<1x9x16xbf16> to vector<9x16xbf16>
    %cst_48 = arith.constant dense<0.000000e+00> : vector<256x16xf32>
    %52 = tpu.matmul %49, %51, %cst_48 {dimension_numbers = #tpu.dot_dimension_numbers<[1], [0], [0], [1], [0, 0, 1, 1], [], []>} : vector<256x9xbf16>, vector<9x16xbf16>, vector<256x16xf32> -> vector<256x16xf32>
    %c0_49 = arith.constant 0 : index
    %c548 = arith.constant 548 : index
    %c0_50 = arith.constant 0 : index
    %53 = vector.load %arg1[%c0_49, %c548, %c0_50] : memref<1x1294x9xbf16, #tpu.memory_space<vmem>>, vector<1x256x9xbf16>
    %54 = vector.shape_cast %53 : vector<1x256x9xbf16> to vector<256x9xbf16>
    %c1_51 = arith.constant 1 : index
    %c0_52 = arith.constant 0 : index
    %c0_53 = arith.constant 0 : index
    %55 = vector.load %arg2[%c1_51, %c0_52, %c0_53] : memref<3x9x16xbf16, #tpu.memory_space<vmem>>, vector<1x9x16xbf16>
    %56 = vector.shape_cast %55 : vector<1x9x16xbf16> to vector<9x16xbf16>
    %cst_54 = arith.constant dense<0.000000e+00> : vector<256x16xf32>
    %57 = tpu.matmul %54, %56, %cst_54 {dimension_numbers = #tpu.dot_dimension_numbers<[1], [0], [0], [1], [0, 0, 1, 1], [], []>} : vector<256x9xbf16>, vector<9x16xbf16>, vector<256x16xf32> -> vector<256x16xf32>
    %58 = arith.addf %52, %57 : vector<256x16xf32>
    %c0_55 = arith.constant 0 : index
    %c584 = arith.constant 584 : index
    %c0_56 = arith.constant 0 : index
    %59 = vector.load %arg1[%c0_55, %c584, %c0_56] : memref<1x1294x9xbf16, #tpu.memory_space<vmem>>, vector<1x256x9xbf16>
    %60 = vector.shape_cast %59 : vector<1x256x9xbf16> to vector<256x9xbf16>
    %c2_57 = arith.constant 2 : index
    %c0_58 = arith.constant 0 : index
    %c0_59 = arith.constant 0 : index
    %61 = vector.load %arg2[%c2_57, %c0_58, %c0_59] : memref<3x9x16xbf16, #tpu.memory_space<vmem>>, vector<1x9x16xbf16>
    %62 = vector.shape_cast %61 : vector<1x9x16xbf16> to vector<9x16xbf16>
    %cst_60 = arith.constant dense<0.000000e+00> : vector<256x16xf32>
    %63 = tpu.matmul %60, %62, %cst_60 {dimension_numbers = #tpu.dot_dimension_numbers<[1], [0], [0], [1], [0, 0, 1, 1], [], []>} : vector<256x9xbf16>, vector<9x16xbf16>, vector<256x16xf32> -> vector<256x16xf32>
    %64 = arith.addf %58, %63 : vector<256x16xf32>
    %65 = vector.broadcast %0 : vector<1x16xf32> to vector<256x16xf32>
    %66 = arith.addf %64, %65 : vector<256x16xf32>
    %cst_61 = arith.constant 0.000000e+00 : f32
    %67 = vector.broadcast %cst_61 : f32 to vector<256x16xf32>
    %68 = arith.maximumf %66, %67 : vector<256x16xf32>
    %69 = arith.truncf %68 : vector<256x16xf32> to vector<256x16xbf16>
    %c512_62 = arith.constant 512 : index
    %c0_63 = arith.constant 0 : index
    %70 = vector.load %arg7[%c512_62, %c0_63] : memref<1222x16xbf16, #tpu.memory_space<vmem>>, vector<256x16xbf16>
    tpu.vector_store %arg7[%c512_62, %c0_63], %69 {strides = array<i32>} : memref<1222x16xbf16, #tpu.memory_space<vmem>>, vector<256x16xbf16>,
    %c0_64 = arith.constant 0 : index
    %c768 = arith.constant 768 : index
    %c0_65 = arith.constant 0 : index
    %71 = vector.load %arg1[%c0_64, %c768, %c0_65] : memref<1x1294x9xbf16, #tpu.memory_space<vmem>>, vector<1x256x9xbf16>
    %72 = vector.shape_cast %71 : vector<1x256x9xbf16> to vector<256x9xbf16>
    %c0_66 = arith.constant 0 : index
    %c0_67 = arith.constant 0 : index
    %c0_68 = arith.constant 0 : index
    %73 = vector.load %arg2[%c0_66, %c0_67, %c0_68] : memref<3x9x16xbf16, #tpu.memory_space<vmem>>, vector<1x9x16xbf16>
    %74 = vector.shape_cast %73 : vector<1x9x16xbf16> to vector<9x16xbf16>
    %cst_69 = arith.constant dense<0.000000e+00> : vector<256x16xf32>
    %75 = tpu.matmul %72, %74, %cst_69 {dimension_numbers = #tpu.dot_dimension_numbers<[1], [0], [0], [1], [0, 0, 1, 1], [], []>} : vector<256x9xbf16>, vector<9x16xbf16>, vector<256x16xf32> -> vector<256x16xf32>
    %c0_70 = arith.constant 0 : index
    %c804 = arith.constant 804 : index
    %c0_71 = arith.constant 0 : index
    %76 = vector.load %arg1[%c0_70, %c804, %c0_71] : memref<1x1294x9xbf16, #tpu.memory_space<vmem>>, vector<1x256x9xbf16>
    %77 = vector.shape_cast %76 : vector<1x256x9xbf16> to vector<256x9xbf16>
    %c1_72 = arith.constant 1 : index
    %c0_73 = arith.constant 0 : index
    %c0_74 = arith.constant 0 : index
    %78 = vector.load %arg2[%c1_72, %c0_73, %c0_74] : memref<3x9x16xbf16, #tpu.memory_space<vmem>>, vector<1x9x16xbf16>
    %79 = vector.shape_cast %78 : vector<1x9x16xbf16> to vector<9x16xbf16>
    %cst_75 = arith.constant dense<0.000000e+00> : vector<256x16xf32>
    %80 = tpu.matmul %77, %79, %cst_75 {dimension_numbers = #tpu.dot_dimension_numbers<[1], [0], [0], [1], [0, 0, 1, 1], [], []>} : vector<256x9xbf16>, vector<9x16xbf16>, vector<256x16xf32> -> vector<256x16xf32>
    %81 = arith.addf %75, %80 : vector<256x16xf32>
    %c0_76 = arith.constant 0 : index
    %c840 = arith.constant 840 : index
    %c0_77 = arith.constant 0 : index
    %82 = vector.load %arg1[%c0_76, %c840, %c0_77] : memref<1x1294x9xbf16, #tpu.memory_space<vmem>>, vector<1x256x9xbf16>
    %83 = vector.shape_cast %82 : vector<1x256x9xbf16> to vector<256x9xbf16>
    %c2_78 = arith.constant 2 : index
    %c0_79 = arith.constant 0 : index
    %c0_80 = arith.constant 0 : index
    %84 = vector.load %arg2[%c2_78, %c0_79, %c0_80] : memref<3x9x16xbf16, #tpu.memory_space<vmem>>, vector<1x9x16xbf16>
    %85 = vector.shape_cast %84 : vector<1x9x16xbf16> to vector<9x16xbf16>
    %cst_81 = arith.constant dense<0.000000e+00> : vector<256x16xf32>
    %86 = tpu.matmul %83, %85, %cst_81 {dimension_numbers = #tpu.dot_dimension_numbers<[1], [0], [0], [1], [0, 0, 1, 1], [], []>} : vector<256x9xbf16>, vector<9x16xbf16>, vector<256x16xf32> -> vector<256x16xf32>
    %87 = arith.addf %81, %86 : vector<256x16xf32>
    %88 = vector.broadcast %0 : vector<1x16xf32> to vector<256x16xf32>
    %89 = arith.addf %87, %88 : vector<256x16xf32>
    %cst_82 = arith.constant 0.000000e+00 : f32
    %90 = vector.broadcast %cst_82 : f32 to vector<256x16xf32>
    %91 = arith.maximumf %89, %90 : vector<256x16xf32>
    %92 = arith.truncf %91 : vector<256x16xf32> to vector<256x16xbf16>
    %c768_83 = arith.constant 768 : index
    %c0_84 = arith.constant 0 : index
    %93 = vector.load %arg7[%c768_83, %c0_84] : memref<1222x16xbf16, #tpu.memory_space<vmem>>, vector<256x16xbf16>
    tpu.vector_store %arg7[%c768_83, %c0_84], %92 {strides = array<i32>} : memref<1222x16xbf16, #tpu.memory_space<vmem>>, vector<256x16xbf16>,
    %c0_85 = arith.constant 0 : index
    %c1024 = arith.constant 1024 : index
    %c0_86 = arith.constant 0 : index
    %94 = vector.load %arg1[%c0_85, %c1024, %c0_86] : memref<1x1294x9xbf16, #tpu.memory_space<vmem>>, vector<1x198x9xbf16>
    %95 = vector.shape_cast %94 : vector<1x198x9xbf16> to vector<198x9xbf16>
    %c0_87 = arith.constant 0 : index
    %c0_88 = arith.constant 0 : index
    %c0_89 = arith.constant 0 : index
    %96 = vector.load %arg2[%c0_87, %c0_88, %c0_89] : memref<3x9x16xbf16, #tpu.memory_space<vmem>>, vector<1x9x16xbf16>
    %97 = vector.shape_cast %96 : vector<1x9x16xbf16> to vector<9x16xbf16>
    %cst_90 = arith.constant dense<0.000000e+00> : vector<198x16xf32>
    %98 = tpu.matmul %95, %97, %cst_90 {dimension_numbers = #tpu.dot_dimension_numbers<[1], [0], [0], [1], [0, 0, 1, 1], [], []>} : vector<198x9xbf16>, vector<9x16xbf16>, vector<198x16xf32> -> vector<198x16xf32>
    %c0_91 = arith.constant 0 : index
    %c1060 = arith.constant 1060 : index
    %c0_92 = arith.constant 0 : index
    %99 = vector.load %arg1[%c0_91, %c1060, %c0_92] : memref<1x1294x9xbf16, #tpu.memory_space<vmem>>, vector<1x198x9xbf16>
    %100 = vector.shape_cast %99 : vector<1x198x9xbf16> to vector<198x9xbf16>
    %c1_93 = arith.constant 1 : index
    %c0_94 = arith.constant 0 : index
    %c0_95 = arith.constant 0 : index
    %101 = vector.load %arg2[%c1_93, %c0_94, %c0_95] : memref<3x9x16xbf16, #tpu.memory_space<vmem>>, vector<1x9x16xbf16>
    %102 = vector.shape_cast %101 : vector<1x9x16xbf16> to vector<9x16xbf16>
    %cst_96 = arith.constant dense<0.000000e+00> : vector<198x16xf32>
    %103 = tpu.matmul %100, %102, %cst_96 {dimension_numbers = #tpu.dot_dimension_numbers<[1], [0], [0], [1], [0, 0, 1, 1], [], []>} : vector<198x9xbf16>, vector<9x16xbf16>, vector<198x16xf32> -> vector<198x16xf32>
    %104 = arith.addf %98, %103 : vector<198x16xf32>
    %c0_97 = arith.constant 0 : index
    %c1096 = arith.constant 1096 : index
    %c0_98 = arith.constant 0 : index
    %105 = vector.load %arg1[%c0_97, %c1096, %c0_98] : memref<1x1294x9xbf16, #tpu.memory_space<vmem>>, vector<1x198x9xbf16>
    %106 = vector.shape_cast %105 : vector<1x198x9xbf16> to vector<198x9xbf16>
    %c2_99 = arith.constant 2 : index
    %c0_100 = arith.constant 0 : index
    %c0_101 = arith.constant 0 : index
    %107 = vector.load %arg2[%c2_99, %c0_100, %c0_101] : memref<3x9x16xbf16, #tpu.memory_space<vmem>>, vector<1x9x16xbf16>
    %108 = vector.shape_cast %107 : vector<1x9x16xbf16> to vector<9x16xbf16>
    %cst_102 = arith.constant dense<0.000000e+00> : vector<198x16xf32>
    %109 = tpu.matmul %106, %108, %cst_102 {dimension_numbers = #tpu.dot_dimension_numbers<[1], [0], [0], [1], [0, 0, 1, 1], [], []>} : vector<198x9xbf16>, vector<9x16xbf16>, vector<198x16xf32> -> vector<198x16xf32>
    %110 = arith.addf %104, %109 : vector<198x16xf32>
    %111 = vector.broadcast %0 : vector<1x16xf32> to vector<198x16xf32>
    %112 = arith.addf %110, %111 : vector<198x16xf32>
    %cst_103 = arith.constant 0.000000e+00 : f32
    %113 = vector.broadcast %cst_103 : f32 to vector<198x16xf32>
    %114 = arith.maximumf %112, %113 : vector<198x16xf32>
    %115 = arith.truncf %114 : vector<198x16xf32> to vector<198x16xbf16>
    %c1024_104 = arith.constant 1024 : index
    %c0_105 = arith.constant 0 : index
    %116 = vector.load %arg7[%c1024_104, %c0_105] : memref<1222x16xbf16, #tpu.memory_space<vmem>>, vector<198x16xbf16>
    tpu.vector_store %arg7[%c1024_104, %c0_105], %115 {strides = array<i32>} : memref<1222x16xbf16, #tpu.memory_space<vmem>>, vector<198x16xbf16>,
    %c0_106 = arith.constant 0 : index
    %c0_107 = arith.constant 0 : index
    %117 = vector.load %arg7[%c0_106, %c0_107] : memref<1222x16xbf16, #tpu.memory_space<vmem>>, vector<256x16xbf16>
    %c0_108 = arith.constant 0 : index
    %c0_109 = arith.constant 0 : index
    %c0_110 = arith.constant 0 : index
    %118 = vector.load %arg4[%c0_108, %c0_109, %c0_110] : memref<9x16x16xbf16, #tpu.memory_space<vmem>>, vector<1x16x16xbf16>
    %119 = vector.shape_cast %118 : vector<1x16x16xbf16> to vector<16x16xbf16>
    %cst_111 = arith.constant dense<0.000000e+00> : vector<256x16xf32>
    %120 = tpu.matmul %117, %119, %cst_111 {dimension_numbers = #tpu.dot_dimension_numbers<[1], [0], [0], [1], [0, 0, 1, 1], [], []>} : vector<256x16xbf16>, vector<16x16xbf16>, vector<256x16xf32> -> vector<256x16xf32>
    %c1_112 = arith.constant 1 : index
    %c0_113 = arith.constant 0 : index
    %121 = vector.load %arg7[%c1_112, %c0_113] : memref<1222x16xbf16, #tpu.memory_space<vmem>>, vector<256x16xbf16>
    %c1_114 = arith.constant 1 : index
    %c0_115 = arith.constant 0 : index
    %c0_116 = arith.constant 0 : index
    %122 = vector.load %arg4[%c1_114, %c0_115, %c0_116] : memref<9x16x16xbf16, #tpu.memory_space<vmem>>, vector<1x16x16xbf16>
    %123 = vector.shape_cast %122 : vector<1x16x16xbf16> to vector<16x16xbf16>
    %cst_117 = arith.constant dense<0.000000e+00> : vector<256x16xf32>
    %124 = tpu.matmul %121, %123, %cst_117 {dimension_numbers = #tpu.dot_dimension_numbers<[1], [0], [0], [1], [0, 0, 1, 1], [], []>} : vector<256x16xbf16>, vector<16x16xbf16>, vector<256x16xf32> -> vector<256x16xf32>
    %125 = arith.addf %120, %124 : vector<256x16xf32>
    %c2_118 = arith.constant 2 : index
    %c0_119 = arith.constant 0 : index
    %126 = vector.load %arg7[%c2_118, %c0_119] : memref<1222x16xbf16, #tpu.memory_space<vmem>>, vector<256x16xbf16>
    %c2_120 = arith.constant 2 : index
    %c0_121 = arith.constant 0 : index
    %c0_122 = arith.constant 0 : index
    %127 = vector.load %arg4[%c2_120, %c0_121, %c0_122] : memref<9x16x16xbf16, #tpu.memory_space<vmem>>, vector<1x16x16xbf16>
    %128 = vector.shape_cast %127 : vector<1x16x16xbf16> to vector<16x16xbf16>
    %cst_123 = arith.constant dense<0.000000e+00> : vector<256x16xf32>
    %129 = tpu.matmul %126, %128, %cst_123 {dimension_numbers = #tpu.dot_dimension_numbers<[1], [0], [0], [1], [0, 0, 1, 1], [], []>} : vector<256x16xbf16>, vector<16x16xbf16>, vector<256x16xf32> -> vector<256x16xf32>
    %130 = arith.addf %125, %129 : vector<256x16xf32>
    %c36_124 = arith.constant 36 : index
    %c0_125 = arith.constant 0 : index
    %131 = vector.load %arg7[%c36_124, %c0_125] : memref<1222x16xbf16, #tpu.memory_space<vmem>>, vector<256x16xbf16>
    %c3 = arith.constant 3 : index
    %c0_126 = arith.constant 0 : index
    %c0_127 = arith.constant 0 : index
    %132 = vector.load %arg4[%c3, %c0_126, %c0_127] : memref<9x16x16xbf16, #tpu.memory_space<vmem>>, vector<1x16x16xbf16>
    %133 = vector.shape_cast %132 : vector<1x16x16xbf16> to vector<16x16xbf16>
    %cst_128 = arith.constant dense<0.000000e+00> : vector<256x16xf32>
    %134 = tpu.matmul %131, %133, %cst_128 {dimension_numbers = #tpu.dot_dimension_numbers<[1], [0], [0], [1], [0, 0, 1, 1], [], []>} : vector<256x16xbf16>, vector<16x16xbf16>, vector<256x16xf32> -> vector<256x16xf32>
    %135 = arith.addf %130, %134 : vector<256x16xf32>
    %c37 = arith.constant 37 : index
    %c0_129 = arith.constant 0 : index
    %136 = vector.load %arg7[%c37, %c0_129] : memref<1222x16xbf16, #tpu.memory_space<vmem>>, vector<256x16xbf16>
    %c4 = arith.constant 4 : index
    %c0_130 = arith.constant 0 : index
    %c0_131 = arith.constant 0 : index
    %137 = vector.load %arg4[%c4, %c0_130, %c0_131] : memref<9x16x16xbf16, #tpu.memory_space<vmem>>, vector<1x16x16xbf16>
    %138 = vector.shape_cast %137 : vector<1x16x16xbf16> to vector<16x16xbf16>
    %cst_132 = arith.constant dense<0.000000e+00> : vector<256x16xf32>
    %139 = tpu.matmul %136, %138, %cst_132 {dimension_numbers = #tpu.dot_dimension_numbers<[1], [0], [0], [1], [0, 0, 1, 1], [], []>} : vector<256x16xbf16>, vector<16x16xbf16>, vector<256x16xf32> -> vector<256x16xf32>
    %140 = arith.addf %135, %139 : vector<256x16xf32>
    %c38 = arith.constant 38 : index
    %c0_133 = arith.constant 0 : index
    %141 = vector.load %arg7[%c38, %c0_133] : memref<1222x16xbf16, #tpu.memory_space<vmem>>, vector<256x16xbf16>
    %c5 = arith.constant 5 : index
    %c0_134 = arith.constant 0 : index
    %c0_135 = arith.constant 0 : index
    %142 = vector.load %arg4[%c5, %c0_134, %c0_135] : memref<9x16x16xbf16, #tpu.memory_space<vmem>>, vector<1x16x16xbf16>
    %143 = vector.shape_cast %142 : vector<1x16x16xbf16> to vector<16x16xbf16>
    %cst_136 = arith.constant dense<0.000000e+00> : vector<256x16xf32>
    %144 = tpu.matmul %141, %143, %cst_136 {dimension_numbers = #tpu.dot_dimension_numbers<[1], [0], [0], [1], [0, 0, 1, 1], [], []>} : vector<256x16xbf16>, vector<16x16xbf16>, vector<256x16xf32> -> vector<256x16xf32>
    %145 = arith.addf %140, %144 : vector<256x16xf32>
    %c72_137 = arith.constant 72 : index
    %c0_138 = arith.constant 0 : index
    %146 = vector.load %arg7[%c72_137, %c0_138] : memref<1222x16xbf16, #tpu.memory_space<vmem>>, vector<256x16xbf16>
    %c6 = arith.constant 6 : index
    %c0_139 = arith.constant 0 : index
    %c0_140 = arith.constant 0 : index
    %147 = vector.load %arg4[%c6, %c0_139, %c0_140] : memref<9x16x16xbf16, #tpu.memory_space<vmem>>, vector<1x16x16xbf16>
    %148 = vector.shape_cast %147 : vector<1x16x16xbf16> to vector<16x16xbf16>
    %cst_141 = arith.constant dense<0.000000e+00> : vector<256x16xf32>
    %149 = tpu.matmul %146, %148, %cst_141 {dimension_numbers = #tpu.dot_dimension_numbers<[1], [0], [0], [1], [0, 0, 1, 1], [], []>} : vector<256x16xbf16>, vector<16x16xbf16>, vector<256x16xf32> -> vector<256x16xf32>
    %150 = arith.addf %145, %149 : vector<256x16xf32>
    %c73 = arith.constant 73 : index
    %c0_142 = arith.constant 0 : index
    %151 = vector.load %arg7[%c73, %c0_142] : memref<1222x16xbf16, #tpu.memory_space<vmem>>, vector<256x16xbf16>
    %c7 = arith.constant 7 : index
    %c0_143 = arith.constant 0 : index
    %c0_144 = arith.constant 0 : index
    %152 = vector.load %arg4[%c7, %c0_143, %c0_144] : memref<9x16x16xbf16, #tpu.memory_space<vmem>>, vector<1x16x16xbf16>
    %153 = vector.shape_cast %152 : vector<1x16x16xbf16> to vector<16x16xbf16>
    %cst_145 = arith.constant dense<0.000000e+00> : vector<256x16xf32>
    %154 = tpu.matmul %151, %153, %cst_145 {dimension_numbers = #tpu.dot_dimension_numbers<[1], [0], [0], [1], [0, 0, 1, 1], [], []>} : vector<256x16xbf16>, vector<16x16xbf16>, vector<256x16xf32> -> vector<256x16xf32>
    %155 = arith.addf %150, %154 : vector<256x16xf32>
    %c74 = arith.constant 74 : index
    %c0_146 = arith.constant 0 : index
    %156 = vector.load %arg7[%c74, %c0_146] : memref<1222x16xbf16, #tpu.memory_space<vmem>>, vector<256x16xbf16>
    %c8 = arith.constant 8 : index
    %c0_147 = arith.constant 0 : index
    %c0_148 = arith.constant 0 : index
    %157 = vector.load %arg4[%c8, %c0_147, %c0_148] : memref<9x16x16xbf16, #tpu.memory_space<vmem>>, vector<1x16x16xbf16>
    %158 = vector.shape_cast %157 : vector<1x16x16xbf16> to vector<16x16xbf16>
    %cst_149 = arith.constant dense<0.000000e+00> : vector<256x16xf32>
    %159 = tpu.matmul %156, %158, %cst_149 {dimension_numbers = #tpu.dot_dimension_numbers<[1], [0], [0], [1], [0, 0, 1, 1], [], []>} : vector<256x16xbf16>, vector<16x16xbf16>, vector<256x16xf32> -> vector<256x16xf32>
    %160 = arith.addf %155, %159 : vector<256x16xf32>
    %161 = vector.broadcast %1 : vector<1x16xf32> to vector<256x16xf32>
    %162 = arith.addf %160, %161 : vector<256x16xf32>
    %c0_150 = arith.constant 0 : index
    %c0_151 = arith.constant 0 : index
    %c0_152 = arith.constant 0 : index
    %163 = vector.load %arg6[%c0_150, %c0_151, %c0_152] : memref<1x1152x16xf32, #tpu.memory_space<vmem>>, vector<1x256x16xf32>
    %164 = vector.shape_cast %163 : vector<1x256x16xf32> to vector<256x16xf32>
    %165 = vector.shape_cast %162 : vector<256x16xf32> to vector<1x256x16xf32>
    tpu.vector_store %arg6[%c0_150, %c0_151, %c0_152], %165 {strides = array<i32>} : memref<1x1152x16xf32, #tpu.memory_space<vmem>>, vector<1x256x16xf32>,
    %c256_153 = arith.constant 256 : index
    %c0_154 = arith.constant 0 : index
    %166 = vector.load %arg7[%c256_153, %c0_154] : memref<1222x16xbf16, #tpu.memory_space<vmem>>, vector<256x16xbf16>
    %c0_155 = arith.constant 0 : index
    %c0_156 = arith.constant 0 : index
    %c0_157 = arith.constant 0 : index
    %167 = vector.load %arg4[%c0_155, %c0_156, %c0_157] : memref<9x16x16xbf16, #tpu.memory_space<vmem>>, vector<1x16x16xbf16>
    %168 = vector.shape_cast %167 : vector<1x16x16xbf16> to vector<16x16xbf16>
    %cst_158 = arith.constant dense<0.000000e+00> : vector<256x16xf32>
    %169 = tpu.matmul %166, %168, %cst_158 {dimension_numbers = #tpu.dot_dimension_numbers<[1], [0], [0], [1], [0, 0, 1, 1], [], []>} : vector<256x16xbf16>, vector<16x16xbf16>, vector<256x16xf32> -> vector<256x16xf32>
    %c257 = arith.constant 257 : index
    %c0_159 = arith.constant 0 : index
    %170 = vector.load %arg7[%c257, %c0_159] : memref<1222x16xbf16, #tpu.memory_space<vmem>>, vector<256x16xbf16>
    %c1_160 = arith.constant 1 : index
    %c0_161 = arith.constant 0 : index
    %c0_162 = arith.constant 0 : index
    %171 = vector.load %arg4[%c1_160, %c0_161, %c0_162] : memref<9x16x16xbf16, #tpu.memory_space<vmem>>, vector<1x16x16xbf16>
    %172 = vector.shape_cast %171 : vector<1x16x16xbf16> to vector<16x16xbf16>
    %cst_163 = arith.constant dense<0.000000e+00> : vector<256x16xf32>
    %173 = tpu.matmul %170, %172, %cst_163 {dimension_numbers = #tpu.dot_dimension_numbers<[1], [0], [0], [1], [0, 0, 1, 1], [], []>} : vector<256x16xbf16>, vector<16x16xbf16>, vector<256x16xf32> -> vector<256x16xf32>
    %174 = arith.addf %169, %173 : vector<256x16xf32>
    %c258 = arith.constant 258 : index
    %c0_164 = arith.constant 0 : index
    %175 = vector.load %arg7[%c258, %c0_164] : memref<1222x16xbf16, #tpu.memory_space<vmem>>, vector<256x16xbf16>
    %c2_165 = arith.constant 2 : index
    %c0_166 = arith.constant 0 : index
    %c0_167 = arith.constant 0 : index
    %176 = vector.load %arg4[%c2_165, %c0_166, %c0_167] : memref<9x16x16xbf16, #tpu.memory_space<vmem>>, vector<1x16x16xbf16>
    %177 = vector.shape_cast %176 : vector<1x16x16xbf16> to vector<16x16xbf16>
    %cst_168 = arith.constant dense<0.000000e+00> : vector<256x16xf32>
    %178 = tpu.matmul %175, %177, %cst_168 {dimension_numbers = #tpu.dot_dimension_numbers<[1], [0], [0], [1], [0, 0, 1, 1], [], []>} : vector<256x16xbf16>, vector<16x16xbf16>, vector<256x16xf32> -> vector<256x16xf32>
    %179 = arith.addf %174, %178 : vector<256x16xf32>
    %c292_169 = arith.constant 292 : index
    %c0_170 = arith.constant 0 : index
    %180 = vector.load %arg7[%c292_169, %c0_170] : memref<1222x16xbf16, #tpu.memory_space<vmem>>, vector<256x16xbf16>
    %c3_171 = arith.constant 3 : index
    %c0_172 = arith.constant 0 : index
    %c0_173 = arith.constant 0 : index
    %181 = vector.load %arg4[%c3_171, %c0_172, %c0_173] : memref<9x16x16xbf16, #tpu.memory_space<vmem>>, vector<1x16x16xbf16>
    %182 = vector.shape_cast %181 : vector<1x16x16xbf16> to vector<16x16xbf16>
    %cst_174 = arith.constant dense<0.000000e+00> : vector<256x16xf32>
    %183 = tpu.matmul %180, %182, %cst_174 {dimension_numbers = #tpu.dot_dimension_numbers<[1], [0], [0], [1], [0, 0, 1, 1], [], []>} : vector<256x16xbf16>, vector<16x16xbf16>, vector<256x16xf32> -> vector<256x16xf32>
    %184 = arith.addf %179, %183 : vector<256x16xf32>
    %c293 = arith.constant 293 : index
    %c0_175 = arith.constant 0 : index
    %185 = vector.load %arg7[%c293, %c0_175] : memref<1222x16xbf16, #tpu.memory_space<vmem>>, vector<256x16xbf16>
    %c4_176 = arith.constant 4 : index
    %c0_177 = arith.constant 0 : index
    %c0_178 = arith.constant 0 : index
    %186 = vector.load %arg4[%c4_176, %c0_177, %c0_178] : memref<9x16x16xbf16, #tpu.memory_space<vmem>>, vector<1x16x16xbf16>
    %187 = vector.shape_cast %186 : vector<1x16x16xbf16> to vector<16x16xbf16>
    %cst_179 = arith.constant dense<0.000000e+00> : vector<256x16xf32>
    %188 = tpu.matmul %185, %187, %cst_179 {dimension_numbers = #tpu.dot_dimension_numbers<[1], [0], [0], [1], [0, 0, 1, 1], [], []>} : vector<256x16xbf16>, vector<16x16xbf16>, vector<256x16xf32> -> vector<256x16xf32>
    %189 = arith.addf %184, %188 : vector<256x16xf32>
    %c294 = arith.constant 294 : index
    %c0_180 = arith.constant 0 : index
    %190 = vector.load %arg7[%c294, %c0_180] : memref<1222x16xbf16, #tpu.memory_space<vmem>>, vector<256x16xbf16>
    %c5_181 = arith.constant 5 : index
    %c0_182 = arith.constant 0 : index
    %c0_183 = arith.constant 0 : index
    %191 = vector.load %arg4[%c5_181, %c0_182, %c0_183] : memref<9x16x16xbf16, #tpu.memory_space<vmem>>, vector<1x16x16xbf16>
    %192 = vector.shape_cast %191 : vector<1x16x16xbf16> to vector<16x16xbf16>
    %cst_184 = arith.constant dense<0.000000e+00> : vector<256x16xf32>
    %193 = tpu.matmul %190, %192, %cst_184 {dimension_numbers = #tpu.dot_dimension_numbers<[1], [0], [0], [1], [0, 0, 1, 1], [], []>} : vector<256x16xbf16>, vector<16x16xbf16>, vector<256x16xf32> -> vector<256x16xf32>
    %194 = arith.addf %189, %193 : vector<256x16xf32>
    %c328_185 = arith.constant 328 : index
    %c0_186 = arith.constant 0 : index
    %195 = vector.load %arg7[%c328_185, %c0_186] : memref<1222x16xbf16, #tpu.memory_space<vmem>>, vector<256x16xbf16>
    %c6_187 = arith.constant 6 : index
    %c0_188 = arith.constant 0 : index
    %c0_189 = arith.constant 0 : index
    %196 = vector.load %arg4[%c6_187, %c0_188, %c0_189] : memref<9x16x16xbf16, #tpu.memory_space<vmem>>, vector<1x16x16xbf16>
    %197 = vector.shape_cast %196 : vector<1x16x16xbf16> to vector<16x16xbf16>
    %cst_190 = arith.constant dense<0.000000e+00> : vector<256x16xf32>
    %198 = tpu.matmul %195, %197, %cst_190 {dimension_numbers = #tpu.dot_dimension_numbers<[1], [0], [0], [1], [0, 0, 1, 1], [], []>} : vector<256x16xbf16>, vector<16x16xbf16>, vector<256x16xf32> -> vector<256x16xf32>
    %199 = arith.addf %194, %198 : vector<256x16xf32>
    %c329 = arith.constant 329 : index
    %c0_191 = arith.constant 0 : index
    %200 = vector.load %arg7[%c329, %c0_191] : memref<1222x16xbf16, #tpu.memory_space<vmem>>, vector<256x16xbf16>
    %c7_192 = arith.constant 7 : index
    %c0_193 = arith.constant 0 : index
    %c0_194 = arith.constant 0 : index
    %201 = vector.load %arg4[%c7_192, %c0_193, %c0_194] : memref<9x16x16xbf16, #tpu.memory_space<vmem>>, vector<1x16x16xbf16>
    %202 = vector.shape_cast %201 : vector<1x16x16xbf16> to vector<16x16xbf16>
    %cst_195 = arith.constant dense<0.000000e+00> : vector<256x16xf32>
    %203 = tpu.matmul %200, %202, %cst_195 {dimension_numbers = #tpu.dot_dimension_numbers<[1], [0], [0], [1], [0, 0, 1, 1], [], []>} : vector<256x16xbf16>, vector<16x16xbf16>, vector<256x16xf32> -> vector<256x16xf32>
    %204 = arith.addf %199, %203 : vector<256x16xf32>
    %c330 = arith.constant 330 : index
    %c0_196 = arith.constant 0 : index
    %205 = vector.load %arg7[%c330, %c0_196] : memref<1222x16xbf16, #tpu.memory_space<vmem>>, vector<256x16xbf16>
    %c8_197 = arith.constant 8 : index
    %c0_198 = arith.constant 0 : index
    %c0_199 = arith.constant 0 : index
    %206 = vector.load %arg4[%c8_197, %c0_198, %c0_199] : memref<9x16x16xbf16, #tpu.memory_space<vmem>>, vector<1x16x16xbf16>
    %207 = vector.shape_cast %206 : vector<1x16x16xbf16> to vector<16x16xbf16>
    %cst_200 = arith.constant dense<0.000000e+00> : vector<256x16xf32>
    %208 = tpu.matmul %205, %207, %cst_200 {dimension_numbers = #tpu.dot_dimension_numbers<[1], [0], [0], [1], [0, 0, 1, 1], [], []>} : vector<256x16xbf16>, vector<16x16xbf16>, vector<256x16xf32> -> vector<256x16xf32>
    %209 = arith.addf %204, %208 : vector<256x16xf32>
    %210 = vector.broadcast %1 : vector<1x16xf32> to vector<256x16xf32>
    %211 = arith.addf %209, %210 : vector<256x16xf32>
    %c0_201 = arith.constant 0 : index
    %c256_202 = arith.constant 256 : index
    %c0_203 = arith.constant 0 : index
    %212 = vector.load %arg6[%c0_201, %c256_202, %c0_203] : memref<1x1152x16xf32, #tpu.memory_space<vmem>>, vector<1x256x16xf32>
    %213 = vector.shape_cast %212 : vector<1x256x16xf32> to vector<256x16xf32>
    %214 = vector.shape_cast %211 : vector<256x16xf32> to vector<1x256x16xf32>
    tpu.vector_store %arg6[%c0_201, %c256_202, %c0_203], %214 {strides = array<i32>} : memref<1x1152x16xf32, #tpu.memory_space<vmem>>, vector<1x256x16xf32>,
    %c512_204 = arith.constant 512 : index
    %c0_205 = arith.constant 0 : index
    %215 = vector.load %arg7[%c512_204, %c0_205] : memref<1222x16xbf16, #tpu.memory_space<vmem>>, vector<256x16xbf16>
    %c0_206 = arith.constant 0 : index
    %c0_207 = arith.constant 0 : index
    %c0_208 = arith.constant 0 : index
    %216 = vector.load %arg4[%c0_206, %c0_207, %c0_208] : memref<9x16x16xbf16, #tpu.memory_space<vmem>>, vector<1x16x16xbf16>
    %217 = vector.shape_cast %216 : vector<1x16x16xbf16> to vector<16x16xbf16>
    %cst_209 = arith.constant dense<0.000000e+00> : vector<256x16xf32>
    %218 = tpu.matmul %215, %217, %cst_209 {dimension_numbers = #tpu.dot_dimension_numbers<[1], [0], [0], [1], [0, 0, 1, 1], [], []>} : vector<256x16xbf16>, vector<16x16xbf16>, vector<256x16xf32> -> vector<256x16xf32>
    %c513 = arith.constant 513 : index
    %c0_210 = arith.constant 0 : index
    %219 = vector.load %arg7[%c513, %c0_210] : memref<1222x16xbf16, #tpu.memory_space<vmem>>, vector<256x16xbf16>
    %c1_211 = arith.constant 1 : index
    %c0_212 = arith.constant 0 : index
    %c0_213 = arith.constant 0 : index
    %220 = vector.load %arg4[%c1_211, %c0_212, %c0_213] : memref<9x16x16xbf16, #tpu.memory_space<vmem>>, vector<1x16x16xbf16>
    %221 = vector.shape_cast %220 : vector<1x16x16xbf16> to vector<16x16xbf16>
    %cst_214 = arith.constant dense<0.000000e+00> : vector<256x16xf32>
    %222 = tpu.matmul %219, %221, %cst_214 {dimension_numbers = #tpu.dot_dimension_numbers<[1], [0], [0], [1], [0, 0, 1, 1], [], []>} : vector<256x16xbf16>, vector<16x16xbf16>, vector<256x16xf32> -> vector<256x16xf32>
    %223 = arith.addf %218, %222 : vector<256x16xf32>
    %c514 = arith.constant 514 : index
    %c0_215 = arith.constant 0 : index
    %224 = vector.load %arg7[%c514, %c0_215] : memref<1222x16xbf16, #tpu.memory_space<vmem>>, vector<256x16xbf16>
    %c2_216 = arith.constant 2 : index
    %c0_217 = arith.constant 0 : index
    %c0_218 = arith.constant 0 : index
    %225 = vector.load %arg4[%c2_216, %c0_217, %c0_218] : memref<9x16x16xbf16, #tpu.memory_space<vmem>>, vector<1x16x16xbf16>
    %226 = vector.shape_cast %225 : vector<1x16x16xbf16> to vector<16x16xbf16>
    %cst_219 = arith.constant dense<0.000000e+00> : vector<256x16xf32>
    %227 = tpu.matmul %224, %226, %cst_219 {dimension_numbers = #tpu.dot_dimension_numbers<[1], [0], [0], [1], [0, 0, 1, 1], [], []>} : vector<256x16xbf16>, vector<16x16xbf16>, vector<256x16xf32> -> vector<256x16xf32>
    %228 = arith.addf %223, %227 : vector<256x16xf32>
    %c548_220 = arith.constant 548 : index
    %c0_221 = arith.constant 0 : index
    %229 = vector.load %arg7[%c548_220, %c0_221] : memref<1222x16xbf16, #tpu.memory_space<vmem>>, vector<256x16xbf16>
    %c3_222 = arith.constant 3 : index
    %c0_223 = arith.constant 0 : index
    %c0_224 = arith.constant 0 : index
    %230 = vector.load %arg4[%c3_222, %c0_223, %c0_224] : memref<9x16x16xbf16, #tpu.memory_space<vmem>>, vector<1x16x16xbf16>
    %231 = vector.shape_cast %230 : vector<1x16x16xbf16> to vector<16x16xbf16>
    %cst_225 = arith.constant dense<0.000000e+00> : vector<256x16xf32>
    %232 = tpu.matmul %229, %231, %cst_225 {dimension_numbers = #tpu.dot_dimension_numbers<[1], [0], [0], [1], [0, 0, 1, 1], [], []>} : vector<256x16xbf16>, vector<16x16xbf16>, vector<256x16xf32> -> vector<256x16xf32>
    %233 = arith.addf %228, %232 : vector<256x16xf32>
    %c549 = arith.constant 549 : index
    %c0_226 = arith.constant 0 : index
    %234 = vector.load %arg7[%c549, %c0_226] : memref<1222x16xbf16, #tpu.memory_space<vmem>>, vector<256x16xbf16>
    %c4_227 = arith.constant 4 : index
    %c0_228 = arith.constant 0 : index
    %c0_229 = arith.constant 0 : index
    %235 = vector.load %arg4[%c4_227, %c0_228, %c0_229] : memref<9x16x16xbf16, #tpu.memory_space<vmem>>, vector<1x16x16xbf16>
    %236 = vector.shape_cast %235 : vector<1x16x16xbf16> to vector<16x16xbf16>
    %cst_230 = arith.constant dense<0.000000e+00> : vector<256x16xf32>
    %237 = tpu.matmul %234, %236, %cst_230 {dimension_numbers = #tpu.dot_dimension_numbers<[1], [0], [0], [1], [0, 0, 1, 1], [], []>} : vector<256x16xbf16>, vector<16x16xbf16>, vector<256x16xf32> -> vector<256x16xf32>
    %238 = arith.addf %233, %237 : vector<256x16xf32>
    %c550 = arith.constant 550 : index
    %c0_231 = arith.constant 0 : index
    %239 = vector.load %arg7[%c550, %c0_231] : memref<1222x16xbf16, #tpu.memory_space<vmem>>, vector<256x16xbf16>
    %c5_232 = arith.constant 5 : index
    %c0_233 = arith.constant 0 : index
    %c0_234 = arith.constant 0 : index
    %240 = vector.load %arg4[%c5_232, %c0_233, %c0_234] : memref<9x16x16xbf16, #tpu.memory_space<vmem>>, vector<1x16x16xbf16>
    %241 = vector.shape_cast %240 : vector<1x16x16xbf16> to vector<16x16xbf16>
    %cst_235 = arith.constant dense<0.000000e+00> : vector<256x16xf32>
    %242 = tpu.matmul %239, %241, %cst_235 {dimension_numbers = #tpu.dot_dimension_numbers<[1], [0], [0], [1], [0, 0, 1, 1], [], []>} : vector<256x16xbf16>, vector<16x16xbf16>, vector<256x16xf32> -> vector<256x16xf32>
    %243 = arith.addf %238, %242 : vector<256x16xf32>
    %c584_236 = arith.constant 584 : index
    %c0_237 = arith.constant 0 : index
    %244 = vector.load %arg7[%c584_236, %c0_237] : memref<1222x16xbf16, #tpu.memory_space<vmem>>, vector<256x16xbf16>
    %c6_238 = arith.constant 6 : index
    %c0_239 = arith.constant 0 : index
    %c0_240 = arith.constant 0 : index
    %245 = vector.load %arg4[%c6_238, %c0_239, %c0_240] : memref<9x16x16xbf16, #tpu.memory_space<vmem>>, vector<1x16x16xbf16>
    %246 = vector.shape_cast %245 : vector<1x16x16xbf16> to vector<16x16xbf16>
    %cst_241 = arith.constant dense<0.000000e+00> : vector<256x16xf32>
    %247 = tpu.matmul %244, %246, %cst_241 {dimension_numbers = #tpu.dot_dimension_numbers<[1], [0], [0], [1], [0, 0, 1, 1], [], []>} : vector<256x16xbf16>, vector<16x16xbf16>, vector<256x16xf32> -> vector<256x16xf32>
    %248 = arith.addf %243, %247 : vector<256x16xf32>
    %c585 = arith.constant 585 : index
    %c0_242 = arith.constant 0 : index
    %249 = vector.load %arg7[%c585, %c0_242] : memref<1222x16xbf16, #tpu.memory_space<vmem>>, vector<256x16xbf16>
    %c7_243 = arith.constant 7 : index
    %c0_244 = arith.constant 0 : index
    %c0_245 = arith.constant 0 : index
    %250 = vector.load %arg4[%c7_243, %c0_244, %c0_245] : memref<9x16x16xbf16, #tpu.memory_space<vmem>>, vector<1x16x16xbf16>
    %251 = vector.shape_cast %250 : vector<1x16x16xbf16> to vector<16x16xbf16>
    %cst_246 = arith.constant dense<0.000000e+00> : vector<256x16xf32>
    %252 = tpu.matmul %249, %251, %cst_246 {dimension_numbers = #tpu.dot_dimension_numbers<[1], [0], [0], [1], [0, 0, 1, 1], [], []>} : vector<256x16xbf16>, vector<16x16xbf16>, vector<256x16xf32> -> vector<256x16xf32>
    %253 = arith.addf %248, %252 : vector<256x16xf32>
    %c586 = arith.constant 586 : index
    %c0_247 = arith.constant 0 : index
    %254 = vector.load %arg7[%c586, %c0_247] : memref<1222x16xbf16, #tpu.memory_space<vmem>>, vector<256x16xbf16>
    %c8_248 = arith.constant 8 : index
    %c0_249 = arith.constant 0 : index
    %c0_250 = arith.constant 0 : index
    %255 = vector.load %arg4[%c8_248, %c0_249, %c0_250] : memref<9x16x16xbf16, #tpu.memory_space<vmem>>, vector<1x16x16xbf16>
    %256 = vector.shape_cast %255 : vector<1x16x16xbf16> to vector<16x16xbf16>
    %cst_251 = arith.constant dense<0.000000e+00> : vector<256x16xf32>
    %257 = tpu.matmul %254, %256, %cst_251 {dimension_numbers = #tpu.dot_dimension_numbers<[1], [0], [0], [1], [0, 0, 1, 1], [], []>} : vector<256x16xbf16>, vector<16x16xbf16>, vector<256x16xf32> -> vector<256x16xf32>
    %258 = arith.addf %253, %257 : vector<256x16xf32>
    %259 = vector.broadcast %1 : vector<1x16xf32> to vector<256x16xf32>
    %260 = arith.addf %258, %259 : vector<256x16xf32>
    %c0_252 = arith.constant 0 : index
    %c512_253 = arith.constant 512 : index
    %c0_254 = arith.constant 0 : index
    %261 = vector.load %arg6[%c0_252, %c512_253, %c0_254] : memref<1x1152x16xf32, #tpu.memory_space<vmem>>, vector<1x256x16xf32>
    %262 = vector.shape_cast %261 : vector<1x256x16xf32> to vector<256x16xf32>
    %263 = vector.shape_cast %260 : vector<256x16xf32> to vector<1x256x16xf32>
    tpu.vector_store %arg6[%c0_252, %c512_253, %c0_254], %263 {strides = array<i32>} : memref<1x1152x16xf32, #tpu.memory_space<vmem>>, vector<1x256x16xf32>,
    %c768_255 = arith.constant 768 : index
    %c0_256 = arith.constant 0 : index
    %264 = vector.load %arg7[%c768_255, %c0_256] : memref<1222x16xbf16, #tpu.memory_space<vmem>>, vector<256x16xbf16>
    %c0_257 = arith.constant 0 : index
    %c0_258 = arith.constant 0 : index
    %c0_259 = arith.constant 0 : index
    %265 = vector.load %arg4[%c0_257, %c0_258, %c0_259] : memref<9x16x16xbf16, #tpu.memory_space<vmem>>, vector<1x16x16xbf16>
    %266 = vector.shape_cast %265 : vector<1x16x16xbf16> to vector<16x16xbf16>
    %cst_260 = arith.constant dense<0.000000e+00> : vector<256x16xf32>
    %267 = tpu.matmul %264, %266, %cst_260 {dimension_numbers = #tpu.dot_dimension_numbers<[1], [0], [0], [1], [0, 0, 1, 1], [], []>} : vector<256x16xbf16>, vector<16x16xbf16>, vector<256x16xf32> -> vector<256x16xf32>
    %c769 = arith.constant 769 : index
    %c0_261 = arith.constant 0 : index
    %268 = vector.load %arg7[%c769, %c0_261] : memref<1222x16xbf16, #tpu.memory_space<vmem>>, vector<256x16xbf16>
    %c1_262 = arith.constant 1 : index
    %c0_263 = arith.constant 0 : index
    %c0_264 = arith.constant 0 : index
    %269 = vector.load %arg4[%c1_262, %c0_263, %c0_264] : memref<9x16x16xbf16, #tpu.memory_space<vmem>>, vector<1x16x16xbf16>
    %270 = vector.shape_cast %269 : vector<1x16x16xbf16> to vector<16x16xbf16>
    %cst_265 = arith.constant dense<0.000000e+00> : vector<256x16xf32>
    %271 = tpu.matmul %268, %270, %cst_265 {dimension_numbers = #tpu.dot_dimension_numbers<[1], [0], [0], [1], [0, 0, 1, 1], [], []>} : vector<256x16xbf16>, vector<16x16xbf16>, vector<256x16xf32> -> vector<256x16xf32>
    %272 = arith.addf %267, %271 : vector<256x16xf32>
    %c770 = arith.constant 770 : index
    %c0_266 = arith.constant 0 : index
    %273 = vector.load %arg7[%c770, %c0_266] : memref<1222x16xbf16, #tpu.memory_space<vmem>>, vector<256x16xbf16>
    %c2_267 = arith.constant 2 : index
    %c0_268 = arith.constant 0 : index
    %c0_269 = arith.constant 0 : index
    %274 = vector.load %arg4[%c2_267, %c0_268, %c0_269] : memref<9x16x16xbf16, #tpu.memory_space<vmem>>, vector<1x16x16xbf16>
    %275 = vector.shape_cast %274 : vector<1x16x16xbf16> to vector<16x16xbf16>
    %cst_270 = arith.constant dense<0.000000e+00> : vector<256x16xf32>
    %276 = tpu.matmul %273, %275, %cst_270 {dimension_numbers = #tpu.dot_dimension_numbers<[1], [0], [0], [1], [0, 0, 1, 1], [], []>} : vector<256x16xbf16>, vector<16x16xbf16>, vector<256x16xf32> -> vector<256x16xf32>
    %277 = arith.addf %272, %276 : vector<256x16xf32>
    %c804_271 = arith.constant 804 : index
    %c0_272 = arith.constant 0 : index
    %278 = vector.load %arg7[%c804_271, %c0_272] : memref<1222x16xbf16, #tpu.memory_space<vmem>>, vector<256x16xbf16>
    %c3_273 = arith.constant 3 : index
    %c0_274 = arith.constant 0 : index
    %c0_275 = arith.constant 0 : index
    %279 = vector.load %arg4[%c3_273, %c0_274, %c0_275] : memref<9x16x16xbf16, #tpu.memory_space<vmem>>, vector<1x16x16xbf16>
    %280 = vector.shape_cast %279 : vector<1x16x16xbf16> to vector<16x16xbf16>
    %cst_276 = arith.constant dense<0.000000e+00> : vector<256x16xf32>
    %281 = tpu.matmul %278, %280, %cst_276 {dimension_numbers = #tpu.dot_dimension_numbers<[1], [0], [0], [1], [0, 0, 1, 1], [], []>} : vector<256x16xbf16>, vector<16x16xbf16>, vector<256x16xf32> -> vector<256x16xf32>
    %282 = arith.addf %277, %281 : vector<256x16xf32>
    %c805 = arith.constant 805 : index
    %c0_277 = arith.constant 0 : index
    %283 = vector.load %arg7[%c805, %c0_277] : memref<1222x16xbf16, #tpu.memory_space<vmem>>, vector<256x16xbf16>
    %c4_278 = arith.constant 4 : index
    %c0_279 = arith.constant 0 : index
    %c0_280 = arith.constant 0 : index
    %284 = vector.load %arg4[%c4_278, %c0_279, %c0_280] : memref<9x16x16xbf16, #tpu.memory_space<vmem>>, vector<1x16x16xbf16>
    %285 = vector.shape_cast %284 : vector<1x16x16xbf16> to vector<16x16xbf16>
    %cst_281 = arith.constant dense<0.000000e+00> : vector<256x16xf32>
    %286 = tpu.matmul %283, %285, %cst_281 {dimension_numbers = #tpu.dot_dimension_numbers<[1], [0], [0], [1], [0, 0, 1, 1], [], []>} : vector<256x16xbf16>, vector<16x16xbf16>, vector<256x16xf32> -> vector<256x16xf32>
    %287 = arith.addf %282, %286 : vector<256x16xf32>
    %c806 = arith.constant 806 : index
    %c0_282 = arith.constant 0 : index
    %288 = vector.load %arg7[%c806, %c0_282] : memref<1222x16xbf16, #tpu.memory_space<vmem>>, vector<256x16xbf16>
    %c5_283 = arith.constant 5 : index
    %c0_284 = arith.constant 0 : index
    %c0_285 = arith.constant 0 : index
    %289 = vector.load %arg4[%c5_283, %c0_284, %c0_285] : memref<9x16x16xbf16, #tpu.memory_space<vmem>>, vector<1x16x16xbf16>
    %290 = vector.shape_cast %289 : vector<1x16x16xbf16> to vector<16x16xbf16>
    %cst_286 = arith.constant dense<0.000000e+00> : vector<256x16xf32>
    %291 = tpu.matmul %288, %290, %cst_286 {dimension_numbers = #tpu.dot_dimension_numbers<[1], [0], [0], [1], [0, 0, 1, 1], [], []>} : vector<256x16xbf16>, vector<16x16xbf16>, vector<256x16xf32> -> vector<256x16xf32>
    %292 = arith.addf %287, %291 : vector<256x16xf32>
    %c840_287 = arith.constant 840 : index
    %c0_288 = arith.constant 0 : index
    %293 = vector.load %arg7[%c840_287, %c0_288] : memref<1222x16xbf16, #tpu.memory_space<vmem>>, vector<256x16xbf16>
    %c6_289 = arith.constant 6 : index
    %c0_290 = arith.constant 0 : index
    %c0_291 = arith.constant 0 : index
    %294 = vector.load %arg4[%c6_289, %c0_290, %c0_291] : memref<9x16x16xbf16, #tpu.memory_space<vmem>>, vector<1x16x16xbf16>
    %295 = vector.shape_cast %294 : vector<1x16x16xbf16> to vector<16x16xbf16>
    %cst_292 = arith.constant dense<0.000000e+00> : vector<256x16xf32>
    %296 = tpu.matmul %293, %295, %cst_292 {dimension_numbers = #tpu.dot_dimension_numbers<[1], [0], [0], [1], [0, 0, 1, 1], [], []>} : vector<256x16xbf16>, vector<16x16xbf16>, vector<256x16xf32> -> vector<256x16xf32>
    %297 = arith.addf %292, %296 : vector<256x16xf32>
    %c841 = arith.constant 841 : index
    %c0_293 = arith.constant 0 : index
    %298 = vector.load %arg7[%c841, %c0_293] : memref<1222x16xbf16, #tpu.memory_space<vmem>>, vector<256x16xbf16>
    %c7_294 = arith.constant 7 : index
    %c0_295 = arith.constant 0 : index
    %c0_296 = arith.constant 0 : index
    %299 = vector.load %arg4[%c7_294, %c0_295, %c0_296] : memref<9x16x16xbf16, #tpu.memory_space<vmem>>, vector<1x16x16xbf16>
    %300 = vector.shape_cast %299 : vector<1x16x16xbf16> to vector<16x16xbf16>
    %cst_297 = arith.constant dense<0.000000e+00> : vector<256x16xf32>
    %301 = tpu.matmul %298, %300, %cst_297 {dimension_numbers = #tpu.dot_dimension_numbers<[1], [0], [0], [1], [0, 0, 1, 1], [], []>} : vector<256x16xbf16>, vector<16x16xbf16>, vector<256x16xf32> -> vector<256x16xf32>
    %302 = arith.addf %297, %301 : vector<256x16xf32>
    %c842 = arith.constant 842 : index
    %c0_298 = arith.constant 0 : index
    %303 = vector.load %arg7[%c842, %c0_298] : memref<1222x16xbf16, #tpu.memory_space<vmem>>, vector<256x16xbf16>
    %c8_299 = arith.constant 8 : index
    %c0_300 = arith.constant 0 : index
    %c0_301 = arith.constant 0 : index
    %304 = vector.load %arg4[%c8_299, %c0_300, %c0_301] : memref<9x16x16xbf16, #tpu.memory_space<vmem>>, vector<1x16x16xbf16>
    %305 = vector.shape_cast %304 : vector<1x16x16xbf16> to vector<16x16xbf16>
    %cst_302 = arith.constant dense<0.000000e+00> : vector<256x16xf32>
    %306 = tpu.matmul %303, %305, %cst_302 {dimension_numbers = #tpu.dot_dimension_numbers<[1], [0], [0], [1], [0, 0, 1, 1], [], []>} : vector<256x16xbf16>, vector<16x16xbf16>, vector<256x16xf32> -> vector<256x16xf32>
    %307 = arith.addf %302, %306 : vector<256x16xf32>
    %308 = vector.broadcast %1 : vector<1x16xf32> to vector<256x16xf32>
    %309 = arith.addf %307, %308 : vector<256x16xf32>
    %c0_303 = arith.constant 0 : index
    %c768_304 = arith.constant 768 : index
    %c0_305 = arith.constant 0 : index
    %310 = vector.load %arg6[%c0_303, %c768_304, %c0_305] : memref<1x1152x16xf32, #tpu.memory_space<vmem>>, vector<1x256x16xf32>
    %311 = vector.shape_cast %310 : vector<1x256x16xf32> to vector<256x16xf32>
    %312 = vector.shape_cast %309 : vector<256x16xf32> to vector<1x256x16xf32>
    tpu.vector_store %arg6[%c0_303, %c768_304, %c0_305], %312 {strides = array<i32>} : memref<1x1152x16xf32, #tpu.memory_space<vmem>>, vector<1x256x16xf32>,
    %c1024_306 = arith.constant 1024 : index
    %c0_307 = arith.constant 0 : index
    %313 = vector.load %arg7[%c1024_306, %c0_307] : memref<1222x16xbf16, #tpu.memory_space<vmem>>, vector<124x16xbf16>
    %c0_308 = arith.constant 0 : index
    %c0_309 = arith.constant 0 : index
    %c0_310 = arith.constant 0 : index
    %314 = vector.load %arg4[%c0_308, %c0_309, %c0_310] : memref<9x16x16xbf16, #tpu.memory_space<vmem>>, vector<1x16x16xbf16>
    %315 = vector.shape_cast %314 : vector<1x16x16xbf16> to vector<16x16xbf16>
    %cst_311 = arith.constant dense<0.000000e+00> : vector<124x16xf32>
    %316 = tpu.matmul %313, %315, %cst_311 {dimension_numbers = #tpu.dot_dimension_numbers<[1], [0], [0], [1], [0, 0, 1, 1], [], []>} : vector<124x16xbf16>, vector<16x16xbf16>, vector<124x16xf32> -> vector<124x16xf32>
    %c1025 = arith.constant 1025 : index
    %c0_312 = arith.constant 0 : index
    %317 = vector.load %arg7[%c1025, %c0_312] : memref<1222x16xbf16, #tpu.memory_space<vmem>>, vector<124x16xbf16>
    %c1_313 = arith.constant 1 : index
    %c0_314 = arith.constant 0 : index
    %c0_315 = arith.constant 0 : index
    %318 = vector.load %arg4[%c1_313, %c0_314, %c0_315] : memref<9x16x16xbf16, #tpu.memory_space<vmem>>, vector<1x16x16xbf16>
    %319 = vector.shape_cast %318 : vector<1x16x16xbf16> to vector<16x16xbf16>
    %cst_316 = arith.constant dense<0.000000e+00> : vector<124x16xf32>
    %320 = tpu.matmul %317, %319, %cst_316 {dimension_numbers = #tpu.dot_dimension_numbers<[1], [0], [0], [1], [0, 0, 1, 1], [], []>} : vector<124x16xbf16>, vector<16x16xbf16>, vector<124x16xf32> -> vector<124x16xf32>
    %321 = arith.addf %316, %320 : vector<124x16xf32>
    %c1026 = arith.constant 1026 : index
    %c0_317 = arith.constant 0 : index
    %322 = vector.load %arg7[%c1026, %c0_317] : memref<1222x16xbf16, #tpu.memory_space<vmem>>, vector<124x16xbf16>
    %c2_318 = arith.constant 2 : index
    %c0_319 = arith.constant 0 : index
    %c0_320 = arith.constant 0 : index
    %323 = vector.load %arg4[%c2_318, %c0_319, %c0_320] : memref<9x16x16xbf16, #tpu.memory_space<vmem>>, vector<1x16x16xbf16>
    %324 = vector.shape_cast %323 : vector<1x16x16xbf16> to vector<16x16xbf16>
    %cst_321 = arith.constant dense<0.000000e+00> : vector<124x16xf32>
    %325 = tpu.matmul %322, %324, %cst_321 {dimension_numbers = #tpu.dot_dimension_numbers<[1], [0], [0], [1], [0, 0, 1, 1], [], []>} : vector<124x16xbf16>, vector<16x16xbf16>, vector<124x16xf32> -> vector<124x16xf32>
    %326 = arith.addf %321, %325 : vector<124x16xf32>
    %c1060_322 = arith.constant 1060 : index
    %c0_323 = arith.constant 0 : index
    %327 = vector.load %arg7[%c1060_322, %c0_323] : memref<1222x16xbf16, #tpu.memory_space<vmem>>, vector<124x16xbf16>
    %c3_324 = arith.constant 3 : index
    %c0_325 = arith.constant 0 : index
    %c0_326 = arith.constant 0 : index
    %328 = vector.load %arg4[%c3_324, %c0_325, %c0_326] : memref<9x16x16xbf16, #tpu.memory_space<vmem>>, vector<1x16x16xbf16>
    %329 = vector.shape_cast %328 : vector<1x16x16xbf16> to vector<16x16xbf16>
    %cst_327 = arith.constant dense<0.000000e+00> : vector<124x16xf32>
    %330 = tpu.matmul %327, %329, %cst_327 {dimension_numbers = #tpu.dot_dimension_numbers<[1], [0], [0], [1], [0, 0, 1, 1], [], []>} : vector<124x16xbf16>, vector<16x16xbf16>, vector<124x16xf32> -> vector<124x16xf32>
    %331 = arith.addf %326, %330 : vector<124x16xf32>
    %c1061 = arith.constant 1061 : index
    %c0_328 = arith.constant 0 : index
    %332 = vector.load %arg7[%c1061, %c0_328] : memref<1222x16xbf16, #tpu.memory_space<vmem>>, vector<124x16xbf16>
    %c4_329 = arith.constant 4 : index
    %c0_330 = arith.constant 0 : index
    %c0_331 = arith.constant 0 : index
    %333 = vector.load %arg4[%c4_329, %c0_330, %c0_331] : memref<9x16x16xbf16, #tpu.memory_space<vmem>>, vector<1x16x16xbf16>
    %334 = vector.shape_cast %333 : vector<1x16x16xbf16> to vector<16x16xbf16>
    %cst_332 = arith.constant dense<0.000000e+00> : vector<124x16xf32>
    %335 = tpu.matmul %332, %334, %cst_332 {dimension_numbers = #tpu.dot_dimension_numbers<[1], [0], [0], [1], [0, 0, 1, 1], [], []>} : vector<124x16xbf16>, vector<16x16xbf16>, vector<124x16xf32> -> vector<124x16xf32>
    %336 = arith.addf %331, %335 : vector<124x16xf32>
    %c1062 = arith.constant 1062 : index
    %c0_333 = arith.constant 0 : index
    %337 = vector.load %arg7[%c1062, %c0_333] : memref<1222x16xbf16, #tpu.memory_space<vmem>>, vector<124x16xbf16>
    %c5_334 = arith.constant 5 : index
    %c0_335 = arith.constant 0 : index
    %c0_336 = arith.constant 0 : index
    %338 = vector.load %arg4[%c5_334, %c0_335, %c0_336] : memref<9x16x16xbf16, #tpu.memory_space<vmem>>, vector<1x16x16xbf16>
    %339 = vector.shape_cast %338 : vector<1x16x16xbf16> to vector<16x16xbf16>
    %cst_337 = arith.constant dense<0.000000e+00> : vector<124x16xf32>
    %340 = tpu.matmul %337, %339, %cst_337 {dimension_numbers = #tpu.dot_dimension_numbers<[1], [0], [0], [1], [0, 0, 1, 1], [], []>} : vector<124x16xbf16>, vector<16x16xbf16>, vector<124x16xf32> -> vector<124x16xf32>
    %341 = arith.addf %336, %340 : vector<124x16xf32>
    %c1096_338 = arith.constant 1096 : index
    %c0_339 = arith.constant 0 : index
    %342 = vector.load %arg7[%c1096_338, %c0_339] : memref<1222x16xbf16, #tpu.memory_space<vmem>>, vector<124x16xbf16>
    %c6_340 = arith.constant 6 : index
    %c0_341 = arith.constant 0 : index
    %c0_342 = arith.constant 0 : index
    %343 = vector.load %arg4[%c6_340, %c0_341, %c0_342] : memref<9x16x16xbf16, #tpu.memory_space<vmem>>, vector<1x16x16xbf16>
    %344 = vector.shape_cast %343 : vector<1x16x16xbf16> to vector<16x16xbf16>
    %cst_343 = arith.constant dense<0.000000e+00> : vector<124x16xf32>
    %345 = tpu.matmul %342, %344, %cst_343 {dimension_numbers = #tpu.dot_dimension_numbers<[1], [0], [0], [1], [0, 0, 1, 1], [], []>} : vector<124x16xbf16>, vector<16x16xbf16>, vector<124x16xf32> -> vector<124x16xf32>
    %346 = arith.addf %341, %345 : vector<124x16xf32>
    %c1097 = arith.constant 1097 : index
    %c0_344 = arith.constant 0 : index
    %347 = vector.load %arg7[%c1097, %c0_344] : memref<1222x16xbf16, #tpu.memory_space<vmem>>, vector<124x16xbf16>
    %c7_345 = arith.constant 7 : index
    %c0_346 = arith.constant 0 : index
    %c0_347 = arith.constant 0 : index
    %348 = vector.load %arg4[%c7_345, %c0_346, %c0_347] : memref<9x16x16xbf16, #tpu.memory_space<vmem>>, vector<1x16x16xbf16>
    %349 = vector.shape_cast %348 : vector<1x16x16xbf16> to vector<16x16xbf16>
    %cst_348 = arith.constant dense<0.000000e+00> : vector<124x16xf32>
    %350 = tpu.matmul %347, %349, %cst_348 {dimension_numbers = #tpu.dot_dimension_numbers<[1], [0], [0], [1], [0, 0, 1, 1], [], []>} : vector<124x16xbf16>, vector<16x16xbf16>, vector<124x16xf32> -> vector<124x16xf32>
    %351 = arith.addf %346, %350 : vector<124x16xf32>
    %c1098 = arith.constant 1098 : index
    %c0_349 = arith.constant 0 : index
    %352 = vector.load %arg7[%c1098, %c0_349] : memref<1222x16xbf16, #tpu.memory_space<vmem>>, vector<124x16xbf16>
    %c8_350 = arith.constant 8 : index
    %c0_351 = arith.constant 0 : index
    %c0_352 = arith.constant 0 : index
    %353 = vector.load %arg4[%c8_350, %c0_351, %c0_352] : memref<9x16x16xbf16, #tpu.memory_space<vmem>>, vector<1x16x16xbf16>
    %354 = vector.shape_cast %353 : vector<1x16x16xbf16> to vector<16x16xbf16>
    %cst_353 = arith.constant dense<0.000000e+00> : vector<124x16xf32>
    %355 = tpu.matmul %352, %354, %cst_353 {dimension_numbers = #tpu.dot_dimension_numbers<[1], [0], [0], [1], [0, 0, 1, 1], [], []>} : vector<124x16xbf16>, vector<16x16xbf16>, vector<124x16xf32> -> vector<124x16xf32>
    %356 = arith.addf %351, %355 : vector<124x16xf32>
    %357 = vector.broadcast %1 : vector<1x16xf32> to vector<124x16xf32>
    %358 = arith.addf %356, %357 : vector<124x16xf32>
    %c0_354 = arith.constant 0 : index
    %c1024_355 = arith.constant 1024 : index
    %c0_356 = arith.constant 0 : index
    %359 = vector.load %arg6[%c0_354, %c1024_355, %c0_356] : memref<1x1152x16xf32, #tpu.memory_space<vmem>>, vector<1x124x16xf32>
    %360 = vector.shape_cast %359 : vector<1x124x16xf32> to vector<124x16xf32>
    %361 = vector.shape_cast %358 : vector<124x16xf32> to vector<1x124x16xf32>
    tpu.vector_store %arg6[%c0_354, %c1024_355, %c0_356], %361 {strides = array<i32>} : memref<1x1152x16xf32, #tpu.memory_space<vmem>>, vector<1x124x16xf32>,
    return
  }
  func.func @transform_0(%arg0: i32) -> (i32, i32, i32) {
    %c0_i32 = arith.constant 0 : i32
    %c0_i32_0 = arith.constant 0 : i32
    %c0_i32_1 = arith.constant 0 : i32
    return %arg0, %c0_i32, %c0_i32_0 : i32, i32, i32
  }
  func.func @transform_1(%arg0: i32) -> (i32, i32, i32) {
    %c0_i32 = arith.constant 0 : i32
    %c0_i32_0 = arith.constant 0 : i32
    %c0_i32_1 = arith.constant 0 : i32
    %c0_i32_2 = arith.constant 0 : i32
    return %c0_i32, %c0_i32_0, %c0_i32_1 : i32, i32, i32
  }
  func.func @transform_2(%arg0: i32) -> (i32, i32) {
    %c0_i32 = arith.constant 0 : i32
    %c0_i32_0 = arith.constant 0 : i32
    %c0_i32_1 = arith.constant 0 : i32
    return %c0_i32, %c0_i32_0 : i32, i32
  }
  func.func @transform_3(%arg0: i32) -> (i32, i32, i32) {
    %c0_i32 = arith.constant 0 : i32
    %c0_i32_0 = arith.constant 0 : i32
    %c0_i32_1 = arith.constant 0 : i32
    %c0_i32_2 = arith.constant 0 : i32
    return %c0_i32, %c0_i32_0, %c0_i32_1 : i32, i32, i32
  }
  func.func @transform_4(%arg0: i32) -> (i32, i32) {
    %c0_i32 = arith.constant 0 : i32
    %c0_i32_0 = arith.constant 0 : i32
    %c0_i32_1 = arith.constant 0 : i32
    return %c0_i32, %c0_i32_0 : i32, i32
  }
  func.func @transform_5(%arg0: i32) -> (i32, i32, i32) {
    %c0_i32 = arith.constant 0 : i32
    %c0_i32_0 = arith.constant 0 : i32
    %c0_i32_1 = arith.constant 0 : i32
    return %arg0, %c0_i32, %c0_i32_0 : i32, i32, i32
  }
}

</mosaic_0001>

<bundles_post_ra>
// kernel: tpu_custom_call.1
= control target key start
LH: loop header
LB: loop body
LE: loop exit
PB: predicated region body
PF: predicated region fallthrough
CT: control target
= control target key end

     0   :  { %10 = vsyncpa [#allocation4], 0  ;;  %s32563_s0 = inlined_call_operand.vmem [shape: bf16[2,1294,9], index: 0, kind: input, shape index: {}]   ;;  %s32564_s1 = inlined_call_operand.vmem [shape: bf16[3,9,16], index: 1, kind: input, shape index: {}]   ;;  %s32565_s2 = inlined_call_operand.hbm [shape: f32[1,16], index: 2, kind: input, shape index: {}]   ;;  %s32566_s3 = inlined_call_operand.hbm [shape: bf16[9,16,16], index: 3, kind: input, shape index: {}]   ;;  %s32567_s4 = inlined_call_operand.hbm [shape: f32[1,16], index: 4, kind: input, shape index: {}]   ;;  %s32568_s5 = inlined_call_operand.vmem [shape: f32[2,1152,16], index: 5, kind: output, shape index: {}]  }
   0x1   :  { %11 = vsyncpa [#allocation6], 0  ;;  %s27897_s18 = smov 0  }
   0x2 LB: > { %s27859_s19 = smov [#allocation5]   ;;  %s27903_s21 = sadd.s32 4294967295, %s27857_s18   ;;  %s27857_s18 = sphi %s27897_s18, %s17_s18  }
   0x3   : > { %s184_s20 = sshll.u32 %s27859_s19, 4  ;;  %p20940_p0 = scmp.ge.s32.totalorder %s27857_s18, 1  ;;  %s27912_s20 = int_to_ptr.vmem [resolvable:$true] %s184_s20 }
   0x4   : > { %p158_p1 = scmp.lt.s32.totalorder %s27857_s18, 3  ;;  %p27045_p2 = scmp.eq.s32.totalorder %s27903_s21, 0 }
   0x5   : > { %s27860_s23 = smov [#allocation3]   ;;  %s27861_s26 = smov [#allocation7]  }
   0x6   : > { %p27908_p3 = pnand %p20940_p0, %p158_p1  ;;  %s174_s24 = sshll.u32 %s27860_s23, 4  ;;  %s27922_s24 = int_to_ptr.vmem [resolvable:$true] %s174_s24 }
   0x7   : > { %s198_s27 = sshll.u32 %s27861_s26, 4  ;;  %s27759_s30 = scalar_lea.hbm %s32566_s3, 1152  ;;  %s27924_s27 = int_to_ptr.vmem [resolvable:$true] %s198_s27 }
   0x8   : > { %p27035_p4 = pneg %p27908_p3  ;;  %p27760_p6 = scmp.ne.s32.totalorder %s32566_s3, %s27759_s30 }
   0x9   : > { %p27766_p10 = scmp.lt.u32.totalorder %s27759_s30, %s32566_s3 }
   0xa   : > { %p27918_p5 = pnand %p27045_p2, %p27035_p4 }
   0xc   : > { %p27934_p7 = pneg %p27918_p5 }
   0xe   : > { %p27762_p8 = pnand %p27934_p7, %p27760_p6 }
  0x10   : > { %p27763_p9 = pneg %p27762_p8 }
  0x12   : > { %p27768_p11 = pnand %p27766_p10, %p27763_p9 }
  0x14   : > { %27771 = shalt.err (!%p27768_p11)
}
  0x15   : > { %s27772_s11 = scalar_lea.vmem %s27912_s20, 1152  ;;  %p27780_p1 = scmp.lt.s32.totalorder %s27912_s20, %s27912_s20 }
  0x16   : > { %p27773_p12 = scmp.ne.s32.totalorder %s27912_s20, %s27772_s11  ;;  %p27781_p4 = scmp.lt.s32.totalorder %s27772_s11, %s27772_s11 }
  0x18   : > { %p27775_p13 = pnand %p27773_p12, %p27934_p7  ;;  %p27782_p6 = por %p27781_p4, %p27780_p1 }
  0x1a   : > { %p27776_p0 = pneg %p27775_p13 }
  0x1c   : > { %p27783_p8 = pnand %p27782_p6, %p27776_p0 }
  0x1e   : > { %27786 = shalt.err (!%p27783_p8)
}
  0x1f   : > { %s27862_s12 = smov 64   ;;  %s27863_s13 = smov 4  }
  0x20   : > { %27041 = dma.hbm_to_vmem [thread:$0]  (!%p27918_p5), %s32566_s3, 1152, %s27912_s20, [#allocation6], %s27862_s12, %s27862_s12, %s27863_s13  }
  0x21   : > { %s27787_s19 = scalar_lea.hbm %s32565_s2, 16 }
  0x22   : > { %p27788_p9 = scmp.ne.s32.totalorder %s32565_s2, %s27787_s19  ;;  %p27794_p12 = scmp.lt.u32.totalorder %s27787_s19, %s32565_s2 }
  0x24   : > { %p27790_p10 = pnand %p27788_p9, %p27934_p7 }
  0x26   : > { %p27791_p11 = pneg %p27790_p10 }
  0x28   : > { %p27796_p13 = pnand %p27794_p12, %p27791_p11 }
  0x2a   : > { %27799 = shalt.err (!%p27796_p13)
}
  0x2b   : > { %s27800_s20 = scalar_lea.vmem %s27922_s24, 16  ;;  %s27807_s30 = scalar_lea.vmem %s27922_s24, 32 }
  0x2c   : > { %p27801_p0 = scmp.ne.s32.totalorder %s27922_s24, %s27800_s20  ;;  %p27808_p6 = scmp.lt.s32.totalorder %s27922_s24, %s27922_s24 }
  0x2d   : > { %p27809_p8 = scmp.lt.s32.totalorder %s27807_s30, %s27800_s20 }
  0x2e   : > { %p27803_p1 = pnand %p27801_p0, %p27934_p7 }
  0x2f   : > { %p27810_p9 = por %p27809_p8, %p27808_p6 }
  0x30   : > { %p27804_p4 = pneg %p27803_p1 }
  0x32   : > { %p27811_p10 = pnand %p27810_p9, %p27804_p4 }
  0x34   : > { %27814 = shalt.err (!%p27811_p10)
}
  0x35   : > { %27038 = dma.hbm_to_vmem [thread:$0]  (!%p27918_p5), %s32565_s2, 16, %s27922_s24, [#allocation4]  }
  0x36   : > { %s27815_s11 = scalar_lea.hbm %s32567_s4, 16 }
  0x37   : > { %p27816_p11 = scmp.ne.s32.totalorder %s32567_s4, %s27815_s11  ;;  %p27822_p0 = scmp.lt.u32.totalorder %s27815_s11, %s32567_s4 }
  0x39   : > { %p27818_p12 = pnand %p27816_p11, %p27934_p7 }
  0x3b   : > { %p27819_p13 = pneg %p27818_p12 }
  0x3d   : > { %p27824_p1 = pnand %p27822_p0, %p27819_p13 }
  0x3f   : > { %27827 = shalt.err (!%p27824_p1)
}
  0x40   : > { %s27828_s24 = scalar_lea.vmem %s27924_s27, 16  ;;  %s27835_s16 = scalar_lea.vmem %s27924_s27, 32 }
  0x41   : > { %p27829_p4 = scmp.ne.s32.totalorder %s27924_s27, %s27828_s24  ;;  %p27836_p9 = scmp.lt.s32.totalorder %s27924_s27, %s27924_s27 }
  0x42   : > { %p27837_p10 = scmp.lt.s32.totalorder %s27835_s16, %s27828_s24 }
  0x43   : > { %p27831_p6 = pnand %p27829_p4, %p27934_p7 }
  0x44   : > { %p27838_p11 = por %p27837_p10, %p27836_p9 }
  0x45   : > { %p27832_p8 = pneg %p27831_p6 }
  0x47   : > { %p27839_p12 = pnand %p27838_p11, %p27832_p8 }
  0x49   : > { %27842 = shalt.err (!%p27839_p12)
}
  0x4a   : > { %27044 = dma.hbm_to_vmem [thread:$0]  (!%p27918_p5), %s32567_s4, 16, %s27924_s27, [#allocation6]  }
  0x4b   : > { %219 = sbr.rel (%p27908_p3) target bundleno = 2148 (0x864), region = 40 }
  0x52   : > { %27848 = dma.done.wait (%p27045_p2), [#allocation4], 16  }
  0x53   : > { %27850 = vsyncadd (%p27045_p2), [#allocation4], 4294967280 }
  0x54   : > { %27852 = dma.done.wait (%p27045_p2), [#allocation6], 1168  }
  0x55   : > { %27854 = vsyncadd (%p27045_p2), [#allocation6], 4294966128  ;;  %vm482_vm0 = vcmask 1043456   ;;  %p255_p7 = scmp.lt.s32.totalorder %s27903_s21, 1  ;;  %vm483_vm1 = vcmask 1044480   ;;  %v27864_v0 = vmov 65535  }
  0x56   : > { %v484_v1 = vsel %vm482_vm0, 4294967295, %v27864_v0  ;;  %vm394_vm2 = vcmask 1045504   ;;  %v27067_v3 = vld [vmem:[%s32564_s1 + $0x8] sm:$0x1f]   ;;  %vm433_vm3 = vcmask 72704   ;;  %vm1442_vm4 = vcmask 125952  }
  0x57   : > { %s32791_s21 = smov (!%p255_p7, %s27903_s21), 1  ;;  %v28019_v2 = vsel %vm483_vm1, %v484_v1, 0  ;;  %v27068_v4 = vld [vmem:[%s32564_s1 + $0x8] sm:$0x1f]   ;;  %v27074_v20 = vld [vmem:[%s32564_s1] sm:$0x1f]  }
  0x58   : > { %s27021_s22 = smul.u32 648, %s32791_s21  ;;  %v487_v5 = vand.u32 %v27067_v3, %v28019_v2  ;;  %v1687_v7 = vand.u32 %v27068_v4, %v28019_v2  ;;  %v717_v25 = vand.u32 %v27074_v20, %v28019_v2  ;;  %v27080_v37 = vld [vmem:[%s32564_s1] sm:$0x1f]   ;;  %vm6155_vm5 = vsmask.f32 7424 }
  0x59   : > { %v1917_v42 = vand.u32 %v27080_v37, %v28019_v2  ;;  %vm6294_vm6 = vcmask 130048   ;;  %vm27866_vm7 = vmmov 0   ;;  %vm6710_vm8 = vcmask 1046528  }
  0x5a   : > { %s28024_s8 = scalar_lea.vmem %s32563_s0, %s27021_s22  ;;  %23655 = vmatprep.subr.bf16.mxu0 %v487_v5  ;;  %23757 = vmatprep.subr.bf16.mxu1 %v1687_v7  ;;  %vm7397_vm9 = vsmask.f32 5376  ;;  %vm6032_vm10 = vcmask 124928  }
  0x5b   : > { %v28034_v6 = vld [vmem:[%s28024_s8 + $0x14] sm:$0xf]  ;;  %v302_v8 = vld [vmem:[%s28024_s8 + $0x10] sm:$0xc]  ;;  %v28039_v9 = vld [vmem:[%s28024_s8 + $0x18] sm:$0xff]   ;;  %23656 = vmatpush3.bf16.msra.mxu0 %v487_v5  ;;  %23758 = vmatpush3.bf16.msra.mxu1 %v1687_v7 }
  0x5c   : > { %v28042_v10 = vld [vmem:[%s28024_s8 + $0x94] sm:$0xf]  ;;  %v20953_v11 = vcombine.low %v302_v8, %v28034_v6  ;;  %v1509_v12 = vld [vmem:[%s28024_s8 + $0x90] sm:$0xc]  ;;  %v396_v13 = vrot.slane %v28039_v9, 2  ;;  %v28049_v15 = vld [vmem:[%s28024_s8 + $0x98] sm:$0xff]   ;;  %23689 = vmatprep.subr.bf16.mxu0 %v717_v25  ;;  %23791 = vmatprep.subr.bf16.mxu1 %v1917_v42 }
  0x5d   : > { %v21077_v14 = vcombine.low %v1509_v12, %v28042_v10  ;;  %v28052_v17 = vld [vmem:[%s28024_s8 + $0x20] sm:$0xff]   ;;  %v1601_v19 = vrot.slane %v28049_v15, 2  ;;  %v28067_v26 = vld [vmem:[%s28024_s8 + $0x28] sm:$0xff]   ;;  %v28078_v31 = vld [vmem:[%s28024_s8 + $0x30] sm:$0xff]  }
  0x5e   : > { %v395_v16 = vrot.slane %v20953_v11, 2  ;;  %v398_v22 = vrot.slane %v28052_v17, 2  ;;  %v28061_v23 = vld [vmem:[%s28024_s8 + $0xa0] sm:$0xff]   ;;  %v28073_v29 = vld [vmem:[%s28024_s8 + $0xa8] sm:$0xff]   ;;  %v400_v30 = vrot.slane %v28067_v26, 2  ;;  %v28083_v34 = vld [vmem:[%s28024_s8 + $0xb0] sm:$0xff]  }
  0x5f   : > { %v1600_v18 = vrot.slane %v21077_v14, 2  ;;  %v1603_v28 = vrot.slane %v28061_v23, 2  ;;  %v1605_v33 = vrot.slane %v28073_v29, 2  ;;  %v402_v36 = vrot.slane %v28078_v31, 2  ;;  %v28092_v38 = vld [vmem:[%s28024_s8 + $0x38] sm:$0xff]   ;;  %v28106_v46 = vld [vmem:[%s28024_s8 + $0x40] sm:$0xff]  }
  0x60   : > { %v397_v21 = vsel %vm394_vm2, %v395_v16, %v396_v13  ;;  %v399_v27 = vsel %vm394_vm2, %v396_v13, %v398_v22  ;;  %v401_v35 = vsel %vm394_vm2, %v398_v22, %v400_v30  ;;  %v1607_v40 = vrot.slane %v28083_v34, 2  ;;  %v28098_v41 = vld [vmem:[%s28024_s8 + $0xb8] sm:$0xff]   ;;  %v28110_v48 = vld [vmem:[%s28024_s8 + $0x48] sm:$0xff]   ;;  %v28114_v50 = vld [vmem:[%s28024_s8 + $0xc0] sm:$0xff]  }
  0x61   : > { %23657 = vmatprep.mubr.msk.bf16.mxu0 %vm433_vm3, %v397_v21  ;;  %v1602_v24 = vsel %vm394_vm2, %v1600_v18, %v1601_v19  ;;  %v1604_v32 = vsel %vm394_vm2, %v1601_v19, %v1603_v28  ;;  %v1606_v39 = vsel %vm394_vm2, %v1603_v28, %v1605_v33  ;;  %v404_v43 = vrot.slane %v28092_v38, 2  ;;  %v28119_v52 = vld [vmem:[%s28024_s8 + $0xc8] sm:$0xff]   ;;  %v28130_v58 = vld [vmem:[%s28024_s8 + $0x50] sm:$0xff]   ;;  %v28134_v60 = vld [vmem:[%s28024_s8 + $0x58] sm:$0xff]  }
  0x62   : > { %23759 = vmatprep.mubr.msk.bf16.mxu1 %vm433_vm3, %v1602_v24  ;;  %23658 = vmatmul.mubr.msk.bf16.vlgmr.msra.gmra.mrb[0].mxu0 %vm433_vm3, %v399_v27  ;;  %v403_v44 = vsel %vm394_vm2, %v400_v30, %v402_v36  ;;  %v1609_v45 = vrot.slane %v28098_v41, 2  ;;  %v1608_v49 = vsel %vm394_vm2, %v1605_v33, %v1607_v40  ;;  %v406_v53 = vrot.slane %v28106_v46, 2  ;;  %v28138_v62 = vld [vmem:[%s28024_s8 + $0xd0] sm:$0xff]   ;;  %v28143_v0 = vld [vmem:[%s28024_s8 + $0xd8] sm:$0xff]   ;;  %v28154_v8 = vld [vmem:[%s28024_s8 + $0x60] sm:$0xff]  }
  0x63   : > { %23690 = vmatpush3.bf16.msra.mxu0 %v717_v25  ;;  %23760 = vmatmul.mubr.msk.bf16.vlgmr.msra.gmra.mrb[0].mxu1 %vm433_vm3, %v1604_v32  ;;  %v405_v47 = vsel %vm394_vm2, %v402_v36, %v404_v43  ;;  %v408_v54 = vrot.slane %v28110_v48, 2  ;;  %v1611_v55 = vrot.slane %v28114_v50, 2  ;;  %v1613_v56 = vrot.slane %v28119_v52, 2  ;;  %v28158_v12 = vld [vmem:[%s28024_s8 + $0x68] sm:$0xff]   ;;  %v28162_v14 = vld [vmem:[%s28024_s8 + $0xe0] sm:$0xff]   ;;  %v28176_v22 = vld [vmem:[%s28024_s8 + $0x70] sm:$0xff]  }
  0x64   : > { %23661 = vmatprep.mubr.msk.bf16.mxu0 %vm433_vm3, %v401_v35  ;;  %23763 = vmatprep.mubr.msk.bf16.mxu1 %vm433_vm3, %v1606_v39  ;;  %v1610_v51 = vsel %vm394_vm2, %v1607_v40, %v1609_v45  ;;  %v407_v57 = vsel %vm394_vm2, %v404_v43, %v406_v53  ;;  %v410_v1 = vrot.slane %v28130_v58, 2  ;;  %v412_v3 = vrot.slane %v28134_v60, 2  ;;  %v28167_v18 = vld [vmem:[%s28024_s8 + $0xe8] sm:$0xff]   ;;  %v28180_v25 = vld [vmem:[%s28024_s8 + $0x78] sm:$0xff]   ;;  %v27108_v30 = vld [vmem:[%s32564_s1 + $0x10] sm:$0x1f]  }
  0x65   : > { %23792 = vmatpush3.bf16.msra.mxu1 %v1917_v42  ;;  %v409_v59 = vsel %vm394_vm2, %v406_v53, %v408_v54  ;;  %v1612_v61 = vsel %vm394_vm2, %v1609_v45, %v1611_v55  ;;  %v1614_v63 = vsel %vm394_vm2, %v1611_v55, %v1613_v56  ;;  %v1615_v4 = vrot.slane %v28138_v62, 2  ;;  %v28189_v33 = vld [vmem:[%s28024_s8 + $0xf0] sm:$0xff]   ;;  %v28192_v35 = vld [vmem:[%s28024_s8 + $0xf8] sm:$0xff]   ;;  %v27101_v53 = vld [vmem:[%s28024_s8 + $0x88] sm:$0xff]  }
  0x66   : > { %v1617_v5 = vrot.slane %v28143_v0, 2  ;;  %v411_v7 = vsel %vm394_vm2, %v408_v54, %v410_v1  ;;  %v413_v11 = vsel %vm394_vm2, %v410_v1, %v412_v3  ;;  %v414_v19 = vrot.slane %v28154_v8, 2  ;;  %v27112_v39 = vld [vmem:[%s32564_s1 + $0x10] sm:$0x1f]   ;;  %v27100_v55 = vld [vmem:[%s28024_s8 + $0x100] sm:$0xff]  }
  0x67   : > { %v1616_v13 = vsel %vm394_vm2, %v1613_v56, %v1615_v4  ;;  %v416_v20 = vrot.slane %v28158_v12, 2  ;;  %v1619_v21 = vrot.slane %v28162_v14, 2  ;;  %v1621_v24 = vrot.slane %v28167_v18, 2  ;;  %v27103_v1 = vld [vmem:[%s28024_s8 + $0x90] ss:$0 sps:$4 sm:$0x33]  }
  0x68   : > { %v1618_v16 = vsel %vm394_vm2, %v1615_v4, %v1617_v5  ;;  %v415_v27 = vsel %vm394_vm2, %v412_v3, %v414_v19  ;;  %v1049_v37 = vand.u32 %v27108_v30, %v28019_v2  ;;  %v418_v40 = vrot.slane %v28176_v22, 2  ;;  %v27107_v30 = vld [vmem:[%s28024_s8 + $0x8] sm:$0xff]  }
  0x69   : > { %v417_v28 = vsel %vm394_vm2, %v414_v19, %v416_v20  ;;  %v1620_v32 = vsel %vm394_vm2, %v1617_v5, %v1619_v21  ;;  %v1622_v36 = vsel %vm394_vm2, %v1619_v21, %v1621_v24  ;;  %v420_v42 = vrot.slane %v28180_v25, 2  ;;  %v27104_v5 = vld [vmem:[%s28024_s8 + $0x110] ss:$0 sps:$4 sm:$0x33]   ;;  %v27105_v21 = vld [vmem:[%s28024_s8] sm:$0xff]  }
  0x6a   : > { %23662 = vmatmul.mubr.msk.bf16.gmra.mrb[4].mxu0 %vm433_vm3, %v403_v44  ;;  %23723 = vmatprep.subr.bf16.mxu0 %v1049_v37  ;;  %v2248_v43 = vand.u32 %v27112_v39, %v28019_v2  ;;  %v1623_v44 = vrot.slane %v28189_v33, 2  ;;  %v1625_v45 = vrot.slane %v28192_v35, 2  ;;  %v1631_v19 = vrot.slane %v27104_v5, 2  ;;  %v27122_v39 = vld [vmem:[%s32564_s1 + $0x8] sm:$0x1f]   ;;  %v27143_v5 = vld [vmem:[%s28024_s8 + $0x94] sm:$0xff]  }
  0x6b   : > { %23665 = vmatprep.mubr.msk.bf16.mxu0 %vm433_vm3, %v405_v47  ;;  %23764 = vmatmul.mubr.msk.bf16.gmra.mrb[4].mxu1 %vm433_vm3, %v1608_v49  ;;  %v419_v47 = vsel %vm394_vm2, %v416_v20, %v418_v40  ;;  %v27099_v49 = vld [vmem:[%s28024_s8 + $0x80] sm:$0xff]  }
  0x6c   : > { %23767 = vmatprep.mubr.msk.bf16.mxu1 %vm433_vm3, %v1610_v51  ;;  %23825 = vmatprep.subr.bf16.mxu1 %v2248_v43  ;;  %v421_v51 = vsel %vm394_vm2, %v418_v40, %v420_v42  ;;  %v1624_v54 = vsel %vm394_vm2, %v1621_v24, %v1623_v44  ;;  %v1626_v56 = vsel %vm394_vm2, %v1623_v44, %v1625_v45 }
  0x72   : > { %23666 = vmatmul.mubr.msk.bf16.gmra.mrb[8].mxu0 %vm433_vm3, %v407_v57  ;;  %v27102_v57 = vld [vmem:[%s28024_s8 + $0x108] sm:$0xff]  }
  0x73   : > { %23669 = vmatprep.mubr.msk.bf16.mxu0 %vm433_vm3, %v409_v59  ;;  %23768 = vmatmul.mubr.msk.bf16.gmra.mrb[8].mxu1 %vm433_vm3, %v1612_v61  ;;  %v422_v59 = vrot.slane %v27099_v49, 2  ;;  %v424_v61 = vrot.slane %v27101_v53, 2  ;;  %v1629_v3 = vrot.slane %v27102_v57, 2  ;;  %v27129_v49 = vld [vmem:[%s28024_s8 + $0x5c] sm:$0xff]   ;;  %v27134_v57 = vld [vmem:[%s28024_s8 + $0xec] sm:$0xff]  }
  0x74   : > { %23771 = vmatprep.mubr.msk.bf16.mxu1 %vm433_vm3, %v1614_v63  ;;  %v1627_v63 = vrot.slane %v27100_v55, 2  ;;  %v27130_v53 = vld [vmem:[%s28024_s8 + $0xdc] sm:$0xff]   ;;  %v27133_v55 = vld [vmem:[%s28024_s8 + $0x6c] sm:$0xff]  }
  0x75   : > { %v423_v4 = vsel %vm394_vm2, %v420_v42, %v422_v59  ;;  %v1632_v24 = vsel %vm394_vm2, %v1629_v3, %v1631_v19  ;;  %v27109_v42 = vld [vmem:[%s28024_s8 + $0x88] sm:$0xff]   ;;  %v27146_v19 = vld [vmem:[%s28024_s8 + $0x11c] sm:$0xff]  }
  0x7a   : > { %23670 = vmatmul.mubr.msk.bf16.gmra.mrb[12].mxu0 %vm433_vm3, %v411_v7  ;;  %v425_v7 = vsel %vm394_vm2, %v422_v59, %v424_v61  ;;  %v27136_v59 = vld [vmem:[%s28024_s8 + $0xf4] sm:$0xff]  }
  0x7b   : > { %23673 = vmatprep.mubr.msk.bf16.mxu0 %vm433_vm3, %v413_v11  ;;  %23772 = vmatmul.mubr.msk.bf16.gmra.mrb[12].mxu1 %vm433_vm3, %v1616_v13  ;;  %v1628_v11 = vsel %vm394_vm2, %v1625_v45, %v1627_v63  ;;  %v1630_v13 = vsel %vm394_vm2, %v1627_v63, %v1629_v3  ;;  %v27139_v63 = vld [vmem:[%s28024_s8 + $0x84] sm:$0xff]  }
  0x7c   : > { %23775 = vmatprep.mubr.msk.bf16.mxu1 %vm433_vm3, %v1618_v16  ;;  %v426_v16 = vrot.slane %v27103_v1, 2  ;;  %v27138_v1 = vld [vmem:[%s28024_s8 + $0xfc] sm:$0xff]   ;;  %v27140_v3 = vld [vmem:[%s28024_s8 + $0x104] sm:$0xff]  }
  0x7e   : > { %v427_v20 = vsel %vm394_vm2, %v424_v61, %v426_v16  ;;  %v27137_v61 = vld [vmem:[%s28024_s8 + $0x7c] sm:$0xff]  }
  0x7f   : > { %v28404_v16 = vld [vmem:[%s28024_s8 + $0x120] sm:$0xff]  }
  0x82   : > { %23674 = vmatmul.mubr.msk.bf16.gmra.mrb[16].mxu0 %vm433_vm3, %v415_v27  ;;  %v27106_v27 = vld [vmem:[%s28024_s8 + $0x80] sm:$0xff]  }
  0x83   : > { %23677 = vmatprep.mubr.msk.bf16.mxu0 %vm433_vm3, %v417_v28  ;;  %23776 = vmatmul.mubr.msk.bf16.gmra.mrb[16].mxu1 %vm433_vm3, %v1620_v32  ;;  %v272_v28 = vld [vmem:[%s28024_s8 + $0x10] sm:$0xf]  ;;  %v27117_v32 = vld [vmem:[%s32564_s1 + $0x8] sm:$0x1f]  }
  0x84   : > { %23779 = vmatprep.mubr.msk.bf16.mxu1 %vm433_vm3, %v1622_v36  ;;  %v1479_v36 = vld [vmem:[%s28024_s8 + $0x90] sm:$0xf]  ;;  %v20989_v40 = vcombine.low %v272_v28, %v28034_v6  ;;  %v2879_v44 = vand.u32 %v27117_v32, %v28019_v2  ;;  %v27113_v6 = vld [vmem:[%s28024_s8 + $0x24] sm:$0xff]  }
  0x85   : > { %v21113_v45 = vcombine.low %v1479_v36, %v28042_v10  ;;  %v28310_v10 = vld [vmem:[%s28024_s8 + $0x114] sm:$0xf]  ;;  %v28422_v28 = vld [vmem:[%s28024_s8 + $0x1a8] sm:$0xff]  }
  0x86   : > { %v27186_v36 = vld [vmem:[%s32564_s1 + $0x10] sm:$0x1f]  }
  0x8a   : > { %23678 = vmatmul.mubr.msk.bf16.gmra.mrb[20].mxu0 %vm433_vm3, %v419_v47  ;;  %v4071_v47 = vand.u32 %v27122_v39, %v28019_v2 }
  0x8b   : > { %23681 = vmatprep.mubr.msk.bf16.mxu0 %vm433_vm3, %v421_v51  ;;  %23780 = vmatmul.mubr.msk.bf16.gmra.mrb[20].mxu1 %vm433_vm3, %v1624_v54  ;;  %v27131_v51 = vld [vmem:[%s28024_s8 + $0x64] sm:$0xff]  }
  0x8c   : > { %23783 = vmatprep.mubr.msk.bf16.mxu1 %vm433_vm3, %v1626_v56  ;;  %v27132_v54 = vld [vmem:[%s28024_s8 + $0xe4] sm:$0xff]   ;;  %v27135_v56 = vld [vmem:[%s28024_s8 + $0x74] sm:$0xff]  }
  0x92   : > { %23682 = vmatmul.mubr.msk.bf16.gmra.mrb[24].mxu0 %vm433_vm3, %v423_v4  ;;  %v27141_v4 = vld [vmem:[%s28024_s8 + $0x8c] sm:$0xff]  }
  0x93   : > { %23685 = vmatprep.mubr.msk.bf16.mxu0 %vm433_vm3, %v425_v7  ;;  %23784 = vmatmul.mubr.msk.bf16.gmra.mrb[24].mxu1 %vm433_vm3, %v1628_v11  ;;  %v27142_v7 = vld [vmem:[%s28024_s8 + $0x10c] sm:$0xff]   ;;  %v27144_v11 = vld [vmem:[%s28024_s8 + $0x114] sm:$0xff]  }
  0x94   : > { %23787 = vmatprep.mubr.msk.bf16.mxu1 %vm433_vm3, %v1630_v13  ;;  %v27145_v13 = vld [vmem:[%s28024_s8 + $0x9c] sm:$0xff]  }
  0x9a   : > { %23686 = vmatmul.mubr.msk.bf16.gmra.mrb[28].mxu0 %vm433_vm3, %v427_v20  ;;  %v28408_v20 = vld [vmem:[%s28024_s8 + $0x128] sm:$0xff]  }
  0x9b   : > { %23691 = vmatprep.mubr.msk.bf16.mxu0 %vm433_vm3, %v27105_v21  ;;  %23788 = vmatmul.mubr.msk.bf16.gmra.mrb[28].mxu1 %vm433_vm3, %v1632_v24  ;;  %v28411_v21 = vld [vmem:[%s28024_s8 + $0x1a0] sm:$0xff]   ;;  %v2797_v32 = vrot.slane %v28408_v20, 2 }
  0x9c   : > { %23793 = vmatprep.mubr.msk.bf16.mxu1 %vm433_vm3, %v27106_v27  ;;  %v3987_v39 = vrot.slane %v28411_v21, 2 }
  0xa2   : > { %23692 = vmatmul.mubr.msk.bf16.vlgmr.msra.gmra.mrb[0].mxu0 %vm433_vm3, %v27107_v30  ;;  %v2795_v30 = vrot.slane %v28404_v16, 2 }
  0xa3   : > { %23724 = vmatpush3.bf16.msra.mxu0 %v1049_v37  ;;  %23695 = vmatprep.mubr.msk.bf16.mxu0 %vm433_vm3, %v20989_v40  ;;  %v27126_v37 = vld [vmem:[%s28024_s8 + $0xcc] sm:$0xff]   ;;  %v3989_v40 = vrot.slane %v28422_v28, 2 }
  0xa4   : > { %23794 = vmatmul.mubr.msk.bf16.vlgmr.msra.gmra.mrb[0].mxu1 %vm433_vm3, %v27109_v42  ;;  %23859 = vmatprep.subr.bf16.mxu0 %v2879_v44  ;;  %v27190_v42 = vld [vmem:[%s32564_s1 + $0x10] sm:$0x1f]  }
  0xa5   : > { %23797 = vmatprep.mubr.msk.bf16.mxu1 %vm433_vm3, %v21113_v45  ;;  %23826 = vmatpush3.bf16.msra.mxu1 %v2248_v43  ;;  %v27128_v43 = vld [vmem:[%s28024_s8 + $0xd4] sm:$0xff]  }
  0xa6   : > { %23961 = vmatprep.subr.bf16.mxu1 %v4071_v47  ;;  %v28441_v45 = vld [vmem:[%s28024_s8 + $0x130] sm:$0xff]  }
  0xaa   : > { %23696 = vmatmul.mubr.msk.bf16.gmra.mrb[4].mxu0 %vm433_vm3, %v28039_v9  ;;  %v27114_v9 = vld [vmem:[%s28024_s8 + $0xa4] sm:$0xff]  }
  0xab   : > { %23699 = vmatprep.mubr.msk.bf16.mxu0 %vm433_vm3, %v28052_v17  ;;  %v2701_v17 = vld [vmem:[%s28024_s8 + $0x110] sm:$0xc] }
  0xac   : > { %23798 = vmatmul.mubr.msk.bf16.gmra.mrb[4].mxu1 %vm433_vm3, %v28049_v15  ;;  %v27115_v15 = vld [vmem:[%s28024_s8 + $0x2c] sm:$0xff]  }
  0xad   : > { %23801 = vmatprep.mubr.msk.bf16.mxu1 %vm433_vm3, %v28061_v23  ;;  %v27152_v23 = vld [vmem:[%s32564_s1] sm:$0x1f]  }
  0xb2   : > { %23700 = vmatmul.mubr.msk.bf16.gmra.mrb[8].mxu0 %vm433_vm3, %v28067_v26  ;;  %v27118_v26 = vld [vmem:[%s28024_s8 + $0x34] sm:$0xff]  }
  0xb3   : > { %23703 = vmatprep.mubr.msk.bf16.mxu0 %vm433_vm3, %v28078_v31  ;;  %v27116_v31 = vld [vmem:[%s28024_s8 + $0xac] sm:$0xff]  }
  0xb4   : > { %23802 = vmatmul.mubr.msk.bf16.gmra.mrb[8].mxu1 %vm433_vm3, %v28073_v29  ;;  %v27158_v29 = vld [vmem:[%s32564_s1] sm:$0x1f]  }
  0xb5   : > { %23805 = vmatprep.mubr.msk.bf16.mxu1 %vm433_vm3, %v28083_v34  ;;  %v28326_v34 = vld [vmem:[%s28024_s8 + $0x118] sm:$0xff]  }
  0xba   : > { %23704 = vmatmul.mubr.msk.bf16.gmra.mrb[12].mxu0 %vm433_vm3, %v28092_v38  ;;  %v27119_v38 = vld [vmem:[%s28024_s8 + $0xb4] sm:$0xff]  }
  0xbb   : > { %23707 = vmatprep.mubr.msk.bf16.mxu0 %vm433_vm3, %v28106_v46  ;;  %v28331_v46 = vand.u32 %v27152_v23, %v28019_v2  ;;  %v3990_v23 = vsel %vm394_vm2, %v3987_v39, %v3989_v40 }
  0xbc   : > { %23806 = vmatmul.mubr.msk.bf16.gmra.mrb[12].mxu1 %vm433_vm3, %v28098_v41  ;;  %v21200_v41 = vcombine.low %v2701_v17, %v28310_v10  ;;  %v28454_v17 = vld [vmem:[%s28024_s8 + $0x1b0] sm:$0xff]  }
  0xbd   : > { %23809 = vmatprep.mubr.msk.bf16.mxu1 %vm433_vm3, %v28114_v50  ;;  %v28339_v50 = vld [vmem:[%s28024_s8 + $0x194] sm:$0xf] }
  0xc2   : > { %23708 = vmatmul.mubr.msk.bf16.gmra.mrb[16].mxu0 %vm433_vm3, %v28110_v48  ;;  %v28335_v48 = vand.u32 %v27158_v29, %v28019_v2  ;;  %v28462_v29 = vand.u32 %v27190_v42, %v28019_v2 }
  0xc3   : > { %23711 = vmatprep.mubr.msk.bf16.mxu0 %vm433_vm3, %v28130_v58  ;;  %v28343_v58 = vrot.slane %v21200_v41, 2  ;;  %v3991_v41 = vrot.slane %v28454_v17, 2 }
  0xc4   : > { %23810 = vmatmul.mubr.msk.bf16.gmra.mrb[16].mxu1 %vm433_vm3, %v28119_v52  ;;  %v27120_v52 = vld [vmem:[%s28024_s8 + $0x3c] sm:$0xff]  }
  0xc5   : > { %23813 = vmatprep.mubr.msk.bf16.mxu1 %vm433_vm3, %v28138_v62  ;;  %v3893_v62 = vld [vmem:[%s28024_s8 + $0x190] sm:$0xc] }
  0xca   : > { %23712 = vmatmul.mubr.msk.bf16.gmra.mrb[20].mxu0 %vm433_vm3, %v28134_v60  ;;  %v2793_v60 = vrot.slane %v28326_v34, 2 }
  0xcb   : > { %23715 = vmatprep.mubr.msk.bf16.mxu0 %vm433_vm3, %v28154_v8  ;;  %v27121_v8 = vld [vmem:[%s28024_s8 + $0xbc] sm:$0xff]  }
  0xcc   : > { %23814 = vmatmul.mubr.msk.bf16.gmra.mrb[20].mxu1 %vm433_vm3, %v28143_v0  ;;  %v27123_v0 = vld [vmem:[%s28024_s8 + $0x44] sm:$0xff]   ;;  %v2794_v24 = vsel %vm394_vm2, %v28343_v58, %v2793_v60 }
  0xcd   : > { %23817 = vmatprep.mubr.msk.bf16.mxu1 %vm433_vm3, %v28162_v14  ;;  %v27124_v14 = vld [vmem:[%s28024_s8 + $0xc4] sm:$0xff]  }
  0xce   : > { %v28477_v58 = vld [vmem:[%s28024_s8 + $0x140] sm:$0xff]  }
  0xd2   : > { %23716 = vmatmul.mubr.msk.bf16.gmra.mrb[24].mxu0 %vm433_vm3, %v28158_v12  ;;  %v28352_v12 = vld [vmem:[%s28024_s8 + $0x198] sm:$0xff]  }
  0xd3   : > { %23719 = vmatprep.mubr.msk.bf16.mxu0 %vm433_vm3, %v28176_v22  ;;  %v27125_v22 = vld [vmem:[%s28024_s8 + $0x4c] sm:$0xff]  }
  0xd4   : > { %23818 = vmatmul.mubr.msk.bf16.gmra.mrb[24].mxu1 %vm433_vm3, %v28167_v18  ;;  %v21323_v18 = vcombine.low %v3893_v62, %v28339_v50  ;;  %v28481_v62 = vld [vmem:[%s28024_s8 + $0x148] sm:$0xff]  }
  0xd5   : > { %23821 = vmatprep.mubr.msk.bf16.mxu1 %vm433_vm3, %v28189_v33  ;;  %v3985_v33 = vrot.slane %v28352_v12, 2 }
  0xda   : > { %23720 = vmatmul.mubr.msk.bf16.gmra.mrb[28].mxu0 %vm433_vm3, %v28180_v25  ;;  %v3984_v25 = vrot.slane %v21323_v18, 2  ;;  %v2803_v18 = vrot.slane %v28477_v58, 2 }
  0xdb   : > { %23725 = vmatprep.mubr.msk.bf16.mxu0 %vm433_vm3, %v27113_v6  ;;  %v28445_v6 = vld [vmem:[%s28024_s8 + $0x138] sm:$0xff]  }
  0xdc   : > { %23822 = vmatmul.mubr.msk.bf16.gmra.mrb[28].mxu1 %vm433_vm3, %v28192_v35  ;;  %v27127_v35 = vld [vmem:[%s28024_s8 + $0x54] sm:$0xff]   ;;  %v3986_v27 = vsel %vm394_vm2, %v3984_v25, %v3985_v33 }
  0xdd   : > { %23827 = vmatprep.mubr.msk.bf16.mxu1 %vm433_vm3, %v27114_v9  ;;  %v28448_v9 = vand.u32 %v27186_v36, %v28019_v2  ;;  %v28549_v36 = vld [vmem:[%s28024_s8 + $0x170] sm:$0xff]  }
  0xe2   : > { %23726 = vmatmul.mubr.msk.bf16.vlgmr.msra.gmra.mrb[0].mxu0 %vm433_vm3, %v27115_v15  ;;  %v3988_v15 = vsel %vm394_vm2, %v3985_v33, %v3987_v39 }
  0xe3   : > { %23860 = vmatpush3.bf16.msra.mxu0 %v2879_v44  ;;  %23729 = vmatprep.mubr.msk.bf16.mxu0 %vm433_vm3, %v27118_v26  ;;  %v2796_v44 = vsel %vm394_vm2, %v2793_v60, %v2795_v30  ;;  %v28459_v26 = vld [vmem:[%s28024_s8 + $0x1b8] sm:$0xff]  }
  0xe4   : > { %23828 = vmatmul.mubr.msk.bf16.vlgmr.msra.gmra.mrb[0].mxu1 %vm433_vm3, %v27116_v31  ;;  %23893 = vmatprep.subr.bf16.mxu0 %v28331_v46  ;;  %v2799_v31 = vrot.slane %v28441_v45, 2 }
  0xe5   : > { %23831 = vmatprep.mubr.msk.bf16.mxu1 %vm433_vm3, %v27119_v38  ;;  %23962 = vmatpush3.bf16.msra.mxu1 %v4071_v47  ;;  %v2798_v47 = vsel %vm394_vm2, %v2795_v30, %v2797_v32  ;;  %v2801_v38 = vrot.slane %v28445_v6, 2 }
  0xe6   : > { %23995 = vmatprep.subr.bf16.mxu1 %v28335_v48 }
  0xe7   : > { %v2802_v60 = vsel %vm394_vm2, %v2799_v31, %v2801_v38 }
  0xea   : > { %23730 = vmatmul.mubr.msk.bf16.gmra.mrb[4].mxu0 %vm433_vm3, %v27120_v52  ;;  %v2800_v52 = vsel %vm394_vm2, %v2797_v32, %v2799_v31 }
  0xeb   : > { %23733 = vmatprep.mubr.msk.bf16.mxu0 %vm433_vm3, %v27123_v0  ;;  %v3992_v0 = vsel %vm394_vm2, %v3989_v40, %v3991_v41  ;;  %v28553_v40 = vld [vmem:[%s28024_s8 + $0x178] sm:$0xff]  }
  0xec   : > { %23832 = vmatmul.mubr.msk.bf16.gmra.mrb[4].mxu1 %vm433_vm3, %v27121_v8  ;;  %v28485_v8 = vld [vmem:[%s28024_s8 + $0x1c0] sm:$0xff]   ;;  %v2817_v31 = vrot.slane %v28553_v40, 2 }
  0xed   : > { %23835 = vmatprep.mubr.msk.bf16.mxu1 %vm433_vm3, %v27124_v14  ;;  %v28490_v14 = vld [vmem:[%s28024_s8 + $0x1c8] sm:$0xff]   ;;  %v3995_v25 = vrot.slane %v28485_v8, 2 }
  0xee   : > { %v3997_v33 = vrot.slane %v28490_v14, 2 }
  0xf2   : > { %23734 = vmatmul.mubr.msk.bf16.gmra.mrb[8].mxu0 %vm433_vm3, %v27125_v22  ;;  %v2805_v22 = vrot.slane %v28481_v62, 2 }
  0xf3   : > { %23737 = vmatprep.mubr.msk.bf16.mxu0 %vm433_vm3, %v27127_v35  ;;  %v2804_v35 = vsel %vm394_vm2, %v2801_v38, %v2803_v18 }
  0xf4   : > { %23836 = vmatmul.mubr.msk.bf16.gmra.mrb[8].mxu1 %vm433_vm3, %v27126_v37  ;;  %v28501_v37 = vld [vmem:[%s28024_s8 + $0x150] sm:$0xff]  }
  0xf5   : > { %23839 = vmatprep.mubr.msk.bf16.mxu1 %vm433_vm3, %v27128_v43  ;;  %v2806_v43 = vsel %vm394_vm2, %v2803_v18, %v2805_v22  ;;  %v27178_v18 = vld [vmem:[%s28024_s8 + $0x200] sm:$0xff]  }
  0xfa   : > { %23738 = vmatmul.mubr.msk.bf16.gmra.mrb[12].mxu0 %vm433_vm3, %v27129_v49  ;;  %v28505_v49 = vld [vmem:[%s28024_s8 + $0x158] sm:$0xff]  }
  0xfb   : > { %23741 = vmatprep.mubr.msk.bf16.mxu0 %vm433_vm3, %v27131_v51 }
  0xfc   : > { %23840 = vmatmul.mubr.msk.bf16.gmra.mrb[12].mxu1 %vm433_vm3, %v27130_v53  ;;  %v28509_v53 = vld [vmem:[%s28024_s8 + $0x1d0] sm:$0xff]  }
  0xfd   : > { %23843 = vmatprep.mubr.msk.bf16.mxu1 %vm433_vm3, %v27132_v54  ;;  %v3998_v54 = vsel %vm394_vm2, %v3995_v25, %v3997_v33 }
 0x102   : > { %23742 = vmatmul.mubr.msk.bf16.gmra.mrb[16].mxu0 %vm433_vm3, %v27133_v55  ;;  %v28514_v55 = vld [vmem:[%s28024_s8 + $0x1d8] sm:$0xff]  }
 0x103   : > { %23745 = vmatprep.mubr.msk.bf16.mxu0 %vm433_vm3, %v27135_v56  ;;  %v2807_v56 = vrot.slane %v28501_v37, 2 }
 0x104   : > { %23844 = vmatmul.mubr.msk.bf16.gmra.mrb[16].mxu1 %vm433_vm3, %v27134_v57  ;;  %v2809_v57 = vrot.slane %v28505_v49, 2 }
 0x105   : > { %23847 = vmatprep.mubr.msk.bf16.mxu1 %vm433_vm3, %v27136_v59  ;;  %v3999_v59 = vrot.slane %v28509_v53, 2 }
 0x10a   : > { %23746 = vmatmul.mubr.msk.bf16.gmra.mrb[20].mxu0 %vm433_vm3, %v27137_v61  ;;  %v4001_v61 = vrot.slane %v28514_v55, 2 }
 0x10b   : > { %23749 = vmatprep.mubr.msk.bf16.mxu0 %vm433_vm3, %v27139_v63  ;;  %v2808_v63 = vsel %vm394_vm2, %v2805_v22, %v2807_v56 }
 0x10c   : > { %23848 = vmatmul.mubr.msk.bf16.gmra.mrb[20].mxu1 %vm433_vm3, %v27138_v1  ;;  %v28525_v1 = vld [vmem:[%s28024_s8 + $0x160] sm:$0xff]  }
 0x10d   : > { %23851 = vmatprep.mubr.msk.bf16.mxu1 %vm433_vm3, %v27140_v3  ;;  %v2810_v3 = vsel %vm394_vm2, %v2807_v56, %v2809_v57  ;;  %v27181_v56 = vld [vmem:[%s28024_s8 + $0x190] ss:$0 sps:$4 sm:$0x33]  }
 0x112   : > { %23750 = vmatmul.mubr.msk.bf16.gmra.mrb[24].mxu0 %vm433_vm3, %v27141_v4  ;;  %v28529_v4 = vld [vmem:[%s28024_s8 + $0x168] sm:$0xff]  }
 0x113   : > { %23753 = vmatprep.mubr.msk.bf16.mxu0 %vm433_vm3, %v27143_v5  ;;  %v4000_v5 = vsel %vm394_vm2, %v3997_v33, %v3999_v59 }
 0x114   : > { %23852 = vmatmul.mubr.msk.bf16.gmra.mrb[24].mxu1 %vm433_vm3, %v27142_v7  ;;  %v28533_v7 = vld [vmem:[%s28024_s8 + $0x1e0] sm:$0xff]  }
 0x115   : > { %23855 = vmatprep.mubr.msk.bf16.mxu1 %vm433_vm3, %v27144_v11  ;;  %v4002_v11 = vsel %vm394_vm2, %v3999_v59, %v4001_v61 }
 0x11a   : > { %23754 = vmatmul.mubr.msk.bf16.gmra.mrb[28].mxu0 %vm433_vm3, %v27145_v13  ;;  %v28538_v13 = vld [vmem:[%s28024_s8 + $0x1e8] sm:$0xff]  }
 0x11b   : > { %23861 = vmatprep.mubr.msk.bf16.mxu0 %vm433_vm3, %v2794_v24  ;;  %v2813_v24 = vrot.slane %v28529_v4, 2  ;;  %v4005_v30 = vrot.slane %v28538_v13, 2 }
 0x11c   : > { %23856 = vmatmul.mubr.msk.bf16.gmra.mrb[28].mxu1 %vm433_vm3, %v27146_v19  ;;  %v2811_v19 = vrot.slane %v28525_v1, 2 }
 0x11d   : > { %23963 = vmatprep.mubr.msk.bf16.mxu1 %vm433_vm3, %v3986_v27  ;;  %v4003_v27 = vrot.slane %v28533_v7, 2 }
 0x11e   : > { %v2812_v32 = vsel %vm394_vm2, %v2809_v57, %v2811_v19  ;;  %v2814_v39 = vsel %vm394_vm2, %v2811_v19, %v2813_v24  ;;  %v27183_v19 = vld [vmem:[%s28024_s8 + $0x100] sm:$0xff]  }
 0x11f   : > { %v4004_v42 = vsel %vm394_vm2, %v4001_v61, %v4003_v27  ;;  %v27182_v61 = vld [vmem:[%s28024_s8 + $0x210] ss:$0 sps:$4 sm:$0x33]  }
 0x122   : > { %23862 = vmatmul.mubr.msk.bf16.vlgmr.msra.gmra.mrb[32].mxu0 %vm433_vm3, %v2796_v44  ;;  %v28557_v44 = vld [vmem:[%s28024_s8 + $0x1f0] sm:$0xff]  }
 0x123   : > { %23894 = vmatpush3.bf16.msra.mxu0 %v28331_v46  ;;  %23865 = vmatprep.mubr.msk.bf16.mxu0 %vm433_vm3, %v2798_v47  ;;  %v3993_v46 = vrot.slane %v28459_v26, 2  ;;  %v4006_v47 = vsel %vm394_vm2, %v4003_v27, %v4005_v30  ;;  %v4007_v38 = vrot.slane %v28557_v44, 2  ;;  %v27184_v27 = vld [vmem:[%s28024_s8 + $0x180] sm:$0xff]  }
 0x124   : > { %23964 = vmatmul.mubr.msk.bf16.vlgmr.msra.gmra.mrb[32].mxu1 %vm433_vm3, %v3988_v15  ;;  %23927 = vmatprep.subr.bf16.mxu0 %v28448_v9  ;;  %v28562_v15 = vld [vmem:[%s28024_s8 + $0x1f8] sm:$0xff]  }
 0x125   : > { %23967 = vmatprep.mubr.msk.bf16.mxu1 %vm433_vm3, %v3990_v23  ;;  %23996 = vmatpush3.bf16.msra.mxu1 %v28335_v48  ;;  %v3994_v48 = vsel %vm394_vm2, %v3991_v41, %v3993_v46  ;;  %v3996_v51 = vsel %vm394_vm2, %v3993_v46, %v3995_v25  ;;  %v2815_v23 = vrot.slane %v28549_v36, 2  ;;  %v4009_v41 = vrot.slane %v28562_v15, 2  ;;  %v27180_v25 = vld [vmem:[%s28024_s8 + $0x208] sm:$0xff]  }
 0x126   : > { %24029 = vmatprep.subr.bf16.mxu1 %v28462_v29 }
 0x127   : > { %v2816_v46 = vsel %vm394_vm2, %v2813_v24, %v2815_v23  ;;  %v4010_v22 = vsel %vm394_vm2, %v4007_v38, %v4009_v41 }
 0x12a   : > { %23866 = vmatmul.mubr.msk.bf16.gmra.mrb[36].mxu0 %vm433_vm3, %v2800_v52  ;;  %v27177_v52 = vld [vmem:[%s28024_s8 + $0x180] sm:$0xff]  }
 0x12b   : > { %23869 = vmatprep.mubr.msk.bf16.mxu0 %vm433_vm3, %v2802_v60  ;;  %v2818_v60 = vsel %vm394_vm2, %v2815_v23, %v2817_v31  ;;  %v2819_v33 = vrot.slane %v27177_v52, 2  ;;  %v27208_v52 = vld [vmem:[%s28024_s8 + $0x1dc] sm:$0xff]  }
 0x12c   : > { %23968 = vmatmul.mubr.msk.bf16.gmra.mrb[36].mxu1 %vm433_vm3, %v3992_v0  ;;  %v27179_v0 = vld [vmem:[%s28024_s8 + $0x188] sm:$0xff]  }
 0x12d   : > { %23971 = vmatprep.mubr.msk.bf16.mxu1 %vm433_vm3, %v3994_v48  ;;  %v4008_v48 = vsel %vm394_vm2, %v4005_v30, %v4007_v38  ;;  %v2671_v30 = vld [vmem:[%s28024_s8 + $0x110] sm:$0xf] }
 0x132   : > { %23870 = vmatmul.mubr.msk.bf16.gmra.mrb[40].mxu0 %vm433_vm3, %v2804_v35  ;;  %v2821_v35 = vrot.slane %v27179_v0, 2 }
 0x133   : > { %23873 = vmatprep.mubr.msk.bf16.mxu0 %vm433_vm3, %v2806_v43  ;;  %v4011_v43 = vrot.slane %v27178_v18, 2 }
 0x134   : > { %23972 = vmatmul.mubr.msk.bf16.gmra.mrb[40].mxu1 %vm433_vm3, %v3996_v51  ;;  %v4013_v51 = vrot.slane %v27180_v25, 2  ;;  %v2822_v57 = vsel %vm394_vm2, %v2819_v33, %v2821_v35 }
 0x135   : > { %23975 = vmatprep.mubr.msk.bf16.mxu1 %vm433_vm3, %v3998_v54  ;;  %v2820_v54 = vsel %vm394_vm2, %v2817_v31, %v2819_v33  ;;  %v4012_v59 = vsel %vm394_vm2, %v4009_v41, %v4011_v43  ;;  %v32569_v31 = vmov 0.0  }
 0x13a   : > { %23874 = vmatmul.mubr.msk.bf16.gmra.mrb[44].mxu0 %vm433_vm3, %v2808_v63  ;;  %v4014_v63 = vsel %vm394_vm2, %v4011_v43, %v4013_v51 }
 0x13b   : > { %23877 = vmatprep.mubr.msk.bf16.mxu0 %vm433_vm3, %v2810_v3  ;;  %v2823_v3 = vrot.slane %v27181_v56, 2 }
 0x13c   : > { %23976 = vmatmul.mubr.msk.bf16.gmra.mrb[44].mxu1 %vm433_vm3, %v4000_v5  ;;  %v4015_v5 = vrot.slane %v27182_v61, 2 }
 0x13d   : > { %23979 = vmatprep.mubr.msk.bf16.mxu1 %vm433_vm3, %v4002_v11  ;;  %v2824_v11 = vsel %vm394_vm2, %v2821_v35, %v2823_v3 }
 0x13e   : > { %v4016_v24 = vsel %vm394_vm2, %v4013_v51, %v4015_v5 }
 0x142   : > { %23878 = vmatmul.mubr.msk.bf16.gmra.mrb[48].mxu0 %vm433_vm3, %v2812_v32  ;;  %v27185_v32 = vld [vmem:[%s28024_s8 + $0x108] sm:$0xff]  }
 0x143   : > { %23881 = vmatprep.mubr.msk.bf16.mxu0 %vm433_vm3, %v2814_v39  ;;  %v3863_v39 = vld [vmem:[%s28024_s8 + $0x190] sm:$0xf] }
 0x144   : > { %23980 = vmatmul.mubr.msk.bf16.gmra.mrb[48].mxu1 %vm433_vm3, %v4004_v42  ;;  %v21236_v42 = vcombine.low %v2671_v30, %v28310_v10  ;;  %v21359_v23 = vcombine.low %v3863_v39, %v28339_v50  ;;  %v27191_v10 = vld [vmem:[%s28024_s8 + $0x124] sm:$0xff]   ;;  %v27211_v39 = vld [vmem:[%s28024_s8 + $0x16c] sm:$0xff]  }
 0x145   : > { %23983 = vmatprep.mubr.msk.bf16.mxu1 %vm433_vm3, %v4006_v47  ;;  %v27187_v47 = vld [vmem:[%s28024_s8 + $0x188] sm:$0xff]  }
 0x146   : > { %v27195_v50 = vld [vmem:[%s32564_s1 + $0x8] sm:$0x1f]  }
 0x14a   : > { %23882 = vmatmul.mubr.msk.bf16.gmra.mrb[52].mxu0 %vm433_vm3, %v2816_v46 }
 0x14b   : > { %23885 = vmatprep.mubr.msk.bf16.mxu0 %vm433_vm3, %v2818_v60 }
 0x14c   : > { %23984 = vmatmul.mubr.msk.bf16.gmra.mrb[52].mxu1 %vm433_vm3, %v4008_v48 }
 0x14d   : > { %23987 = vmatprep.mubr.msk.bf16.mxu1 %vm433_vm3, %v4010_v22  ;;  %v27210_v22 = vld [vmem:[%s28024_s8 + $0x1e4] sm:$0xff]  }
 0x152   : > { %23886 = vmatmul.mubr.msk.bf16.gmra.mrb[56].mxu0 %vm433_vm3, %v2820_v54 }
 0x153   : > { %23889 = vmatprep.mubr.msk.bf16.mxu0 %vm433_vm3, %v2822_v57 }
 0x154   : > { %23988 = vmatmul.mubr.msk.bf16.gmra.mrb[56].mxu1 %vm433_vm3, %v4012_v59 }
 0x155   : > { %23991 = vmatprep.mubr.msk.bf16.mxu1 %vm433_vm3, %v4014_v63 }
 0x15a   : > { %23890 = vmatmul.mubr.msk.bf16.gmra.mrb[60].mxu0 %vm433_vm3, %v2824_v11 }
 0x15b   : > { %23895 = vmatprep.mubr.msk.bf16.mxu0 %vm433_vm3, %v27183_v19 }
 0x15c   : > { %23992 = vmatmul.mubr.msk.bf16.gmra.mrb[60].mxu1 %vm433_vm3, %v4016_v24 }
 0x15d   : > { %23997 = vmatprep.mubr.msk.bf16.mxu1 %vm433_vm3, %v27184_v27 }
 0x162   : > { %23896 = vmatmul.mubr.msk.bf16.vlgmr.msra.gmra.mrb[32].mxu0 %vm433_vm3, %v27185_v32 }
 0x163   : > { %23928 = vmatpush3.bf16.msra.mxu0 %v28448_v9  ;;  %23899 = vmatprep.mubr.msk.bf16.mxu0 %vm433_vm3, %v21236_v42  ;;  %v28686_v9 = vld [vmem:[#allocation5 + $0x8] sm:$0xff]  }
 0x164   : > { %23998 = vmatmul.mubr.msk.bf16.vlgmr.msra.gmra.mrb[32].mxu1 %vm433_vm3, %v27187_v47  ;;  %24063 = vmatprep.subr.bf16.mxu0 %v32569_v31 }
 0x165   : > { %24001 = vmatprep.mubr.msk.bf16.mxu1 %vm433_vm3, %v21359_v23  ;;  %24030 = vmatpush3.bf16.msra.mxu1 %v28462_v29  ;;  %v27199_v29 = vld [vmem:[%s28024_s8 + $0x1bc] sm:$0xff]  }
 0x166   : > { %25611 = vmatprep.subr.bf16.mxu1 %v32569_v31 }
 0x16a   : > { %23900 = vmatmul.mubr.msk.bf16.gmra.mrb[36].mxu0 %vm433_vm3, %v28326_v34  ;;  %v27192_v34 = vld [vmem:[%s28024_s8 + $0x1a4] sm:$0xff]  }
 0x16b   : > { %23903 = vmatprep.mubr.msk.bf16.mxu0 %vm433_vm3, %v28404_v16  ;;  %v27193_v16 = vld [vmem:[%s28024_s8 + $0x12c] sm:$0xff]  }
 0x16c   : > { %24002 = vmatmul.mubr.msk.bf16.gmra.mrb[36].mxu1 %vm433_vm3, %v28352_v12  ;;  %v27200_v12 = vld [vmem:[%s32564_s1] sm:$0x1f]  }
 0x16d   : > { %24005 = vmatprep.mubr.msk.bf16.mxu1 %vm433_vm3, %v28411_v21  ;;  %v27196_v21 = vld [vmem:[%s28024_s8 + $0x134] sm:$0xff]  }
 0x172   : > { %23904 = vmatmul.mubr.msk.bf16.gmra.mrb[40].mxu0 %vm433_vm3, %v28408_v20  ;;  %v5222_v20 = vand.u32 %v27195_v50, %v28019_v2 }
 0x173   : > { %23907 = vmatprep.mubr.msk.bf16.mxu0 %vm433_vm3, %v28441_v45  ;;  %v27197_v45 = vld [vmem:[%s28024_s8 + $0x1b4] sm:$0xff]  }
 0x174   : > { %24006 = vmatmul.mubr.msk.bf16.gmra.mrb[40].mxu1 %vm433_vm3, %v28422_v28  ;;  %v27194_v28 = vld [vmem:[%s28024_s8 + $0x1ac] sm:$0xff]  }
 0x175   : > { %24009 = vmatprep.mubr.msk.bf16.mxu1 %vm433_vm3, %v28454_v17  ;;  %v27198_v17 = vld [vmem:[%s28024_s8 + $0x13c] sm:$0xff]  }
 0x17a   : > { %23908 = vmatmul.mubr.msk.bf16.gmra.mrb[44].mxu0 %vm433_vm3, %v28445_v6  ;;  %v28683_v6 = vand.u32 %v27200_v12, %v28019_v2 }
 0x17b   : > { %23911 = vmatprep.mubr.msk.bf16.mxu0 %vm433_vm3, %v28477_v58  ;;  %v27202_v58 = vld [vmem:[%s28024_s8 + $0x1c4] sm:$0xff]  }
 0x17c   : > { %24010 = vmatmul.mubr.msk.bf16.gmra.mrb[44].mxu1 %vm433_vm3, %v28459_v26  ;;  %v27201_v26 = vld [vmem:[%s28024_s8 + $0x144] sm:$0xff]  }
 0x17d   : > { %24013 = vmatprep.mubr.msk.bf16.mxu1 %vm433_vm3, %v28485_v8  ;;  %v27205_v8 = vld [vmem:[%s28024_s8 + $0x154] sm:$0xff]  }
 0x182   : > { %23912 = vmatmul.mubr.msk.bf16.gmra.mrb[48].mxu0 %vm433_vm3, %v28481_v62  ;;  %v27203_v62 = vld [vmem:[%s28024_s8 + $0x14c] sm:$0xff]  }
 0x183   : > { %23915 = vmatprep.mubr.msk.bf16.mxu0 %vm433_vm3, %v28501_v37  ;;  %v27206_v37 = vld [vmem:[%s28024_s8 + $0x1d4] sm:$0xff]  }
 0x184   : > { %24014 = vmatmul.mubr.msk.bf16.gmra.mrb[48].mxu1 %vm433_vm3, %v28490_v14  ;;  %v27204_v14 = vld [vmem:[%s28024_s8 + $0x1cc] sm:$0xff]  }
 0x185   : > { %24017 = vmatprep.mubr.msk.bf16.mxu1 %vm433_vm3, %v28509_v53 }
 0x18a   : > { %23916 = vmatmul.mubr.msk.bf16.gmra.mrb[52].mxu0 %vm433_vm3, %v28505_v49  ;;  %v28707_v49 = vld [vmem:[#allocation3] ss:$0 sm:$0xff] }
 0x18b   : > { %23919 = vmatprep.mubr.msk.bf16.mxu0 %vm433_vm3, %v28525_v1 }
 0x18c   : > { %24018 = vmatmul.mubr.msk.bf16.gmra.mrb[52].mxu1 %vm433_vm3, %v28514_v55 }
 0x18d   : > { %24021 = vmatprep.mubr.msk.bf16.mxu1 %vm433_vm3, %v28533_v7 }
 0x192   : > { %23920 = vmatmul.mubr.msk.bf16.gmra.mrb[56].mxu0 %vm433_vm3, %v28529_v4  ;;  %v27207_v4 = vld [vmem:[%s28024_s8 + $0x15c] sm:$0xff]  }
 0x193   : > { %23923 = vmatprep.mubr.msk.bf16.mxu0 %vm433_vm3, %v28549_v36 }
 0x194   : > { %24022 = vmatmul.mubr.msk.bf16.gmra.mrb[56].mxu1 %vm433_vm3, %v28538_v13 }
 0x195   : > { %24025 = vmatprep.mubr.msk.bf16.mxu1 %vm433_vm3, %v28557_v44 }
 0x19a   : > { %23924 = vmatmul.mubr.msk.bf16.gmra.mrb[60].mxu0 %vm433_vm3, %v28553_v40  ;;  %v27209_v40 = vld [vmem:[%s28024_s8 + $0x164] sm:$0xff]  }
 0x19b   : > { %23929 = vmatprep.mubr.msk.bf16.mxu0 %vm433_vm3, %v27191_v10 }
 0x19c   : > { %24026 = vmatmul.mubr.msk.bf16.gmra.mrb[60].mxu1 %vm433_vm3, %v28562_v15 }
 0x19d   : > { %24031 = vmatprep.mubr.msk.bf16.mxu1 %vm433_vm3, %v27192_v34  ;;  %v27213_v34 = vld [vmem:[%s28024_s8 + $0x174] sm:$0xff]  }
 0x1a2   : > { %23930 = vmatmul.mubr.msk.bf16.vlgmr.msra.gmra.mrb[32].mxu0 %vm433_vm3, %v27193_v16 }
 0x1a3   : > { %24064 = vmatpush3.bf16.msra.mxu0 %v5222_v20  ;;  %23933 = vmatprep.mubr.msk.bf16.mxu0 %vm433_vm3, %v27196_v21 }
 0x1a4   : > { %24032 = vmatmul.mubr.msk.bf16.vlgmr.msra.gmra.mrb[32].mxu1 %vm433_vm3, %v27194_v28  ;;  %24117 = vmatprep.subr.bf16.mxu0 %v32569_v31  ;;  %v27212_v28 = vld [vmem:[%s28024_s8 + $0x1ec] sm:$0xff]  }
 0x1a5   : > { %24035 = vmatprep.mubr.msk.bf16.mxu1 %vm433_vm3, %v27197_v45  ;;  %25612 = vmatpush3.bf16.msra.mxu1 %v28683_v6 }
 0x1a6   : > { %24225 = vmatprep.subr.bf16.mxu1 %v28686_v9 }
 0x1aa   : > { %23934 = vmatmul.mubr.msk.bf16.gmra.mrb[36].mxu0 %vm433_vm3, %v27198_v17 }
 0x1ab   : > { %23937 = vmatprep.mubr.msk.bf16.mxu0 %vm433_vm3, %v27201_v26 }
 0x1ac   : > { %24036 = vmatmul.mubr.msk.bf16.gmra.mrb[36].mxu1 %vm433_vm3, %v27199_v29 }
 0x1ad   : > { %24039 = vmatprep.mubr.msk.bf16.mxu1 %vm433_vm3, %v27202_v58  ;;  %v27214_v58 = vld [vmem:[%s28024_s8 + $0x1f4] sm:$0xff]  }
 0x1b2   : > { %23938 = vmatmul.mubr.msk.bf16.gmra.mrb[40].mxu0 %vm433_vm3, %v27203_v62 }
 0x1b3   : > { %23941 = vmatprep.mubr.msk.bf16.mxu0 %vm433_vm3, %v27205_v8 }
 0x1b4   : > { %24040 = vmatmul.mubr.msk.bf16.gmra.mrb[40].mxu1 %vm433_vm3, %v27204_v14 }
 0x1b5   : > { %v23727_v53 = vpop.f32.mrb[0].mxu0  ;;  %24043 = vmatprep.mubr.msk.bf16.mxu1 %vm433_vm3, %v27206_v37 }
 0x1b6   : > { %v1252_v55 = vadd.f32 %v23727_v53, %v28707_v49  ;;  %v1085_v1 = vpop.f32.mrb[1].mxu0 }
 0x1b7   : > { %v23829_v7 = vpop.f32.mrb[0].mxu1  ;;  %v1250_v13 = vadd.f32 %v28707_v49, %v1085_v1  ;;  %v23728_v36 = vpop.f32.mrb[2].mxu0 }
 0x1b8   : > { %v1284_v44 = vmax.f32 %v1252_v55, 0.0  ;;  %v2445_v15 = vadd.f32 %v23829_v7, %v28707_v49  ;;  %v2284_v38 = vpop.f32.mrb[1].mxu1  ;;  %v1253_v41 = vadd.f32 %v23728_v36, %v28707_v49  ;;  %v1088_v46 = vpop.f32.mrb[3].mxu0 }
 0x1b9   : > { %v1282_v60 = vmax.f32 %v1250_v13, 0.0  ;;  %v2443_v0 = vadd.f32 %v28707_v49, %v2284_v38  ;;  %v23830_v48 = vpop.f32.mrb[2].mxu1  ;;  %v1251_v18 = vadd.f32 %v28707_v49, %v1088_v46  ;;  %v28755_v46 = vld [vmem:[%s28024_s8 + $0x214] sm:$0xf] }
 0x1ba   : > { %v22565_v25 = vpack.c.bf16 %v1284_v44, %v1284_v44  ;;  %v2477_v33 = vmax.f32 %v2445_v15, 0.0  ;;  %v1285_v35 = vmax.f32 %v1253_v41, 0.0  ;;  %v2446_v43 = vadd.f32 %v23830_v48, %v28707_v49  ;;  %v2287_v51 = vpop.f32.mrb[3].mxu1  ;;  %23942 = vmatmul.mubr.msk.bf16.gmra.mrb[44].mxu0 %vm433_vm3, %v27207_v4  ;;  %v27215_v48 = vld [vmem:[%s28024_s8 + $0x17c] sm:$0xff]  }
 0x1bb   : > { %v22563_v54 = vpack.c.bf16 %v1282_v60, %v1282_v60  ;;  %v2475_v56 = vmax.f32 %v2443_v0, 0.0  ;;  %v1283_v57 = vmax.f32 %v1251_v18, 0.0  ;;  %v2444_v59 = vadd.f32 %v28707_v49, %v2287_v51  ;;  %23945 = vmatprep.mubr.msk.bf16.mxu0 %vm433_vm3, %v27209_v40  ;;  %v5078_v18 = vld [vmem:[%s28024_s8 + $0x210] sm:$0xc]  ;;  %v27217_v51 = vld [vmem:[%s28024_s8 + $0x184] sm:$0xff]  }
 0x1bc   : > { %1445 = vst.msk [vmem:[#allocation2 + $0x8] sm:$0xf] %vm1442_vm4, %v22565_v25  ;;  %v22597_v61 = vpack.c.bf16 %v2477_v33, %v2477_v33  ;;  %v22566_v63 = vpack.c.bf16 %v1285_v35, %v1285_v35  ;;  %v2478_v3 = vmax.f32 %v2446_v43, 0.0  ;;  %24044 = vmatmul.mubr.msk.bf16.gmra.mrb[44].mxu1 %vm433_vm3, %v27208_v52  ;;  %v27216_v43 = vld [vmem:[%s28024_s8 + $0x1fc] sm:$0xff]  }
 0x1bd   : > { %1443 = vst.msk [vmem:[#allocation2] sm:$0xf] %vm1442_vm4, %v22563_v54  ;;  %v22595_v5 = vpack.c.bf16 %v2475_v56, %v2475_v56  ;;  %v22564_v11 = vpack.c.bf16 %v1283_v57, %v1283_v57  ;;  %v2476_v19 = vmax.f32 %v2444_v59, 0.0  ;;  %v23731_v24 = vpop.f32.mrb[4].mxu0  ;;  %24047 = vmatprep.mubr.msk.bf16.mxu1 %vm433_vm3, %v27210_v22 }
 0x1be   : > { %2637 = vst.msk [vmem:[#allocation2 + $0x88] sm:$0xf] %vm1442_vm4, %v22597_v61  ;;  %1446 = vst.msk [vmem:[#allocation2 + $0xc] sm:$0xf] %vm1442_vm4, %v22566_v63  ;;  %v22598_v27 = vpack.c.bf16 %v2478_v3, %v2478_v3  ;;  %v1256_v30 = vadd.f32 %v23731_v24, %v28707_v49  ;;  %v1101_v32 = vpop.f32.mrb[5].mxu0  ;;  %v27218_v63 = vld [vmem:[%s28024_s8 + $0x204] sm:$0xff]   ;;  %v21446_v24 = vcombine.low %v5078_v18, %v28755_v46 }
 0x1bf   : > { %2635 = vst.msk [vmem:[#allocation2 + $0x80] sm:$0xf] %vm1442_vm4, %v22595_v5  ;;  %1444 = vst.msk [vmem:[#allocation2 + $0x4] sm:$0xf] %vm1442_vm4, %v22564_v11  ;;  %v22596_v42 = vpack.c.bf16 %v2476_v19, %v2476_v19  ;;  %v23833_v47 = vpop.f32.mrb[4].mxu1  ;;  %v1254_v23 = vadd.f32 %v28707_v49, %v1101_v32  ;;  %v23732_v10 = vpop.f32.mrb[6].mxu0 }
 0x1c0   : > { %2638 = vst.msk [vmem:[#allocation2 + $0x8c] sm:$0xf] %vm1442_vm4, %v22598_v27  ;;  %v1288_v50 = vmax.f32 %v1256_v30, 0.0  ;;  %v2449_v12 = vadd.f32 %v23833_v47, %v28707_v49  ;;  %v2300_v16 = vpop.f32.mrb[5].mxu1  ;;  %v1257_v20 = vadd.f32 %v23732_v10, %v28707_v49  ;;  %v1104_v21 = vpop.f32.mrb[7].mxu0  ;;  %v28776_v27 = vld [vmem:[%s28024_s8 + $0x218] sm:$0xff]  }
 0x1c1   : > { %2636 = vst.msk [vmem:[#allocation2 + $0x84] sm:$0xf] %vm1442_vm4, %v22596_v42  ;;  %v1286_v45 = vmax.f32 %v1254_v23, 0.0  ;;  %v2447_v17 = vadd.f32 %v28707_v49, %v2300_v16  ;;  %v23834_v26 = vpop.f32.mrb[6].mxu1  ;;  %v1255_v29 = vadd.f32 %v28707_v49, %v1104_v21  ;;  %v28781_v10 = vld [vmem:[%s28024_s8 + $0x220] sm:$0xff]  }
 0x1c2   : > { %v22569_v62 = vpack.c.bf16 %v1288_v50, %v1288_v50  ;;  %v2481_v8 = vmax.f32 %v2449_v12, 0.0  ;;  %v1289_v14 = vmax.f32 %v1257_v20, 0.0  ;;  %v2450_v37 = vadd.f32 %v23834_v26, %v28707_v49  ;;  %v2303_v53 = vpop.f32.mrb[7].mxu1  ;;  %23946 = vmatmul.mubr.msk.bf16.gmra.mrb[48].mxu0 %vm433_vm3, %v27211_v39 }
 0x1c3   : > { %v22567_v55 = vpack.c.bf16 %v1286_v45, %v1286_v45  ;;  %v2479_v1 = vmax.f32 %v2447_v17, 0.0  ;;  %v1287_v4 = vmax.f32 %v1255_v29, 0.0  ;;  %v2448_v7 = vadd.f32 %v28707_v49, %v2303_v53  ;;  %23949 = vmatprep.mubr.msk.bf16.mxu0 %vm433_vm3, %v27213_v34 }
 0x1c4   : > { %1449 = vst.msk [vmem:[#allocation2 + $0x18] sm:$0xf] %vm1442_vm4, %v22569_v62  ;;  %v22601_v13 = vpack.c.bf16 %v2481_v8, %v2481_v8  ;;  %v22570_v36 = vpack.c.bf16 %v1289_v14, %v1289_v14  ;;  %v2482_v40 = vmax.f32 %v2450_v37, 0.0  ;;  %24048 = vmatmul.mubr.msk.bf16.gmra.mrb[48].mxu1 %vm433_vm3, %v27212_v28  ;;  %v6034_v45 = vld [vmem:[#allocation2] sm:$0xf] }
 0x1c5   : > { %1447 = vst.msk [vmem:[#allocation2 + $0x10] sm:$0xf] %vm1442_vm4, %v22567_v55  ;;  %v22599_v44 = vpack.c.bf16 %v2479_v1, %v2479_v1  ;;  %v22568_v15 = vpack.c.bf16 %v1287_v4, %v1287_v4  ;;  %v2480_v38 = vmax.f32 %v2448_v7, 0.0  ;;  %v23735_v41 = vpop.f32.mrb[8].mxu0  ;;  %24051 = vmatprep.mubr.msk.bf16.mxu1 %vm433_vm3, %v27214_v58  ;;  %v28787_v17 = vld [vmem:[#allocation2 + $0x8] sm:$0xff]   ;;  %v5152_v1 = vrot.slane %v21446_v24, 2 }
 0x1c6   : > { %2641 = vst.msk [vmem:[#allocation2 + $0x98] sm:$0xf] %vm1442_vm4, %v22601_v13  ;;  %1450 = vst.msk [vmem:[#allocation2 + $0x1c] sm:$0xf] %vm1442_vm4, %v22570_v36  ;;  %v22602_v52 = vpack.c.bf16 %v2482_v40, %v2482_v40  ;;  %v1260_v60 = vadd.f32 %v23735_v41, %v28707_v49  ;;  %v1117_v0 = vpop.f32.mrb[9].mxu0  ;;  %v27219_v55 = vld [vmem:[%s28024_s8 + $0x18c] sm:$0xff]  }
 0x1c7   : > { %2639 = vst.msk [vmem:[#allocation2 + $0x90] sm:$0xf] %vm1442_vm4, %v22599_v44  ;;  %1448 = vst.msk [vmem:[#allocation2 + $0x14] sm:$0xf] %vm1442_vm4, %v22568_v15  ;;  %v22600_v22 = vpack.c.bf16 %v2480_v38, %v2480_v38  ;;  %v23837_v25 = vpop.f32.mrb[8].mxu1  ;;  %v1258_v33 = vadd.f32 %v28707_v49, %v1117_v0  ;;  %v23736_v35 = vpop.f32.mrb[10].mxu0 }
 0x1c8   : > { %2642 = vst.msk [vmem:[#allocation2 + $0x9c] sm:$0xf] %vm1442_vm4, %v22602_v52  ;;  %v1292_v54 = vmax.f32 %v1260_v60, 0.0  ;;  %v2453_v56 = vadd.f32 %v23837_v25, %v28707_v49  ;;  %v2316_v57 = vpop.f32.mrb[9].mxu1  ;;  %v1261_v59 = vadd.f32 %v23736_v35, %v28707_v49  ;;  %v1120_v61 = vpop.f32.mrb[11].mxu0  ;;  %v27221_v40 = vld [vmem:[%s28024_s8 + $0x194] sm:$0xff]  }
 0x1c9   : > { %2640 = vst.msk [vmem:[#allocation2 + $0x94] sm:$0xf] %vm1442_vm4, %v22600_v22  ;;  %v1290_v3 = vmax.f32 %v1258_v33, 0.0  ;;  %v2451_v5 = vadd.f32 %v28707_v49, %v2316_v57  ;;  %v23838_v11 = vpop.f32.mrb[10].mxu1  ;;  %v1259_v19 = vadd.f32 %v28707_v49, %v1120_v61  ;;  %v6035_v30 = vld [vmem:[#allocation2 + $0x4] sm:$0xf] }
 0x1ca   : > { %v22573_v32 = vpack.c.bf16 %v1292_v54, %v1292_v54  ;;  %v2485_v39 = vmax.f32 %v2453_v56, 0.0  ;;  %v1293_v42 = vmax.f32 %v1261_v59, 0.0  ;;  %v2454_v47 = vadd.f32 %v23838_v11, %v28707_v49  ;;  %v2319_v23 = vpop.f32.mrb[11].mxu1  ;;  %23950 = vmatmul.mubr.msk.bf16.gmra.mrb[52].mxu0 %vm433_vm3, %v27215_v48  ;;  %v27220_v0 = vld [vmem:[%s28024_s8 + $0x20c] sm:$0xff]   ;;  %v27222_v35 = vld [vmem:[%s28024_s8 + $0x214] sm:$0xff]  }
 0x1cb   : > { %v22571_v34 = vpack.c.bf16 %v1290_v3, %v1290_v3  ;;  %v2483_v50 = vmax.f32 %v2451_v5, 0.0  ;;  %v1291_v12 = vmax.f32 %v1259_v19, 0.0  ;;  %v2452_v16 = vadd.f32 %v28707_v49, %v2319_v23  ;;  %23953 = vmatprep.mubr.msk.bf16.mxu0 %vm433_vm3, %v27217_v51 }
 0x1cc   : > { %1453 = vst.msk [vmem:[#allocation2 + $0x28] sm:$0xf] %vm1442_vm4, %v22573_v32  ;;  %v22605_v20 = vpack.c.bf16 %v2485_v39, %v2485_v39  ;;  %v22574_v21 = vpack.c.bf16 %v1293_v42, %v1293_v42  ;;  %v2486_v28 = vmax.f32 %v2454_v47, 0.0  ;;  %24052 = vmatmul.mubr.msk.bf16.gmra.mrb[52].mxu1 %vm433_vm3, %v27216_v43  ;;  %v28791_v8 = vcombine.low %v6034_v45, %v6035_v30 }
 0x1cd   : > { %1451 = vst.msk [vmem:[#allocation2 + $0x20] sm:$0xf] %vm1442_vm4, %v22571_v34  ;;  %v22603_v26 = vpack.c.bf16 %v2483_v50, %v2483_v50  ;;  %v22572_v29 = vpack.c.bf16 %v1291_v12, %v1291_v12  ;;  %v2484_v58 = vmax.f32 %v2452_v16, 0.0  ;;  %v23739_v62 = vpop.f32.mrb[12].mxu0  ;;  %24055 = vmatprep.mubr.msk.bf16.mxu1 %vm433_vm3, %v27218_v63  ;;  %v5153_v44 = vrot.slane %v28776_v27, 2  ;;  %v27223_v12 = vld [vmem:[%s28024_s8 + $0x19c] sm:$0xff]  }
 0x1ce   : > { %2645 = vst.msk [vmem:[#allocation2 + $0xa8] sm:$0xf] %vm1442_vm4, %v22605_v20  ;;  %1454 = vst.msk [vmem:[#allocation2 + $0x2c] sm:$0xf] %vm1442_vm4, %v22574_v21  ;;  %v22606_v14 = vpack.c.bf16 %v2486_v28, %v2486_v28  ;;  %v1264_v37 = vadd.f32 %v23739_v62, %v28707_v49  ;;  %v1133_v53 = vpop.f32.mrb[13].mxu0  ;;  %v5155_v15 = vrot.slane %v28781_v10, 2 }
 0x1cf   : > { %2643 = vst.msk [vmem:[#allocation2 + $0xa0] sm:$0xf] %vm1442_vm4, %v22603_v26  ;;  %1452 = vst.msk [vmem:[#allocation2 + $0x24] sm:$0xf] %vm1442_vm4, %v22572_v29  ;;  %v22604_v4 = vpack.c.bf16 %v2484_v58, %v2484_v58  ;;  %v23841_v7 = vpop.f32.mrb[12].mxu1  ;;  %v1262_v13 = vadd.f32 %v28707_v49, %v1133_v53  ;;  %v23740_v36 = vpop.f32.mrb[14].mxu0  ;;  %v28828_v16 = vsel %vm394_vm2, %v5152_v1, %v5153_v44 }
 0x1d0   : > { %2646 = vst.msk [vmem:[#allocation2 + $0xac] sm:$0xf] %vm1442_vm4, %v22606_v14  ;;  %v1296_v38 = vmax.f32 %v1264_v37, 0.0  ;;  %v2457_v41 = vadd.f32 %v23841_v7, %v28707_v49  ;;  %v2332_v46 = vpop.f32.mrb[13].mxu1  ;;  %v1265_v52 = vadd.f32 %v23740_v36, %v28707_v49  ;;  %v1136_v60 = vpop.f32.mrb[15].mxu0  ;;  %v6164_v48 = vshll.u32 %v28787_v17, 16 }
 0x1d1   : > { %2644 = vst.msk [vmem:[#allocation2 + $0xa4] sm:$0xf] %vm1442_vm4, %v22604_v4  ;;  %v1294_v18 = vmax.f32 %v1262_v13, 0.0  ;;  %v2455_v22 = vadd.f32 %v28707_v49, %v2332_v46  ;;  %v23842_v25 = vpop.f32.mrb[14].mxu1  ;;  %v1263_v33 = vadd.f32 %v28707_v49, %v1136_v60  ;;  %v6159_v43 = vshll.u32 %v28791_v8, 16  ;;  %v28819_v27 = vld [vmem:[#allocation2 + $0x10] sm:$0xff]  }
 0x1d2   : > { %v22577_v51 = vpack.c.bf16 %v1296_v38, %v1296_v38  ;;  %v2489_v54 = vmax.f32 %v2457_v41, 0.0  ;;  %v1297_v56 = vmax.f32 %v1265_v52, 0.0  ;;  %v2458_v57 = vadd.f32 %v23842_v25, %v28707_v49  ;;  %v2335_v59 = vpop.f32.mrb[15].mxu1  ;;  %23954 = vmatmul.mubr.msk.bf16.gmra.mrb[56].mxu0 %vm433_vm3, %v27219_v55  ;;  %v27224_v29 = vld [vmem:[%s28024_s8 + $0x21c] sm:$0xff]  }
 0x1d3   : > { %v22575_v61 = vpack.c.bf16 %v1294_v18, %v1294_v18  ;;  %v2487_v63 = vmax.f32 %v2455_v22, 0.0  ;;  %v1295_v3 = vmax.f32 %v1263_v33, 0.0  ;;  %v2456_v5 = vadd.f32 %v28707_v49, %v2335_v59  ;;  %23957 = vmatprep.mubr.msk.bf16.mxu0 %vm433_vm3, %v27221_v40  ;;  %v28840_v14 = vld [vmem:[#allocation2 + $0x18] sm:$0xff]  }
 0x1d4   : > { %1457 = vst.msk [vmem:[#allocation2 + $0x38] sm:$0xf] %vm1442_vm4, %v22577_v51  ;;  %v22609_v11 = vpack.c.bf16 %v2489_v54, %v2489_v54  ;;  %v22578_v19 = vpack.c.bf16 %v1297_v56, %v1297_v56  ;;  %v2490_v24 = vmax.f32 %v2458_v57, 0.0  ;;  %24056 = vmatmul.mubr.msk.bf16.gmra.mrb[56].mxu1 %vm433_vm3, %v27220_v0  ;;  %v6161_v47 = vrot.slane %v6159_v43, 1 }
 0x1d5   : > { %1455 = vst.msk [vmem:[#allocation2 + $0x30] sm:$0xf] %vm1442_vm4, %v22575_v61  ;;  %v22607_v30 = vpack.c.bf16 %v2487_v63, %v2487_v63  ;;  %v22576_v32 = vpack.c.bf16 %v1295_v3, %v1295_v3  ;;  %v2488_v39 = vmax.f32 %v2456_v5, 0.0  ;;  %v23743_v42 = vpop.f32.mrb[16].mxu0  ;;  %24059 = vmatprep.mubr.msk.bf16.mxu1 %vm433_vm3, %v27222_v35  ;;  %v28833_v20 = vsel %vm394_vm2, %v5153_v44, %v5155_v15 }
 0x1d6   : > { %2649 = vst.msk [vmem:[#allocation2 + $0xb8] sm:$0xf] %vm1442_vm4, %v22609_v11  ;;  %1458 = vst.msk [vmem:[#allocation2 + $0x3c] sm:$0xf] %vm1442_vm4, %v22578_v19  ;;  %v22610_v23 = vpack.c.bf16 %v2490_v24, %v2490_v24  ;;  %v1268_v34 = vadd.f32 %v23743_v42, %v28707_v49  ;;  %v1149_v50 = vpop.f32.mrb[17].mxu0  ;;  %v6157_v58 = vshrl.u32 %v28791_v8, 16 }
 0x1d7   : > { %2647 = vst.msk [vmem:[#allocation2 + $0xb0] sm:$0xf] %vm1442_vm4, %v22607_v30  ;;  %1456 = vst.msk [vmem:[#allocation2 + $0x34] sm:$0xf] %vm1442_vm4, %v22576_v32  ;;  %v22608_v21 = vpack.c.bf16 %v2488_v39, %v2488_v39  ;;  %v23845_v28 = vpop.f32.mrb[16].mxu1  ;;  %v1266_v45 = vadd.f32 %v28707_v49, %v1149_v50  ;;  %v23744_v26 = vpop.f32.mrb[18].mxu0 }
 0x1d8   : > { %v6166_v62 = vrot.slane %v6164_v48, 1  ;;  %2650 = vst.msk [vmem:[#allocation2 + $0xbc] sm:$0xf] %vm1442_vm4, %v22610_v23  ;;  %v1300_v37 = vmax.f32 %v1268_v34, 0.0  ;;  %v2461_v53 = vadd.f32 %v23845_v28, %v28707_v49  ;;  %v2348_v55 = vpop.f32.mrb[17].mxu1  ;;  %v1269_v1 = vadd.f32 %v23744_v26, %v28707_v49  ;;  %v1152_v4 = vpop.f32.mrb[19].mxu0 }
 0x1d9   : > { %v6172_v7 = vshll.u32 %v28819_v27, 16  ;;  %2648 = vst.msk [vmem:[#allocation2 + $0xb4] sm:$0xf] %vm1442_vm4, %v22608_v21  ;;  %v1298_v13 = vmax.f32 %v1266_v45, 0.0  ;;  %v2459_v36 = vadd.f32 %v28707_v49, %v2348_v55  ;;  %v23846_v40 = vpop.f32.mrb[18].mxu1  ;;  %v1267_v44 = vadd.f32 %v28707_v49, %v1152_v4  ;;  %v28852_v48 = vld [vmem:[%s28024_s8 + $0x228] sm:$0xff]  }
 0x1da   : > { %v6162_v38 = vor.u32 %v6161_v47, %v6157_v58  ;;  %v22581_v41 = vpack.c.bf16 %v1300_v37, %v1300_v37  ;;  %v2493_v46 = vmax.f32 %v2461_v53, 0.0  ;;  %v1301_v52 = vmax.f32 %v1269_v1, 0.0  ;;  %v2351_v0 = vpop.f32.mrb[19].mxu1  ;;  %23958 = vmatmul.mubr.msk.bf16.gmra.mrb[60].mxu0 %vm433_vm3, %v27223_v12  ;;  %v28882_v53 = vld [vmem:[#allocation2 + $0x20] sm:$0xff]  }
 0x1db   : > { %v2462_v60 = vadd.f32 %v23846_v40, %v28707_v49  ;;  %v22579_v18 = vpack.c.bf16 %v1298_v13, %v1298_v13  ;;  %v2491_v22 = vmax.f32 %v2459_v36, 0.0  ;;  %v1299_v25 = vmax.f32 %v1267_v44, 0.0  ;;  %24065 = vmatprep.mubr.msk.bf16.mxu0 %vm27866_vm7, %v32569_v31  ;;  %v28887_v36 = vld [vmem:[#allocation5] sm:$0xff]  }
 0x1dc   : > { %v2460_v33 = vadd.f32 %v28707_v49, %v2351_v0  ;;  %1461 = vst.msk [vmem:[#allocation2 + $0x48] sm:$0xf] %vm1442_vm4, %v22581_v41  ;;  %v22613_v35 = vpack.c.bf16 %v2493_v46, %v2493_v46  ;;  %v22582_v43 = vpack.c.bf16 %v1301_v52, %v1301_v52  ;;  %24060 = vmatmul.mubr.msk.bf16.gmra.mrb[60].mxu1 %vm433_vm3, %v27224_v29  ;;  %v6168_v54 = vshrl.u32 %v28787_v17, 16  ;;  %v27227_v17 = vld [vmem:[%s28024_s8 + $0x260] ss:$0 sps:$4 sm:$0x77]  }
 0x1dd   : > { %v2494_v51 = vmax.f32 %v2462_v60, 0.0  ;;  %1459 = vst.msk [vmem:[#allocation2 + $0x40] sm:$0xf] %vm1442_vm4, %v22579_v18  ;;  %v22611_v56 = vpack.c.bf16 %v2491_v22, %v2491_v22  ;;  %v22580_v57 = vpack.c.bf16 %v1299_v25, %v1299_v25  ;;  %v23747_v61 = vpop.f32.mrb[20].mxu0  ;;  %24167 = vmatprep.mubr.msk.bf16.mxu1 %vm27866_vm7, %v32569_v31  ;;  %v6180_v63 = vshll.u32 %v28840_v14, 16  ;;  %v28889_v40 = vld [vmem:[#allocation2 + $0x28] sm:$0xff]  }
 0x1de   : > { %v2492_v59 = vmax.f32 %v2460_v33, 0.0  ;;  %2653 = vst.msk [vmem:[#allocation2 + $0xc8] sm:$0xf] %vm1442_vm4, %v22613_v35  ;;  %1462 = vst.msk [vmem:[#allocation2 + $0x4c] sm:$0xf] %vm1442_vm4, %v22582_v43  ;;  %v1272_v5 = vadd.f32 %v23747_v61, %v28707_v49  ;;  %v1165_v11 = vpop.f32.mrb[21].mxu0  ;;  %v6170_v19 = vor.u32 %v6168_v54, %v6166_v62  ;;  %v6167_v47 = vsel %vm6155_vm5, %v6162_v38, %v6166_v62 }
 0x1df   : > { %v22614_v3 = vpack.c.bf16 %v2494_v51, %v2494_v51  ;;  %v5157_v24 = vrot.slane %v28852_v48, 2  ;;  %2651 = vst.msk [vmem:[#allocation2 + $0xc0] sm:$0xf] %vm1442_vm4, %v22611_v56  ;;  %1460 = vst.msk [vmem:[#allocation2 + $0x44] sm:$0xf] %vm1442_vm4, %v22580_v57  ;;  %v23849_v32 = vpop.f32.mrb[20].mxu1  ;;  %v1270_v39 = vadd.f32 %v28707_v49, %v1165_v11 }
 0x1e0   : > { %v22612_v30 = vpack.c.bf16 %v2492_v59, %v2492_v59  ;;  %v23748_v42 = vpop.f32.mrb[22].mxu0  ;;  %v6174_v23 = vrot.slane %v6172_v7, 1  ;;  %v1304_v34 = vmax.f32 %v1272_v5, 0.0  ;;  %v2465_v50 = vadd.f32 %v23849_v32, %v28707_v49  ;;  %v2364_v12 = vpop.f32.mrb[21].mxu1 }
 0x1e1   : > { %2654 = vst.msk [vmem:[#allocation2 + $0xcc] sm:$0xf] %vm1442_vm4, %v22614_v3  ;;  %v1273_v21 = vadd.f32 %v23748_v42, %v28707_v49  ;;  %v1168_v28 = vpop.f32.mrb[23].mxu0  ;;  %v6176_v45 = vshrl.u32 %v28819_v27, 16  ;;  %v1302_v26 = vmax.f32 %v1270_v39, 0.0  ;;  %v2463_v29 = vadd.f32 %v28707_v49, %v2364_v12  ;;  %v23850_v58 = vpop.f32.mrb[22].mxu1 }
 0x1e2   : > { %2652 = vst.msk [vmem:[#allocation2 + $0xc4] sm:$0xf] %vm1442_vm4, %v22612_v30  ;;  %v1271_v62 = vadd.f32 %v28707_v49, %v1168_v28  ;;  %v28880_v37 = vrot.slane %v6180_v63, 1  ;;  %v22585_v55 = vpack.c.bf16 %v1304_v34, %v1304_v34  ;;  %v2497_v1 = vmax.f32 %v2465_v50, 0.0  ;;  %v2367_v13 = vpop.f32.mrb[23].mxu1  ;;  %24066 = vmatmul.mubr.msk.bf16.vlgmr.msra.gmra.mrb[64].mxu0 %vm433_vm3, %v28828_v16  ;;  %v28921_v50 = vld [vmem:[%s28024_s8 + $0x230] sm:$0xff]  }
 0x1e3   : > { %v1305_v4 = vmax.f32 %v1273_v21, 0.0  ;;  %v2466_v7 = vadd.f32 %v23850_v58, %v28707_v49  ;;  %v22583_v44 = vpack.c.bf16 %v1302_v26, %v1302_v26  ;;  %v2495_v38 = vmax.f32 %v2463_v29, 0.0  ;;  %24118 = vmatpush3.bf16.msra.mxu0 %v28683_v6  ;;  %24069 = vmatprep.mubr.msk.bf16.mxu0 %vm27866_vm7, %v32569_v31  ;;  %v28926_v29 = vld [vmem:[#allocation5 + $0x10] sm:$0xff]  }
 0x1e4   : > { %v1303_v41 = vmax.f32 %v1271_v62, 0.0  ;;  %v2464_v46 = vadd.f32 %v28707_v49, %v2367_v13  ;;  %1465 = vst.msk [vmem:[#allocation2 + $0x58] sm:$0xf] %vm1442_vm4, %v22585_v55  ;;  %v22617_v52 = vpack.c.bf16 %v2497_v1, %v2497_v1  ;;  %24168 = vmatmul.mubr.msk.bf16.vlgmr.msra.gmra.mrb[64].mxu1 %vm433_vm3, %v27227_v17  ;;  %v6184_v16 = vshrl.u32 %v28840_v14, 16  ;;  %24171 = vmatprep.subr.bf16.mxu0 %v32569_v31 }
 0x1e5   : > { %v22586_v60 = vpack.c.bf16 %v1305_v4, %v1305_v4  ;;  %v2498_v0 = vmax.f32 %v2466_v7, 0.0  ;;  %1463 = vst.msk [vmem:[#allocation2 + $0x50] sm:$0xf] %vm1442_vm4, %v22583_v44  ;;  %v22615_v18 = vpack.c.bf16 %v2495_v38, %v2495_v38  ;;  %24227 = vmatprep.mubr.msk.bf16.mxu1 %vm6294_vm6, %v6167_v47  ;;  %v23751_v6 = vpop.f32.mrb[24].mxu0  ;;  %24226 = vmatpush3.bf16.msra.mxu1 %v28686_v9  ;;  %v6188_v33 = vshll.u32 %v28882_v53, 16  ;;  %v28935_v44 = vld [vmem:[#allocation2 + $0x30] sm:$0xff]  }
 0x1e6   : > { %v22584_v22 = vpack.c.bf16 %v1303_v41, %v1303_v41  ;;  %v2496_v25 = vmax.f32 %v2464_v46, 0.0  ;;  %2657 = vst.msk [vmem:[#allocation2 + $0xd8] sm:$0xf] %vm1442_vm4, %v22617_v52  ;;  %v1276_v43 = vadd.f32 %v23751_v6, %v28707_v49  ;;  %v1181_v51 = vpop.f32.mrb[25].mxu0  ;;  %v6175_v54 = vsel %vm6155_vm5, %v6170_v19, %v6174_v23  ;;  %24259 = vmatprep.subr.bf16.mxu1 %v28887_v36 }
 0x1e7   : > { %1466 = vst.msk [vmem:[#allocation2 + $0x5c] sm:$0xf] %vm1442_vm4, %v22586_v60  ;;  %v22618_v35 = vpack.c.bf16 %v2498_v0, %v2498_v0  ;;  %v6178_v56 = vor.u32 %v6176_v45, %v6174_v23  ;;  %2655 = vst.msk [vmem:[#allocation2 + $0xd0] sm:$0xf] %vm1442_vm4, %v22615_v18  ;;  %v23853_v57 = vpop.f32.mrb[24].mxu1  ;;  %v1274_v59 = vadd.f32 %v28707_v49, %v1181_v51  ;;  %v23752_v61 = vpop.f32.mrb[26].mxu0 }
 0x1e8   : > { %1464 = vst.msk [vmem:[#allocation2 + $0x54] sm:$0xf] %vm1442_vm4, %v22584_v22  ;;  %v22616_v9 = vpack.c.bf16 %v2496_v25, %v2496_v25  ;;  %v6186_v63 = vor.u32 %v6184_v16, %v28880_v37  ;;  %v6192_v3 = vshrl.u32 %v28882_v53, 16  ;;  %v1308_v5 = vmax.f32 %v1276_v43, 0.0  ;;  %v2380_v17 = vpop.f32.mrb[25].mxu1  ;;  %v1184_v30 = vpop.f32.mrb[27].mxu0 }
 0x1e9   : > { %2658 = vst.msk [vmem:[#allocation2 + $0xdc] sm:$0xf] %vm1442_vm4, %v22618_v35  ;;  %v2469_v11 = vadd.f32 %v23853_v57, %v28707_v49  ;;  %v1277_v19 = vadd.f32 %v23752_v61, %v28707_v49  ;;  %v6196_v32 = vshll.u32 %v28889_v40, 16  ;;  %v1306_v39 = vmax.f32 %v1274_v59, 0.0  ;;  %v23854_v47 = vpop.f32.mrb[26].mxu1 }
 0x1ea   : > { %2656 = vst.msk [vmem:[#allocation2 + $0xd4] sm:$0xf] %vm1442_vm4, %v22616_v9  ;;  %v2467_v42 = vadd.f32 %v28707_v49, %v2380_v17  ;;  %v1275_v23 = vadd.f32 %v28707_v49, %v1184_v30  ;;  %v6190_v34 = vrot.slane %v6188_v33, 1  ;;  %v22589_v12 = vpack.c.bf16 %v1308_v5, %v1308_v5  ;;  %v2383_v26 = vpop.f32.mrb[27].mxu1  ;;  %24070 = vmatmul.mubr.msk.bf16.gmra.mrb[68].mxu0 %vm433_vm3, %v28833_v20  ;;  %v28962_v5 = vld [vmem:[#allocation2 + $0x38] sm:$0xff]  }
 0x1eb   : > { %v2501_v21 = vmax.f32 %v2469_v11, 0.0  ;;  %v1309_v28 = vmax.f32 %v1277_v19, 0.0  ;;  %v2470_v45 = vadd.f32 %v23854_v47, %v28707_v49  ;;  %v22587_v58 = vpack.c.bf16 %v1306_v39, %v1306_v39  ;;  %24073 = vmatprep.mubr.msk.bf16.mxu0 %vm27866_vm7, %v32569_v31  ;;  %v28966_v39 = vld [vmem:[#allocation2 + $0x40] sm:$0xff]  }
 0x1ec   : > { %v2499_v62 = vmax.f32 %v2467_v42, 0.0  ;;  %v1307_v55 = vmax.f32 %v1275_v23, 0.0  ;;  %v2468_v1 = vadd.f32 %v28707_v49, %v2383_v26  ;;  %1469 = vst.msk [vmem:[#allocation2 + $0x68] sm:$0xf] %vm1442_vm4, %v22589_v12  ;;  %24228 = vmatmul.mubr.msk.bf16.vlgmr.msra.gmra.mrb[68].mxu1 %vm6294_vm6, %v6175_v54  ;;  %v6183_v20 = vsel %vm6155_vm5, %v6178_v56, %v28880_v37 }
 0x1ed   : > { %v22621_v4 = vpack.c.bf16 %v2501_v21, %v2501_v21  ;;  %v22590_v7 = vpack.c.bf16 %v1309_v28, %v1309_v28  ;;  %v2502_v13 = vmax.f32 %v2470_v45, 0.0  ;;  %1467 = vst.msk [vmem:[#allocation2 + $0x60] sm:$0xf] %vm1442_vm4, %v22587_v58  ;;  %24231 = vmatprep.mubr.msk.bf16.mxu1 %vm6294_vm6, %v6183_v20  ;;  %v23755_v52 = vpop.f32.mrb[28].mxu0  ;;  %v6194_v60 = vor.u32 %v6192_v3, %v6190_v34 }
 0x1ee   : > { %v22619_v38 = vpack.c.bf16 %v2499_v62, %v2499_v62  ;;  %v22588_v41 = vpack.c.bf16 %v1307_v55, %v1307_v55  ;;  %v2500_v46 = vmax.f32 %v2468_v1, 0.0  ;;  %24260 = vmatpush3.bf16.msra.mxu1 %v28887_v36  ;;  %v1280_v37 = vadd.f32 %v23755_v52, %v28707_v49  ;;  %v1197_v16 = vpop.f32.mrb[29].mxu0  ;;  %v27241_v55 = vld [vmem:[%s28024_s8 + $0x238] sm:$0xff]  }
 0x1ef   : > { %2661 = vst.msk [vmem:[#allocation2 + $0xe8] sm:$0xf] %vm1442_vm4, %v22621_v4  ;;  %1470 = vst.msk [vmem:[#allocation2 + $0x6c] sm:$0xf] %vm1442_vm4, %v22590_v7  ;;  %v22622_v0 = vpack.c.bf16 %v2502_v13, %v2502_v13  ;;  %v5158_v18 = vsel %vm394_vm2, %v5155_v15, %v5157_v24  ;;  %v5159_v22 = vrot.slane %v28921_v50, 2  ;;  %24293 = vmatprep.subr.bf16.mxu1 %v28926_v29  ;;  %v23857_v25 = vpop.f32.mrb[28].mxu1 }
 0x1f0   : > { %2659 = vst.msk [vmem:[#allocation2 + $0xe0] sm:$0xf] %vm1442_vm4, %v22619_v38  ;;  %1468 = vst.msk [vmem:[#allocation2 + $0x64] sm:$0xf] %vm1442_vm4, %v22588_v41  ;;  %v22620_v36 = vpack.c.bf16 %v2500_v46, %v2500_v46  ;;  %v1278_v6 = vadd.f32 %v28707_v49, %v1197_v16  ;;  %v23756_v33 = vpop.f32.mrb[30].mxu0  ;;  %v6191_v35 = vsel %vm6155_vm5, %v6186_v63, %v6190_v34  ;;  %v6198_v43 = vrot.slane %v6196_v32, 1 }
 0x1f1   : > { %2662 = vst.msk [vmem:[#allocation2 + $0xec] sm:$0xf] %vm1442_vm4, %v22622_v0  ;;  %v1312_v10 = vmax.f32 %v1280_v37, 0.0  ;;  %v2473_v15 = vadd.f32 %v23857_v25, %v28707_v49  ;;  %v2396_v51 = vpop.f32.mrb[29].mxu1  ;;  %v1281_v54 = vadd.f32 %v23756_v33, %v28707_v49  ;;  %v1200_v56 = vpop.f32.mrb[31].mxu0  ;;  %v6204_v9 = vshll.u32 %v28935_v44, 16 }
 0x1f2   : > { %2660 = vst.msk [vmem:[#allocation2 + $0xe4] sm:$0xf] %vm1442_vm4, %v22620_v36  ;;  %v1310_v57 = vmax.f32 %v1278_v6, 0.0  ;;  %v2471_v59 = vadd.f32 %v28707_v49, %v2396_v51  ;;  %v23858_v61 = vpop.f32.mrb[30].mxu1  ;;  %v1279_v63 = vadd.f32 %v28707_v49, %v1200_v56  ;;  %v6199_v3 = vsel %vm6155_vm5, %v6194_v60, %v6198_v43  ;;  %24074 = vmatmul.mubr.msk.bf16.gmra.mrb[72].mxu0 %vm433_vm3, %v5158_v18  ;;  %v28992_v0 = vld [vmem:[#allocation2 + $0x48] sm:$0xff]   ;;  %v28997_v37 = vld [vmem:[#allocation2 + $0x50] sm:$0xff]  }
 0x1f3   : > { %v22593_v11 = vpack.c.bf16 %v1312_v10, %v1312_v10  ;;  %v2505_v17 = vmax.f32 %v2473_v15, 0.0  ;;  %v1313_v19 = vmax.f32 %v1281_v54, 0.0  ;;  %v2474_v30 = vadd.f32 %v23858_v61, %v28707_v49  ;;  %v2399_v32 = vpop.f32.mrb[31].mxu1  ;;  %24077 = vmatprep.mubr.msk.bf16.mxu0 %vm27866_vm7, %v32569_v31  ;;  %v27244_v33 = vld [vmem:[%s28024_s8 + $0x240] sm:$0xff]   ;;  %v29011_v51 = vld [vmem:[#allocation2 + $0x58] sm:$0xff]  }
 0x1f4   : > { %v22591_v42 = vpack.c.bf16 %v1310_v57, %v1310_v57  ;;  %v2503_v47 = vmax.f32 %v2471_v59, 0.0  ;;  %v1311_v23 = vmax.f32 %v1279_v63, 0.0  ;;  %v2472_v34 = vadd.f32 %v28707_v49, %v2399_v32  ;;  %24232 = vmatmul.mubr.msk.bf16.gmra.mrb[72].mxu1 %vm6294_vm6, %v6191_v35 }
 0x1f5   : > { %1473 = vst.msk [vmem:[#allocation2 + $0x78] sm:$0xf] %vm1442_vm4, %v22593_v11  ;;  %v22625_v12 = vpack.c.bf16 %v2505_v17, %v2505_v17  ;;  %v22594_v21 = vpack.c.bf16 %v1313_v19, %v1313_v19  ;;  %v2506_v28 = vmax.f32 %v2474_v30, 0.0  ;;  %v6206_v45 = vrot.slane %v6204_v9, 1  ;;  %24235 = vmatprep.mubr.msk.bf16.mxu1 %vm6294_vm6, %v6199_v3  ;;  %v27247_v3 = vld [vmem:[%s28024_s8 + $0x248] sm:$0xff]  }
 0x1f6   : > { %1471 = vst.msk [vmem:[#allocation2 + $0x70] sm:$0xf] %vm1442_vm4, %v22591_v42  ;;  %v22623_v26 = vpack.c.bf16 %v2503_v47, %v2503_v47  ;;  %v22592_v58 = vpack.c.bf16 %v1311_v23, %v1311_v23  ;;  %v2504_v62 = vmax.f32 %v2472_v34, 0.0  ;;  %v6208_v1 = vshrl.u32 %v28935_v44, 16  ;;  %v29028_v32 = vld [vmem:[#allocation2 + $0x68] sm:$0xff]  }
 0x1f7   : > { %2665 = vst.msk [vmem:[#allocation2 + $0xf8] sm:$0xf] %vm1442_vm4, %v22625_v12  ;;  %1474 = vst.msk [vmem:[#allocation2 + $0x7c] sm:$0xf] %vm1442_vm4, %v22594_v21  ;;  %v22626_v49 = vpack.c.bf16 %v2506_v28, %v2506_v28  ;;  %v6212_v4 = vshll.u32 %v28962_v5, 16  ;;  %v5160_v13 = vsel %vm394_vm2, %v5157_v24, %v5159_v22  ;;  %v6200_v20 = vshrl.u32 %v28889_v40, 16 }
 0x1f8   : > { %2663 = vst.msk [vmem:[#allocation2 + $0xf0] sm:$0xf] %vm1442_vm4, %v22623_v26  ;;  %1472 = vst.msk [vmem:[#allocation2 + $0x74] sm:$0xf] %vm1442_vm4, %v22592_v58  ;;  %v22624_v7 = vpack.c.bf16 %v2504_v62, %v2504_v62  ;;  %v6220_v38 = vshll.u32 %v28966_v39, 16  ;;  %v6210_v41 = vor.u32 %v6208_v1, %v6206_v45  ;;  %v5161_v52 = vrot.slane %v27241_v55, 2 }
 0x1f9   : > { %2666 = vst.msk [vmem:[#allocation2 + $0xfc] sm:$0xf] %vm1442_vm4, %v22626_v49  ;;  %v6202_v46 = vor.u32 %v6200_v20, %v6198_v43  ;;  %v6214_v60 = vrot.slane %v6212_v4, 1  ;;  %v6224_v18 = vshrl.u32 %v28966_v39, 16  ;;  %v6228_v36 = vshll.u32 %v28992_v0, 16  ;;  %v29018_v9 = vld [vmem:[#allocation2 + $0x60] sm:$0xff]  }
 0x1fa   : > { %2664 = vst.msk [vmem:[#allocation2 + $0xf4] sm:$0xf] %vm1442_vm4, %v22624_v7  ;;  %24078 = vmatmul.mubr.msk.bf16.gmra.mrb[76].mxu0 %vm433_vm3, %v5160_v13  ;;  %v6222_v24 = vrot.slane %v6220_v38, 1  ;;  %v5162_v25 = vsel %vm394_vm2, %v5159_v22, %v5161_v52  ;;  %v6216_v6 = vshrl.u32 %v28962_v5, 16  ;;  %v6236_v43 = vshll.u32 %v28997_v37, 16  ;;  %v27250_v58 = vld [vmem:[%s28024_s8 + $0x250] sm:$0xff]  }
 0x1fb   : > { %v6207_v48 = vsel %vm6155_vm5, %v6202_v46, %v6206_v45  ;;  %24081 = vmatprep.mubr.msk.bf16.mxu0 %vm27866_vm7, %v32569_v31  ;;  %v6215_v16 = vsel %vm6155_vm5, %v6210_v41, %v6214_v60  ;;  %v6230_v15 = vrot.slane %v6228_v36, 1  ;;  %v5163_v50 = vrot.slane %v27244_v33, 2  ;;  %v27253_v41 = vld [vmem:[%s28024_s8 + $0x258] sm:$0xff]  }
 0x1fc   : > { %24236 = vmatmul.mubr.msk.bf16.gmra.mrb[76].mxu1 %vm6294_vm6, %v6207_v48  ;;  %v6226_v35 = vor.u32 %v6224_v18, %v6222_v24  ;;  %v6218_v10 = vor.u32 %v6216_v6, %v6214_v60  ;;  %v6238_v56 = vrot.slane %v6236_v43, 1  ;;  %v6240_v57 = vshrl.u32 %v28997_v37, 16 }
 0x1fd   : > { %24239 = vmatprep.mubr.msk.bf16.mxu1 %vm6294_vm6, %v6215_v16  ;;  %v6244_v59 = vshll.u32 %v29011_v51, 16  ;;  %v5164_v61 = vsel %vm394_vm2, %v5161_v52, %v5163_v50  ;;  %v6232_v63 = vshrl.u32 %v28992_v0, 16  ;;  %v6252_v17 = vshll.u32 %v29018_v9, 16 }
 0x1fe   : > { %v6223_v54 = vsel %vm6155_vm5, %v6218_v10, %v6222_v24  ;;  %v6231_v22 = vsel %vm6155_vm5, %v6226_v35, %v6230_v15  ;;  %v6242_v11 = vor.u32 %v6240_v57, %v6238_v56  ;;  %v5165_v47 = vrot.slane %v27247_v3, 2  ;;  %v29045_v4 = vld [vmem:[#allocation2 + $0x78] sm:$0xff]   ;;  %v27254_v24 = vld [vmem:[#allocation2 + $0x80] ss:$0 sps:$4 sm:$0x11]   ;;  %v29082_v3 = vld [vmem:[#allocation2 + $0x8] sm:$0xff]  }
 0x1ff   : > { %v6234_v19 = vor.u32 %v6232_v63, %v6230_v15  ;;  %v6246_v30 = vrot.slane %v6244_v59, 1  ;;  %v6254_v34 = vrot.slane %v6252_v17, 1  ;;  %v29035_v12 = vld [vmem:[#allocation2 + $0x70] sm:$0xff]   ;;  %v6256_v21 = vshrl.u32 %v29018_v9, 16  ;;  %v27256_v59 = vld [vmem:[%s28024_s8 + $0x268] sm:$0xff]   ;;  %v27264_v17 = vld [vmem:[#allocation2 + $0x18] sm:$0xff]  }
 0x200   : > { %v6260_v28 = vshll.u32 %v29028_v32, 16  ;;  %v5166_v45 = vsel %vm394_vm2, %v5163_v50, %v5165_v47  ;;  %v6248_v26 = vshrl.u32 %v29011_v51, 16  ;;  %v6268_v55 = vshll.u32 %v29035_v12, 16 }
 0x201   : > { %v6239_v42 = vsel %vm6155_vm5, %v6234_v19, %v6238_v56  ;;  %v6247_v23 = vsel %vm6155_vm5, %v6242_v11, %v6246_v30  ;;  %v6258_v62 = vor.u32 %v6256_v21, %v6254_v34  ;;  %v5167_v13 = vrot.slane %v27250_v58, 2  ;;  %v29091_v11 = vld [vmem:[#allocation2 + $0x14] sm:$0xf] }
 0x202   : > { %24082 = vmatmul.mubr.msk.bf16.gmra.mrb[80].mxu0 %vm433_vm3, %v5162_v25  ;;  %v6250_v49 = vor.u32 %v6248_v26, %v6246_v30  ;;  %v6262_v1 = vrot.slane %v6260_v28, 1  ;;  %v6270_v38 = vrot.slane %v6268_v55, 1  ;;  %v6272_v46 = vshrl.u32 %v29035_v12, 16  ;;  %v27266_v30 = vld [vmem:[#allocation2 + $0x20] sm:$0xff]  }
 0x203   : > { %24085 = vmatprep.mubr.msk.bf16.mxu0 %vm27866_vm7, %v32569_v31  ;;  %v6276_v52 = vshll.u32 %v29045_v4, 16  ;;  %v5168_v60 = vsel %vm394_vm2, %v5165_v47, %v5167_v13  ;;  %v6264_v48 = vshrl.u32 %v29028_v32, 16  ;;  %v5169_v6 = vrot.slane %v27253_v41, 2  ;;  %v27268_v47 = vld [vmem:[#allocation2 + $0x28] sm:$0xff]   ;;  %v27274_v55 = vld [vmem:[#allocation2 + $0x40] sm:$0xff]  }
 0x204   : > { %24240 = vmatmul.mubr.msk.bf16.gmra.mrb[80].mxu1 %vm6294_vm6, %v6223_v54  ;;  %v6255_v7 = vsel %vm6155_vm5, %v6250_v49, %v6254_v34  ;;  %v6263_v20 = vsel %vm6155_vm5, %v6258_v62, %v6262_v1  ;;  %v6274_v16 = vor.u32 %v6272_v46, %v6270_v38  ;;  %v6280_v35 = vshrl.u32 %v29045_v4, 16  ;;  %v27255_v54 = vld [vmem:[%s28024_s8 + $0x260] sm:$0xff]   ;;  %v27270_v34 = vld [vmem:[#allocation2 + $0x30] sm:$0xff]   ;;  %v27278_v46 = vld [vmem:[#allocation2 + $0x58] sm:$0xff]  }
 0x205   : > { %24243 = vmatprep.mubr.msk.bf16.mxu1 %vm6294_vm6, %v6231_v22  ;;  %v6266_v18 = vor.u32 %v6264_v48, %v6262_v1  ;;  %v6278_v36 = vrot.slane %v6276_v52, 1  ;;  %v6284_v43 = vshll.u32 %v27254_v24, 16  ;;  %v5170_v10 = vsel %vm394_vm2, %v5167_v13, %v5169_v6  ;;  %v27275_v13 = vld [vmem:[#allocation2 + $0x48] sm:$0xff]   ;;  %v27280_v48 = vld [vmem:[#allocation2 + $0x60] sm:$0xff]  }
 0x206   : > { %v5171_v56 = vrot.slane %v27255_v54, 2  ;;  %v5173_v63 = vrot.slane %v27256_v59, 2  ;;  %v7806_v21 = vrot.slane %v27264_v17, 3  ;;  %v7808_v28 = vrot.slane %v27266_v30, 3  ;;  %v27281_v24 = vld [vmem:[#allocation2 + $0x68] sm:$0xff]  }
 0x207   : > { %v6271_v25 = vsel %vm6155_vm5, %v6266_v18, %v6270_v38  ;;  %v6279_v33 = vsel %vm6155_vm5, %v6274_v16, %v6278_v36  ;;  %v6282_v15 = vor.u32 %v6280_v35, %v6278_v36  ;;  %v6286_v50 = vrot.slane %v6284_v43, 1  ;;  %v27286_v16 = vld [vmem:[#allocation2 + $0x80] sm:$0xff]   ;;  %v27287_v43 = vld [vmem:[#allocation2 + $0x88] sm:$0xff]  }
 0x208   : > { %v5172_v57 = vsel %vm394_vm2, %v5169_v6, %v5171_v56  ;;  %v5174_v19 = vsel %vm394_vm2, %v5171_v56, %v5173_v63  ;;  %v29106_v58 = vsel %vm483_vm1, %v7806_v21, %v7808_v28  ;;  %v7810_v62 = vrot.slane %v27268_v47, 3  ;;  %v27284_v6 = vld [vmem:[#allocation2 + $0x78] sm:$0xff]  }
 0x209   : > { %v6287_v22 = vsel %vm6155_vm5, %v6282_v15, %v6286_v50  ;;  %v7812_v49 = vrot.slane %v27270_v34, 3  ;;  %v7816_v38 = vrot.slane %v27274_v55, 3  ;;  %v7822_v35 = vrot.slane %v27278_v46, 3  ;;  %v27339_v46 = vld [vmem:[#allocation2 + $0x44] sm:$0xff]  }
 0x20a   : > { %24086 = vmatmul.mubr.msk.bf16.gmra.mrb[84].mxu0 %vm433_vm3, %v5164_v61  ;;  %v29078_v61 = vld [vmem:[#allocation5 + $0x18] sm:$0xff]   ;;  %v7826_v54 = vrot.slane %v27281_v24, 3  ;;  %v7832_v59 = vrot.slane %v27286_v16, 3 }
 0x20b   : > { %24089 = vmatprep.mubr.msk.bf16.mxu0 %vm27866_vm7, %v32569_v31 }
 0x20c   : > { %24244 = vmatmul.mubr.msk.bf16.gmra.mrb[84].mxu1 %vm6294_vm6, %v6239_v42  ;;  %v7797_v42 = vld [vmem:[#allocation2 + $0x10] sm:$0x8] }
 0x20d   : > { %24247 = vmatprep.mubr.msk.bf16.mxu1 %vm6294_vm6, %v6247_v23  ;;  %v21666_v23 = vcombine.low %v7797_v42, %v29091_v11 }
 0x212   : > { %24090 = vmatmul.mubr.msk.bf16.gmra.mrb[88].mxu0 %vm433_vm3, %v5166_v45  ;;  %v27272_v45 = vld [vmem:[#allocation2 + $0x38] sm:$0xff]  }
 0x213   : > { %24093 = vmatprep.mubr.msk.bf16.mxu0 %vm27866_vm7, %v32569_v31 }
 0x214   : > { %24248 = vmatmul.mubr.msk.bf16.gmra.mrb[88].mxu1 %vm6294_vm6, %v6255_v7  ;;  %v29110_v7 = vsel %vm483_vm1, %v7808_v28, %v7810_v62 }
 0x215   : > { %24251 = vmatprep.mubr.msk.bf16.mxu1 %vm6294_vm6, %v6263_v20  ;;  %v27277_v20 = vld [vmem:[#allocation2 + $0x50] sm:$0xff]  }
 0x216   : > { %v7820_v36 = vrot.slane %v27277_v20, 3  ;;  %v8945_v20 = vld [vmem:[#allocation2 + $0x24] sm:$0xe] }
 0x218   : > { %v29139_v15 = vsel %vm483_vm1, %v7820_v36, %v7822_v35 }
 0x219   : > { %32582 = vst [vmem:[#allocation11_spill] sm:$0xff] %v29139_v15 }
 0x21a   : > { %24094 = vmatmul.mubr.msk.bf16.gmra.mrb[92].mxu0 %vm433_vm3, %v5168_v60  ;;  %v7818_v60 = vrot.slane %v27275_v13, 3  ;;  %v27336_v13 = vld [vmem:[#allocation2 + $0x2c] sm:$0xff]  }
 0x21b   : > { %24097 = vmatprep.mubr.msk.bf16.mxu0 %vm27866_vm7, %v32569_v31  ;;  %v8953_v16 = vrot.slane %v27336_v13, 1  ;;  %v27353_v13 = vld [vmem:[#allocation2 + $0x8c] sm:$0xff]  }
 0x21c   : > { %24252 = vmatmul.mubr.msk.bf16.gmra.mrb[92].mxu1 %vm6294_vm6, %v6271_v25  ;;  %v29129_v18 = vsel %vm483_vm1, %v7816_v38, %v7818_v60  ;;  %v27283_v25 = vld [vmem:[#allocation2 + $0x70] sm:$0xff]  }
 0x21d   : > { %24255 = vmatprep.mubr.msk.bf16.mxu1 %vm6294_vm6, %v6279_v33  ;;  %v27303_v33 = vld [vmem:[#allocation2 + $0x90] ss:$0 sps:$4 sm:$0x77]  }
 0x21e   : > { %v7836_v17 = vrot.slane %v27303_v33, 3 }
 0x222   : > { %24098 = vmatmul.mubr.msk.bf16.gmra.mrb[96].mxu0 %vm433_vm3, %v5170_v10  ;;  %v7824_v10 = vrot.slane %v27280_v48, 3 }
 0x223   : > { %24101 = vmatprep.mubr.msk.bf16.mxu0 %vm27866_vm7, %v32569_v31 }
 0x224   : > { %24256 = vmatmul.mubr.msk.bf16.gmra.mrb[96].mxu1 %vm6294_vm6, %v6287_v22  ;;  %v29144_v50 = vsel %vm483_vm1, %v7822_v35, %v7824_v10  ;;  %v7828_v22 = vrot.slane %v27283_v25, 3  ;;  %v29149_v56 = vsel %vm483_vm1, %v7824_v10, %v7826_v54  ;;  %v27343_v35 = vld [vmem:[#allocation2 + $0x5c] sm:$0xff]  }
 0x225   : > { %24261 = vmatprep.mubr.msk.bf16.mxu1 %vm6294_vm6, %v28791_v8  ;;  %v27258_v8 = vld [vmem:[%s28024_s8 + $0x270] sm:$0x1f]   ;;  %32583 = vst [vmem:[#allocation12_spill] sm:$0xff] %v29144_v50  ;;  %32584 = vst [vmem:[#allocation13_spill] sm:$0xff] %v29149_v56 }
 0x22a   : > { %24102 = vmatmul.mubr.msk.bf16.gmra.mrb[100].mxu0 %vm433_vm3, %v5172_v57  ;;  %v7830_v57 = vrot.slane %v27284_v6, 3  ;;  %v27615_v6 = vld [vmem:[#allocation2 + $0x18] sm:$0xff]  }
 0x22b   : > { %24105 = vmatprep.mubr.msk.bf16.mxu0 %vm27866_vm7, %v32569_v31  ;;  %v6716_v33 = vrot.slane %v27615_v6, 1 }
 0x22c   : > { %24262 = vmatmul.mubr.msk.bf16.vlgmr.msra.gmra.mrb[68].mxu1 %vm6294_vm6, %v29082_v3  ;;  %v29158_v30 = vsel %vm483_vm1, %v7828_v22, %v7830_v57  ;;  %v29161_v42 = vsel %vm483_vm1, %v7830_v57, %v7832_v59  ;;  %v8959_v57 = vrot.slane %v27339_v46, 1  ;;  %v27618_v46 = vld [vmem:[#allocation2 + $0x28] sm:$0xff]  }
 0x22d   : > { %24265 = vmatprep.mubr.msk.bf16.mxu1 %vm6294_vm6, %v28819_v27  ;;  %24294 = vmatpush3.bf16.msra.mxu1 %v28926_v29  ;;  %v5175_v27 = vrot.slane %v27258_v8, 2  ;;  %v7805_v29 = vrot.slane %v21666_v23, 3  ;;  %v7834_v8 = vrot.slane %v27287_v43, 3  ;;  %32586 = vst [vmem:[#allocation15_spill] sm:$0xff] %v29158_v30  ;;  %32587 = vst [vmem:[#allocation16_spill] sm:$0xff] %v29161_v42  ;;  %v27344_v43 = vld [vmem:[#allocation2 + $0x64] sm:$0xff]  }
 0x22e   : > { %24327 = vmatprep.subr.bf16.mxu1 %v29078_v61 }
 0x22f   : > { %v29103_v26 = vsel %vm483_vm1, %v7805_v29, %v7806_v21  ;;  %v5176_v1 = vsel %vm394_vm2, %v5173_v63, %v5175_v27  ;;  %v29154_v63 = vsel %vm483_vm1, %v7826_v54, %v7828_v22  ;;  %v29165_v23 = vsel %vm483_vm1, %v7832_v59, %v7834_v8  ;;  %v5055_v29 = vld [vmem:[%s28024_s8 + $0x210] sm:$0xf]  ;;  %v27611_v21 = vld [vmem:[%s28024_s8 + $0x214] sm:$0xf]  ;;  %v27616_v59 = vld [vmem:[%s28024_s8 + $0x220] sm:$0xff]  }
 0x230   : > { %32585 = vst [vmem:[#allocation14_spill] sm:$0xff] %v29154_v63  ;;  %32588 = vst [vmem:[#allocation17_spill] sm:$0xff] %v29165_v23  ;;  %v29168_v34 = vsel %vm483_vm1, %v7834_v8, %v7836_v17  ;;  %v21475_v28 = vcombine.low %v5055_v29, %v27611_v21  ;;  %v27346_v54 = vld [vmem:[#allocation2 + $0x74] sm:$0xff]   ;;  %v29208_v8 = vld [vmem:[#allocation5 + $0x20] sm:$0xff]  }
 0x231   : > { %32589 = vst [vmem:[#allocation18_spill] sm:$0xff] %v29168_v34  ;;  %v27419_v34 = vld [vmem:[#allocation2 + $0xcc] sm:$0xff]   ;;  %v27420_v23 = vld [vmem:[#allocation2 + $0xd4] sm:$0xff]  }
 0x232   : > { %24106 = vmatmul.mubr.msk.bf16.gmra.mrb[104].mxu0 %vm433_vm3, %v5174_v19  ;;  %v27259_v19 = vld [vmem:[%s28024_s8 + $0x200] sm:$0xff]  }
 0x233   : > { %24109 = vmatprep.mubr.msk.bf16.mxu0 %vm27866_vm7, %v32569_v31 }
 0x234   : > { %24266 = vmatmul.mubr.msk.bf16.gmra.mrb[72].mxu1 %vm6294_vm6, %v28840_v14  ;;  %v29113_v14 = vsel %vm483_vm1, %v7810_v62, %v7812_v49  ;;  %v27612_v62 = vld [vmem:[#allocation2 + $0x4] sm:$0xf] }
 0x235   : > { %24269 = vmatprep.mubr.msk.bf16.mxu1 %vm6294_vm6, %v28882_v53  ;;  %v7814_v53 = vrot.slane %v27272_v45, 3  ;;  %v6703_v45 = vld [vmem:[#allocation2] sm:$0xe] }
 0x236   : > { %v21596_v55 = vcombine.low %v6703_v45, %v27612_v62 }
 0x237   : > { %v29119_v41 = vsel %vm483_vm1, %v7812_v49, %v7814_v53  ;;  %v29124_v52 = vsel %vm483_vm1, %v7814_v53, %v7816_v38  ;;  %v27337_v53 = vld [vmem:[#allocation2 + $0x34] sm:$0xff]   ;;  %v8448_v38 = vld [vmem:[#allocation2 + $0x28] sm:$0xf] }
 0x238   : > { %v6711_v49 = vrot.slane %v21596_v55, 1  ;;  %v21751_v24 = vcombine.low %v8945_v20, %v8448_v38  ;;  %v8955_v25 = vrot.slane %v27337_v53, 1  ;;  %v8965_v55 = vrot.slane %v27343_v35, 1 }
 0x23a   : > { %24110 = vmatmul.mubr.msk.bf16.gmra.mrb[108].mxu0 %vm433_vm3, %v5176_v1  ;;  %v27613_v1 = vld [vmem:[%s28024_s8 + $0x218] sm:$0xff]   ;;  %v8952_v10 = vrot.slane %v21751_v24, 1  ;;  %v29204_v22 = vsel %vm6710_vm8, %v8953_v16, %v8955_v25 }
 0x23b   : > { %24113 = vmatprep.mubr.msk.bf16.mxu0 %vm27866_vm7, %v32569_v31  ;;  %32590 = vst [vmem:[#allocation19_spill] sm:$0xff] %v29204_v22  ;;  %v27418_v22 = vld [vmem:[#allocation2 + $0xc4] sm:$0xff]  }
 0x23c   : > { %24270 = vmatmul.mubr.msk.bf16.gmra.mrb[76].mxu1 %vm6294_vm6, %v28889_v40  ;;  %v29132_v40 = vsel %vm483_vm1, %v7818_v60, %v7820_v36  ;;  %v27614_v60 = vld [vmem:[#allocation2 + $0x10] sm:$0xff]   ;;  %v29211_v17 = vsel %vm6710_vm8, %v8952_v10, %v8953_v16 }
 0x23d   : > { %24273 = vmatprep.mubr.msk.bf16.mxu1 %vm6294_vm6, %v28935_v44  ;;  %32581 = vst [vmem:[#allocation10_spill] sm:$0xff] %v29132_v40  ;;  %v27260_v44 = vld [vmem:[%s32564_s1 + $0x10] sm:$0x1f]   ;;  %v6714_v48 = vrot.slane %v27614_v60, 1  ;;  %32591 = vst [vmem:[#allocation20_spill] sm:$0xff] %v29211_v17  ;;  %v6720_v60 = vrot.slane %v27618_v46, 1 }
 0x23e   : > { %v5694_v47 = vand.u32 %v27260_v44, %v28019_v2  ;;  %v27261_v2 = vld [vmem:[%s28024_s8 + $0x208] sm:$0xff]   ;;  %v27342_v36 = vld [vmem:[#allocation2 + $0x54] sm:$0xff]  }
 0x23f   : > { %v6717_v21 = vsel %vm6710_vm8, %v6714_v48, %v6716_v33  ;;  %v8963_v62 = vrot.slane %v27342_v36, 1 }
 0x241   : > { %v29234_v20 = vsel %vm6710_vm8, %v8963_v62, %v8965_v55 }
 0x242   : > { %24114 = vmatmul.mubr.msk.bf16.gmra.mrb[112].mxu0 %vm433_vm3, %v5175_v27  ;;  %v27267_v27 = vld [vmem:[#allocation5 + $0x8] sm:$0xff]   ;;  %32596 = vst [vmem:[#allocation25_spill] sm:$0xff] %v29234_v20 }
 0x243   : > { %24119 = vmatprep.mubr.msk.bf16.mxu0 %vm27866_vm7, %v32569_v31 }
 0x244   : > { %24274 = vmatmul.mubr.msk.bf16.gmra.mrb[80].mxu1 %vm6294_vm6, %v28962_v5 }
 0x245   : > { %24277 = vmatprep.mubr.msk.bf16.mxu1 %vm6294_vm6, %v28966_v39 }
 0x24a   : > { %24120 = vmatmul.mubr.msk.bf16.vlgmr.msra.gmra.mrb[116].mxu0 %vm433_vm3, %v27259_v19 }
 0x24b   : > { %24172 = vmatpush3.bf16.msra.mxu0 %v5694_v47  ;;  %24123 = vmatprep.mubr.msk.bf16.mxu0 %vm27866_vm7, %v32569_v31 }
 0x24c   : > { %24278 = vmatmul.mubr.msk.bf16.gmra.mrb[84].mxu1 %vm6294_vm6, %v28992_v0  ;;  %24531 = vmatprep.subr.bf16.mxu0 %v27267_v27  ;;  %v27347_v27 = vld [vmem:[#allocation2 + $0x7c] sm:$0xff]  }
 0x24d   : > { %24281 = vmatprep.mubr.msk.bf16.mxu1 %vm6294_vm6, %v28997_v37 }
 0x252   : > { %24124 = vmatmul.mubr.msk.bf16.gmra.mrb[120].mxu0 %vm433_vm3, %v27261_v2 }
 0x253   : > { %24127 = vmatprep.mubr.msk.bf16.mxu0 %vm27866_vm7, %v32569_v31 }
 0x254   : > { %24282 = vmatmul.mubr.msk.bf16.gmra.mrb[88].mxu1 %vm6294_vm6, %v29011_v51 }
 0x255   : > { %24285 = vmatprep.mubr.msk.bf16.mxu1 %vm6294_vm6, %v29018_v9  ;;  %v6712_v9 = vrot.slane %v29082_v3, 1  ;;  %v27341_v3 = vld [vmem:[#allocation2 + $0x4c] sm:$0xff]  }
 0x256   : > { %v8961_v29 = vrot.slane %v27341_v3, 1  ;;  %v29242_v3 = vld [vmem:[#allocation2 + $0x94] sm:$0xff]  }
 0x257   : > { %v6715_v47 = vsel %vm6710_vm8, %v6712_v9, %v6714_v48 }
 0x258   : > { %v29231_v53 = vsel %vm6710_vm8, %v8961_v29, %v8963_v62 }
 0x259   : > { %32595 = vst [vmem:[#allocation24_spill] sm:$0xff] %v29231_v53 }
 0x25a   : > { %24128 = vmatmul.mubr.msk.bf16.gmra.mrb[124].mxu0 %vm433_vm3, %v21475_v28  ;;  %v27617_v28 = vld [vmem:[#allocation2 + $0x20] sm:$0xff]  }
 0x25b   : > { %24131 = vmatprep.mubr.msk.bf16.mxu0 %vm27866_vm7, %v32569_v31  ;;  %v6718_v45 = vrot.slane %v27617_v28, 1 }
 0x25c   : > { %24286 = vmatmul.mubr.msk.bf16.gmra.mrb[92].mxu1 %vm6294_vm6, %v29028_v32  ;;  %v6713_v32 = vsel %vm6710_vm8, %v6711_v49, %v6712_v9  ;;  %v27350_v49 = vld [vmem:[#allocation2 + $0x84] sm:$0xff]   ;;  %v8967_v9 = vrot.slane %v27344_v43, 1  ;;  %v8977_v43 = vrot.slane %v27353_v13, 1 }
 0x25d   : > { %24289 = vmatprep.mubr.msk.bf16.mxu1 %vm6294_vm6, %v29035_v12  ;;  %v27338_v12 = vld [vmem:[#allocation2 + $0x3c] sm:$0xff]   ;;  %v8975_v36 = vrot.slane %v27350_v49, 1  ;;  %v6719_v6 = vsel %vm6710_vm8, %v6716_v33, %v6718_v45  ;;  %v8979_v33 = vrot.slane %v29242_v3, 1 }
 0x25e   : > { %v8957_v44 = vrot.slane %v27338_v12, 1  ;;  %v29237_v38 = vsel %vm6710_vm8, %v8965_v55, %v8967_v9  ;;  %v8973_v12 = vrot.slane %v27347_v27, 1 }
 0x25f   : > { %32597 = vst [vmem:[#allocation26_spill] sm:$0xff] %v29237_v38  ;;  %v29273_v62 = vsel %vm6710_vm8, %v8977_v43, %v8979_v33 }
 0x260   : > { %v29214_v19 = vsel %vm6710_vm8, %v8955_v25, %v8957_v44  ;;  %v29220_v2 = vsel %vm6710_vm8, %v8957_v44, %v8959_v57  ;;  %v27619_v25 = vld [vmem:[%s28024_s8 + $0x228] sm:$0xff]   ;;  %v29256_v35 = vsel %vm6710_vm8, %v8973_v12, %v8975_v36  ;;  %v27620_v44 = vld [vmem:[#allocation2 + $0x30] sm:$0xff]   ;;  %32603 = vst [vmem:[#allocation32_spill] sm:$0xff] %v29273_v62 }
 0x261   : > { %32592 = vst [vmem:[#allocation21_spill] sm:$0xff] %v29214_v19  ;;  %32593 = vst [vmem:[#allocation22_spill] sm:$0xff] %v29220_v2  ;;  %v27417_v2 = vld [vmem:[#allocation2 + $0xbc] sm:$0xff]   ;;  %v12201_v19 = vld [vmem:[#allocation2 + $0xa4] sm:$0xe] }
 0x262   : > { %24132 = vmatmul.mubr.msk.bf16.gmra.mrb[128].mxu0 %vm433_vm3, %v27613_v1  ;;  %v29227_v1 = vsel %vm6710_vm8, %v8959_v57, %v8961_v29  ;;  %32601 = vst [vmem:[#allocation30_spill] sm:$0xff] %v29256_v35  ;;  %v29262_v57 = vsel %vm6710_vm8, %v8975_v36, %v8977_v43 }
 0x263   : > { %24135 = vmatprep.mubr.msk.bf16.mxu0 %vm27866_vm7, %v32569_v31  ;;  %32594 = vst [vmem:[#allocation23_spill] sm:$0xff] %v29227_v1  ;;  %32602 = vst [vmem:[#allocation31_spill] sm:$0xff] %v29262_v57  ;;  %v29625_v57 = vld [vmem:[#allocation2 + $0x88] sm:$0xff]  }
 0x264   : > { %24290 = vmatmul.mubr.msk.bf16.gmra.mrb[96].mxu1 %vm6294_vm6, %v29045_v4  ;;  %v27345_v4 = vld [vmem:[#allocation2 + $0x6c] sm:$0xff]   ;;  %v32607_v63 = vrot.slane %v29625_v57, 2 }
 0x265   : > { %24295 = vmatprep.mubr.msk.bf16.mxu1 %vm6294_vm6, %v6713_v32  ;;  %v8969_v32 = vrot.slane %v27345_v4, 1  ;;  %v6721_v4 = vsel %vm6710_vm8, %v6718_v45, %v6720_v60  ;;  %v6724_v45 = vrot.slane %v28962_v5, 1  ;;  %v27414_v1 = vld [vmem:[#allocation2 + $0xac] sm:$0xff]  }
 0x267   : > { %v29240_v48 = vsel %vm6710_vm8, %v8967_v9, %v8969_v32 }
 0x268   : > { %32598 = vst [vmem:[#allocation27_spill] sm:$0xff] %v29240_v48  ;;  %v32606_v48 = vmov 0.0  }
 0x26a   : > { %24136 = vmatmul.mubr.msk.bf16.gmra.mrb[132].mxu0 %vm433_vm3, %v27616_v59  ;;  %v29265_v59 = vld [vmem:[#allocation3] ss:$0 sm:$0xff] }
 0x26b   : > { %24139 = vmatprep.mubr.msk.bf16.mxu0 %vm27866_vm7, %v32569_v31 }
 0x26c   : > { %24296 = vmatmul.mubr.msk.bf16.vlgmr.msra.gmra.mrb[68].mxu1 %vm6294_vm6, %v6715_v47 }
 0x26d   : > { %24299 = vmatprep.mubr.msk.bf16.mxu1 %vm6294_vm6, %v6717_v21  ;;  %24328 = vmatpush3.bf16.msra.mxu1 %v29078_v61  ;;  %v8971_v61 = vrot.slane %v27346_v54, 1  ;;  %v6722_v54 = vrot.slane %v27620_v44, 1 }
 0x26e   : > { %24361 = vmatprep.subr.bf16.mxu1 %v29208_v8 }
 0x26f   : > { %v29245_v24 = vsel %vm6710_vm8, %v8969_v32, %v8971_v61  ;;  %v29248_v16 = vsel %vm6710_vm8, %v8971_v61, %v8973_v12  ;;  %v6726_v61 = vrot.slane %v28966_v39, 1 }
 0x270   : > { %32599 = vst [vmem:[#allocation28_spill] sm:$0xff] %v29245_v24  ;;  %32600 = vst [vmem:[#allocation29_spill] sm:$0xff] %v29248_v16 }
 0x272   : > { %24140 = vmatmul.mubr.msk.bf16.gmra.mrb[136].mxu0 %vm433_vm3, %v27619_v25  ;;  %v6723_v25 = vsel %vm6710_vm8, %v6720_v60, %v6722_v54 }
 0x273   : > { %24143 = vmatprep.mubr.msk.bf16.mxu0 %vm27866_vm7, %v32569_v31 }
 0x274   : > { %24300 = vmatmul.mubr.msk.bf16.gmra.mrb[72].mxu1 %vm6294_vm6, %v6719_v6 }
 0x275   : > { %24303 = vmatprep.mubr.msk.bf16.mxu1 %vm6294_vm6, %v6721_v4  ;;  %v23931_v10 = vpop.f32.mrb[32].mxu0 }
 0x276   : > { %v3637_v47 = vadd.f32 %v29265_v59, %v23931_v10  ;;  %v3476_v27 = vpop.f32.mrb[33].mxu0 }
 0x277   : > { %v24033_v29 = vpop.f32.mrb[32].mxu1  ;;  %v3635_v21 = vadd.f32 %v29265_v59, %v3476_v27  ;;  %v23932_v28 = vpop.f32.mrb[34].mxu0  ;;  %v29284_v27 = vld [vmem:[#allocation2 + $0x9c] sm:$0xff]  }
 0x278   : > { %v3669_v55 = vmax.f32 %v3637_v47, 0.0  ;;  %v4829_v49 = vadd.f32 %v29265_v59, %v24033_v29  ;;  %v4668_v9 = vpop.f32.mrb[33].mxu1  ;;  %v3638_v13 = vadd.f32 %v29265_v59, %v23932_v28  ;;  %v3479_v32 = vpop.f32.mrb[35].mxu0  ;;  %v27622_v47 = vld [vmem:[%s28024_s8 + $0x230] sm:$0xff]  }
 0x279   : > { %v3667_v12 = vmax.f32 %v3635_v21, 0.0  ;;  %v4827_v46 = vadd.f32 %v29265_v59, %v4668_v9  ;;  %v24034_v36 = vpop.f32.mrb[34].mxu1  ;;  %v3636_v5 = vadd.f32 %v29265_v59, %v3479_v32 }
 0x27a   : > { %v22629_v6 = vpack.c.bf16 %v3669_v55, %v3669_v55  ;;  %v4861_v43 = vmax.f32 %v4829_v49, 0.0  ;;  %v3670_v4 = vmax.f32 %v3638_v13, 0.0  ;;  %v4830_v10 = vadd.f32 %v29265_v59, %v24034_v36  ;;  %v4671_v44 = vpop.f32.mrb[35].mxu1  ;;  %24144 = vmatmul.mubr.msk.bf16.gmra.mrb[140].mxu0 %vm433_vm3, %v27622_v47 }
 0x27b   : > { %v22627_v29 = vpack.c.bf16 %v3667_v12, %v3667_v12  ;;  %v4859_v21 = vmax.f32 %v4827_v46, 0.0  ;;  %v3668_v28 = vmax.f32 %v3636_v5, 0.0  ;;  %v4828_v9 = vadd.f32 %v29265_v59, %v4671_v44  ;;  %24147 = vmatprep.mubr.msk.bf16.mxu0 %vm27866_vm7, %v32569_v31 }
 0x27c   : > { %3829 = vst.msk [vmem:[#allocation2 + $0x108] sm:$0xf] %vm1442_vm4, %v22629_v6  ;;  %v22661_v60 = vpack.c.bf16 %v4861_v43, %v4861_v43  ;;  %v22630_v55 = vpack.c.bf16 %v3670_v4, %v3670_v4  ;;  %v4862_v49 = vmax.f32 %v4830_v10, 0.0  ;;  %24304 = vmatmul.mubr.msk.bf16.gmra.mrb[76].mxu1 %vm6294_vm6, %v6723_v25  ;;  %v6725_v13 = vsel %vm6710_vm8, %v6722_v54, %v6724_v45 }
 0x27d   : > { %3827 = vst.msk [vmem:[#allocation2 + $0x100] sm:$0xf] %vm1442_vm4, %v22627_v29  ;;  %v22659_v32 = vpack.c.bf16 %v4859_v21, %v4859_v21  ;;  %v22628_v12 = vpack.c.bf16 %v3668_v28, %v3668_v28  ;;  %v4860_v46 = vmax.f32 %v4828_v9, 0.0  ;;  %24307 = vmatprep.mubr.msk.bf16.mxu1 %vm6294_vm6, %v6725_v13  ;;  %v23935_v36 = vpop.f32.mrb[36].mxu0  ;;  %v8981_v25 = vrot.slane %v29284_v27, 1 }
 0x27e   : > { %5021 = vst.msk [vmem:[#allocation2 + $0x188] sm:$0xf] %vm1442_vm4, %v22661_v60  ;;  %3830 = vst.msk [vmem:[#allocation2 + $0x10c] sm:$0xf] %vm1442_vm4, %v22630_v55  ;;  %v22662_v5 = vpack.c.bf16 %v4862_v49, %v4862_v49  ;;  %v3641_v6 = vadd.f32 %v29265_v59, %v23935_v36  ;;  %v3492_v43 = vpop.f32.mrb[37].mxu0  ;;  %v6728_v47 = vrot.slane %v28992_v0, 1  ;;  %v6727_v49 = vsel %vm6710_vm8, %v6724_v45, %v6726_v61 }
 0x27f   : > { %5019 = vst.msk [vmem:[#allocation2 + $0x180] sm:$0xf] %vm1442_vm4, %v22659_v32  ;;  %3828 = vst.msk [vmem:[#allocation2 + $0x104] sm:$0xf] %vm1442_vm4, %v22628_v12  ;;  %v22660_v54 = vpack.c.bf16 %v4860_v46, %v4860_v46  ;;  %v24037_v4 = vpop.f32.mrb[36].mxu1  ;;  %v3639_v10 = vadd.f32 %v29265_v59, %v3492_v43  ;;  %v23936_v44 = vpop.f32.mrb[38].mxu0  ;;  %v29317_v36 = vsel %vm6710_vm8, %v8979_v33, %v8981_v25 }
 0x280   : > { %v6730_v29 = vrot.slane %v28997_v37, 1  ;;  %5022 = vst.msk [vmem:[#allocation2 + $0x18c] sm:$0xf] %vm1442_vm4, %v22662_v5  ;;  %v3673_v21 = vmax.f32 %v3641_v6, 0.0  ;;  %v4833_v28 = vadd.f32 %v29265_v59, %v24037_v4  ;;  %v4684_v9 = vpop.f32.mrb[37].mxu1  ;;  %v3642_v60 = vadd.f32 %v29265_v59, %v23936_v44  ;;  %v3495_v55 = vpop.f32.mrb[39].mxu0 }
 0x281   : > { %5020 = vst.msk [vmem:[#allocation2 + $0x184] sm:$0xf] %vm1442_vm4, %v22660_v54  ;;  %v3671_v13 = vmax.f32 %v3639_v10, 0.0  ;;  %v4831_v32 = vadd.f32 %v29265_v59, %v4684_v9  ;;  %v24038_v12 = vpop.f32.mrb[38].mxu1  ;;  %v3640_v46 = vadd.f32 %v29265_v59, %v3495_v55  ;;  %32604 = vst [vmem:[#allocation33_spill] sm:$0xff] %v29317_v36  ;;  %v27623_v54 = vld [vmem:[%s28024_s8 + $0x238] sm:$0xff]  }
 0x282   : > { %v22633_v5 = vpack.c.bf16 %v3673_v21, %v3673_v21  ;;  %v4865_v6 = vmax.f32 %v4833_v28, 0.0  ;;  %v3674_v43 = vmax.f32 %v3642_v60, 0.0  ;;  %v4834_v45 = vadd.f32 %v29265_v59, %v24038_v12  ;;  %v4687_v4 = vpop.f32.mrb[39].mxu1  ;;  %24148 = vmatmul.mubr.msk.bf16.gmra.mrb[144].mxu0 %vm433_vm3, %v27623_v54 }
 0x283   : > { %v22631_v10 = vpack.c.bf16 %v3671_v13, %v3671_v13  ;;  %v4863_v44 = vmax.f32 %v4831_v32, 0.0  ;;  %v3672_v9 = vmax.f32 %v3640_v46, 0.0  ;;  %v4832_v55 = vadd.f32 %v29265_v59, %v4687_v4  ;;  %24151 = vmatprep.mubr.msk.bf16.mxu0 %vm27866_vm7, %v32569_v31 }
 0x284   : > { %3833 = vst.msk [vmem:[#allocation2 + $0x118] sm:$0xf] %vm1442_vm4, %v22633_v5  ;;  %v22665_v3 = vpack.c.bf16 %v4865_v6, %v4865_v6  ;;  %v22634_v33 = vpack.c.bf16 %v3674_v43, %v3674_v43  ;;  %v4866_v21 = vmax.f32 %v4834_v45, 0.0  ;;  %24308 = vmatmul.mubr.msk.bf16.gmra.mrb[80].mxu1 %vm6294_vm6, %v6727_v49  ;;  %v6729_v28 = vsel %vm6710_vm8, %v6726_v61, %v6728_v47 }
 0x285   : > { %3831 = vst.msk [vmem:[#allocation2 + $0x110] sm:$0xf] %vm1442_vm4, %v22631_v10  ;;  %v22663_v60 = vpack.c.bf16 %v4863_v44, %v4863_v44  ;;  %v22632_v13 = vpack.c.bf16 %v3672_v9, %v3672_v9  ;;  %v4864_v32 = vmax.f32 %v4832_v55, 0.0  ;;  %24311 = vmatprep.mubr.msk.bf16.mxu1 %vm6294_vm6, %v6729_v28  ;;  %v23939_v12 = vpop.f32.mrb[40].mxu0  ;;  %v6732_v45 = vrot.slane %v29011_v51, 1 }
 0x286   : > { %5025 = vst.msk [vmem:[#allocation2 + $0x198] sm:$0xf] %vm1442_vm4, %v22665_v3  ;;  %3834 = vst.msk [vmem:[#allocation2 + $0x11c] sm:$0xf] %vm1442_vm4, %v22634_v33  ;;  %v22666_v46 = vpack.c.bf16 %v4866_v21, %v4866_v21  ;;  %v3645_v49 = vadd.f32 %v29265_v59, %v23939_v12  ;;  %v3508_v5 = vpop.f32.mrb[41].mxu0 }
 0x287   : > { %5023 = vst.msk [vmem:[#allocation2 + $0x190] sm:$0xf] %vm1442_vm4, %v22663_v60  ;;  %3832 = vst.msk [vmem:[#allocation2 + $0x114] sm:$0xf] %vm1442_vm4, %v22632_v13  ;;  %v22664_v39 = vpack.c.bf16 %v4864_v32, %v4864_v32  ;;  %v24041_v61 = vpop.f32.mrb[40].mxu1  ;;  %v3643_v6 = vadd.f32 %v29265_v59, %v3508_v5  ;;  %v23940_v43 = vpop.f32.mrb[42].mxu0  ;;  %v6731_v60 = vsel %vm6710_vm8, %v6728_v47, %v6730_v29 }
 0x288   : > { %5026 = vst.msk [vmem:[#allocation2 + $0x19c] sm:$0xf] %vm1442_vm4, %v22666_v46  ;;  %v3677_v4 = vmax.f32 %v3645_v49, 0.0  ;;  %v4837_v54 = vadd.f32 %v29265_v59, %v24041_v61  ;;  %v4700_v10 = vpop.f32.mrb[41].mxu1  ;;  %v3646_v44 = vadd.f32 %v29265_v59, %v23940_v43  ;;  %v3511_v9 = vpop.f32.mrb[43].mxu0  ;;  %v27624_v5 = vld [vmem:[%s28024_s8 + $0x240] sm:$0xff]  }
 0x289   : > { %v27359_v55 = vld [vmem:[#allocation2 + $0xa4] ss:$0 sps:$4 sm:$0x11]   ;;  %5024 = vst.msk [vmem:[#allocation2 + $0x194] sm:$0xf] %vm1442_vm4, %v22664_v39  ;;  %v3675_v3 = vmax.f32 %v3643_v6, 0.0  ;;  %v4835_v33 = vadd.f32 %v29265_v59, %v4700_v10  ;;  %v3644_v28 = vadd.f32 %v29265_v59, %v3511_v9 }
 0x28a   : > { %v24042_v21 = vpop.f32.mrb[42].mxu1  ;;  %v22637_v13 = vpack.c.bf16 %v3677_v4, %v3677_v4  ;;  %v4869_v32 = vmax.f32 %v4837_v54, 0.0  ;;  %v3678_v12 = vmax.f32 %v3646_v44, 0.0  ;;  %24152 = vmatmul.mubr.msk.bf16.gmra.mrb[148].mxu0 %vm433_vm3, %v27624_v5  ;;  %v6733_v54 = vsel %vm6710_vm8, %v6730_v29, %v6732_v45 }
 0x28b   : > { %v4838_v46 = vadd.f32 %v29265_v59, %v24042_v21  ;;  %v4703_v49 = vpop.f32.mrb[43].mxu1  ;;  %v22635_v39 = vpack.c.bf16 %v3675_v3, %v3675_v3  ;;  %v4867_v61 = vmax.f32 %v4835_v33, 0.0  ;;  %v3676_v6 = vmax.f32 %v3644_v28, 0.0  ;;  %24155 = vmatprep.mubr.msk.bf16.mxu0 %vm27866_vm7, %v32569_v31  ;;  %v27625_v33 = vld [vmem:[#allocation2 + $0x60] sm:$0xff]  }
 0x28c   : > { %v4836_v43 = vadd.f32 %v29265_v59, %v4703_v49  ;;  %3837 = vst.msk [vmem:[#allocation2 + $0x128] sm:$0xf] %vm1442_vm4, %v22637_v13  ;;  %v22669_v0 = vpack.c.bf16 %v4869_v32, %v4869_v32  ;;  %v22638_v47 = vpack.c.bf16 %v3678_v12, %v3678_v12  ;;  %24312 = vmatmul.mubr.msk.bf16.gmra.mrb[84].mxu1 %vm6294_vm6, %v6731_v60  ;;  %v6734_v21 = vrot.slane %v27625_v33, 1  ;;  %v29373_v49 = vld [vmem:[#allocation2 + $0x68] sm:$0xff]  }
 0x28d   : > { %v4870_v4 = vmax.f32 %v4838_v46, 0.0  ;;  %3835 = vst.msk [vmem:[#allocation2 + $0x120] sm:$0xf] %vm1442_vm4, %v22635_v39  ;;  %v22667_v10 = vpack.c.bf16 %v4867_v61, %v4867_v61  ;;  %v22636_v44 = vpack.c.bf16 %v3676_v6, %v3676_v6  ;;  %24315 = vmatprep.mubr.msk.bf16.mxu1 %vm6294_vm6, %v6733_v54  ;;  %v23943_v3 = vpop.f32.mrb[44].mxu0  ;;  %v8983_v13 = vrot.slane %v27359_v55, 1 }
 0x28e   : > { %v4868_v9 = vmax.f32 %v4836_v43, 0.0  ;;  %5029 = vst.msk [vmem:[#allocation2 + $0x1a8] sm:$0xf] %vm1442_vm4, %v22669_v0  ;;  %3838 = vst.msk [vmem:[#allocation2 + $0x12c] sm:$0xf] %vm1442_vm4, %v22638_v47  ;;  %v3649_v60 = vadd.f32 %v29265_v59, %v23943_v3  ;;  %v3524_v37 = vpop.f32.mrb[45].mxu0 }
 0x28f   : > { %v22670_v28 = vpack.c.bf16 %v4870_v4, %v4870_v4  ;;  %5027 = vst.msk [vmem:[#allocation2 + $0x1a0] sm:$0xf] %vm1442_vm4, %v22667_v10  ;;  %3836 = vst.msk [vmem:[#allocation2 + $0x124] sm:$0xf] %vm1442_vm4, %v22636_v44  ;;  %v24045_v32 = vpop.f32.mrb[44].mxu1  ;;  %v3647_v12 = vadd.f32 %v29265_v59, %v3524_v37  ;;  %v23944_v46 = vpop.f32.mrb[46].mxu0  ;;  %v29382_v0 = vsel %vm6710_vm8, %v8981_v25, %v8983_v13 }
 0x290   : > { %v22668_v29 = vpack.c.bf16 %v4868_v9, %v4868_v9  ;;  %v6736_v5 = vrot.slane %v29373_v49, 1  ;;  %v3681_v39 = vmax.f32 %v3649_v60, 0.0  ;;  %v4841_v61 = vadd.f32 %v29265_v59, %v24045_v32  ;;  %v4716_v55 = vpop.f32.mrb[45].mxu1  ;;  %v3527_v43 = vpop.f32.mrb[47].mxu0  ;;  %32605 = vst [vmem:[#allocation34_spill] sm:$0xff] %v29382_v0  ;;  %v27627_v25 = vld [vmem:[%s28024_s8 + $0x248] sm:$0xff]  }
 0x291   : > { %5030 = vst.msk [vmem:[#allocation2 + $0x1ac] sm:$0xf] %vm1442_vm4, %v22670_v28  ;;  %v3650_v6 = vadd.f32 %v29265_v59, %v23944_v46  ;;  %v3679_v47 = vmax.f32 %v3647_v12, 0.0  ;;  %v4839_v4 = vadd.f32 %v29265_v59, %v4716_v55  ;;  %v24046_v54 = vpop.f32.mrb[46].mxu1  ;;  %v3648_v10 = vadd.f32 %v29265_v59, %v3527_v43  ;;  %v29615_v0 = vld [vmem:[#allocation2 + $0x78] sm:$0xff]  }
 0x292   : > { %5028 = vst.msk [vmem:[#allocation2 + $0x1a4] sm:$0xf] %vm1442_vm4, %v22668_v29  ;;  %v6735_v44 = vsel %vm6710_vm8, %v6732_v45, %v6734_v21  ;;  %v22641_v9 = vpack.c.bf16 %v3681_v39, %v3681_v39  ;;  %v4873_v3 = vmax.f32 %v4841_v61, 0.0  ;;  %v4842_v27 = vadd.f32 %v29265_v59, %v24046_v54  ;;  %v4719_v28 = vpop.f32.mrb[47].mxu1  ;;  %24156 = vmatmul.mubr.msk.bf16.gmra.mrb[152].mxu0 %vm433_vm3, %v27627_v25 }
 0x293   : > { %v3682_v33 = vmax.f32 %v3650_v6, 0.0  ;;  %v22639_v60 = vpack.c.bf16 %v3679_v47, %v3679_v47  ;;  %v4871_v37 = vmax.f32 %v4839_v4, 0.0  ;;  %v3680_v13 = vmax.f32 %v3648_v10, 0.0  ;;  %24159 = vmatprep.mubr.msk.bf16.mxu0 %vm27866_vm7, %v32569_v31  ;;  %v27628_v6 = vld [vmem:[#allocation2 + $0x70] sm:$0xff]  }
 0x294   : > { %v4840_v29 = vadd.f32 %v29265_v59, %v4719_v28  ;;  %3841 = vst.msk [vmem:[#allocation2 + $0x138] sm:$0xf] %vm1442_vm4, %v22641_v9  ;;  %v22673_v51 = vpack.c.bf16 %v4873_v3, %v4873_v3  ;;  %v4874_v32 = vmax.f32 %v4842_v27, 0.0  ;;  %24316 = vmatmul.mubr.msk.bf16.gmra.mrb[88].mxu1 %vm6294_vm6, %v6735_v44  ;;  %v6737_v12 = vsel %vm6710_vm8, %v6734_v21, %v6736_v5  ;;  %v6991_v10 = vld [vmem:[#allocation2 + $0x10] sm:$0xc] }
 0x295   : > { %v22642_v45 = vpack.c.bf16 %v3682_v33, %v3682_v33  ;;  %3839 = vst.msk [vmem:[#allocation2 + $0x130] sm:$0xf] %vm1442_vm4, %v22639_v60  ;;  %v22671_v46 = vpack.c.bf16 %v4871_v37, %v4871_v37  ;;  %v22640_v39 = vpack.c.bf16 %v3680_v13, %v3680_v13  ;;  %24319 = vmatprep.mubr.msk.bf16.mxu1 %vm6294_vm6, %v6737_v12  ;;  %v23947_v55 = vpop.f32.mrb[48].mxu0  ;;  %v6738_v43 = vrot.slane %v27628_v6, 1  ;;  %v29409_v33 = vld [vmem:[#allocation2 + $0x78] sm:$0xff]  }
 0x296   : > { %v4872_v61 = vmax.f32 %v4840_v29, 0.0  ;;  %5033 = vst.msk [vmem:[#allocation2 + $0x1b8] sm:$0xf] %vm1442_vm4, %v22673_v51  ;;  %v22674_v47 = vpack.c.bf16 %v4874_v32, %v4874_v32  ;;  %v3653_v4 = vadd.f32 %v29265_v59, %v23947_v55  ;;  %v3540_v54 = vpop.f32.mrb[49].mxu0  ;;  %v6740_v27 = vrot.slane %v29409_v33, 1 }
 0x297   : > { %3842 = vst.msk [vmem:[#allocation2 + $0x13c] sm:$0xf] %vm1442_vm4, %v22642_v45  ;;  %5031 = vst.msk [vmem:[#allocation2 + $0x1b0] sm:$0xf] %vm1442_vm4, %v22671_v46  ;;  %v24049_v44 = vpop.f32.mrb[48].mxu1  ;;  %v3651_v9 = vadd.f32 %v29265_v59, %v3540_v54  ;;  %v23948_v3 = vpop.f32.mrb[50].mxu0  ;;  %v29416_v29 = vcombine.low %v6991_v10, %v29091_v11  ;;  %v6739_v46 = vsel %vm6710_vm8, %v6736_v5, %v6738_v43 }
 0x298   : > { %3840 = vst.msk [vmem:[#allocation2 + $0x134] sm:$0xf] %vm1442_vm4, %v22640_v39  ;;  %v22672_v21 = vpack.c.bf16 %v4872_v61, %v4872_v61  ;;  %5034 = vst.msk [vmem:[#allocation2 + $0x1bc] sm:$0xf] %vm1442_vm4, %v22674_v47  ;;  %v3685_v28 = vmax.f32 %v3653_v4, 0.0  ;;  %v4845_v25 = vadd.f32 %v29265_v59, %v24049_v44  ;;  %v4732_v60 = vpop.f32.mrb[49].mxu1  ;;  %v3654_v37 = vadd.f32 %v29265_v59, %v23948_v3 }
 0x299   : > { %v3543_v13 = vpop.f32.mrb[51].mxu0  ;;  %v3683_v51 = vmax.f32 %v3651_v9, 0.0  ;;  %v4843_v45 = vadd.f32 %v29265_v59, %v4732_v60  ;;  %v24050_v32 = vpop.f32.mrb[50].mxu1  ;;  %v27630_v11 = vld [vmem:[%s28024_s8 + $0x250] sm:$0xff]   ;;  %v6741_v9 = vsel %vm6710_vm8, %v6738_v43, %v6740_v27 }
 0x29a   : > { %5032 = vst.msk [vmem:[#allocation2 + $0x1b4] sm:$0xf] %vm1442_vm4, %v22672_v21  ;;  %v3652_v12 = vadd.f32 %v29265_v59, %v3543_v13  ;;  %v22645_v39 = vpack.c.bf16 %v3685_v28, %v3685_v28  ;;  %v4877_v61 = vmax.f32 %v4845_v25, 0.0  ;;  %v3686_v55 = vmax.f32 %v3654_v37, 0.0  ;;  %v4735_v47 = vpop.f32.mrb[51].mxu1  ;;  %24160 = vmatmul.mubr.msk.bf16.gmra.mrb[156].mxu0 %vm433_vm3, %v27630_v11 }
 0x29b   : > { %v4846_v6 = vadd.f32 %v29265_v59, %v24050_v32  ;;  %v22643_v4 = vpack.c.bf16 %v3683_v51, %v3683_v51  ;;  %v4875_v54 = vmax.f32 %v4843_v45, 0.0  ;;  %v4844_v21 = vadd.f32 %v29265_v59, %v4735_v47  ;;  %24163 = vmatprep.mubr.msk.bf16.mxu0 %vm27866_vm7, %v32569_v31  ;;  %v27631_v45 = vld [vmem:[#allocation2 + $0x80] ss:$0 sps:$4 sm:$0x11]  }
 0x29c   : > { %v3684_v10 = vmax.f32 %v3652_v12, 0.0  ;;  %3845 = vst.msk [vmem:[#allocation2 + $0x148] sm:$0xf] %vm1442_vm4, %v22645_v39  ;;  %v22677_v49 = vpack.c.bf16 %v4877_v61, %v4877_v61  ;;  %v22646_v5 = vpack.c.bf16 %v3686_v55, %v3686_v55  ;;  %24320 = vmatmul.mubr.msk.bf16.gmra.mrb[92].mxu1 %vm6294_vm6, %v6739_v46  ;;  %v6742_v32 = vrot.slane %v27631_v45, 1  ;;  %v29443_v61 = vld [vmem:[#allocation2 + $0x18] sm:$0xff]  }
 0x29d   : > { %v4878_v44 = vmax.f32 %v4846_v6, 0.0  ;;  %3843 = vst.msk [vmem:[#allocation2 + $0x140] sm:$0xf] %vm1442_vm4, %v22643_v4  ;;  %v22675_v3 = vpack.c.bf16 %v4875_v54, %v4875_v54  ;;  %v4876_v25 = vmax.f32 %v4844_v21, 0.0  ;;  %24323 = vmatprep.mubr.msk.bf16.mxu1 %vm6294_vm6, %v6741_v9  ;;  %v23951_v60 = vpop.f32.mrb[52].mxu0  ;;  %v7111_v55 = vrot.slane %v29443_v61, 2 }
 0x29e   : > { %v22644_v28 = vpack.c.bf16 %v3684_v10, %v3684_v10  ;;  %5037 = vst.msk [vmem:[#allocation2 + $0x1c8] sm:$0xf] %vm1442_vm4, %v22677_v49  ;;  %3846 = vst.msk [vmem:[#allocation2 + $0x14c] sm:$0xf] %vm1442_vm4, %v22646_v5  ;;  %v3657_v13 = vadd.f32 %v29265_v59, %v23951_v60  ;;  %v3556_v51 = vpop.f32.mrb[53].mxu0  ;;  %v29446_v6 = vld [vmem:[#allocation2 + $0x20] sm:$0xff]  }
 0x29f   : > { %v22678_v37 = vpack.c.bf16 %v4878_v44, %v4878_v44  ;;  %5035 = vst.msk [vmem:[#allocation2 + $0x1c0] sm:$0xf] %vm1442_vm4, %v22675_v3  ;;  %v22676_v43 = vpack.c.bf16 %v4876_v25, %v4876_v25  ;;  %v24053_v12 = vpop.f32.mrb[52].mxu1  ;;  %v3655_v46 = vadd.f32 %v29265_v59, %v3556_v51  ;;  %v23952_v39 = vpop.f32.mrb[54].mxu0  ;;  %v7113_v47 = vrot.slane %v29446_v6, 2  ;;  %v27634_v45 = vld [vmem:[%s28024_s8 + $0x258] sm:$0xff]  }
 0x2a0   : > { %3844 = vst.msk [vmem:[#allocation2 + $0x144] sm:$0xf] %vm1442_vm4, %v22644_v28  ;;  %v3689_v11 = vmax.f32 %v3657_v13, 0.0  ;;  %v4849_v4 = vadd.f32 %v29265_v59, %v24053_v12  ;;  %v4748_v54 = vpop.f32.mrb[53].mxu1  ;;  %v3658_v10 = vadd.f32 %v29265_v59, %v23952_v39  ;;  %v3559_v21 = vpop.f32.mrb[55].mxu0  ;;  %v7110_v49 = vrot.slane %v29416_v29, 2 }
 0x2a1   : > { %5038 = vst.msk [vmem:[#allocation2 + $0x1cc] sm:$0xf] %vm1442_vm4, %v22678_v37  ;;  %5036 = vst.msk [vmem:[#allocation2 + $0x1c4] sm:$0xf] %vm1442_vm4, %v22676_v43  ;;  %v3687_v5 = vmax.f32 %v3655_v46, 0.0  ;;  %v4847_v44 = vadd.f32 %v29265_v59, %v4748_v54  ;;  %v24054_v9 = vpop.f32.mrb[54].mxu1  ;;  %v3656_v3 = vadd.f32 %v29265_v59, %v3559_v21  ;;  %v6743_v28 = vsel %vm6710_vm8, %v6740_v27, %v6742_v32 }
 0x2a2   : > { %v22649_v25 = vpack.c.bf16 %v3689_v11, %v3689_v11  ;;  %v4881_v60 = vmax.f32 %v4849_v4, 0.0  ;;  %v3690_v37 = vmax.f32 %v3658_v10, 0.0  ;;  %v4850_v13 = vadd.f32 %v29265_v59, %v24054_v9  ;;  %v4751_v51 = vpop.f32.mrb[55].mxu1  ;;  %24164 = vmatmul.mubr.msk.bf16.gmra.mrb[160].mxu0 %vm433_vm3, %v27634_v45 }
 0x2a3   : > { %v22647_v43 = vpack.c.bf16 %v3687_v5, %v3687_v5  ;;  %v4879_v12 = vmax.f32 %v4847_v44, 0.0  ;;  %v3688_v46 = vmax.f32 %v3656_v3, 0.0  ;;  %v4848_v39 = vadd.f32 %v29265_v59, %v4751_v51  ;;  %24173 = vmatprep.mubr.msk.bf16.mxu0 %vm27866_vm7, %v32569_v31  ;;  %v27265_v3 = vld [vmem:[%s28024_s8 + $0x224] sm:$0xff]  }
 0x2a4   : > { %3849 = vst.msk [vmem:[#allocation2 + $0x158] sm:$0xf] %vm1442_vm4, %v22649_v25  ;;  %v22681_v33 = vpack.c.bf16 %v4881_v60, %v4881_v60  ;;  %v22650_v27 = vpack.c.bf16 %v3690_v37, %v3690_v37  ;;  %v4882_v32 = vmax.f32 %v4850_v13, 0.0  ;;  %24324 = vmatmul.mubr.msk.bf16.gmra.mrb[96].mxu1 %vm6294_vm6, %v6743_v28  ;;  %v7112_v11 = vsel %vm394_vm2, %v7110_v49, %v7111_v55  ;;  %v29479_v37 = vld [vmem:[#allocation2 + $0x28] sm:$0xff]  }
 0x2a5   : > { %3847 = vst.msk [vmem:[#allocation2 + $0x150] sm:$0xf] %vm1442_vm4, %v22647_v43  ;;  %v22679_v4 = vpack.c.bf16 %v4879_v12, %v4879_v12  ;;  %v22648_v54 = vpack.c.bf16 %v3688_v46, %v3688_v46  ;;  %v4880_v10 = vmax.f32 %v4848_v39, 0.0  ;;  %24329 = vmatprep.mubr.msk.bf16.mxu1 %vm6294_vm6, %v7112_v11  ;;  %v23955_v21 = vpop.f32.mrb[56].mxu0  ;;  %v7115_v13 = vrot.slane %v29479_v37, 2  ;;  %v27299_v39 = vld [vmem:[#allocation5] sm:$0xff]  }
 0x2a6   : > { %5041 = vst.msk [vmem:[#allocation2 + $0x1d8] sm:$0xf] %vm1442_vm4, %v22681_v33  ;;  %3850 = vst.msk [vmem:[#allocation2 + $0x15c] sm:$0xf] %vm1442_vm4, %v22650_v27  ;;  %v22682_v5 = vpack.c.bf16 %v4882_v32, %v4882_v32  ;;  %v3661_v44 = vadd.f32 %v29265_v59, %v23955_v21  ;;  %v3572_v9 = vpop.f32.mrb[57].mxu0  ;;  %v7407_v36 = vshrl.u32 %v29443_v61, 16 }
 0x2a7   : > { %5039 = vst.msk [vmem:[#allocation2 + $0x1d0] sm:$0xf] %vm1442_vm4, %v22679_v4  ;;  %3848 = vst.msk [vmem:[#allocation2 + $0x154] sm:$0xf] %vm1442_vm4, %v22648_v54  ;;  %v22680_v49 = vpack.c.bf16 %v4880_v10, %v4880_v10  ;;  %v24057_v28 = vpop.f32.mrb[56].mxu1  ;;  %v3659_v25 = vadd.f32 %v29265_v59, %v3572_v9  ;;  %v23956_v60 = vpop.f32.mrb[58].mxu0  ;;  %v7114_v4 = vsel %vm394_vm2, %v7111_v55, %v7113_v47 }
 0x2a8   : > { %5042 = vst.msk [vmem:[#allocation2 + $0x1dc] sm:$0xf] %vm1442_vm4, %v22682_v5  ;;  %v3693_v51 = vmax.f32 %v3661_v44, 0.0  ;;  %v4853_v45 = vadd.f32 %v29265_v59, %v24057_v28  ;;  %v4764_v43 = vpop.f32.mrb[57].mxu1  ;;  %v3662_v12 = vadd.f32 %v29265_v59, %v23956_v60  ;;  %v3575_v46 = vpop.f32.mrb[59].mxu0  ;;  %v29495_v9 = vld [vmem:[#allocation5 + $0x28] sm:$0xff]  }
 0x2a9   : > { %5040 = vst.msk [vmem:[#allocation2 + $0x1d4] sm:$0xf] %vm1442_vm4, %v22680_v49  ;;  %v3691_v33 = vmax.f32 %v3659_v25, 0.0  ;;  %v4851_v27 = vadd.f32 %v29265_v59, %v4764_v43  ;;  %v24058_v32 = vpop.f32.mrb[58].mxu1  ;;  %v3660_v11 = vadd.f32 %v29265_v59, %v3575_v46  ;;  %v27636_v43 = vld [vmem:[#allocation5 + $0x8] sm:$0xff]   ;;  %v7410_v20 = vshll.u32 %v29443_v61, 16 }
 0x2aa   : > { %v22653_v54 = vpack.c.bf16 %v3693_v51, %v3693_v51  ;;  %v4885_v10 = vmax.f32 %v4853_v45, 0.0  ;;  %v3694_v21 = vmax.f32 %v3662_v12, 0.0  ;;  %v4854_v5 = vadd.f32 %v29265_v59, %v24058_v32  ;;  %v4767_v44 = vpop.f32.mrb[59].mxu1  ;;  %24174 = vmatmul.mubr.msk.bf16.vlgmr.msra.gmra.mrb[164].mxu0 %vm433_vm3, %v27265_v3  ;;  %v29509_v32 = vld [vmem:[#allocation2 + $0x30] sm:$0xff]  }
 0x2ab   : > { %v22651_v49 = vpack.c.bf16 %v3691_v33, %v3691_v33  ;;  %v4883_v28 = vmax.f32 %v4851_v27, 0.0  ;;  %v3692_v25 = vmax.f32 %v3660_v11, 0.0  ;;  %v4852_v60 = vadd.f32 %v29265_v59, %v4767_v44  ;;  %24532 = vmatpush3.bf16.msra.mxu0 %v27636_v43  ;;  %24177 = vmatprep.mubr.msk.bf16.mxu0 %vm27866_vm7, %v32569_v31  ;;  %v29524_v43 = vld [vmem:[#allocation2 + $0x38] sm:$0xff]  }
 0x2ac   : > { %3853 = vst.msk [vmem:[#allocation2 + $0x168] sm:$0xf] %vm1442_vm4, %v22653_v54  ;;  %v22685_v55 = vpack.c.bf16 %v4885_v10, %v4885_v10  ;;  %v22654_v51 = vpack.c.bf16 %v3694_v21, %v3694_v21  ;;  %v4886_v45 = vmax.f32 %v4854_v5, 0.0  ;;  %24330 = vmatmul.mubr.msk.bf16.vlgmr.msra.gmra.mrb[68].mxu1 %vm6294_vm6, %v7114_v4  ;;  %v7116_v3 = vsel %vm394_vm2, %v7113_v47, %v7115_v13  ;;  %v27269_v54 = vld [vmem:[%s28024_s8 + $0x22c] sm:$0xff]  }
 0x2ad   : > { %24565 = vmatprep.subr.bf16.mxu0 %v27299_v39  ;;  %3851 = vst.msk [vmem:[#allocation2 + $0x160] sm:$0xf] %vm1442_vm4, %v22651_v49  ;;  %v22683_v12 = vpack.c.bf16 %v4883_v28, %v4883_v28  ;;  %v22652_v46 = vpack.c.bf16 %v3692_v25, %v3692_v25  ;;  %v4884_v33 = vmax.f32 %v4852_v60, 0.0  ;;  %24333 = vmatprep.mubr.msk.bf16.mxu1 %vm6294_vm6, %v7116_v3  ;;  %v23959_v27 = vpop.f32.mrb[60].mxu0  ;;  %v7117_v11 = vrot.slane %v29509_v32, 2 }
 0x2ae   : > { %24362 = vmatpush3.bf16.msra.mxu1 %v29208_v8  ;;  %5045 = vst.msk [vmem:[#allocation2 + $0x1e8] sm:$0xf] %vm1442_vm4, %v22685_v55  ;;  %3854 = vst.msk [vmem:[#allocation2 + $0x16c] sm:$0xf] %vm1442_vm4, %v22654_v51  ;;  %v22686_v47 = vpack.c.bf16 %v4886_v45, %v4886_v45  ;;  %v3665_v39 = vadd.f32 %v29265_v59, %v23959_v27  ;;  %v3588_v4 = vpop.f32.mrb[61].mxu0  ;;  %v7119_v55 = vrot.slane %v29524_v43, 2 }
 0x2af   : > { %24395 = vmatprep.subr.bf16.mxu1 %v29495_v9  ;;  %5043 = vst.msk [vmem:[#allocation2 + $0x1e0] sm:$0xf] %vm1442_vm4, %v22683_v12  ;;  %3852 = vst.msk [vmem:[#allocation2 + $0x164] sm:$0xf] %vm1442_vm4, %v22652_v46  ;;  %v22684_v10 = vpack.c.bf16 %v4884_v33, %v4884_v33  ;;  %v24061_v21 = vpop.f32.mrb[60].mxu1  ;;  %v3663_v5 = vadd.f32 %v29265_v59, %v3588_v4  ;;  %v23960_v8 = vpop.f32.mrb[62].mxu0  ;;  %v7118_v46 = vsel %vm394_vm2, %v7115_v13, %v7117_v11 }
 0x2b0   : > { %5046 = vst.msk [vmem:[#allocation2 + $0x1ec] sm:$0xf] %vm1442_vm4, %v22686_v47  ;;  %v3697_v44 = vmax.f32 %v3665_v39, 0.0  ;;  %v4857_v49 = vadd.f32 %v29265_v59, %v24061_v21  ;;  %v4780_v28 = vpop.f32.mrb[61].mxu1  ;;  %v3666_v25 = vadd.f32 %v29265_v59, %v23960_v8  ;;  %v3591_v60 = vpop.f32.mrb[63].mxu0  ;;  %v7416_v35 = vshrl.u32 %v29446_v6, 16 }
 0x2b1   : > { %5044 = vst.msk [vmem:[#allocation2 + $0x1e4] sm:$0xf] %vm1442_vm4, %v22684_v10  ;;  %v3695_v51 = vmax.f32 %v3663_v5, 0.0  ;;  %v4855_v45 = vadd.f32 %v29265_v59, %v4780_v28  ;;  %v24062_v3 = vpop.f32.mrb[62].mxu1  ;;  %v3664_v12 = vadd.f32 %v29265_v59, %v3591_v60  ;;  %v7120_v28 = vsel %vm394_vm2, %v7117_v11, %v7119_v55 }
 0x2b2   : > { %v22657_v33 = vpack.c.bf16 %v3697_v44, %v3697_v44  ;;  %v4889_v27 = vmax.f32 %v4857_v49, 0.0  ;;  %v3698_v47 = vmax.f32 %v3666_v25, 0.0  ;;  %v4858_v39 = vadd.f32 %v29265_v59, %v24062_v3  ;;  %v4783_v4 = vpop.f32.mrb[63].mxu1  ;;  %24178 = vmatmul.mubr.msk.bf16.gmra.mrb[168].mxu0 %vm433_vm3, %v27269_v54  ;;  %v27273_v3 = vld [vmem:[%s28024_s8 + $0x234] sm:$0xff]  }
 0x2b3   : > { %v22655_v21 = vpack.c.bf16 %v3695_v51, %v3695_v51  ;;  %v4887_v10 = vmax.f32 %v4855_v45, 0.0  ;;  %v3696_v5 = vmax.f32 %v3664_v12, 0.0  ;;  %v4856_v8 = vadd.f32 %v29265_v59, %v4783_v4  ;;  %24181 = vmatprep.mubr.msk.bf16.mxu0 %vm27866_vm7, %v32569_v31 }
 0x2b4   : > { %3857 = vst.msk [vmem:[#allocation2 + $0x178] sm:$0xf] %vm1442_vm4, %v22657_v33  ;;  %v22689_v13 = vpack.c.bf16 %v4889_v27, %v4889_v27  ;;  %v22658_v44 = vpack.c.bf16 %v3698_v47, %v3698_v47  ;;  %v4890_v49 = vmax.f32 %v4858_v39, 0.0  ;;  %24334 = vmatmul.mubr.msk.bf16.gmra.mrb[72].mxu1 %vm6294_vm6, %v7118_v46  ;;  %v29552_v46 = vld [vmem:[#allocation2 + $0x40] sm:$0xff]   ;;  %v29558_v39 = vld [vmem:[#allocation2 + $0x48] sm:$0xff]   ;;  %v7409_v53 = vrot.slane %v7407_v36, 2 }
 0x2b5   : > { %3855 = vst.msk [vmem:[#allocation2 + $0x170] sm:$0xf] %vm1442_vm4, %v22655_v21  ;;  %v22687_v54 = vpack.c.bf16 %v4887_v10, %v4887_v10  ;;  %v22656_v25 = vpack.c.bf16 %v3696_v5, %v3696_v5  ;;  %v4888_v60 = vmax.f32 %v4856_v8, 0.0  ;;  %24337 = vmatprep.mubr.msk.bf16.mxu1 %vm6294_vm6, %v7120_v28  ;;  %v29543_v59 = vpop.f32.mrb[64].mxu0  ;;  %v7121_v33 = vrot.slane %v29552_v46, 2  ;;  %v27276_v28 = vld [vmem:[%s28024_s8 + $0x23c] sm:$0xff]  }
 0x2b6   : > { %5049 = vst.msk [vmem:[#allocation2 + $0x1f8] sm:$0xf] %vm1442_vm4, %v22689_v13  ;;  %3858 = vst.msk [vmem:[#allocation2 + $0x17c] sm:$0xf] %vm1442_vm4, %v22658_v44  ;;  %v22690_v51 = vpack.c.bf16 %v4890_v49, %v4890_v49  ;;  %v24067_v45 = vpop.f32.mrb[65].mxu0  ;;  %v7123_v4 = vrot.slane %v29558_v39, 2 }
 0x2b7   : > { %5047 = vst.msk [vmem:[#allocation2 + $0x1f0] sm:$0xf] %vm1442_vm4, %v22687_v54  ;;  %3856 = vst.msk [vmem:[#allocation2 + $0x174] sm:$0xf] %vm1442_vm4, %v22656_v25  ;;  %v22688_v11 = vpack.c.bf16 %v4888_v60, %v4888_v60  ;;  %v29550_v12 = vpop.f32.mrb[66].mxu0  ;;  %v29555_v27 = vpop.f32.mrb[64].mxu1  ;;  %v7122_v8 = vsel %vm394_vm2, %v7119_v55, %v7121_v33 }
 0x2b8   : > { %5050 = vst.msk [vmem:[#allocation2 + $0x1fc] sm:$0xf] %vm1442_vm4, %v22690_v51  ;;  %v24068_v47 = vpop.f32.mrb[67].mxu0  ;;  %v24169_v21 = vpop.f32.mrb[65].mxu1  ;;  %v7124_v13 = vsel %vm394_vm2, %v7121_v33, %v7123_v4  ;;  %v29574_v25 = vld [vmem:[#allocation2 + $0x50] sm:$0xff]   ;;  %v29577_v51 = vld [vmem:[#allocation2 + $0x58] sm:$0xff]  }
 0x2b9   : > { %5048 = vst.msk [vmem:[#allocation2 + $0x1f4] sm:$0xf] %vm1442_vm4, %v22688_v11  ;;  %v5556_v10 = vpop.f32.mrb[66].mxu1  ;;  %v7125_v55 = vrot.slane %v29574_v25, 2  ;;  %v7127_v45 = vrot.slane %v29577_v51, 2  ;;  %v27279_v21 = vld [vmem:[%s28024_s8 + $0x244] sm:$0xff]  }
 0x2ba   : > { %24182 = vmatmul.mubr.msk.bf16.gmra.mrb[172].mxu0 %vm433_vm3, %v27273_v3  ;;  %v24170_v5 = vpop.f32.mrb[67].mxu1  ;;  %v7425_v61 = vshrl.u32 %v29479_v37, 16  ;;  %v12208_v36 = vrot.slane %v27414_v1, 1  ;;  %v7418_v15 = vrot.slane %v7416_v35, 2 }
 0x2bb   : > { %24185 = vmatprep.mubr.msk.bf16.mxu0 %vm27866_vm7, %v32569_v31  ;;  %v7126_v3 = vsel %vm394_vm2, %v7123_v4, %v7125_v55  ;;  %v7128_v11 = vsel %vm394_vm2, %v7125_v55, %v7127_v45  ;;  %v29592_v5 = vld [vmem:[#allocation2 + $0x60] sm:$0xff]  }
 0x2bc   : > { %24338 = vmatmul.mubr.msk.bf16.gmra.mrb[76].mxu1 %vm6294_vm6, %v7122_v8  ;;  %v7129_v4 = vrot.slane %v29592_v5, 2 }
 0x2bd   : > { %24341 = vmatprep.mubr.msk.bf16.mxu1 %vm6294_vm6, %v7124_v13  ;;  %v29569_v44 = vpop.f32.mrb[68].mxu0  ;;  %v29595_v13 = vld [vmem:[#allocation2 + $0x68] sm:$0xff]  }
 0x2be   : > { %v24071_v49 = vpop.f32.mrb[69].mxu0 }
 0x2bf   : > { %v29572_v54 = vpop.f32.mrb[70].mxu0  ;;  %v7131_v49 = vrot.slane %v29595_v13, 2 }
 0x2c0   : > { %v24072_v60 = vpop.f32.mrb[71].mxu0 }
 0x2c1   : > { %v7132_v55 = vsel %vm394_vm2, %v7129_v4, %v7131_v49 }
 0x2c2   : > { %24186 = vmatmul.mubr.msk.bf16.gmra.mrb[176].mxu0 %vm433_vm3, %v27276_v28  ;;  %v7130_v28 = vsel %vm394_vm2, %v7127_v45, %v7129_v4  ;;  %v7399_v4 = vshrl.u32 %v29416_v29, 16 }
 0x2c3   : > { %24189 = vmatprep.mubr.msk.bf16.mxu0 %vm27866_vm7, %v32569_v31 }
 0x2c4   : > { %24342 = vmatmul.mubr.msk.bf16.gmra.mrb[80].mxu1 %vm6294_vm6, %v7126_v3  ;;  %v29607_v3 = vld [vmem:[#allocation2 + $0x90] ss:$0 sps:$4 sm:$0x33]  }
 0x2c5   : > { %24345 = vmatprep.mubr.msk.bf16.mxu1 %vm6294_vm6, %v7128_v11  ;;  %v29587_v33 = vpop.f32.mrb[72].mxu0 }
 0x2c6   : > { %v24075_v47 = vpop.f32.mrb[73].mxu0 }
 0x2c7   : > { %v29590_v10 = vpop.f32.mrb[74].mxu0  ;;  %v27282_v47 = vld [vmem:[%s28024_s8 + $0x24c] sm:$0xff]  }
 0x2c8   : > { %v24076_v8 = vpop.f32.mrb[75].mxu0 }
 0x2ca   : > { %24190 = vmatmul.mubr.msk.bf16.gmra.mrb[180].mxu0 %vm433_vm3, %v27279_v21  ;;  %v29612_v21 = vld [vmem:[#allocation2 + $0x70] sm:$0xff]  }
 0x2cb   : > { %24193 = vmatprep.mubr.msk.bf16.mxu0 %vm27866_vm7, %v32569_v31  ;;  %v7133_v45 = vrot.slane %v29612_v21, 2  ;;  %v7402_v31 = vshll.u32 %v29416_v29, 16  ;;  %v27415_v29 = vld [vmem:[#allocation2 + $0xb4] sm:$0xff]  }
 0x2cc   : > { %24346 = vmatmul.mubr.msk.bf16.gmra.mrb[84].mxu1 %vm6294_vm6, %v7130_v28  ;;  %v7135_v28 = vrot.slane %v29615_v0, 2  ;;  %v12210_v30 = vrot.slane %v27415_v29, 1  ;;  %v12216_v29 = vrot.slane %v27419_v34, 1  ;;  %v7434_v34 = vshrl.u32 %v29509_v32, 16 }
 0x2cd   : > { %24349 = vmatprep.mubr.msk.bf16.mxu1 %vm6294_vm6, %v7132_v55  ;;  %v29605_v60 = vpop.f32.mrb[76].mxu0  ;;  %v7134_v16 = vsel %vm394_vm2, %v7131_v49, %v7133_v45  ;;  %v29637_v38 = vrot.slane %v7402_v31, 3  ;;  %v7419_v49 = vshll.u32 %v29446_v6, 16  ;;  %v11705_v31 = vld [vmem:[#allocation2 + $0xa8] sm:$0xf]  ;;  %v7412_v6 = vrot.slane %v7410_v20, 3 }
 0x2ce   : > { %v24079_v11 = vpop.f32.mrb[77].mxu0  ;;  %v7136_v24 = vsel %vm394_vm2, %v7133_v45, %v7135_v28  ;;  %v21976_v42 = vcombine.low %v12201_v19, %v11705_v31  ;;  %v27424_v20 = vld [vmem:[#allocation2 + $0xe4] sm:$0xff]   ;;  %v27426_v19 = vld [vmem:[#allocation2 + $0xec] sm:$0xff]   ;;  %v29658_v1 = vsel %vm6710_vm8, %v12208_v36, %v12210_v30 }
 0x2cf   : > { %v29610_v8 = vpop.f32.mrb[78].mxu0  ;;  %v29622_v11 = vld [vmem:[#allocation2 + $0x80] sm:$0xff]   ;;  %32608 = vst [vmem:[#allocation35_spill] sm:$0xff] %v29658_v1 }
 0x2d0   : > { %v24080_v55 = vpop.f32.mrb[79].mxu0  ;;  %v7137_v62 = vrot.slane %v29622_v11, 2  ;;  %v12207_v50 = vrot.slane %v21976_v42, 1  ;;  %v29804_v1 = vld [vmem:[#allocation2 + $0xa0] sm:$0xff]  }
 0x2d1   : > { %v29633_v55 = vrot.slane %v7399_v4, 2 }
 0x2d2   : > { %24194 = vmatmul.mubr.msk.bf16.gmra.mrb[184].mxu0 %vm433_vm3, %v27282_v47  ;;  %v27285_v47 = vld [vmem:[%s28024_s8 + $0x254] sm:$0xff]   ;;  %v7140_v56 = vsel %vm394_vm2, %v7137_v62, %v32607_v63  ;;  %v29666_v31 = vsel %vm6710_vm8, %v12207_v50, %v12208_v36 }
 0x2d3   : > { %24197 = vmatprep.mubr.msk.bf16.mxu0 %vm27866_vm7, %v32606_v48  ;;  %32609 = vst [vmem:[#allocation36_spill] sm:$0xff] %v29666_v31  ;;  %v29829_v31 = vld [vmem:[#allocation2 + $0xa8] sm:$0xff]  }
 0x2d4   : > { %24350 = vmatmul.mubr.msk.bf16.gmra.mrb[88].mxu1 %vm6294_vm6, %v7134_v16 }
 0x2d5   : > { %24353 = vmatprep.mubr.msk.bf16.mxu1 %vm6294_vm6, %v7136_v24  ;;  %v29643_v45 = vpop.f32.mrb[80].mxu0  ;;  %v7428_v24 = vshll.u32 %v29479_v37, 16  ;;  %v12212_v37 = vrot.slane %v27417_v2, 1  ;;  %v27288_v2 = vld [vmem:[%s28024_s8 + $0x25c] sm:$0xff]  }
 0x2d6   : > { %v24083_v4 = vpop.f32.mrb[81].mxu0 }
 0x2d7   : > { %v29645_v16 = vpop.f32.mrb[82].mxu0  ;;  %v7138_v4 = vsel %vm394_vm2, %v7135_v28, %v7137_v62  ;;  %v12214_v28 = vrot.slane %v27418_v22, 1  ;;  %v29663_v62 = vld [vmem:[#allocation2 + $0xf4] sm:$0xff]   ;;  %v29670_v40 = vsel %vm6710_vm8, %v12210_v30, %v12212_v37 }
 0x2d8   : > { %v24084_v17 = vpop.f32.mrb[83].mxu0  ;;  %32610 = vst [vmem:[#allocation37_spill] sm:$0xff] %v29670_v40  ;;  %v12224_v40 = vrot.slane %v27426_v19, 1  ;;  %v7443_v19 = vshrl.u32 %v29524_v43, 16 }
 0x2d9   : > { %v27421_v17 = vld [vmem:[#allocation2 + $0xdc] sm:$0xff]   ;;  %v29673_v22 = vsel %vm6710_vm8, %v12212_v37, %v12214_v28  ;;  %v29681_v50 = vsel %vm6710_vm8, %v12214_v28, %v12216_v29  ;;  %v7437_v37 = vshll.u32 %v29509_v32, 16 }
 0x2da   : > { %24198 = vmatmul.mubr.msk.bf16.gmra.mrb[188].mxu0 %vm433_vm3, %v27285_v47  ;;  %v12218_v47 = vrot.slane %v27420_v23, 1  ;;  %32611 = vst [vmem:[#allocation38_spill] sm:$0xff] %v29673_v22  ;;  %32612 = vst [vmem:[#allocation39_spill] sm:$0xff] %v29681_v50  ;;  %v12220_v30 = vrot.slane %v27421_v17, 1  ;;  %v32571_v22 = vrot.slane %v29663_v62, 1  ;;  %v32618_v17 = vrot.slane %v29625_v57, 2 }
 0x2db   : > { %24201 = vmatprep.mubr.msk.bf16.mxu0 %vm27866_vm7, %v32606_v48 }
 0x2dc   : > { %24354 = vmatmul.mubr.msk.bf16.gmra.mrb[92].mxu1 %vm6294_vm6, %v7138_v4  ;;  %v7421_v4 = vrot.slane %v7419_v49, 3  ;;  %v29684_v36 = vsel %vm6710_vm8, %v12216_v29, %v12218_v47  ;;  %v7427_v49 = vrot.slane %v7425_v61, 2  ;;  %v32617_v61 = vrot.slane %v29607_v3, 2 }
 0x2dd   : > { %24357 = vmatprep.mubr.msk.bf16.mxu1 %vm6294_vm6, %v7140_v56  ;;  %v29661_v63 = vpop.f32.mrb[84].mxu0  ;;  %v7405_v56 = vor.u32 %v29637_v38, %v29633_v55  ;;  %32613 = vst [vmem:[#allocation40_spill] sm:$0xff] %v29684_v36  ;;  %v7413_v38 = vor.u32 %v7412_v6, %v7409_v53  ;;  %v29690_v55 = vsel %vm6710_vm8, %v12218_v47, %v12220_v30  ;;  %v7446_v47 = vshll.u32 %v29524_v43, 16 }
 0x2de   : > { %v24087_v42 = vpop.f32.mrb[85].mxu0  ;;  %32614 = vst [vmem:[#allocation41_spill] sm:$0xff] %v29690_v55  ;;  %v7142_v32 = vsel %vm394_vm2, %v32618_v17, %v32617_v61  ;;  %v29708_v53 = vsel %vm6710_vm8, %v12224_v40, %v32571_v22  ;;  %v7439_v61 = vrot.slane %v7437_v37, 3  ;;  %v29720_v22 = vld [vmem:[#allocation5 + $0x30] sm:$0xff]  }
 0x2df   : > { %v29675_v23 = vpop.f32.mrb[86].mxu0  ;;  %v12222_v42 = vrot.slane %v27424_v20, 1  ;;  %32619 = vst [vmem:[#allocation44_spill] sm:$0xff] %v29708_v53  ;;  %v7414_v6 = vsel %vm7397_vm9, %v7405_v56, %v7413_v38  ;;  %v7430_v20 = vrot.slane %v7428_v24, 3  ;;  %v7445_v56 = vrot.slane %v7443_v19, 2  ;;  %v29778_v53 = vld [vmem:[#allocation2 + $0x90] sm:$0xff]  }
 0x2e0   : > { %v24088_v35 = vpop.f32.mrb[87].mxu0  ;;  %v7448_v24 = vrot.slane %v7446_v47, 3 }
 0x2e1   : > { %v29693_v28 = vsel %vm6710_vm8, %v12220_v30, %v12222_v42  ;;  %v29696_v29 = vsel %vm6710_vm8, %v12222_v42, %v12224_v40  ;;  %v27290_v35 = vld [vmem:[%s28024_s8 + $0x264] sm:$0xff]   ;;  %v7422_v42 = vor.u32 %v7421_v4, %v7418_v15  ;;  %v7436_v40 = vrot.slane %v7434_v34, 2  ;;  %v27291_v34 = vld [vmem:[%s28024_s8 + $0x26c] sm:$0xff]  }
 0x2e2   : > { %24202 = vmatmul.mubr.msk.bf16.gmra.mrb[192].mxu0 %vm433_vm3, %v27288_v2  ;;  %32615 = vst [vmem:[#allocation42_spill] sm:$0xff] %v29693_v28  ;;  %32616 = vst [vmem:[#allocation43_spill] sm:$0xff] %v29696_v29  ;;  %v7449_v47 = vor.u32 %v7448_v24, %v7445_v56  ;;  %v7518_v28 = vshll.u32 %v29615_v0, 16 }
 0x2e3   : > { %24205 = vmatprep.mubr.msk.bf16.mxu0 %vm27866_vm7, %v32606_v48  ;;  %v7440_v37 = vor.u32 %v7439_v61, %v7436_v40 }
 0x2e4   : > { %24358 = vmatmul.mubr.msk.bf16.gmra.mrb[96].mxu1 %vm6294_vm6, %v7142_v32  ;;  %v7431_v32 = vor.u32 %v7430_v20, %v7427_v49  ;;  %v7455_v20 = vshll.u32 %v29552_v46, 16 }
 0x2e5   : > { %24363 = vmatprep.mubr.msk.bf16.mxu1 %vm6294_vm6, %v7414_v6  ;;  %v29714_v3 = vpop.f32.mrb[88].mxu0  ;;  %v7423_v6 = vsel %vm7397_vm9, %v7413_v38, %v7422_v42  ;;  %v7452_v38 = vshrl.u32 %v29552_v46, 16  ;;  %v7450_v46 = vsel %vm7397_vm9, %v7440_v37, %v7449_v47 }
 0x2e6   : > { %v24091_v2 = vpop.f32.mrb[89].mxu0  ;;  %v7432_v15 = vsel %vm7397_vm9, %v7422_v42, %v7431_v32  ;;  %v7457_v40 = vrot.slane %v7455_v20, 3 }
 0x2e7   : > { %v29718_v30 = vpop.f32.mrb[90].mxu0  ;;  %v7461_v2 = vshrl.u32 %v29558_v39, 16  ;;  %v7454_v42 = vrot.slane %v7452_v38, 2 }
 0x2e8   : > { %v24092_v17 = vpop.f32.mrb[91].mxu0 }
 0x2e9   : > { %v7463_v61 = vrot.slane %v7461_v2, 2  ;;  %v9302_v2 = vld [vmem:[#allocation2 + $0x80] sm:$0xf] }
 0x2ea   : > { %24206 = vmatmul.mubr.msk.bf16.gmra.mrb[196].mxu0 %vm433_vm3, %v27290_v35  ;;  %v7464_v35 = vshll.u32 %v29558_v39, 16  ;;  %v9303_v39 = vld [vmem:[#allocation2 + $0x84] sm:$0xf] }
 0x2eb   : > { %24209 = vmatprep.mubr.msk.bf16.mxu0 %vm27866_vm7, %v32606_v48 }
 0x2ec   : > { %24364 = vmatmul.mubr.msk.bf16.vlgmr.msra.gmra.mrb[68].mxu1 %vm6294_vm6, %v7423_v6  ;;  %v7466_v17 = vrot.slane %v7464_v35, 3  ;;  %v27293_v6 = vld [vmem:[%s28024_s8 + $0x274] sm:$0xff]   ;;  %v29757_v35 = vcombine.low %v9302_v2, %v9303_v39  ;;  %v7491_v39 = vshll.u32 %v29592_v5, 16  ;;  %v29775_v2 = vld [vmem:[#allocation2 + $0x88] sm:$0xff]  }
 0x2ed   : > { %24367 = vmatprep.mubr.msk.bf16.mxu1 %vm6294_vm6, %v7432_v15  ;;  %v29729_v43 = vpop.f32.mrb[92].mxu0  ;;  %24396 = vmatpush3.bf16.msra.mxu1 %v29495_v9  ;;  %v7441_v9 = vsel %vm7397_vm9, %v7431_v32, %v7440_v37  ;;  %v7470_v32 = vshrl.u32 %v29574_v25, 16  ;;  %v7479_v37 = vshrl.u32 %v29577_v51, 16 }
 0x2ee   : > { %v24095_v4 = vpop.f32.mrb[93].mxu0  ;;  %24429 = vmatprep.subr.bf16.mxu1 %v29720_v22  ;;  %v7467_v20 = vor.u32 %v7466_v17, %v7463_v61  ;;  %v7488_v17 = vshrl.u32 %v29592_v5, 16 }
 0x2ef   : > { %v29734_v49 = vpop.f32.mrb[94].mxu0  ;;  %v7458_v4 = vor.u32 %v7457_v40, %v7454_v42  ;;  %v7472_v42 = vrot.slane %v7470_v32, 2  ;;  %v9425_v32 = vshll.u32 %v29757_v35, 16 }
 0x2f0   : > { %v24096_v19 = vpop.f32.mrb[95].mxu0 }
 0x2f1   : > { %v7482_v19 = vshll.u32 %v29577_v51, 16 }
 0x2f2   : > { %24210 = vmatmul.mubr.msk.bf16.gmra.mrb[200].mxu0 %vm433_vm3, %v27291_v34  ;;  %v7473_v34 = vshll.u32 %v29574_v25, 16  ;;  %v7468_v25 = vsel %vm7397_vm9, %v7458_v4, %v7467_v20 }
 0x2f3   : > { %24213 = vmatprep.mubr.msk.bf16.mxu0 %vm27866_vm7, %v32606_v48  ;;  %v7484_v61 = vrot.slane %v7482_v19, 3 }
 0x2f4   : > { %24368 = vmatmul.mubr.msk.bf16.gmra.mrb[72].mxu1 %vm6294_vm6, %v7441_v9  ;;  %v7459_v9 = vsel %vm7397_vm9, %v7449_v47, %v7458_v4  ;;  %v7475_v40 = vrot.slane %v7473_v34, 3  ;;  %v7500_v4 = vshll.u32 %v29595_v13, 16 }
 0x2f5   : > { %24371 = vmatprep.mubr.msk.bf16.mxu1 %vm6294_vm6, %v7450_v46  ;;  %v29747_v56 = vpop.f32.mrb[96].mxu0  ;;  %v7481_v46 = vrot.slane %v7479_v37, 2 }
 0x2f6   : > { %v24099_v24 = vpop.f32.mrb[97].mxu0 }
 0x2f7   : > { %v29751_v15 = vpop.f32.mrb[98].mxu0  ;;  %v27294_v24 = vld [vmem:[%s28024_s8 + $0x27c] sm:$0xff]   ;;  %v7485_v19 = vor.u32 %v7484_v61, %v7481_v46  ;;  %v9430_v46 = vshll.u32 %v29775_v2, 16 }
 0x2f8   : > { %v24100_v38 = vpop.f32.mrb[99].mxu0  ;;  %v27431_v61 = vld [vmem:[#allocation2 + $0xfc] sm:$0xff]  }
 0x2f9   : > { %v7476_v38 = vor.u32 %v7475_v40, %v7472_v42  ;;  %v7502_v42 = vrot.slane %v7500_v4, 3  ;;  %v27433_v4 = vld [vmem:[#allocation2 + $0x104] sm:$0xff]   ;;  %v9432_v36 = vrot.slane %v9430_v46, 1 }
 0x2fa   : > { %24214 = vmatmul.mubr.msk.bf16.gmra.mrb[204].mxu0 %vm433_vm3, %v27293_v6  ;;  %v7497_v6 = vshrl.u32 %v29595_v13, 16  ;;  %v9423_v13 = vshrl.u32 %v29757_v35, 16 }
 0x2fb   : > { %24217 = vmatprep.mubr.msk.bf16.mxu0 %vm27866_vm7, %v32606_v48  ;;  %v7477_v29 = vsel %vm7397_vm9, %v7467_v20, %v7476_v38  ;;  %v7486_v40 = vsel %vm7397_vm9, %v7476_v38, %v7485_v19  ;;  %v7506_v20 = vshrl.u32 %v29612_v21, 16  ;;  %v7515_v38 = vshrl.u32 %v29615_v0, 16 }
 0x2fc   : > { %24372 = vmatmul.mubr.msk.bf16.gmra.mrb[76].mxu1 %vm6294_vm6, %v7459_v9  ;;  %v7490_v9 = vrot.slane %v7488_v17, 2  ;;  %v7499_v5 = vrot.slane %v7497_v6, 2  ;;  %v27295_v6 = vld [vmem:[%s28024_s8 + $0x284] ss:$0 sps:$4 sm:$0x77]   ;;  %v32624_v0 = vrot.slane %v29663_v62, 1 }
 0x2fd   : > { %24375 = vmatprep.mubr.msk.bf16.mxu1 %vm6294_vm6, %v7468_v25  ;;  %v29765_v51 = vpop.f32.mrb[100].mxu0  ;;  %v7493_v25 = vrot.slane %v7491_v39, 3  ;;  %s27022_s8 = smul.u32 1152, %s32791_s21 }
 0x2fe   : > { %32620 = vst [vmem:[#allocation45_spill] sm:$0xff] %v29765_v51  ;;  %v24103_v47 = vpop.f32.mrb[101].mxu0  ;;  %v7503_v55 = vor.u32 %v7502_v42, %v7499_v5  ;;  %v12230_v42 = vrot.slane %v27433_v4, 1  ;;  %v29860_v51 = vld [vmem:[#allocation2 + $0xb8] sm:$0xff]  }
 0x2ff   : > { %v29772_v34 = vpop.f32.mrb[102].mxu0  ;;  %v9427_v47 = vrot.slane %v9425_v32, 1  ;;  %v7494_v39 = vor.u32 %v7493_v25, %v7490_v9  ;;  %v9438_v32 = vshll.u32 %v29778_v53, 16  ;;  %v29798_v9 = vld [vmem:[#allocation2 + $0x98] sm:$0xff]   ;;  %v12228_v25 = vrot.slane %v27431_v61, 1  ;;  %s30963_s11 = scalar_lea.vmem %s32568_s5, %s27022_s8 }
 0x300   : > { %32621 = vst [vmem:[#allocation46_spill] sm:$0xff] %v29772_v34  ;;  %v24104_v37 = vpop.f32.mrb[103].mxu0  ;;  %v7520_v61 = vrot.slane %v7518_v28, 3  ;;  %v9454_v28 = vshll.u32 %v29804_v1, 16 }
 0x301   : > { %v29809_v5 = vsel %vm6710_vm8, %v32624_v0, %v12228_v25  ;;  %v29820_v4 = vsel %vm6710_vm8, %v12228_v25, %v12230_v42 }
 0x302   : > { %24218 = vmatmul.mubr.msk.bf16.gmra.mrb[208].mxu0 %vm433_vm3, %v27294_v24  ;;  %32625 = vst [vmem:[#allocation49_spill] sm:$0xff] %v29809_v5  ;;  %32627 = vst [vmem:[#allocation51_spill] sm:$0xff] %v29820_v4  ;;  %v7524_v5 = vshrl.u32 %v29622_v11, 16 }
 0x303   : > { %24221 = vmatprep.mubr.msk.bf16.mxu0 %vm27866_vm7, %v32606_v48  ;;  %v9428_v48 = vor.u32 %v9427_v47, %v9423_v13  ;;  %v9434_v47 = vshrl.u32 %v29775_v2, 16  ;;  %v7508_v13 = vrot.slane %v7506_v20, 2  ;;  %v9442_v20 = vshrl.u32 %v29778_v53, 16 }
 0x304   : > { %24376 = vmatmul.mubr.msk.bf16.gmra.mrb[80].mxu1 %vm6294_vm6, %v7477_v29  ;;  %v7509_v29 = vshll.u32 %v29612_v21, 16  ;;  %v9440_v21 = vrot.slane %v9438_v32, 1  ;;  %v27435_v32 = vld [vmem:[#allocation2 + $0x10c] sm:$0xff]  }
 0x305   : > { %24379 = vmatprep.mubr.msk.bf16.mxu1 %vm6294_vm6, %v7486_v40  ;;  %v29788_v17 = vpop.f32.mrb[104].mxu0  ;;  %v9433_v50 = vsel %vm6155_vm5, %v9428_v48, %v9432_v36  ;;  %v9446_v48 = vshll.u32 %v29798_v9, 16 }
 0x306   : > { %32622 = vst [vmem:[#allocation47_spill] sm:$0xff] %v29788_v17  ;;  %v24107_v24 = vpop.f32.mrb[105].mxu0  ;;  %v7511_v46 = vrot.slane %v7509_v29, 3 }
 0x307   : > { %v29793_v37 = vpop.f32.mrb[106].mxu0  ;;  %v7495_v24 = vsel %vm7397_vm9, %v7485_v19, %v7494_v39  ;;  %v7517_v19 = vrot.slane %v7515_v38, 2  ;;  %v9444_v38 = vor.u32 %v9442_v20, %v9440_v21  ;;  %v9448_v25 = vrot.slane %v9446_v48, 1  ;;  %v29833_v20 = vld [vmem:[#allocation5 + $0x10] sm:$0xff]  }
 0x308   : > { %32623 = vst [vmem:[#allocation48_spill] sm:$0xff] %v29793_v37  ;;  %v24108_v40 = vpop.f32.mrb[107].mxu0 }
 0x309   : > { %v29823_v40 = vld [vmem:[#allocation2 + $0x114] sm:$0xff]   ;;  %v7521_v0 = vor.u32 %v7520_v61, %v7517_v19 }
 0x30a   : > { %24222 = vmatmul.mubr.msk.bf16.gmra.mrb[212].mxu0 %vm433_vm3, %v27295_v6  ;;  %v7504_v6 = vsel %vm7397_vm9, %v7494_v39, %v7503_v55  ;;  %v7512_v39 = vor.u32 %v7511_v46, %v7508_v13  ;;  %v9449_v13 = vsel %vm6155_vm5, %v9444_v38, %v9448_v25  ;;  %v9456_v46 = vrot.slane %v9454_v28, 1  ;;  %v29838_v19 = vld [vmem:[#allocation2 + $0xb0] sm:$0xff]  }
 0x30b   : > { %24533 = vmatprep.mubr.msk.bf16.mxu0 %vm6294_vm6, %v9433_v50  ;;  %v9436_v50 = vor.u32 %v9434_v47, %v9432_v36  ;;  %v7533_v36 = vshrl.u32 %v29625_v57, 16  ;;  %v7536_v47 = vshll.u32 %v29625_v57, 16  ;;  %v12234_v61 = vrot.slane %v29823_v40, 1  ;;  %v27439_v40 = vld [vmem:[#allocation2 + $0x11c] sm:$0xff]  }
 0x30c   : > { %24380 = vmatmul.mubr.msk.bf16.gmra.mrb[84].mxu1 %vm6294_vm6, %v7495_v24  ;;  %v7513_v48 = vsel %vm7397_vm9, %v7503_v55, %v7512_v39  ;;  %v7522_v57 = vsel %vm7397_vm9, %v7512_v39, %v7521_v0  ;;  %v9458_v38 = vshrl.u32 %v29804_v1, 16  ;;  %v9450_v28 = vshrl.u32 %v29798_v9, 16 }
 0x30d   : > { %24383 = vmatprep.mubr.msk.bf16.mxu1 %vm6294_vm6, %v7504_v6  ;;  %v29817_v62 = vpop.f32.mrb[108].mxu0  ;;  %v7527_v6 = vshll.u32 %v29622_v11, 16  ;;  %v9441_v4 = vsel %vm6155_vm5, %v9436_v50, %v9440_v21  ;;  %v7526_v21 = vrot.slane %v7524_v5, 2  ;;  %v7538_v50 = vrot.slane %v7536_v47, 3 }
 0x30e   : > { %32626 = vst [vmem:[#allocation50_spill] sm:$0xff] %v29817_v62  ;;  %v24111_v29 = vpop.f32.mrb[109].mxu0  ;;  %v9470_v47 = vshll.u32 %v29838_v19, 16 }
 0x30f   : > { %v29825_v24 = vpop.f32.mrb[110].mxu0  ;;  %v12232_v29 = vrot.slane %v27435_v32, 1  ;;  %v27649_v32 = vld [vmem:[#allocation5] sm:$0xff]  }
 0x310   : > { %32628 = vst [vmem:[#allocation52_spill] sm:$0xff] %v29825_v24  ;;  %v24112_v62 = vpop.f32.mrb[111].mxu0 }
 0x311   : > { %v29841_v11 = vsel %vm6710_vm8, %v12230_v42, %v12232_v29  ;;  %v7529_v62 = vrot.slane %v7527_v6, 3  ;;  %v9462_v42 = vshll.u32 %v29829_v31, 16  ;;  %v29854_v39 = vsel %vm6710_vm8, %v12232_v29, %v12234_v61 }
 0x312   : > { %24534 = vmatmul.mubr.msk.bf16.vlgmr.msra.gmra.mrb[216].mxu0 %vm6294_vm6, %v9441_v4  ;;  %32629 = vst [vmem:[#allocation53_spill] sm:$0xff] %v29841_v11  ;;  %v7535_v4 = vrot.slane %v7533_v36, 2  ;;  %32630 = vst [vmem:[#allocation54_spill] sm:$0xff] %v29854_v39  ;;  %v9460_v36 = vor.u32 %v9458_v38, %v9456_v46  ;;  %v27441_v39 = vld [vmem:[#allocation2 + $0x124] ss:$0 sps:$4 sm:$0x11]  }
 0x313   : > { %24537 = vmatprep.mubr.msk.bf16.mxu0 %vm6294_vm6, %v9449_v13  ;;  %24566 = vmatpush3.bf16.msra.mxu0 %v27649_v32  ;;  %v27650_v32 = vld [vmem:[#allocation2 + $0x90] ss:$0 sps:$4 sm:$0x77]   ;;  %v7530_v37 = vor.u32 %v7529_v62, %v7526_v21  ;;  %v9464_v34 = vrot.slane %v9462_v42, 1 }
 0x314   : > { %24384 = vmatmul.mubr.msk.bf16.gmra.mrb[88].mxu1 %vm6294_vm6, %v7513_v48  ;;  %24599 = vmatprep.subr.bf16.mxu0 %v29833_v20  ;;  %v9452_v48 = vor.u32 %v9450_v28, %v9448_v25  ;;  %v7542_v11 = vshrl.u32 %v27650_v32, 16  ;;  %v7545_v24 = vshll.u32 %v27650_v32, 16  ;;  %v7539_v17 = vor.u32 %v7538_v50, %v7535_v4 }
 0x315   : > { %24387 = vmatprep.mubr.msk.bf16.mxu1 %vm6294_vm6, %v7522_v57  ;;  %v5354_v55 = vpop.f32.mrb[112].mxu0  ;;  %v9465_v38 = vsel %vm6155_vm5, %v9460_v36, %v9464_v34  ;;  %v7531_v25 = vsel %vm7397_vm9, %v7521_v0, %v7530_v37  ;;  %v9478_v50 = vshll.u32 %v29860_v51, 16  ;;  %v9466_v28 = vshrl.u32 %v29829_v31, 16 }
 0x316   : > { %v29857_v5 = vadd.f32 %v29555_v27, %v5354_v55  ;;  %v24115_v6 = vpop.f32.mrb[113].mxu0  ;;  %v9457_v29 = vsel %vm6155_vm5, %v9452_v48, %v9456_v46  ;;  %v12236_v27 = vrot.slane %v27439_v40, 1  ;;  %v9472_v55 = vrot.slane %v9470_v47, 1 }
 0x317   : > { %v5357_v13 = vpop.f32.mrb[114].mxu0  ;;  %v29865_v6 = vld [vmem:[#allocation2 + $0xc0] sm:$0xff]   ;;  %v7544_v21 = vrot.slane %v7542_v11, 2  ;;  %v7547_v62 = vrot.slane %v7545_v24, 3  ;;  %v7540_v4 = vsel %vm7397_vm9, %v7530_v37, %v7539_v17  ;;  %v9474_v46 = vshrl.u32 %v29838_v19, 16 }
 0x318   : > { %v24116_v57 = vpop.f32.mrb[115].mxu0  ;;  %v29876_v40 = vsel %vm6710_vm8, %v12234_v61, %v12236_v27  ;;  %v12238_v0 = vrot.slane %v27441_v39, 1  ;;  %v9486_v37 = vshll.u32 %v29865_v6, 16  ;;  %v9468_v48 = vor.u32 %v9466_v28, %v9464_v34 }
 0x319   : > { %v9476_v36 = vor.u32 %v9474_v46, %v9472_v55  ;;  %v7548_v13 = vor.u32 %v7547_v62, %v7544_v21  ;;  %v9480_v61 = vrot.slane %v9478_v50, 1  ;;  %v9482_v21 = vshrl.u32 %v29860_v51, 16 }
 0x31a   : > { %24538 = vmatmul.mubr.msk.bf16.gmra.mrb[220].mxu0 %vm6294_vm6, %v9457_v29  ;;  %v29883_v32 = vsel %vm6710_vm8, %v12236_v27, %v12238_v0 }
 0x31b   : > { %24541 = vmatprep.mubr.msk.bf16.mxu0 %vm6294_vm6, %v9465_v38  ;;  %v29888_v38 = vld [vmem:[#allocation2 + $0xc8] sm:$0xff]   ;;  %v9481_v39 = vsel %vm6155_vm5, %v9476_v36, %v9480_v61  ;;  %v7549_v34 = vsel %vm7397_vm9, %v7539_v17, %v7548_v13  ;;  %v9484_v28 = vor.u32 %v9482_v21, %v9480_v61  ;;  %v29915_v13 = vld [vmem:[#allocation2 + $0xe0] sm:$0xff]  }
 0x31c   : > { %24388 = vmatmul.mubr.msk.bf16.gmra.mrb[92].mxu1 %vm6294_vm6, %v7531_v25  ;;  %v9488_v25 = vrot.slane %v9486_v37, 1  ;;  %v9494_v27 = vshll.u32 %v29888_v38, 16  ;;  %v29910_v37 = vld [vmem:[#allocation2 + $0xd8] sm:$0xff]  }
 0x31d   : > { %24391 = vmatprep.mubr.msk.bf16.mxu1 %vm6294_vm6, %v7540_v4  ;;  %v5457_v42 = vpop.f32.mrb[116].mxu0  ;;  %v29893_v4 = vld [vmem:[#allocation2 + $0xd0] sm:$0xff]  }
 0x31e   : > { %v29879_v11 = vadd.f32 %v5457_v42, %v29543_v59  ;;  %v24121_v24 = vpop.f32.mrb[117].mxu0  ;;  %v9473_v59 = vsel %vm6155_vm5, %v9468_v48, %v9472_v55  ;;  %v9502_v17 = vshll.u32 %v29893_v4, 16  ;;  %v9496_v36 = vrot.slane %v9494_v27, 1  ;;  %v29917_v48 = vld [vmem:[#allocation5 + $0x38] sm:$0xff]  }
 0x31f   : > { %v5460_v47 = vpop.f32.mrb[118].mxu0 }
 0x320   : > { %v29886_v57 = vadd.f32 %v5460_v47, %v29550_v12  ;;  %v24122_v29 = vpop.f32.mrb[119].mxu0  ;;  %v9490_v12 = vshrl.u32 %v29865_v6, 16  ;;  %v9504_v47 = vrot.slane %v9502_v17, 1  ;;  %v29941_v17 = vld [vmem:[#allocation2 + $0xf0] sm:$0xff]  }
 0x321   : > { %v9510_v29 = vshll.u32 %v29910_v37, 16 }
 0x322   : > { %24542 = vmatmul.mubr.msk.bf16.gmra.mrb[224].mxu0 %vm6294_vm6, %v9473_v59  ;;  %v9492_v50 = vor.u32 %v9490_v12, %v9488_v25  ;;  %v9498_v59 = vshrl.u32 %v29888_v38, 16  ;;  %v9518_v12 = vshll.u32 %v29915_v13, 16 }
 0x323   : > { %24545 = vmatprep.mubr.msk.bf16.mxu0 %vm6294_vm6, %v9481_v39  ;;  %v9512_v21 = vrot.slane %v9510_v29, 1 }
 0x324   : > { %24392 = vmatmul.mubr.msk.bf16.gmra.mrb[96].mxu1 %vm6294_vm6, %v7549_v34  ;;  %v9500_v27 = vor.u32 %v9498_v59, %v9496_v36 }
 0x325   : > { %24397 = vmatprep.mubr.msk.bf16.mxu1 %vm6294_vm6, %v29103_v26  ;;  %v5465_v55 = vpop.f32.mrb[120].mxu0  ;;  %v9489_v26 = vsel %vm6155_vm5, %v9484_v28, %v9488_v25 }
 0x326   : > { %v29904_v62 = vadd.f32 %v5465_v55, %v29569_v44  ;;  %v24125_v46 = vpop.f32.mrb[121].mxu0  ;;  %v9497_v44 = vsel %vm6155_vm5, %v9492_v50, %v9496_v36  ;;  %v9520_v50 = vrot.slane %v9518_v12, 1 }
 0x327   : > { %v5468_v42 = vpop.f32.mrb[122].mxu0  ;;  %v29936_v46 = vld [vmem:[#allocation2 + $0xe8] sm:$0xff]  }
 0x328   : > { %v29908_v0 = vadd.f32 %v5468_v42, %v29572_v54  ;;  %v24126_v24 = vpop.f32.mrb[123].mxu0  ;;  %v9506_v54 = vshrl.u32 %v29893_v4, 16  ;;  %v9526_v42 = vshll.u32 %v29936_v46, 16  ;;  %v9530_v12 = vshrl.u32 %v29936_v46, 16 }
 0x329   : > { %v9514_v24 = vshrl.u32 %v29910_v37, 16 }
 0x32a   : > { %24546 = vmatmul.mubr.msk.bf16.gmra.mrb[228].mxu0 %vm6294_vm6, %v9489_v26  ;;  %v9508_v34 = vor.u32 %v9506_v54, %v9504_v47  ;;  %v9528_v59 = vrot.slane %v9526_v42, 1 }
 0x32b   : > { %24549 = vmatprep.mubr.msk.bf16.mxu0 %vm6294_vm6, %v9497_v44  ;;  %v9516_v29 = vor.u32 %v9514_v24, %v9512_v21 }
 0x32c   : > { %24398 = vmatmul.mubr.msk.bf16.vlgmr.msra.gmra.mrb[68].mxu1 %vm6294_vm6, %v29106_v58 }
 0x32d   : > { %24401 = vmatprep.mubr.msk.bf16.mxu1 %vm6294_vm6, %v29110_v7  ;;  %v5473_v61 = vpop.f32.mrb[124].mxu0  ;;  %24430 = vmatpush3.bf16.msra.mxu1 %v29720_v22  ;;  %v9505_v22 = vsel %vm6155_vm5, %v9500_v27, %v9504_v47  ;;  %v9534_v47 = vshll.u32 %v29941_v17, 16 }
 0x32e   : > { %v29929_v39 = vadd.f32 %v5473_v61, %v29587_v33  ;;  %v24129_v25 = vpop.f32.mrb[125].mxu0  ;;  %24463 = vmatprep.subr.bf16.mxu1 %v29917_v48  ;;  %v9513_v33 = vsel %vm6155_vm5, %v9508_v34, %v9512_v21 }
 0x32f   : > { %v5476_v58 = vpop.f32.mrb[126].mxu0  ;;  %v29958_v25 = vld [vmem:[#allocation2 + $0xf8] sm:$0xff]   ;;  %v9536_v34 = vrot.slane %v9534_v47, 1 }
 0x330   : > { %v29934_v55 = vadd.f32 %v5476_v58, %v29590_v10  ;;  %v24130_v7 = vpop.f32.mrb[127].mxu0  ;;  %v9522_v10 = vshrl.u32 %v29915_v13, 16  ;;  %v9542_v58 = vshll.u32 %v29958_v25, 16  ;;  %v32632_v47 = vld [vmem:[#allocation11_spill] sm:$0xff] }
 0x331   : > { %v27315_v7 = vld [vmem:[#allocation2 + $0x100] ss:$0 sps:$4 sm:$0x11]  }
 0x332   : > { %24550 = vmatmul.mubr.msk.bf16.gmra.mrb[232].mxu0 %vm6294_vm6, %v9505_v22  ;;  %v9524_v44 = vor.u32 %v9522_v10, %v9520_v50  ;;  %v9532_v10 = vor.u32 %v9530_v12, %v9528_v59 }
 0x333   : > { %24553 = vmatprep.mubr.msk.bf16.mxu0 %vm6294_vm6, %v9513_v33 }
 0x334   : > { %24402 = vmatmul.mubr.msk.bf16.gmra.mrb[72].mxu1 %vm6294_vm6, %v29113_v14  ;;  %v9537_v24 = vsel %vm6155_vm5, %v9532_v10, %v9536_v34  ;;  %v32635_v10 = vld [vmem:[#allocation13_spill] sm:$0xff] }
 0x335   : > { %24405 = vmatprep.mubr.msk.bf16.mxu1 %vm6294_vm6, %v29119_v41  ;;  %v5481_v28 = vpop.f32.mrb[128].mxu0  ;;  %v9521_v41 = vsel %vm6155_vm5, %v9516_v29, %v9520_v50  ;;  %v29986_v29 = vld [vmem:[#allocation2 + $0x130] sm:$0xff]  }
 0x336   : > { %v29952_v36 = vadd.f32 %v5481_v28, %v29605_v60  ;;  %v24133_v26 = vpop.f32.mrb[129].mxu0  ;;  %v9529_v60 = vsel %vm6155_vm5, %v9524_v44, %v9528_v59  ;;  %v9544_v28 = vrot.slane %v9542_v58, 1  ;;  %v9546_v44 = vshrl.u32 %v29958_v25, 16  ;;  %v27434_v58 = vld [vmem:[#allocation2 + $0x140] sm:$0xff]  }
 0x337   : > { %v5484_v54 = vpop.f32.mrb[130].mxu0  ;;  %v9550_v26 = vshll.u32 %v27315_v7, 16  ;;  %v27436_v7 = vld [vmem:[#allocation2 + $0x148] sm:$0xff]  }
 0x338   : > { %v29956_v14 = vadd.f32 %v5484_v54, %v29610_v8  ;;  %v24134_v61 = vpop.f32.mrb[131].mxu0  ;;  %v9538_v8 = vshrl.u32 %v29941_v17, 16 }
 0x339   : > { %v9552_v54 = vrot.slane %v9550_v26, 1  ;;  %v27432_v61 = vld [vmem:[#allocation2 + $0x138] sm:$0xff]   ;;  %v14325_v26 = vrot.slane %v27436_v7, 3 }
 0x33a   : > { %24554 = vmatmul.mubr.msk.bf16.gmra.mrb[236].mxu0 %vm6294_vm6, %v9521_v41  ;;  %v9540_v33 = vor.u32 %v9538_v8, %v9536_v34  ;;  %v9548_v34 = vor.u32 %v9546_v44, %v9544_v28 }
 0x33b   : > { %24557 = vmatprep.mubr.msk.bf16.mxu0 %vm6294_vm6, %v9529_v60 }
 0x33c   : > { %24406 = vmatmul.mubr.msk.bf16.gmra.mrb[76].mxu1 %vm6294_vm6, %v29124_v52 }
 0x33d   : > { %24409 = vmatprep.mubr.msk.bf16.mxu1 %vm6294_vm6, %v29129_v18  ;;  %v5489_v27 = vpop.f32.mrb[132].mxu0  ;;  %v9545_v18 = vsel %vm6155_vm5, %v9540_v33, %v9544_v28  ;;  %v14321_v33 = vrot.slane %v27432_v61, 3  ;;  %v27438_v28 = vld [vmem:[#allocation2 + $0x150] sm:$0xff]  }
 0x33e   : > { %v29972_v21 = vadd.f32 %v5489_v27, %v29643_v45  ;;  %v24137_v22 = vpop.f32.mrb[133].mxu0  ;;  %v32631_v45 = vld [vmem:[#allocation10_spill] sm:$0xff]  ;;  %v9553_v27 = vsel %vm6155_vm5, %v9548_v34, %v9552_v54 }
 0x33f   : > { %v5492_v50 = vpop.f32.mrb[134].mxu0  ;;  %v32573_v22 = vrot.slane %v29986_v29, 3  ;;  %v27444_v34 = vld [vmem:[#allocation2 + $0x170] sm:$0xff]  }
 0x340   : > { %v29975_v42 = vadd.f32 %v5492_v50, %v29645_v16  ;;  %v24138_v52 = vpop.f32.mrb[135].mxu0  ;;  %v14323_v50 = vrot.slane %v27434_v58, 3 }
 0x342   : > { %24558 = vmatmul.mubr.msk.bf16.gmra.mrb[240].mxu0 %vm6294_vm6, %v9537_v24  ;;  %v27440_v24 = vld [vmem:[#allocation2 + $0x158] sm:$0xff]   ;;  %v30014_v44 = vsel %vm483_vm1, %v14321_v33, %v14323_v50  ;;  %v30017_v54 = vsel %vm483_vm1, %v14323_v50, %v14325_v26  ;;  %v14335_v50 = vrot.slane %v27444_v34, 3 }
 0x343   : > { %24561 = vmatprep.mubr.msk.bf16.mxu0 %vm6294_vm6, %v9545_v18  ;;  %32636 = vst [vmem:[#allocation11_spill] sm:$0xff] %v30014_v44  ;;  %v14329_v58 = vrot.slane %v27440_v24, 3 }
 0x344   : > { %24410 = vmatmul.mubr.msk.bf16.gmra.mrb[80].mxu1 %vm6294_vm6, %v32631_v45  ;;  %v30011_v45 = vld [vmem:[#allocation5 + $0x18] sm:$0xff]  }
 0x345   : > { %24413 = vmatprep.mubr.msk.bf16.mxu1 %vm6294_vm6, %v32632_v47  ;;  %v5497_v16 = vpop.f32.mrb[136].mxu0 }
 0x346   : > { %v29989_v59 = vadd.f32 %v5497_v16, %v29661_v63  ;;  %v24141_v41 = vpop.f32.mrb[137].mxu0  ;;  %v32633_v63 = vld [vmem:[#allocation12_spill] sm:$0xff] }
 0x347   : > { %v5500_v60 = vpop.f32.mrb[138].mxu0  ;;  %v27442_v16 = vld [vmem:[#allocation2 + $0x160] sm:$0xff]   ;;  %32637 = vst [vmem:[#allocation12_spill] sm:$0xff] %v30017_v54 }
 0x348   : > { %v29992_v12 = vadd.f32 %v5500_v60, %v29675_v23  ;;  %v24142_v8 = vpop.f32.mrb[139].mxu0  ;;  %v30004_v23 = vsel %vm483_vm1, %v32573_v22, %v14321_v33  ;;  %v27443_v60 = vld [vmem:[#allocation2 + $0x168] sm:$0xff]   ;;  %v14331_v7 = vrot.slane %v27442_v16, 3  ;;  %v32641_v33 = vld [vmem:[#allocation14_spill] sm:$0xff]  ;;  %v27494_v22 = vld [vmem:[#allocation2 + $0x13c] sm:$0xff]  }
 0x349   : > { %32634 = vst [vmem:[#allocation10_spill] sm:$0xff] %v30004_v23  ;;  %v30022_v8 = vld [vmem:[#allocation2 + $0x178] sm:$0xff]  }
 0x34a   : > { %24562 = vmatmul.mubr.msk.bf16.gmra.mrb[244].mxu0 %vm6294_vm6, %v9553_v27  ;;  %32638 = vst [vmem:[#allocation13_spill] sm:$0xff] %v30022_v8 }
 0x34b   : > { %24567 = vmatprep.mubr.msk.bf16.mxu0 %vm6294_vm6, %v29757_v35 }
 0x34c   : > { %24414 = vmatmul.mubr.msk.bf16.gmra.mrb[84].mxu1 %vm6294_vm6, %v32633_v63  ;;  %v14333_v63 = vrot.slane %v27443_v60, 3  ;;  %v32648_v60 = vld [vmem:[#allocation17_spill] sm:$0xff] }
 0x34d   : > { %24417 = vmatprep.mubr.msk.bf16.mxu1 %vm6294_vm6, %v32635_v10  ;;  %v5505_v52 = vpop.f32.mrb[140].mxu0  ;;  %v32572_v10 = vrot.slane %v30022_v8, 3  ;;  %v14954_v8 = vld [vmem:[#allocation2 + $0x128] sm:$0xf] }
 0x34e   : > { %v30009_v18 = vadd.f32 %v5505_v52, %v29714_v3  ;;  %v24145_v35 = vpop.f32.mrb[141].mxu0  ;;  %v14327_v3 = vrot.slane %v27438_v28, 3  ;;  %v30048_v24 = vsel %vm483_vm1, %v14331_v7, %v14333_v63 }
 0x34f   : > { %v5508_v47 = vpop.f32.mrb[142].mxu0 }
 0x350   : > { %v30020_v61 = vadd.f32 %v5508_v47, %v29718_v30  ;;  %v24146_v41 = vpop.f32.mrb[143].mxu0  ;;  %v30030_v27 = vsel %vm483_vm1, %v14325_v26, %v14327_v3  ;;  %v30033_v30 = vsel %vm483_vm1, %v14327_v3, %v14329_v58  ;;  %v30051_v26 = vsel %vm483_vm1, %v14333_v63, %v14335_v50  ;;  %v32649_v63 = vld [vmem:[#allocation18_spill] sm:$0xff] }
 0x351   : > { %32639 = vst [vmem:[#allocation55_spill] sm:$0xff] %v30030_v27  ;;  %32640 = vst [vmem:[#allocation56_spill] sm:$0xff] %v30033_v30  ;;  %v30056_v47 = vsel %vm483_vm1, %v14335_v50, %v32572_v10  ;;  %v32650_v50 = vld [vmem:[#allocation45_spill] sm:$0xff]  ;;  %v27493_v10 = vld [vmem:[#allocation2 + $0x134] sm:$0xff]  }
 0x352   : > { %24568 = vmatmul.mubr.msk.bf16.vlgmr.msra.gmra.mrb[216].mxu0 %vm6294_vm6, %v29775_v2  ;;  %v32642_v2 = vld [vmem:[#allocation15_spill] sm:$0xff]  ;;  %32645 = vst [vmem:[#allocation57_spill] sm:$0xff] %v30051_v26  ;;  %32646 = vst [vmem:[#allocation58_spill] sm:$0xff] %v30056_v47  ;;  %v27323_v47 = vld [vmem:[#allocation2 + $0x4c] sm:$0xff]  }
 0x353   : > { %24571 = vmatprep.mubr.msk.bf16.mxu0 %vm6294_vm6, %v29778_v53  ;;  %24600 = vmatpush3.bf16.msra.mxu0 %v29833_v20  ;;  %v30041_v20 = vsel %vm483_vm1, %v14329_v58, %v14331_v7  ;;  %32644 = vst [vmem:[#allocation15_spill] sm:$0xff] %v30048_v24  ;;  %v27324_v26 = vld [vmem:[#allocation2 + $0x54] sm:$0xff]   ;;  %v30132_v27 = vld [vmem:[#allocation3] ss:$0 sm:$0xff] }
 0x354   : > { %24418 = vmatmul.mubr.msk.bf16.gmra.mrb[88].mxu1 %vm6294_vm6, %v32641_v33  ;;  %24633 = vmatprep.subr.bf16.mxu0 %v30011_v45  ;;  %32643 = vst [vmem:[#allocation14_spill] sm:$0xff] %v30041_v20  ;;  %v27498_v24 = vld [vmem:[#allocation2 + $0x154] sm:$0xff]   ;;  %v27499_v20 = vld [vmem:[#allocation2 + $0x15c] sm:$0xff]  }
 0x355   : > { %24421 = vmatprep.mubr.msk.bf16.mxu1 %vm6294_vm6, %v32642_v2  ;;  %v5513_v53 = vpop.f32.mrb[144].mxu0 }
 0x356   : > { %v30045_v52 = vadd.f32 %v5513_v53, %v29729_v43  ;;  %v24149_v28 = vpop.f32.mrb[145].mxu0  ;;  %v32647_v43 = vld [vmem:[#allocation16_spill] sm:$0xff] }
 0x357   : > { %v5516_v35 = vpop.f32.mrb[146].mxu0  ;;  %v32651_v28 = vld [vmem:[#allocation46_spill] sm:$0xff] }
 0x358   : > { %v30059_v16 = vadd.f32 %v5516_v35, %v29734_v49  ;;  %v24150_v41 = vpop.f32.mrb[147].mxu0 }
 0x35a   : > { %24572 = vmatmul.mubr.msk.bf16.gmra.mrb[220].mxu0 %vm6294_vm6, %v29798_v9 }
 0x35b   : > { %24575 = vmatprep.mubr.msk.bf16.mxu0 %vm6294_vm6, %v29804_v1  ;;  %v27317_v1 = vld [vmem:[#allocation2 + $0x24] sm:$0xff]  }
 0x35c   : > { %24422 = vmatmul.mubr.msk.bf16.gmra.mrb[92].mxu1 %vm6294_vm6, %v32647_v43  ;;  %v27318_v43 = vld [vmem:[#allocation2 + $0x2c] sm:$0xff]  }
 0x35d   : > { %24425 = vmatprep.mubr.msk.bf16.mxu1 %vm6294_vm6, %v32648_v60  ;;  %v5521_v34 = vpop.f32.mrb[148].mxu0  ;;  %v30090_v60 = vld [vmem:[#allocation5 + $0x40] sm:$0xff]  }
 0x35e   : > { %v30070_v3 = vadd.f32 %v5521_v34, %v29747_v56  ;;  %v24153_v58 = vpop.f32.mrb[149].mxu0  ;;  %v27319_v34 = vld [vmem:[#allocation2 + $0x34] sm:$0xff]  }
 0x35f   : > { %v5524_v49 = vpop.f32.mrb[150].mxu0 }
 0x360   : > { %v30073_v7 = vadd.f32 %v5524_v49, %v29751_v15  ;;  %v24154_v33 = vpop.f32.mrb[151].mxu0  ;;  %v32652_v49 = vld [vmem:[#allocation47_spill] sm:$0xff] }
 0x362   : > { %24576 = vmatmul.mubr.msk.bf16.gmra.mrb[224].mxu0 %vm6294_vm6, %v29829_v31 }
 0x363   : > { %24579 = vmatprep.mubr.msk.bf16.mxu0 %vm6294_vm6, %v29838_v19 }
 0x364   : > { %24426 = vmatmul.mubr.msk.bf16.gmra.mrb[96].mxu1 %vm6294_vm6, %v32649_v63 }
 0x365   : > { %24431 = vmatprep.mubr.msk.bf16.mxu1 %vm6294_vm6, %v27317_v1  ;;  %v5529_v56 = vpop.f32.mrb[152].mxu0 }
 0x366   : > { %v30083_v2 = vadd.f32 %v5529_v56, %v32650_v50  ;;  %v24157_v53 = vpop.f32.mrb[153].mxu0  ;;  %v32653_v56 = vld [vmem:[#allocation48_spill] sm:$0xff] }
 0x367   : > { %v5532_v15 = vpop.f32.mrb[154].mxu0 }
 0x368   : > { %v30086_v35 = vadd.f32 %v5532_v15, %v32651_v28  ;;  %v24158_v41 = vpop.f32.mrb[155].mxu0  ;;  %v27320_v15 = vld [vmem:[#allocation2 + $0x3c] sm:$0xff]   ;;  %v27322_v28 = vld [vmem:[#allocation2 + $0x44] sm:$0xff]  }
 0x369   : > { %v32654_v41 = vld [vmem:[#allocation50_spill] sm:$0xff] }
 0x36a   : > { %24580 = vmatmul.mubr.msk.bf16.gmra.mrb[228].mxu0 %vm6294_vm6, %v29860_v51 }
 0x36b   : > { %24583 = vmatprep.mubr.msk.bf16.mxu0 %vm6294_vm6, %v29865_v6 }
 0x36c   : > { %24432 = vmatmul.mubr.msk.bf16.vlgmr.msra.gmra.mrb[68].mxu1 %vm6294_vm6, %v27318_v43 }
 0x36d   : > { %24435 = vmatprep.mubr.msk.bf16.mxu1 %vm6294_vm6, %v27319_v34  ;;  %v5537_v58 = vpop.f32.mrb[156].mxu0  ;;  %24464 = vmatpush3.bf16.msra.mxu1 %v29917_v48 }
 0x36e   : > { %v30098_v33 = vadd.f32 %v5537_v58, %v32652_v49  ;;  %v24161_v1 = vpop.f32.mrb[157].mxu0  ;;  %24497 = vmatprep.subr.bf16.mxu1 %v30090_v60  ;;  %v27492_v58 = vld [vmem:[#allocation2 + $0x12c] sm:$0xff]  }
 0x36f   : > { %v5540_v63 = vpop.f32.mrb[158].mxu0  ;;  %v15450_v1 = vld [vmem:[#allocation2 + $0x124] sm:$0xe] }
 0x370   : > { %v30102_v50 = vadd.f32 %v5540_v63, %v32653_v56  ;;  %v24162_v53 = vpop.f32.mrb[159].mxu0  ;;  %v32655_v63 = vld [vmem:[#allocation52_spill] sm:$0xff] }
 0x372   : > { %24584 = vmatmul.mubr.msk.bf16.gmra.mrb[232].mxu0 %vm6294_vm6, %v29888_v38 }
 0x373   : > { %24587 = vmatprep.mubr.msk.bf16.mxu0 %vm6294_vm6, %v29893_v4 }
 0x374   : > { %24436 = vmatmul.mubr.msk.bf16.gmra.mrb[72].mxu1 %vm6294_vm6, %v27320_v15  ;;  %v22200_v15 = vcombine.low %v15450_v1, %v14954_v8 }
 0x375   : > { %24439 = vmatprep.mubr.msk.bf16.mxu1 %vm6294_vm6, %v27322_v28  ;;  %v5545_v48 = vpop.f32.mrb[160].mxu0  ;;  %v15457_v28 = vrot.slane %v27492_v58, 1 }
 0x376   : > { %v30111_v43 = vadd.f32 %v5545_v48, %v32654_v41  ;;  %v24165_v34 = vpop.f32.mrb[161].mxu0  ;;  %v27495_v48 = vld [vmem:[#allocation2 + $0x144] sm:$0xff]   ;;  %v27497_v41 = vld [vmem:[#allocation2 + $0x14c] sm:$0xff]  }
 0x377   : > { %v5548_v49 = vpop.f32.mrb[162].mxu0  ;;  %v15456_v34 = vrot.slane %v22200_v15, 1  ;;  %v15463_v15 = vrot.slane %v27495_v48, 1  ;;  %v15467_v48 = vrot.slane %v27498_v24, 1 }
 0x378   : > { %v30114_v56 = vadd.f32 %v5548_v49, %v32655_v63  ;;  %v24166_v53 = vpop.f32.mrb[163].mxu0  ;;  %v15459_v49 = vrot.slane %v27493_v10, 1  ;;  %v15461_v63 = vrot.slane %v27494_v22, 1  ;;  %v9968_v10 = vld [vmem:[#allocation2 + $0x80] sm:$0xe]  ;;  %v27500_v22 = vld [vmem:[#allocation2 + $0x164] sm:$0xff]  }
 0x379   : > { %v30124_v58 = vsel %vm6710_vm8, %v15456_v34, %v15457_v28  ;;  %v27652_v34 = vld [vmem:[#allocation2 + $0x84] sm:$0xf] }
 0x37a   : > { %24588 = vmatmul.mubr.msk.bf16.gmra.mrb[236].mxu0 %vm6294_vm6, %v29910_v37  ;;  %32656 = vst [vmem:[#allocation16_spill] sm:$0xff] %v30124_v58  ;;  %v30130_v1 = vsel %vm6710_vm8, %v15459_v49, %v15461_v63  ;;  %v27501_v58 = vld [vmem:[#allocation2 + $0x16c] sm:$0xff]  }
 0x37b   : > { %24591 = vmatprep.mubr.msk.bf16.mxu0 %vm6294_vm6, %v29915_v13  ;;  %v30127_v13 = vsel %vm6710_vm8, %v15457_v28, %v15459_v49  ;;  %32658 = vst [vmem:[#allocation18_spill] sm:$0xff] %v30130_v1  ;;  %v27502_v28 = vld [vmem:[#allocation2 + $0x174] sm:$0xff]   ;;  %v30137_v49 = vsel %vm6710_vm8, %v15461_v63, %v15463_v15 }
 0x37c   : > { %24440 = vmatmul.mubr.msk.bf16.gmra.mrb[76].mxu1 %vm6294_vm6, %v27323_v47  ;;  %32657 = vst [vmem:[#allocation17_spill] sm:$0xff] %v30127_v13  ;;  %v27503_v13 = vld [vmem:[#allocation2 + $0x17c] sm:$0xff]  }
 0x37d   : > { %24443 = vmatprep.mubr.msk.bf16.mxu1 %vm6294_vm6, %v27324_v26  ;;  %v5730_v53 = vpop.f32.mrb[164].mxu0  ;;  %v15465_v26 = vrot.slane %v27497_v41, 1  ;;  %v15469_v41 = vrot.slane %v27499_v20, 1 }
 0x37e   : > { %v5832_v30 = vadd.f32 %v5730_v53, %v29879_v11  ;;  %v24175_v8 = vpop.f32.mrb[165].mxu0 }
 0x37f   : > { %v5733_v47 = vpop.f32.mrb[166].mxu0  ;;  %v21821_v8 = vcombine.low %v9968_v10, %v27652_v34  ;;  %v30140_v1 = vsel %vm6710_vm8, %v15463_v15, %v15465_v26  ;;  %v30151_v63 = vsel %vm6710_vm8, %v15467_v48, %v15469_v41  ;;  %v15471_v10 = vrot.slane %v27500_v22, 1 }
 0x380   : > { %v5857_v54 = vadd.f32 %v30132_v27, %v5832_v30  ;;  %v5833_v11 = vadd.f32 %v5733_v47, %v29886_v57  ;;  %v24176_v53 = vpop.f32.mrb[167].mxu0  ;;  %v27325_v30 = vld [vmem:[#allocation2 + $0x5c] sm:$0xff]   ;;  %v27326_v57 = vld [vmem:[#allocation2 + $0x64] sm:$0xff]   ;;  %v30148_v47 = vsel %vm6710_vm8, %v15465_v26, %v15467_v48  ;;  %v15473_v15 = vrot.slane %v27501_v58, 1  ;;  %v27509_v48 = vld [vmem:[#allocation2 + $0x18c] sm:$0xff]  }
 0x381   : > { %v9974_v53 = vrot.slane %v21821_v8, 1  ;;  %v15477_v26 = vrot.slane %v27503_v13, 1 }
 0x382   : > { %v5882_v44 = vmax.f32 %v5857_v54, 0.0  ;;  %v5858_v23 = vadd.f32 %v30132_v27, %v5833_v11  ;;  %24592 = vmatmul.mubr.msk.bf16.gmra.mrb[240].mxu0 %vm6294_vm6, %v29936_v46  ;;  %v27506_v54 = vld [vmem:[#allocation2 + $0x184] sm:$0xff]   ;;  %v15475_v11 = vrot.slane %v27502_v28, 1 }
 0x383   : > { %24595 = vmatprep.mubr.msk.bf16.mxu0 %vm6294_vm6, %v29941_v17  ;;  %v30156_v17 = vsel %vm6710_vm8, %v15469_v41, %v15471_v10 }
 0x384   : > { %v22691_v24 = vpack.c.bf16 %v5882_v44, %v5882_v44  ;;  %v5883_v20 = vmax.f32 %v5858_v23, 0.0  ;;  %24444 = vmatmul.mubr.msk.bf16.gmra.mrb[80].mxu1 %vm6294_vm6, %v27325_v30  ;;  %32659 = vst [vmem:[#allocation45_spill] sm:$0xff] %v30156_v17  ;;  %v30161_v23 = vsel %vm6710_vm8, %v15471_v10, %v15473_v15  ;;  %v30164_v58 = vsel %vm6710_vm8, %v15473_v15, %v15475_v11  ;;  %v27327_v15 = vld [vmem:[#allocation2 + $0x6c] sm:$0xff]  }
 0x385   : > { %24447 = vmatprep.mubr.msk.bf16.mxu1 %vm6294_vm6, %v27326_v57  ;;  %v5738_v46 = vpop.f32.mrb[168].mxu0  ;;  %32660 = vst [vmem:[#allocation46_spill] sm:$0xff] %v30161_v23  ;;  %32661 = vst [vmem:[#allocation47_spill] sm:$0xff] %v30164_v58  ;;  %v30167_v8 = vsel %vm6710_vm8, %v15475_v11, %v15477_v26  ;;  %v27522_v17 = vld [vmem:[#allocation2 + $0x1e8] sm:$0xff]  }
 0x386   : > { %6008 = vst.msk [vmem:[#allocation2 + $0x200] sm:$0xf] %vm1442_vm4, %v22691_v24  ;;  %v22692_v34 = vpack.c.bf16 %v5883_v20, %v5883_v20  ;;  %v5834_v22 = vadd.f32 %v5738_v46, %v29904_v62  ;;  %v24179_v44 = vpop.f32.mrb[169].mxu0  ;;  %32662 = vst [vmem:[#allocation48_spill] sm:$0xff] %v30167_v8  ;;  %v27653_v62 = vld [vmem:[#allocation2 + $0x88] sm:$0xff]   ;;  %v15479_v24 = vrot.slane %v27506_v54, 1 }
 0x387   : > { %v5741_v28 = vpop.f32.mrb[170].mxu0  ;;  %v9975_v57 = vrot.slane %v27653_v62, 1  ;;  %v27513_v54 = vld [vmem:[#allocation2 + $0x19c] sm:$0xff]  }
 0x388   : > { %6009 = vst.msk [vmem:[#allocation2 + $0x204] sm:$0xf] %vm1442_vm4, %v22692_v34  ;;  %v5859_v13 = vadd.f32 %v30132_v27, %v5834_v22  ;;  %v5835_v41 = vadd.f32 %v5741_v28, %v29908_v0  ;;  %v24180_v30 = vpop.f32.mrb[171].mxu0  ;;  %v30177_v46 = vsel %vm6710_vm8, %v15477_v26, %v15479_v24  ;;  %v27328_v34 = vld [vmem:[#allocation2 + $0x74] sm:$0xff]   ;;  %v15481_v22 = vrot.slane %v27509_v48, 1 }
 0x389   : > { %v9976_v11 = vsel %vm6710_vm8, %v9974_v53, %v9975_v57  ;;  %32663 = vst [vmem:[#allocation50_spill] sm:$0xff] %v30177_v46  ;;  %v27511_v0 = vld [vmem:[#allocation2 + $0x194] sm:$0xff]   ;;  %v9979_v48 = vrot.slane %v29798_v9, 1 }
 0x38a   : > { %v5884_v10 = vmax.f32 %v5859_v13, 0.0  ;;  %v5860_v20 = vadd.f32 %v30132_v27, %v5835_v41  ;;  %24596 = vmatmul.mubr.msk.bf16.gmra.mrb[244].mxu0 %vm6294_vm6, %v29958_v25  ;;  %v27654_v41 = vld [vmem:[#allocation2 + $0x90] sm:$0xff]   ;;  %v30183_v53 = vsel %vm6710_vm8, %v15479_v24, %v15481_v22  ;;  %v30191_v24 = vld [vmem:[#allocation5 + $0x20] sm:$0xff]  }
 0x38b   : > { %24601 = vmatprep.mubr.msk.bf16.mxu0 %vm6294_vm6, %v9976_v11  ;;  %v9977_v25 = vrot.slane %v27654_v41, 1  ;;  %32664 = vst [vmem:[#allocation52_spill] sm:$0xff] %v30183_v53  ;;  %v15485_v53 = vrot.slane %v27513_v54, 1 }
 0x38c   : > { %v22693_v44 = vpack.c.bf16 %v5884_v10, %v5884_v10  ;;  %v5885_v28 = vmax.f32 %v5860_v20, 0.0  ;;  %24448 = vmatmul.mubr.msk.bf16.gmra.mrb[84].mxu1 %vm6294_vm6, %v27327_v15  ;;  %v8447_v20 = vld [vmem:[#allocation2 + $0x24] sm:$0xf]  ;;  %v15483_v15 = vrot.slane %v27511_v0, 1  ;;  %v27329_v0 = vld [vmem:[#allocation2 + $0x7c] sm:$0xff]  }
 0x38d   : > { %24451 = vmatprep.mubr.msk.bf16.mxu1 %vm6294_vm6, %v27328_v34  ;;  %v5746_v13 = vpop.f32.mrb[172].mxu0 }
 0x38e   : > { %6010 = vst.msk [vmem:[#allocation2 + $0x208] sm:$0xf] %vm1442_vm4, %v22693_v44  ;;  %v22694_v26 = vpack.c.bf16 %v5885_v28, %v5885_v28  ;;  %v5836_v30 = vadd.f32 %v5746_v13, %v29929_v39  ;;  %v24183_v62 = vpop.f32.mrb[173].mxu0  ;;  %v9978_v44 = vsel %vm6710_vm8, %v9975_v57, %v9977_v25  ;;  %v27516_v28 = vld [vmem:[#allocation2 + $0x1a4] ss:$0 sps:$4 sm:$0x11]   ;;  %v30195_v39 = vsel %vm6710_vm8, %v15481_v22, %v15483_v15 }
 0x38f   : > { %v5749_v10 = vpop.f32.mrb[174].mxu0  ;;  %32665 = vst [vmem:[#allocation59_spill] sm:$0xff] %v30195_v39  ;;  %v27655_v22 = vld [vmem:[#allocation2 + $0x28] sm:$0xf]  ;;  %v27505_v39 = vld [vmem:[#allocation2 + $0x198] sm:$0xff]  }
 0x390   : > { %6011 = vst.msk [vmem:[#allocation2 + $0x20c] sm:$0xf] %vm1442_vm4, %v22694_v26  ;;  %v5861_v11 = vadd.f32 %v30132_v27, %v5836_v30  ;;  %v5837_v34 = vadd.f32 %v5749_v10, %v29934_v55  ;;  %v24184_v41 = vpop.f32.mrb[175].mxu0  ;;  %v9980_v26 = vsel %vm6710_vm8, %v9977_v25, %v9979_v48  ;;  %v30201_v55 = vsel %vm6710_vm8, %v15483_v15, %v15485_v53  ;;  %v27331_v30 = vld [vmem:[#allocation2 + $0x84] sm:$0xff]  }
 0x391   : > { %32666 = vst [vmem:[#allocation60_spill] sm:$0xff] %v30201_v55  ;;  %v30206_v62 = vcombine.low %v8447_v20, %v27655_v22  ;;  %v27656_v10 = vld [vmem:[#allocation2 + $0xa0] sm:$0xff]   ;;  %v27519_v55 = vld [vmem:[#allocation2 + $0x1d8] sm:$0xff]  }
 0x392   : > { %v5886_v9 = vmax.f32 %v5861_v11, 0.0  ;;  %v5862_v13 = vadd.f32 %v30132_v27, %v5837_v34  ;;  %24602 = vmatmul.mubr.msk.bf16.vlgmr.msra.gmra.mrb[216].mxu0 %vm6294_vm6, %v9978_v44  ;;  %v9981_v15 = vrot.slane %v27656_v10, 1  ;;  %v9983_v11 = vrot.slane %v29829_v31, 1 }
 0x393   : > { %24605 = vmatprep.mubr.msk.bf16.mxu0 %vm6294_vm6, %v9980_v26  ;;  %24634 = vmatpush3.bf16.msra.mxu0 %v30011_v45  ;;  %v15487_v34 = vrot.slane %v27516_v28, 1  ;;  %v8569_v28 = vshll.u32 %v30206_v62, 16  ;;  %v8567_v10 = vshrl.u32 %v30206_v62, 16  ;;  %v17555_v62 = vld [vmem:[#allocation2 + $0x190] sm:$0x8] }
 0x394   : > { %v22695_v57 = vpack.c.bf16 %v5886_v9, %v5886_v9  ;;  %v5887_v54 = vmax.f32 %v5862_v13, 0.0  ;;  %24452 = vmatmul.mubr.msk.bf16.gmra.mrb[88].mxu1 %vm6294_vm6, %v27329_v0  ;;  %24667 = vmatprep.subr.bf16.mxu0 %v30191_v24  ;;  %v27657_v13 = vld [vmem:[#allocation2 + $0x2c] sm:$0xff]  }
 0x395   : > { %24455 = vmatprep.mubr.msk.bf16.mxu1 %vm6294_vm6, %v27331_v30  ;;  %v5754_v25 = vpop.f32.mrb[176].mxu0  ;;  %v8574_v20 = vshll.u32 %v27657_v13, 16  ;;  %v30214_v0 = vsel %vm6710_vm8, %v15485_v53, %v15487_v34  ;;  %v27332_v53 = vld [vmem:[#allocation2 + $0x8c] sm:$0xff]   ;;  %v30226_v34 = vld [vmem:[#allocation2 + $0x34] sm:$0xff]  }
 0x396   : > { %6012 = vst.msk [vmem:[#allocation2 + $0x210] sm:$0xf] %vm1442_vm4, %v22695_v57  ;;  %v22696_v45 = vpack.c.bf16 %v5887_v54, %v5887_v54  ;;  %v5838_v41 = vadd.f32 %v5754_v25, %v29952_v36  ;;  %v24187_v44 = vpop.f32.mrb[177].mxu0  ;;  %32667 = vst [vmem:[#allocation61_spill] sm:$0xff] %v30214_v0  ;;  %v9982_v57 = vsel %vm6710_vm8, %v9979_v48, %v9981_v15  ;;  %v9985_v54 = vrot.slane %v29838_v19, 1 }
 0x397   : > { %v5757_v9 = vpop.f32.mrb[178].mxu0  ;;  %v9984_v36 = vsel %vm6710_vm8, %v9981_v15, %v9983_v11  ;;  %v8576_v48 = vrot.slane %v8574_v20, 1  ;;  %v9987_v15 = vrot.slane %v29860_v51, 1  ;;  %v9989_v19 = vrot.slane %v29865_v6, 1 }
 0x398   : > { %6013 = vst.msk [vmem:[#allocation2 + $0x214] sm:$0xf] %vm1442_vm4, %v22696_v45  ;;  %v5863_v26 = vadd.f32 %v30132_v27, %v5838_v41  ;;  %v5839_v30 = vadd.f32 %v5757_v9, %v29956_v14  ;;  %v24188_v31 = vpop.f32.mrb[179].mxu0  ;;  %v8582_v14 = vshll.u32 %v30226_v34, 16  ;;  %v27333_v45 = vld [vmem:[#allocation2 + $0x94] sm:$0xff]   ;;  %v8578_v41 = vshrl.u32 %v27657_v13, 16 }
 0x39a   : > { %v5888_v22 = vmax.f32 %v5863_v26, 0.0  ;;  %v5864_v25 = vadd.f32 %v30132_v27, %v5839_v30  ;;  %24606 = vmatmul.mubr.msk.bf16.gmra.mrb[220].mxu0 %vm6294_vm6, %v9982_v57  ;;  %v8571_v26 = vrot.slane %v8569_v28, 1  ;;  %v16753_v30 = vld [vmem:[#allocation2 + $0x194] sm:$0xf]  ;;  %v30235_v57 = vld [vmem:[#allocation2 + $0x3c] sm:$0xff]  }
 0x39b   : > { %24609 = vmatprep.mubr.msk.bf16.mxu0 %vm6294_vm6, %v9984_v36  ;;  %v8590_v20 = vshll.u32 %v30235_v57, 16  ;;  %v8584_v36 = vrot.slane %v8582_v14, 1  ;;  %v8594_v14 = vshrl.u32 %v30235_v57, 16 }
 0x39c   : > { %v22697_v44 = vpack.c.bf16 %v5888_v22, %v5888_v22  ;;  %v5889_v9 = vmax.f32 %v5864_v25, 0.0  ;;  %24456 = vmatmul.mubr.msk.bf16.gmra.mrb[92].mxu1 %vm6294_vm6, %v27332_v53  ;;  %v9986_v25 = vsel %vm6710_vm8, %v9983_v11, %v9985_v54  ;;  %v30242_v53 = vld [vmem:[#allocation2 + $0x44] sm:$0xff]   ;;  %v27518_v11 = vld [vmem:[#allocation2 + $0x1d0] sm:$0xff]  }
 0x39d   : > { %24459 = vmatprep.mubr.msk.bf16.mxu1 %vm6294_vm6, %v27333_v45  ;;  %v5762_v31 = vpop.f32.mrb[180].mxu0  ;;  %v8598_v45 = vshll.u32 %v30242_v53, 16  ;;  %v8592_v22 = vrot.slane %v8590_v20, 1 }
 0x39e   : > { %6014 = vst.msk [vmem:[#allocation2 + $0x218] sm:$0xf] %vm1442_vm4, %v22697_v44  ;;  %v22698_v51 = vpack.c.bf16 %v5889_v9, %v5889_v9  ;;  %v5840_v6 = vadd.f32 %v5762_v31, %v29972_v21  ;;  %v24191_v13 = vpop.f32.mrb[181].mxu0  ;;  %v27334_v21 = vld [vmem:[#allocation2 + $0x9c] sm:$0xff]   ;;  %v22339_v31 = vcombine.low %v17555_v62, %v16753_v30  ;;  %v27510_v30 = vld [vmem:[#allocation2 + $0x1a8] sm:$0xff]  }
 0x39f   : > { %v5765_v28 = vpop.f32.mrb[182].mxu0  ;;  %v8572_v13 = vor.u32 %v8571_v26, %v8567_v10  ;;  %v30256_v10 = vrot.slane %v8598_v45, 1  ;;  %v30258_v26 = vld [vmem:[#allocation2 + $0x4c] sm:$0xff]   ;;  %v9990_v45 = vsel %vm6710_vm8, %v9987_v15, %v9989_v19 }
 0x3a0   : > { %6015 = vst.msk [vmem:[#allocation2 + $0x21c] sm:$0xf] %vm1442_vm4, %v22698_v51  ;;  %v5865_v0 = vadd.f32 %v30132_v27, %v5840_v6  ;;  %v5841_v44 = vadd.f32 %v5765_v28, %v29975_v42  ;;  %v24192_v9 = vpop.f32.mrb[183].mxu0  ;;  %v8580_v51 = vor.u32 %v8578_v41, %v8576_v48  ;;  %v9988_v42 = vsel %vm6710_vm8, %v9985_v54, %v9987_v15  ;;  %v27507_v6 = vld [vmem:[#allocation2 + $0x1a0] sm:$0xff]   ;;  %v27514_v54 = vld [vmem:[#allocation2 + $0x1b8] sm:$0xff]  }
 0x3a1   : > { %v8577_v28 = vsel %vm6155_vm5, %v8572_v13, %v8576_v48  ;;  %v32668_v9 = vrot.slane %v29888_v38, 1  ;;  %v17564_v62 = vrot.slane %v27507_v6, 3  ;;  %v32669_v15 = vshrl.u32 %v30226_v34, 16  ;;  %v30279_v6 = vld [vmem:[#allocation5 + $0x8] sm:$0xff]  }
 0x3a2   : > { %v5890_v46 = vmax.f32 %v5865_v0, 0.0  ;;  %v5866_v8 = vadd.f32 %v30132_v27, %v5841_v44  ;;  %24610 = vmatmul.mubr.msk.bf16.gmra.mrb[224].mxu0 %vm6294_vm6, %v9986_v25  ;;  %v27512_v0 = vld [vmem:[#allocation2 + $0x1b0] sm:$0xff]   ;;  %v27515_v25 = vld [vmem:[#allocation2 + $0x1c0] sm:$0xff]   ;;  %v17561_v44 = vrot.slane %v22339_v31, 3  ;;  %v8585_v31 = vsel %vm6155_vm5, %v8580_v51, %v8584_v36 }
 0x3a3   : > { %24613 = vmatprep.mubr.msk.bf16.mxu0 %vm6294_vm6, %v9988_v42  ;;  %v9992_v13 = vsel %vm6710_vm8, %v9989_v19, %v32668_v9  ;;  %v27517_v42 = vld [vmem:[#allocation2 + $0x1c8] sm:$0xff]   ;;  %v8588_v23 = vor.u32 %v32669_v15, %v8584_v36  ;;  %v27523_v19 = vld [vmem:[#allocation2 + $0x1f0] sm:$0xff]   ;;  %v17578_v15 = vrot.slane %v27519_v55, 3  ;;  %v17582_v55 = vrot.slane %v27522_v17, 3 }
 0x3a4   : > { %v22699_v57 = vpack.c.bf16 %v5890_v46, %v5890_v46  ;;  %v5891_v20 = vmax.f32 %v5866_v8, 0.0  ;;  %24460 = vmatmul.mubr.msk.bf16.gmra.mrb[96].mxu1 %vm6294_vm6, %v27334_v21  ;;  %v17562_v46 = vrot.slane %v27505_v39, 3  ;;  %v17566_v39 = vrot.slane %v27510_v30, 3 }
 0x3a5   : > { %24465 = vmatprep.mubr.msk.bf16.mxu1 %vm6294_vm6, %v8577_v28  ;;  %v5770_v48 = vpop.f32.mrb[184].mxu0  ;;  %v27520_v28 = vld [vmem:[#allocation2 + $0x1e0] sm:$0xff]  }
 0x3a6   : > { %6016 = vst.msk [vmem:[#allocation2 + $0x220] sm:$0xf] %vm1442_vm4, %v22699_v57  ;;  %v22700_v8 = vpack.c.bf16 %v5891_v20, %v5891_v20  ;;  %v5842_v21 = vadd.f32 %v5770_v48, %v29989_v59  ;;  %v24195_v41 = vpop.f32.mrb[185].mxu0  ;;  %v30274_v9 = vsel %vm483_vm1, %v17561_v44, %v17562_v46  ;;  %v17568_v57 = vrot.slane %v27512_v0, 3  ;;  %v30281_v48 = vld [vmem:[#allocation2 + $0x1f8] sm:$0xff]  }
 0x3a7   : > { %v5773_v58 = vpop.f32.mrb[186].mxu0  ;;  %32670 = vst [vmem:[#allocation62_spill] sm:$0xff] %v30274_v9  ;;  %v8596_v41 = vor.u32 %v8594_v14, %v8592_v22  ;;  %v30284_v34 = vsel %vm483_vm1, %v17562_v46, %v17564_v62  ;;  %v30287_v36 = vsel %vm483_vm1, %v17564_v62, %v17566_v39  ;;  %v17570_v0 = vrot.slane %v27514_v54, 3 }
 0x3a8   : > { %6017 = vst.msk [vmem:[#allocation2 + $0x224] sm:$0xf] %vm1442_vm4, %v22700_v8  ;;  %v5867_v59 = vadd.f32 %v30132_v27, %v5842_v21  ;;  %v5843_v51 = vadd.f32 %v5773_v58, %v29992_v12  ;;  %v24196_v20 = vpop.f32.mrb[187].mxu0  ;;  %32671 = vst [vmem:[#allocation63_spill] sm:$0xff] %v30284_v34  ;;  %v30290_v30 = vsel %vm483_vm1, %v17566_v39, %v17568_v57  ;;  %v17572_v44 = vrot.slane %v27515_v25, 3 }
 0x3a9   : > { %32672 = vst [vmem:[#allocation64_spill] sm:$0xff] %v30287_v36  ;;  %32673 = vst [vmem:[#allocation65_spill] sm:$0xff] %v30290_v30  ;;  %v8593_v58 = vsel %vm6155_vm5, %v8588_v23, %v8592_v22  ;;  %v17574_v14 = vrot.slane %v27517_v42, 3  ;;  %v30297_v46 = vsel %vm483_vm1, %v17568_v57, %v17570_v0  ;;  %v17576_v21 = vrot.slane %v27518_v11, 3  ;;  %v30716_v30 = vld [vmem:[#allocation2 + $0x138] sm:$0xff]  }
 0x3aa   : > { %v5892_v8 = vmax.f32 %v5867_v59, 0.0  ;;  %v5868_v12 = vadd.f32 %v30132_v27, %v5843_v51  ;;  %24614 = vmatmul.mubr.msk.bf16.gmra.mrb[228].mxu0 %vm6294_vm6, %v9990_v45  ;;  %32674 = vst [vmem:[#allocation66_spill] sm:$0xff] %v30297_v46  ;;  %v30300_v62 = vsel %vm483_vm1, %v17570_v0, %v17572_v44  ;;  %v17580_v45 = vrot.slane %v27520_v28, 3 }
 0x3ab   : > { %24617 = vmatprep.mubr.msk.bf16.mxu0 %vm6294_vm6, %v9992_v13  ;;  %32675 = vst [vmem:[#allocation67_spill] sm:$0xff] %v30300_v62  ;;  %v30304_v39 = vsel %vm483_vm1, %v17572_v44, %v17574_v14  ;;  %v30309_v22 = vsel %vm483_vm1, %v17574_v14, %v17576_v21  ;;  %v30312_v13 = vsel %vm483_vm1, %v17576_v21, %v17578_v15  ;;  %v17584_v11 = vrot.slane %v27523_v19, 3 }
 0x3ac   : > { %v22701_v54 = vpack.c.bf16 %v5892_v8, %v5892_v8  ;;  %v5893_v25 = vmax.f32 %v5868_v12, 0.0  ;;  %24466 = vmatmul.mubr.msk.bf16.vlgmr.msra.gmra.mrb[68].mxu1 %vm6294_vm6, %v8585_v31  ;;  %32676 = vst [vmem:[#allocation68_spill] sm:$0xff] %v30304_v39  ;;  %32677 = vst [vmem:[#allocation69_spill] sm:$0xff] %v30309_v22  ;;  %v30318_v28 = vsel %vm483_vm1, %v17578_v15, %v17580_v45  ;;  %v32680_v51 = vshll.u32 %v30258_v26, 16  ;;  %v27662_v8 = vld [vmem:[#allocation2 + $0x54] sm:$0xff]  }
 0x3ad   : > { %24469 = vmatprep.mubr.msk.bf16.mxu1 %vm6294_vm6, %v8593_v58  ;;  %v5778_v23 = vpop.f32.mrb[188].mxu0  ;;  %24498 = vmatpush3.bf16.msra.mxu1 %v30090_v60  ;;  %32678 = vst [vmem:[#allocation70_spill] sm:$0xff] %v30312_v13  ;;  %32679 = vst [vmem:[#allocation71_spill] sm:$0xff] %v30318_v28  ;;  %v32575_v60 = vrot.slane %v30281_v48, 3  ;;  %v30324_v17 = vsel %vm483_vm1, %v17580_v45, %v17582_v55  ;;  %v30327_v19 = vsel %vm483_vm1, %v17582_v55, %v17584_v11  ;;  %v27663_v45 = vld [vmem:[#allocation2 + $0x5c] sm:$0xff]  }
 0x3ae   : > { %6018 = vst.msk [vmem:[#allocation2 + $0x228] sm:$0xf] %vm1442_vm4, %v22701_v54  ;;  %v22702_v42 = vpack.c.bf16 %v5893_v25, %v5893_v25  ;;  %v5844_v31 = vadd.f32 %v5778_v23, %v30009_v18  ;;  %v24199_v57 = vpop.f32.mrb[189].mxu0  ;;  %24837 = vmatprep.subr.bf16.mxu1 %v30279_v6  ;;  %v8608_v20 = vrot.slane %v32680_v51, 1  ;;  %32681 = vst [vmem:[#allocation72_spill] sm:$0xff] %v30324_v17  ;;  %v8614_v12 = vshll.u32 %v27662_v8, 16 }
 0x3af   : > { %v5781_v59 = vpop.f32.mrb[190].mxu0  ;;  %32682 = vst [vmem:[#allocation73_spill] sm:$0xff] %v30327_v19  ;;  %v30335_v58 = vsel %vm483_vm1, %v17584_v11, %v32575_v60  ;;  %v32684_v14 = vrot.slane %v29893_v4, 1  ;;  %v32685_v21 = vrot.slane %v29888_v38, 1  ;;  %v32686_v54 = vshrl.u32 %v30242_v53, 16  ;;  %v30430_v28 = vld [vmem:[#allocation2 + $0xa0] sm:$0xff]  }
 0x3b0   : > { %6019 = vst.msk [vmem:[#allocation2 + $0x22c] sm:$0xf] %vm1442_vm4, %v22702_v42  ;;  %v5869_v18 = vadd.f32 %v30132_v27, %v5844_v31  ;;  %v5845_v0 = vadd.f32 %v5781_v59, %v30020_v61  ;;  %v24200_v44 = vpop.f32.mrb[191].mxu0  ;;  %32683 = vst [vmem:[#allocation74_spill] sm:$0xff] %v30335_v58  ;;  %v8610_v61 = vshrl.u32 %v30258_v26, 16  ;;  %v8622_v23 = vshll.u32 %v27663_v45, 16 }
 0x3b1   : > { %v9994_v15 = vsel %vm6710_vm8, %v32685_v21, %v32684_v14  ;;  %v8604_v25 = vor.u32 %v32686_v54, %v30256_v10  ;;  %v8601_v11 = vsel %vm6155_vm5, %v8596_v41, %v30256_v10  ;;  %v32687_v38 = vrot.slane %v29910_v37, 1  ;;  %v27664_v59 = vld [vmem:[#allocation2 + $0xe0] sm:$0xff]   ;;  %v30358_v41 = vld [vmem:[#allocation2 + $0xe8] sm:$0xff]  }
 0x3b2   : > { %v5894_v55 = vmax.f32 %v5869_v18, 0.0  ;;  %v5870_v42 = vadd.f32 %v30132_v27, %v5845_v0  ;;  %24618 = vmatmul.mubr.msk.bf16.gmra.mrb[232].mxu0 %vm6294_vm6, %v9994_v15  ;;  %v32688_v31 = vmov %v32684_v14  ;;  %v8612_v26 = vor.u32 %v8610_v61, %v8608_v20 }
 0x3b3   : > { %v9996_v57 = vsel %vm6710_vm8, %v32688_v31, %v32687_v38  ;;  %v8609_v53 = vsel %vm6155_vm5, %v8604_v25, %v8608_v20  ;;  %v9997_v51 = vrot.slane %v27664_v59, 1  ;;  %v8618_v18 = vshrl.u32 %v27662_v8, 16  ;;  %v27666_v25 = vld [vmem:[#allocation2 + $0x64] sm:$0xff]  }
 0x3b4   : > { %24621 = vmatprep.mubr.msk.bf16.mxu0 %vm6294_vm6, %v9996_v57  ;;  %v22703_v0 = vpack.c.bf16 %v5894_v55, %v5894_v55  ;;  %v5895_v44 = vmax.f32 %v5870_v42, 0.0  ;;  %24470 = vmatmul.mubr.msk.bf16.gmra.mrb[72].mxu1 %vm6294_vm6, %v8601_v11  ;;  %v8616_v10 = vrot.slane %v8614_v12, 1  ;;  %v9999_v14 = vrot.slane %v30358_v41, 1  ;;  %v27667_v42 = vld [vmem:[#allocation2 + $0x6c] sm:$0xff]  }
 0x3b5   : > { %24473 = vmatprep.mubr.msk.bf16.mxu1 %vm6294_vm6, %v8609_v53  ;;  %v5786_v4 = vpop.f32.mrb[192].mxu0  ;;  %v8624_v21 = vrot.slane %v8622_v23, 1  ;;  %v8626_v8 = vshrl.u32 %v27663_v45, 16  ;;  %v8630_v61 = vshll.u32 %v27666_v25, 16  ;;  %v8638_v12 = vshll.u32 %v27667_v42, 16 }
 0x3b6   : > { %6020 = vst.msk [vmem:[#allocation2 + $0x230] sm:$0xf] %vm1442_vm4, %v22703_v0  ;;  %v22704_v15 = vpack.c.bf16 %v5895_v44, %v5895_v44  ;;  %v5846_v20 = vadd.f32 %v5786_v4, %v30045_v52  ;;  %v24203_v54 = vpop.f32.mrb[193].mxu0  ;;  %v8617_v23 = vsel %vm6155_vm5, %v8612_v26, %v8616_v10  ;;  %v32689_v57 = vrot.slane %v29910_v37, 1  ;;  %v27668_v0 = vld [vmem:[#allocation2 + $0xf0] sm:$0xff]  }
 0x3b7   : > { %v5789_v55 = vpop.f32.mrb[194].mxu0  ;;  %v8620_v53 = vor.u32 %v8618_v18, %v8616_v10  ;;  %v10000_v45 = vsel %vm6710_vm8, %v9997_v51, %v9999_v14  ;;  %v8628_v59 = vor.u32 %v8626_v8, %v8624_v21  ;;  %v10001_v44 = vrot.slane %v27668_v0, 1  ;;  %v30374_v54 = vld [vmem:[#allocation2 + $0x94] sm:$0xf]  ;;  %v30378_v18 = vld [vmem:[#allocation2 + $0xf8] sm:$0xff]  }
 0x3b8   : > { %6021 = vst.msk [vmem:[#allocation2 + $0x234] sm:$0xf] %vm1442_vm4, %v22704_v15  ;;  %v5871_v11 = vadd.f32 %v30132_v27, %v5846_v20  ;;  %v5847_v38 = vadd.f32 %v5789_v55, %v30059_v16  ;;  %v24204_v31 = vpop.f32.mrb[195].mxu0  ;;  %v9998_v52 = vsel %vm6710_vm8, %v32689_v57, %v9997_v51  ;;  %v8632_v15 = vrot.slane %v8630_v61, 1  ;;  %v10254_v20 = vld [vmem:[#allocation2 + $0x90] sm:$0xc] }
 0x3b9   : > { %v8634_v16 = vshrl.u32 %v27666_v25, 16  ;;  %v8625_v37 = vsel %vm6155_vm5, %v8620_v53, %v8624_v21  ;;  %v8640_v26 = vrot.slane %v8638_v12, 1  ;;  %v32576_v51 = vrot.slane %v30378_v18, 1  ;;  %v18699_v8 = vld [vmem:[#allocation2 + $0x1a4] sm:$0xe]  ;;  %v30382_v61 = vld [vmem:[#allocation2 + $0x74] sm:$0xff]  }
 0x3ba   : > { %v5896_v41 = vmax.f32 %v5871_v11, 0.0  ;;  %v5872_v4 = vadd.f32 %v30132_v27, %v5847_v38  ;;  %24622 = vmatmul.mubr.msk.bf16.gmra.mrb[236].mxu0 %vm6294_vm6, %v9998_v52  ;;  %v8642_v10 = vshrl.u32 %v27667_v42, 16  ;;  %v8646_v25 = vshll.u32 %v30382_v61, 16  ;;  %v30386_v21 = vld [vmem:[#allocation2 + $0x98] sm:$0xff]   ;;  %v18203_v31 = vld [vmem:[#allocation2 + $0x1a8] sm:$0xf] }
 0x3bb   : > { %24625 = vmatprep.mubr.msk.bf16.mxu0 %vm6294_vm6, %v10000_v45  ;;  %v30389_v57 = vld [vmem:[#allocation2 + $0x7c] sm:$0xff]   ;;  %v30393_v52 = vcombine.low %v10254_v20, %v30374_v54  ;;  %v8636_v0 = vor.u32 %v8634_v16, %v8632_v15  ;;  %v10002_v38 = vsel %vm6710_vm8, %v9999_v14, %v10001_v44  ;;  %v10004_v58 = vsel %vm6710_vm8, %v10001_v44, %v32576_v51  ;;  %v27582_v20 = vld [vmem:[#allocation2 + $0x1b4] sm:$0xff]   ;;  %v27586_v44 = vld [vmem:[#allocation2 + $0x1c4] sm:$0xff]  }
 0x3bc   : > { %v22705_v55 = vpack.c.bf16 %v5896_v41, %v5896_v41  ;;  %v5897_v11 = vmax.f32 %v5872_v4, 0.0  ;;  %24474 = vmatmul.mubr.msk.bf16.gmra.mrb[76].mxu1 %vm6294_vm6, %v8617_v23  ;;  %v8654_v42 = vshll.u32 %v30389_v57, 16  ;;  %v27581_v41 = vld [vmem:[#allocation2 + $0x1ac] sm:$0xff]   ;;  %v22424_v4 = vcombine.low %v18699_v8, %v18203_v31  ;;  %v27585_v31 = vld [vmem:[#allocation2 + $0x1bc] sm:$0xff]  }
 0x3bd   : > { %24477 = vmatprep.mubr.msk.bf16.mxu1 %vm6294_vm6, %v8625_v37  ;;  %v5794_v12 = vpop.f32.mrb[196].mxu0  ;;  %v8633_v37 = vsel %vm6155_vm5, %v8628_v59, %v8632_v15  ;;  %v8641_v16 = vsel %vm6155_vm5, %v8636_v0, %v8640_v26  ;;  %v8644_v8 = vor.u32 %v8642_v10, %v8640_v26  ;;  %v10372_v14 = vrot.slane %v30393_v52, 2  ;;  %v27672_v26 = vld [vmem:[#allocation2 + $0x100] ss:$0 sps:$4 sm:$0x11]  }
 0x3be   : > { %6022 = vst.msk [vmem:[#allocation2 + $0x238] sm:$0xf] %vm1442_vm4, %v22705_v55  ;;  %v22706_v23 = vpack.c.bf16 %v5897_v11, %v5897_v11  ;;  %v5848_v53 = vadd.f32 %v5794_v12, %v30070_v3  ;;  %v24207_v45 = vpop.f32.mrb[197].mxu0  ;;  %v8648_v12 = vrot.slane %v8646_v25, 1  ;;  %v30406_v59 = vrot.slane %v8654_v42, 1  ;;  %v30414_v42 = vld [vmem:[#allocation2 + $0x84] sm:$0xff]  }
 0x3bf   : > { %v5797_v60 = vpop.f32.mrb[198].mxu0  ;;  %v10005_v10 = vrot.slane %v27672_v26, 1  ;;  %v8662_v0 = vshll.u32 %v30414_v42, 16  ;;  %v27589_v15 = vld [vmem:[#allocation2 + $0x1dc] sm:$0xff]   ;;  %v18710_v26 = vrot.slane %v27585_v31, 1 }
 0x3c0   : > { %6023 = vst.msk [vmem:[#allocation2 + $0x23c] sm:$0xf] %vm1442_vm4, %v22706_v23  ;;  %v5873_v55 = vadd.f32 %v30132_v27, %v5848_v53  ;;  %v5849_v3 = vadd.f32 %v5797_v60, %v30073_v7  ;;  %v24208_v11 = vpop.f32.mrb[199].mxu0  ;;  %v27587_v53 = vld [vmem:[#allocation2 + $0x1cc] sm:$0xff]   ;;  %v18705_v7 = vrot.slane %v22424_v4, 1  ;;  %v18706_v60 = vrot.slane %v27581_v41, 1 }
 0x3c1   : > { %v27588_v11 = vld [vmem:[#allocation2 + $0x1d4] sm:$0xff]   ;;  %v27593_v4 = vld [vmem:[#allocation2 + $0x1ec] sm:$0xff]   ;;  %v8649_v19 = vsel %vm6155_vm5, %v8644_v8, %v8648_v12  ;;  %v18714_v31 = vrot.slane %v27587_v53, 1 }
 0x3c2   : > { %v5898_v45 = vmax.f32 %v5873_v55, 0.0  ;;  %v5874_v23 = vadd.f32 %v30132_v27, %v5849_v3  ;;  %24626 = vmatmul.mubr.msk.bf16.gmra.mrb[240].mxu0 %vm6294_vm6, %v10002_v38  ;;  %v18708_v55 = vrot.slane %v27582_v20, 1  ;;  %v27590_v38 = vld [vmem:[#allocation2 + $0x1e4] sm:$0xff]   ;;  %v30418_v41 = vld [vmem:[#allocation2 + $0x1f4] sm:$0xff]   ;;  %v18712_v20 = vrot.slane %v27586_v44, 1 }
 0x3c3   : > { %24629 = vmatprep.mubr.msk.bf16.mxu0 %vm6294_vm6, %v10004_v58  ;;  %v30421_v58 = vsel %vm6710_vm8, %v18705_v7, %v18706_v60 }
 0x3c4   : > { %v22707_v51 = vpack.c.bf16 %v5898_v45, %v5898_v45  ;;  %v5899_v3 = vmax.f32 %v5874_v23, 0.0  ;;  %24478 = vmatmul.mubr.msk.bf16.gmra.mrb[80].mxu1 %vm6294_vm6, %v8633_v37  ;;  %32690 = vst [vmem:[#allocation75_spill] sm:$0xff] %v30421_v58  ;;  %v30426_v17 = vsel %vm6710_vm8, %v18706_v60, %v18708_v55  ;;  %v30433_v7 = vsel %vm6710_vm8, %v18708_v55, %v18710_v26 }
 0x3c5   : > { %24481 = vmatprep.mubr.msk.bf16.mxu1 %vm6294_vm6, %v8641_v16  ;;  %v5802_v25 = vpop.f32.mrb[200].mxu0  ;;  %32691 = vst [vmem:[#allocation76_spill] sm:$0xff] %v30426_v17  ;;  %32692 = vst [vmem:[#allocation77_spill] sm:$0xff] %v30433_v7  ;;  %v32693_v58 = vrot.slane %v30378_v18, 1  ;;  %v32694_v60 = vshrl.u32 %v30382_v61, 16  ;;  %v30447_v53 = vsel %vm6710_vm8, %v18712_v20, %v18714_v31  ;;  %v18718_v18 = vrot.slane %v27589_v15, 1 }
 0x3c6   : > { %6024 = vst.msk [vmem:[#allocation2 + $0x240] sm:$0xf] %vm1442_vm4, %v22707_v51  ;;  %v22708_v37 = vpack.c.bf16 %v5899_v3, %v5899_v3  ;;  %v5850_v45 = vadd.f32 %v5802_v25, %v30083_v2  ;;  %v24211_v23 = vpop.f32.mrb[201].mxu0  ;;  %v30441_v51 = vsel %vm6710_vm8, %v18710_v26, %v18712_v20  ;;  %v18716_v3 = vrot.slane %v27588_v11, 1  ;;  %32696 = vst [vmem:[#allocation79_spill] sm:$0xff] %v30447_v53 }
 0x3c7   : > { %v5805_v16 = vpop.f32.mrb[202].mxu0  ;;  %v10006_v8 = vsel %vm6710_vm8, %v32693_v58, %v10005_v10  ;;  %v8652_v44 = vor.u32 %v32694_v60, %v8648_v12  ;;  %32695 = vst [vmem:[#allocation78_spill] sm:$0xff] %v30441_v51  ;;  %v18720_v61 = vrot.slane %v27590_v38, 1  ;;  %v18722_v12 = vrot.slane %v27593_v4, 1  ;;  %v30664_v51 = vld [vmem:[#allocation2 + $0x118] sm:$0xff]  }
 0x3c8   : > { %6025 = vst.msk [vmem:[#allocation2 + $0x244] sm:$0xf] %vm1442_vm4, %v22708_v37  ;;  %v5875_v2 = vadd.f32 %v30132_v27, %v5850_v45  ;;  %v5851_v25 = vadd.f32 %v5805_v16, %v30086_v35  ;;  %v24212_v55 = vpop.f32.mrb[203].mxu0  ;;  %v30450_v10 = vsel %vm6710_vm8, %v18714_v31, %v18716_v3  ;;  %v32577_v58 = vrot.slane %v30418_v41, 1  ;;  %v30458_v45 = vld [vmem:[#allocation2 + $0xa8] sm:$0xff]  }
 0x3c9   : > { %32697 = vst [vmem:[#allocation80_spill] sm:$0xff] %v30450_v10  ;;  %v32698_v37 = vrot.slane %v30386_v21, 2  ;;  %v30461_v15 = vsel %vm6710_vm8, %v18716_v3, %v18718_v18  ;;  %v10375_v38 = vrot.slane %v30430_v28, 2  ;;  %v30466_v4 = vsel %vm6710_vm8, %v18718_v18, %v18720_v61 }
 0x3ca   : > { %v5900_v26 = vmax.f32 %v5875_v2, 0.0  ;;  %v5876_v11 = vadd.f32 %v30132_v27, %v5851_v25  ;;  %24630 = vmatmul.mubr.msk.bf16.gmra.mrb[244].mxu0 %vm6294_vm6, %v10006_v8  ;;  %32699 = vst [vmem:[#allocation81_spill] sm:$0xff] %v30461_v15  ;;  %32700 = vst [vmem:[#allocation82_spill] sm:$0xff] %v30466_v4  ;;  %v30469_v20 = vsel %vm6710_vm8, %v18720_v61, %v18722_v12  ;;  %v27674_v8 = vld [vmem:[#allocation2 + $0x8c] sm:$0xff]   ;;  %v8664_v2 = vrot.slane %v8662_v0, 1 }
 0x3cb   : > { %v10374_v35 = vsel %vm394_vm2, %v10372_v14, %v32698_v37  ;;  %32701 = vst [vmem:[#allocation83_spill] sm:$0xff] %v30469_v20  ;;  %v30474_v23 = vsel %vm6710_vm8, %v18722_v12, %v32577_v58  ;;  %v8657_v16 = vsel %vm6155_vm5, %v8652_v44, %v30406_v59  ;;  %v8670_v60 = vshll.u32 %v27674_v8, 16  ;;  %v30645_v4 = vld [vmem:[#allocation2 + $0x108] sm:$0xff]  }
 0x3cc   : > { %24635 = vmatprep.mubr.msk.bf16.mxu0 %vm6294_vm6, %v10374_v35  ;;  %32702 = vst [vmem:[#allocation84_spill] sm:$0xff] %v30474_v23  ;;  %v22709_v14 = vpack.c.bf16 %v5900_v26, %v5900_v26  ;;  %v5901_v31 = vmax.f32 %v5876_v11, 0.0  ;;  %24482 = vmatmul.mubr.msk.bf16.gmra.mrb[84].mxu1 %vm6294_vm6, %v8649_v19  ;;  %v10377_v61 = vrot.slane %v30458_v45, 2  ;;  %v32703_v19 = vshrl.u32 %v30389_v57, 16 }
 0x3cd   : > { %24485 = vmatprep.mubr.msk.bf16.mxu1 %vm6294_vm6, %v8657_v16  ;;  %v5810_v3 = vpop.f32.mrb[204].mxu0  ;;  %v8666_v44 = vshrl.u32 %v30414_v42, 16  ;;  %v8672_v35 = vrot.slane %v8670_v60, 1  ;;  %v12683_v7 = vshrl.u32 %v30645_v4, 16 }
 0x3ce   : > { %6026 = vst.msk [vmem:[#allocation2 + $0x248] sm:$0xf] %vm1442_vm4, %v22709_v14  ;;  %v22710_v25 = vpack.c.bf16 %v5901_v31, %v5901_v31  ;;  %v5852_v55 = vadd.f32 %v5810_v3, %v30098_v33  ;;  %v24215_v18 = vpop.f32.mrb[205].mxu0  ;;  %v8660_v26 = vor.u32 %v32703_v19, %v30406_v59  ;;  %v30490_v14 = vld [vmem:[#allocation5 + $0x28] sm:$0xff]   ;;  %v32704_v33 = vrot.slane %v30386_v21, 2 }
 0x3cf   : > { %v5813_v12 = vpop.f32.mrb[206].mxu0  ;;  %v8668_v16 = vor.u32 %v8666_v44, %v8664_v2  ;;  %v30495_v3 = vld [vmem:[#allocation2 + $0xb0] sm:$0xff]   ;;  %v10378_v42 = vsel %vm394_vm2, %v10375_v38, %v10377_v61  ;;  %v8674_v18 = vshrl.u32 %v27674_v8, 16  ;;  %v27676_v44 = vld [vmem:[#allocation2 + $0x9c] sm:$0xff]  }
 0x3d0   : > { %6027 = vst.msk [vmem:[#allocation2 + $0x24c] sm:$0xf] %vm1442_vm4, %v22710_v25  ;;  %v5877_v11 = vadd.f32 %v30132_v27, %v5852_v55  ;;  %v5853_v0 = vadd.f32 %v5813_v12, %v30102_v50  ;;  %v24216_v37 = vpop.f32.mrb[207].mxu0  ;;  %v10376_v31 = vsel %vm394_vm2, %v32704_v33, %v10375_v38  ;;  %v27675_v25 = vld [vmem:[#allocation2 + $0x94] sm:$0xff]   ;;  %v8665_v60 = vsel %vm6155_vm5, %v8660_v26, %v8664_v2 }
 0x3d1   : > { %v8678_v50 = vshll.u32 %v27675_v25, 16  ;;  %v30500_v55 = vld [vmem:[#allocation2 + $0xb8] sm:$0xff]   ;;  %v10379_v2 = vrot.slane %v30495_v3, 2 }
 0x3d2   : > { %v5902_v57 = vmax.f32 %v5877_v11, 0.0  ;;  %v5878_v59 = vadd.f32 %v30132_v27, %v5853_v0  ;;  %24636 = vmatmul.mubr.msk.bf16.vlgmr.msra.gmra.mrb[216].mxu0 %vm6294_vm6, %v10376_v31  ;;  %v8673_v27 = vsel %vm6155_vm5, %v8668_v16, %v8672_v35  ;;  %v8686_v11 = vshll.u32 %v27676_v44, 16  ;;  %v27677_v16 = vld [vmem:[#allocation3] ss:$0 sm:$0xff] }
 0x3d3   : > { %24639 = vmatprep.mubr.msk.bf16.mxu0 %vm6294_vm6, %v10378_v42  ;;  %24668 = vmatpush3.bf16.msra.mxu0 %v30191_v24  ;;  %v8680_v0 = vrot.slane %v8678_v50, 1  ;;  %v10381_v37 = vrot.slane %v30500_v55, 2  ;;  %v8676_v31 = vor.u32 %v8674_v18, %v8672_v35  ;;  %v30520_v18 = vld [vmem:[#allocation2 + $0xc8] sm:$0xff]  }
 0x3d4   : > { %v22711_v12 = vpack.c.bf16 %v5902_v57, %v5902_v57  ;;  %v5903_v19 = vmax.f32 %v5878_v59, 0.0  ;;  %24486 = vmatmul.mubr.msk.bf16.gmra.mrb[88].mxu1 %vm6294_vm6, %v8665_v60  ;;  %24701 = vmatprep.subr.bf16.mxu0 %v30490_v14  ;;  %v8682_v60 = vshrl.u32 %v27675_v25, 16 }
 0x3d5   : > { %24489 = vmatprep.mubr.msk.bf16.mxu1 %vm6294_vm6, %v8673_v27  ;;  %v5818_v38 = vpop.f32.mrb[208].mxu0  ;;  %v8688_v27 = vrot.slane %v8686_v11, 1  ;;  %v10382_v35 = vsel %vm394_vm2, %v10379_v2, %v10381_v37 }
 0x3d6   : > { %6028 = vst.msk [vmem:[#allocation2 + $0x250] sm:$0xf] %vm1442_vm4, %v22711_v12  ;;  %v22712_v26 = vpack.c.bf16 %v5903_v19, %v5903_v19  ;;  %v5854_v24 = vadd.f32 %v5818_v38, %v30111_v43  ;;  %v24219_v8 = vpop.f32.mrb[209].mxu0  ;;  %v10380_v12 = vsel %vm394_vm2, %v10377_v61, %v10379_v2  ;;  %v30516_v19 = vld [vmem:[#allocation2 + $0xc0] sm:$0xff]   ;;  %v8684_v50 = vor.u32 %v8682_v60, %v8680_v0 }
 0x3d7   : > { %v5821_v33 = vpop.f32.mrb[210].mxu0  ;;  %v8690_v8 = vshrl.u32 %v27676_v44, 16  ;;  %v10383_v2 = vrot.slane %v30516_v19, 2 }
 0x3d8   : > { %6029 = vst.msk [vmem:[#allocation2 + $0x254] sm:$0xf] %vm1442_vm4, %v22712_v26  ;;  %v5879_v57 = vadd.f32 %v27677_v16, %v5854_v24  ;;  %v5855_v59 = vadd.f32 %v5821_v33, %v30114_v56  ;;  %v24220_v42 = vpop.f32.mrb[211].mxu0  ;;  %v8681_v26 = vsel %vm6155_vm5, %v8676_v31, %v8680_v0  ;;  %v27678_v56 = vld [vmem:[#allocation2 + $0xa4] ss:$0 sps:$4 sm:$0x11]   ;;  %v8689_v61 = vsel %vm6155_vm5, %v8684_v50, %v8688_v27 }
 0x3d9   : > { %v8694_v25 = vshll.u32 %v27678_v56, 16  ;;  %v8692_v60 = vor.u32 %v8690_v8, %v8688_v27  ;;  %v30533_v50 = vld [vmem:[#allocation2 + $0xd0] sm:$0xff]   ;;  %v30551_v8 = vld [vmem:[#allocation2 + $0xe8] sm:$0xff]  }
 0x3da   : > { %v5904_v43 = vmax.f32 %v5879_v57, 0.0  ;;  %v5880_v38 = vadd.f32 %v27677_v16, %v5855_v59  ;;  %24640 = vmatmul.mubr.msk.bf16.gmra.mrb[220].mxu0 %vm6294_vm6, %v10380_v12  ;;  %v10385_v59 = vrot.slane %v30520_v18, 2 }
 0x3db   : > { %24643 = vmatprep.mubr.msk.bf16.mxu0 %vm6294_vm6, %v10382_v35  ;;  %v8696_v12 = vrot.slane %v8694_v25, 1 }
 0x3dc   : > { %v22713_v11 = vpack.c.bf16 %v5904_v43, %v5904_v43  ;;  %v5905_v24 = vmax.f32 %v5880_v38, 0.0  ;;  %24490 = vmatmul.mubr.msk.bf16.gmra.mrb[92].mxu1 %vm6294_vm6, %v8681_v26  ;;  %v10384_v38 = vsel %vm394_vm2, %v10381_v37, %v10383_v2  ;;  %v10386_v26 = vsel %vm394_vm2, %v10383_v2, %v10385_v59  ;;  %v32706_v2 = vld [vmem:[#allocation19_spill] sm:$0xff] }
 0x3dd   : > { %24493 = vmatprep.mubr.msk.bf16.mxu1 %vm6294_vm6, %v8689_v61  ;;  %v5826_v33 = vpop.f32.mrb[212].mxu0  ;;  %v8697_v56 = vsel %vm6155_vm5, %v8692_v60, %v8696_v12  ;;  %v10387_v37 = vrot.slane %v30533_v50, 2  ;;  %v30569_v12 = vld [vmem:[#allocation2 + $0xf8] sm:$0xff]  }
 0x3de   : > { %6030 = vst.msk [vmem:[#allocation2 + $0x258] sm:$0xf] %vm1442_vm4, %v22713_v11  ;;  %v22714_v57 = vpack.c.bf16 %v5905_v24, %v5905_v24  ;;  %v5856_v0 = vadd.f32 %v5826_v33, %v29857_v5  ;;  %v24223_v31 = vpop.f32.mrb[213].mxu0  ;;  %v30537_v5 = vld [vmem:[#allocation2 + $0xd8] sm:$0xff]   ;;  %v30547_v24 = vld [vmem:[#allocation2 + $0xe0] sm:$0xff]  }
 0x3df   : > { %v5829_v42 = vpop.f32.mrb[214].mxu0  ;;  %v10389_v25 = vrot.slane %v30537_v5, 2  ;;  %v10388_v11 = vsel %vm394_vm2, %v10385_v59, %v10387_v37  ;;  %v30553_v33 = vld [vmem:[#allocation5] sm:$0xff]   ;;  %v10393_v31 = vrot.slane %v30551_v8, 2 }
 0x3e0   : > { %6031 = vst.msk [vmem:[#allocation2 + $0x25c] sm:$0xf] %vm1442_vm4, %v22714_v57  ;;  %v5881_v43 = vadd.f32 %v27677_v16, %v5856_v0  ;;  %v24224_v44 = vpop.f32.mrb[215].mxu0  ;;  %v32705_v16 = vld [vmem:[#allocation20_spill] sm:$0xff]  ;;  %v32707_v57 = vld [vmem:[#allocation21_spill] sm:$0xff]  ;;  %v10391_v0 = vrot.slane %v30547_v24, 2 }
 0x3e1   : > { %v10390_v61 = vsel %vm394_vm2, %v10387_v37, %v10389_v25  ;;  %v30565_v42 = vld [vmem:[#allocation2 + $0xf0] sm:$0xff]   ;;  %v32711_v37 = vld [vmem:[#allocation25_spill] sm:$0xff] }
 0x3e2   : > { %v5906_v35 = vmax.f32 %v5881_v43, 0.0  ;;  %24644 = vmatmul.mubr.msk.bf16.gmra.mrb[224].mxu0 %vm6294_vm6, %v10384_v38  ;;  %v10392_v59 = vsel %vm394_vm2, %v10389_v25, %v10391_v0  ;;  %v10394_v60 = vsel %vm394_vm2, %v10391_v0, %v10393_v31  ;;  %v32708_v43 = vld [vmem:[#allocation22_spill] sm:$0xff]  ;;  %v10395_v44 = vrot.slane %v30565_v42, 2 }
 0x3e3   : > { %24647 = vmatprep.mubr.msk.bf16.mxu0 %vm6294_vm6, %v10386_v26  ;;  %v10397_v38 = vrot.slane %v30569_v12, 2  ;;  %v30579_v26 = vld [vmem:[#allocation2 + $0x100] sm:$0xff]   ;;  %v10670_v0 = vshll.u32 %v30386_v21, 16 }
 0x3e4   : > { %v22715_v27 = vpack.c.bf16 %v5906_v35, %v5906_v35  ;;  %24494 = vmatmul.mubr.msk.bf16.gmra.mrb[96].mxu1 %vm6294_vm6, %v8697_v56  ;;  %v10396_v35 = vsel %vm394_vm2, %v10393_v31, %v10395_v44  ;;  %v10399_v25 = vrot.slane %v30579_v26, 2 }
 0x3e5   : > { %24499 = vmatprep.mubr.msk.bf16.mxu1 %vm6294_vm6, %v32705_v16  ;;  %v10398_v56 = vsel %vm394_vm2, %v10395_v44, %v10397_v38  ;;  %v32710_v16 = vld [vmem:[#allocation24_spill] sm:$0xff]  ;;  %v32712_v44 = vld [vmem:[#allocation26_spill] sm:$0xff] }
 0x3e6   : > { %6033 = vst.msk [vmem:[#allocation2 + $0x260] sm:$0x7] %vm6032_vm10, %v22715_v27  ;;  %v30583_v27 = vld [vmem:[#allocation2 + $0x108] sm:$0xff]   ;;  %v10400_v31 = vsel %vm394_vm2, %v10397_v38, %v10399_v25  ;;  %v10676_v38 = vshrl.u32 %v30430_v28, 16 }
 0x3e8   : > { %v10678_v58 = vrot.slane %v10676_v38, 2  ;;  %v10706_v38 = vshll.u32 %v30500_v55, 16 }
 0x3ea   : > { %24648 = vmatmul.mubr.msk.bf16.gmra.mrb[228].mxu0 %vm6294_vm6, %v10388_v11  ;;  %v10401_v11 = vrot.slane %v30583_v27, 2 }
 0x3eb   : > { %24651 = vmatprep.mubr.msk.bf16.mxu0 %vm6294_vm6, %v10390_v61  ;;  %v10659_v61 = vshrl.u32 %v30393_v52, 16 }
 0x3ec   : > { %24500 = vmatmul.mubr.msk.bf16.vlgmr.msra.gmra.mrb[68].mxu1 %vm6294_vm6, %v32706_v2  ;;  %v10662_v2 = vshll.u32 %v30393_v52, 16  ;;  %v10672_v52 = vrot.slane %v10670_v0, 3 }
 0x3ed   : > { %24503 = vmatprep.mubr.msk.bf16.mxu1 %vm6294_vm6, %v32707_v57  ;;  %24838 = vmatpush3.bf16.msra.mxu1 %v30279_v6  ;;  %v32709_v6 = vld [vmem:[#allocation23_spill] sm:$0xff]  ;;  %v10667_v57 = vshrl.u32 %v30386_v21, 16 }
 0x3ee   : > { %24871 = vmatprep.subr.bf16.mxu1 %v30553_v33 }
 0x3f2   : > { %24652 = vmatmul.mubr.msk.bf16.gmra.mrb[232].mxu0 %vm6294_vm6, %v10392_v59  ;;  %v27371_v59 = vld [vmem:[#allocation2 + $0x110] ss:$0 sps:$4 sm:$0x33]  }
 0x3f3   : > { %24655 = vmatprep.mubr.msk.bf16.mxu0 %vm6294_vm6, %v10394_v60  ;;  %v10402_v60 = vsel %vm394_vm2, %v10399_v25, %v10401_v11  ;;  %v10685_v25 = vshrl.u32 %v30458_v45, 16 }
 0x3f4   : > { %24504 = vmatmul.mubr.msk.bf16.gmra.mrb[72].mxu1 %vm6294_vm6, %v32708_v43  ;;  %v10661_v43 = vrot.slane %v10659_v61, 2  ;;  %v10688_v61 = vshll.u32 %v30458_v45, 16 }
 0x3f5   : > { %24507 = vmatprep.mubr.msk.bf16.mxu1 %vm6294_vm6, %v32709_v6  ;;  %v10664_v6 = vrot.slane %v10662_v2, 3  ;;  %v10687_v0 = vrot.slane %v10685_v25, 2 }
 0x3fa   : > { %24656 = vmatmul.mubr.msk.bf16.gmra.mrb[236].mxu0 %vm6294_vm6, %v10396_v35  ;;  %v10669_v35 = vrot.slane %v10667_v57, 2 }
 0x3fb   : > { %24659 = vmatprep.mubr.msk.bf16.mxu0 %vm6294_vm6, %v10398_v56  ;;  %v32713_v56 = vld [vmem:[#allocation27_spill] sm:$0xff] }
 0x3fc   : > { %24508 = vmatmul.mubr.msk.bf16.gmra.mrb[76].mxu1 %vm6294_vm6, %v32710_v16  ;;  %v10403_v16 = vrot.slane %v27371_v59, 2  ;;  %v10673_v2 = vor.u32 %v10672_v52, %v10669_v35  ;;  %v10690_v59 = vrot.slane %v10688_v61, 3  ;;  %v10694_v35 = vshrl.u32 %v30495_v3, 16 }
 0x3fd   : > { %24511 = vmatprep.mubr.msk.bf16.mxu1 %vm6294_vm6, %v32711_v37  ;;  %v10679_v37 = vshll.u32 %v30430_v28, 16 }
 0x3fe   : > { %v10691_v52 = vor.u32 %v10690_v59, %v10687_v0  ;;  %v10696_v25 = vrot.slane %v10694_v35, 2  ;;  %v12551_v0 = vld [vmem:[#allocation2 + $0x100] sm:$0xf]  ;;  %v32716_v59 = vld [vmem:[#allocation30_spill] sm:$0xff] }
 0x402   : > { %24660 = vmatmul.mubr.msk.bf16.gmra.mrb[240].mxu0 %vm6294_vm6, %v10400_v31  ;;  %v10665_v31 = vor.u32 %v10664_v6, %v10661_v43  ;;  %v32715_v43 = vld [vmem:[#allocation29_spill] sm:$0xff] }
 0x403   : > { %24663 = vmatprep.mubr.msk.bf16.mxu0 %vm6294_vm6, %v10402_v60  ;;  %v10404_v60 = vsel %vm394_vm2, %v10401_v11, %v10403_v16  ;;  %v10697_v11 = vshll.u32 %v30495_v3, 16  ;;  %v10703_v16 = vshrl.u32 %v30500_v55, 16 }
 0x404   : > { %24512 = vmatmul.mubr.msk.bf16.gmra.mrb[80].mxu1 %vm6294_vm6, %v32712_v44  ;;  %v10681_v44 = vrot.slane %v10679_v37, 3  ;;  %v10674_v57 = vsel %vm7397_vm9, %v10665_v31, %v10673_v2  ;;  %v30620_v37 = vld [vmem:[#allocation5 + $0x30] sm:$0xff]  }
 0x405   : > { %24515 = vmatprep.mubr.msk.bf16.mxu1 %vm6294_vm6, %v32713_v56  ;;  %v32714_v56 = vld [vmem:[#allocation28_spill] sm:$0xff]  ;;  %v10699_v61 = vrot.slane %v10697_v11, 3 }
 0x406   : > { %v10682_v6 = vor.u32 %v10681_v44, %v10678_v58  ;;  %v10705_v44 = vrot.slane %v10703_v16, 2  ;;  %v10724_v16 = vshll.u32 %v30520_v18, 16 }
 0x407   : > { %v10700_v35 = vor.u32 %v10699_v61, %v10696_v25  ;;  %v32718_v25 = vld [vmem:[#allocation32_spill] sm:$0xff] }
 0x408   : > { %v10683_v31 = vsel %vm7397_vm9, %v10673_v2, %v10682_v6  ;;  %v10692_v58 = vsel %vm7397_vm9, %v10682_v6, %v10691_v52  ;;  %v10712_v2 = vshrl.u32 %v30516_v19, 16  ;;  %v32717_v6 = vld [vmem:[#allocation31_spill] sm:$0xff]  ;;  %v10726_v20 = vrot.slane %v10724_v16, 3 }
 0x40a   : > { %24664 = vmatmul.mubr.msk.bf16.gmra.mrb[244].mxu0 %vm6294_vm6, %v10404_v60  ;;  %v30623_v60 = vld [vmem:[#allocation2 + $0x104] sm:$0xf] }
 0x40b   : > { %24669 = vmatprep.mubr.msk.bf16.mxu0 %vm6294_vm6, %v10674_v57  ;;  %v10708_v57 = vrot.slane %v10706_v38, 3  ;;  %v10714_v38 = vrot.slane %v10712_v2, 2  ;;  %v32719_v2 = vld [vmem:[#allocation33_spill] sm:$0xff] }
 0x40c   : > { %24516 = vmatmul.mubr.msk.bf16.gmra.mrb[84].mxu1 %vm6294_vm6, %v32714_v56  ;;  %v10715_v56 = vshll.u32 %v30516_v19, 16 }
 0x40d   : > { %24519 = vmatprep.mubr.msk.bf16.mxu1 %vm6294_vm6, %v32715_v43  ;;  %v30634_v43 = vcombine.low %v12551_v0, %v30623_v60  ;;  %v10709_v11 = vor.u32 %v10708_v57, %v10705_v44  ;;  %v30650_v57 = vld [vmem:[#allocation2 + $0x110] sm:$0xff]  }
 0x40f   : > { %v10710_v0 = vsel %vm7397_vm9, %v10700_v35, %v10709_v11  ;;  %v12672_v16 = vshrl.u32 %v30634_v43, 16 }
 0x412   : > { %24670 = vmatmul.mubr.msk.bf16.vlgmr.msra.gmra.mrb[216].mxu0 %vm6294_vm6, %v10683_v31  ;;  %v10717_v31 = vrot.slane %v10715_v56, 3  ;;  %v10733_v56 = vshll.u32 %v30533_v50, 16 }
 0x413   : > { %24673 = vmatprep.mubr.msk.bf16.mxu0 %vm6294_vm6, %v10692_v58  ;;  %24702 = vmatpush3.bf16.msra.mxu0 %v30490_v14  ;;  %v10721_v14 = vshrl.u32 %v30520_v18, 16  ;;  %v12674_v58 = vshll.u32 %v30634_v43, 16 }
 0x414   : > { %24520 = vmatmul.mubr.msk.bf16.gmra.mrb[88].mxu1 %vm6294_vm6, %v32716_v59  ;;  %24735 = vmatprep.subr.bf16.mxu0 %v30620_v37  ;;  %v10701_v59 = vsel %vm7397_vm9, %v10691_v52, %v10700_v35  ;;  %v10718_v61 = vor.u32 %v10717_v31, %v10714_v38  ;;  %v10730_v52 = vshrl.u32 %v30533_v50, 16  ;;  %v10742_v35 = vshll.u32 %v30537_v5, 16 }
 0x415   : > { %24523 = vmatprep.mubr.msk.bf16.mxu1 %vm6294_vm6, %v32717_v6  ;;  %v10723_v23 = vrot.slane %v10721_v14, 2  ;;  %v12676_v44 = vrot.slane %v12674_v58, 1  ;;  %v10739_v6 = vshrl.u32 %v30537_v5, 16  ;;  %v12687_v58 = vshll.u32 %v30650_v57, 16 }
 0x416   : > { %v10719_v38 = vsel %vm7397_vm9, %v10709_v11, %v10718_v61  ;;  %v10744_v15 = vrot.slane %v10742_v35, 3  ;;  %v27525_v11 = vld [vmem:[#allocation2 + $0x200] sm:$0xff]  }
 0x417   : > { %v10727_v14 = vor.u32 %v10726_v20, %v10723_v23  ;;  %v12677_v31 = vor.u32 %v12676_v44, %v12672_v16  ;;  %v10748_v20 = vshrl.u32 %v30547_v24, 16  ;;  %v10751_v23 = vshll.u32 %v30547_v24, 16  ;;  %v32720_v44 = vld [vmem:[#allocation34_spill] sm:$0xff] }
 0x418   : > { %v12691_v16 = vshrl.u32 %v30650_v57, 16 }
 0x419   : > { %v10728_v10 = vsel %vm7397_vm9, %v10718_v61, %v10727_v14  ;;  %v10753_v17 = vrot.slane %v10751_v23, 3  ;;  %v30689_v23 = vld [vmem:[#allocation2 + $0x128] sm:$0xff]  }
 0x41a   : > { %24674 = vmatmul.mubr.msk.bf16.gmra.mrb[220].mxu0 %vm6294_vm6, %v10701_v59  ;;  %v12679_v59 = vshll.u32 %v30645_v4, 16 }
 0x41b   : > { %24677 = vmatprep.mubr.msk.bf16.mxu0 %vm6294_vm6, %v10710_v0  ;;  %v10732_v0 = vrot.slane %v10730_v52, 2 }
 0x41c   : > { %24524 = vmatmul.mubr.msk.bf16.gmra.mrb[92].mxu1 %vm6294_vm6, %v32718_v25  ;;  %v10735_v25 = vrot.slane %v10733_v56, 3  ;;  %v12681_v53 = vrot.slane %v12679_v59, 1  ;;  %v12689_v56 = vrot.slane %v12687_v58, 1  ;;  %v10757_v59 = vshrl.u32 %v30551_v8, 16 }
 0x41d   : > { %24527 = vmatprep.mubr.msk.bf16.mxu1 %vm6294_vm6, %v32719_v2  ;;  %v10741_v2 = vrot.slane %v10739_v6, 2  ;;  %v30672_v6 = vld [vmem:[#allocation2 + $0x120] sm:$0xff]  }
 0x41e   : > { %v12682_v52 = vsel %vm6155_vm5, %v12677_v31, %v12681_v53  ;;  %v10736_v61 = vor.u32 %v10735_v25, %v10732_v0  ;;  %v17588_v31 = vrot.slane %v27525_v11, 3  ;;  %v12693_v58 = vor.u32 %v12691_v16, %v12689_v56  ;;  %v30691_v11 = vld [vmem:[#allocation5 + $0x10] sm:$0xff]  }
 0x41f   : > { %v10745_v35 = vor.u32 %v10744_v15, %v10741_v2  ;;  %v12703_v13 = vshll.u32 %v30672_v6, 16  ;;  %v12685_v22 = vor.u32 %v12683_v7, %v12681_v53  ;;  %v32721_v15 = vrot.slane %v30281_v48, 3  ;;  %v27526_v48 = vld [vmem:[#allocation2 + $0x208] sm:$0xff]  }
 0x420   : > { %v10737_v0 = vsel %vm7397_vm9, %v10727_v14, %v10736_v61  ;;  %v10759_v39 = vrot.slane %v10757_v59, 2  ;;  %v30699_v59 = vld [vmem:[#allocation2 + $0x130] sm:$0xff]  }
 0x421   : > { %v30685_v25 = vsel %vm483_vm1, %v32721_v15, %v17588_v31  ;;  %v10746_v2 = vsel %vm7397_vm9, %v10736_v61, %v10745_v35  ;;  %v12690_v7 = vsel %vm6155_vm5, %v12685_v22, %v12689_v56  ;;  %v12705_v16 = vrot.slane %v12703_v13, 1 }
 0x422   : > { %24678 = vmatmul.mubr.msk.bf16.gmra.mrb[224].mxu0 %vm6294_vm6, %v10719_v38  ;;  %v10760_v38 = vshll.u32 %v30551_v8, 16  ;;  %32722 = vst [vmem:[#allocation20_spill] sm:$0xff] %v30685_v25  ;;  %v10766_v61 = vshrl.u32 %v30565_v42, 16  ;;  %v10775_v22 = vshrl.u32 %v30569_v12, 16 }
 0x423   : > { %24681 = vmatprep.mubr.msk.bf16.mxu0 %vm6294_vm6, %v10728_v10  ;;  %v12695_v10 = vshll.u32 %v30664_v51, 16 }
 0x424   : > { %24528 = vmatmul.mubr.msk.bf16.gmra.mrb[96].mxu1 %vm6294_vm6, %v32720_v44  ;;  %v10750_v44 = vrot.slane %v10748_v20, 2  ;;  %v10762_v20 = vrot.slane %v10760_v38, 3  ;;  %v12707_v38 = vshrl.u32 %v30672_v6, 16  ;;  %v10777_v25 = vrot.slane %v10775_v22, 2  ;;  %v30724_v22 = vld [vmem:[#allocation2 + $0x140] sm:$0xff]  }
 0x425   : > { %24839 = vmatprep.mubr.msk.bf16.mxu1 %vm6294_vm6, %v12682_v52  ;;  %v12697_v52 = vrot.slane %v12695_v10, 1  ;;  %v10769_v10 = vshll.u32 %v30565_v42, 16 }
 0x426   : > { %v10754_v53 = vor.u32 %v10753_v17, %v10750_v44  ;;  %v10778_v17 = vshll.u32 %v30569_v12, 16  ;;  %v10763_v56 = vor.u32 %v10762_v20, %v10759_v39  ;;  %v12711_v44 = vshll.u32 %v30689_v23, 16  ;;  %v27538_v39 = vld [vmem:[#allocation2 + $0x210] ss:$0 sps:$4 sm:$0x77]  }
 0x427   : > { %v12698_v14 = vsel %vm6155_vm5, %v12693_v58, %v12697_v52  ;;  %v12699_v58 = vshrl.u32 %v30664_v51, 16  ;;  %v12709_v15 = vor.u32 %v12707_v38, %v12705_v16  ;;  %v17592_v38 = vrot.slane %v27538_v39, 3 }
 0x428   : > { %v10755_v13 = vsel %vm7397_vm9, %v10745_v35, %v10754_v53  ;;  %v10780_v62 = vrot.slane %v10778_v17, 3  ;;  %v10764_v46 = vsel %vm7397_vm9, %v10754_v53, %v10763_v56  ;;  %v12713_v35 = vrot.slane %v12711_v44, 1  ;;  %v27598_v44 = vld [vmem:[#allocation2 + $0x1fc] sm:$0xff]  }
 0x429   : > { %v18726_v39 = vrot.slane %v27598_v44, 1  ;;  %v32724_v44 = vrot.slane %v30418_v41, 1 }
 0x42a   : > { %24682 = vmatmul.mubr.msk.bf16.gmra.mrb[228].mxu0 %vm6294_vm6, %v10737_v0  ;;  %v17590_v0 = vrot.slane %v27526_v48, 3  ;;  %v10781_v17 = vor.u32 %v10780_v62, %v10777_v25  ;;  %v12735_v62 = vshll.u32 %v30724_v22, 16 }
 0x42b   : > { %24685 = vmatprep.mubr.msk.bf16.mxu0 %vm6294_vm6, %v10746_v2  ;;  %v10768_v2 = vrot.slane %v10766_v61, 2 }
 0x42c   : > { %24840 = vmatmul.mubr.msk.bf16.vlgmr.msra.gmra.mrb[100].mxu1 %vm6294_vm6, %v12690_v7  ;;  %v10771_v7 = vrot.slane %v10769_v10, 3  ;;  %v30712_v20 = vsel %vm483_vm1, %v17588_v31, %v17590_v0  ;;  %v10784_v10 = vshrl.u32 %v30579_v26, 16  ;;  %v10787_v31 = vshll.u32 %v30579_v26, 16 }
 0x42d   : > { %24843 = vmatprep.mubr.msk.bf16.mxu1 %vm6294_vm6, %v12698_v14  ;;  %24872 = vmatpush3.bf16.msra.mxu1 %v30553_v33  ;;  %v12719_v33 = vshll.u32 %v30699_v59, 16  ;;  %v12701_v14 = vor.u32 %v12699_v58, %v12697_v52  ;;  %32723 = vst [vmem:[#allocation19_spill] sm:$0xff] %v30712_v20  ;;  %v12714_v52 = vsel %vm6155_vm5, %v12709_v15, %v12713_v35  ;;  %v10796_v58 = vshll.u32 %v30583_v27, 16 }
 0x42e   : > { %24905 = vmatprep.subr.bf16.mxu1 %v30691_v11  ;;  %v10772_v53 = vor.u32 %v10771_v7, %v10768_v2  ;;  %v12715_v15 = vshrl.u32 %v30689_v23, 16  ;;  %v30737_v7 = vld [vmem:[#allocation2 + $0x110] ss:$0 sps:$4 sm:$0x77]  }
 0x42f   : > { %v12706_v48 = vsel %vm6155_vm5, %v12701_v14, %v12705_v16  ;;  %v12721_v61 = vrot.slane %v12719_v33, 1  ;;  %v12723_v16 = vshrl.u32 %v30699_v59, 16  ;;  %v30733_v33 = vsel %vm483_vm1, %v17590_v0, %v17592_v38  ;;  %v30741_v0 = vld [vmem:[#allocation2 + $0x148] sm:$0xff]   ;;  %v30747_v38 = vld [vmem:[#allocation2 + $0x150] sm:$0xff]  }
 0x430   : > { %v10773_v25 = vsel %vm7397_vm9, %v10763_v56, %v10772_v53  ;;  %v12717_v2 = vor.u32 %v12715_v15, %v12713_v35  ;;  %v10782_v20 = vsel %vm7397_vm9, %v10772_v53, %v10781_v17  ;;  %v10798_v9 = vrot.slane %v10796_v58, 3 }
 0x431   : > { %v12725_v14 = vor.u32 %v12723_v16, %v12721_v61  ;;  %v30752_v53 = vsel %vm6710_vm8, %v32724_v44, %v18726_v39  ;;  %v10802_v16 = vshrl.u32 %v30737_v7, 16  ;;  %v12743_v58 = vshll.u32 %v30741_v0, 16  ;;  %v30765_v44 = vld [vmem:[#allocation2 + $0x158] sm:$0xff]  }
 0x432   : > { %24686 = vmatmul.mubr.msk.bf16.gmra.mrb[232].mxu0 %vm6294_vm6, %v10755_v13  ;;  %v10793_v13 = vshrl.u32 %v30583_v27, 16  ;;  %32725 = vst [vmem:[#allocation21_spill] sm:$0xff] %v30752_v53  ;;  %v12731_v15 = vshrl.u32 %v30716_v30, 16 }
 0x433   : > { %24689 = vmatprep.mubr.msk.bf16.mxu0 %vm6294_vm6, %v10764_v46  ;;  %v12727_v46 = vshll.u32 %v30716_v30, 16 }
 0x434   : > { %24844 = vmatmul.mubr.msk.bf16.gmra.mrb[104].mxu1 %vm6294_vm6, %v12706_v48  ;;  %v10786_v48 = vrot.slane %v10784_v10, 2  ;;  %v10795_v34 = vrot.slane %v10793_v13, 2  ;;  %v12722_v10 = vsel %vm6155_vm5, %v12717_v2, %v12721_v61  ;;  %v10805_v61 = vshll.u32 %v30737_v7, 16  ;;  %v11057_v2 = vld [vmem:[#allocation2 + $0x90] sm:$0x8] }
 0x435   : > { %24847 = vmatprep.mubr.msk.bf16.mxu1 %vm6294_vm6, %v12714_v52  ;;  %v10789_v52 = vrot.slane %v10787_v31, 3  ;;  %v12729_v36 = vrot.slane %v12727_v46, 1  ;;  %v12737_v31 = vrot.slane %v12735_v62, 1  ;;  %v12739_v13 = vshrl.u32 %v30724_v22, 16 }
 0x436   : > { %v10799_v46 = vor.u32 %v10798_v9, %v10795_v34  ;;  %v10804_v62 = vrot.slane %v10802_v16, 2  ;;  %v12745_v34 = vrot.slane %v12743_v58, 1  ;;  %v27602_v58 = vld [vmem:[#allocation2 + $0x20c] sm:$0xff]  }
 0x437   : > { %v12730_v56 = vsel %vm6155_vm5, %v12725_v14, %v12729_v36  ;;  %v10790_v35 = vor.u32 %v10789_v52, %v10786_v48  ;;  %v12741_v41 = vor.u32 %v12739_v13, %v12737_v31  ;;  %v12751_v48 = vshll.u32 %v30747_v38, 16 }
 0x438   : > { %v12733_v52 = vor.u32 %v12731_v15, %v12729_v36  ;;  %v12747_v13 = vshrl.u32 %v30741_v0, 16 }
 0x439   : > { %v10791_v14 = vsel %vm7397_vm9, %v10781_v17, %v10790_v35  ;;  %v10800_v9 = vsel %vm7397_vm9, %v10790_v35, %v10799_v46  ;;  %v12746_v36 = vsel %vm6155_vm5, %v12741_v41, %v12745_v34  ;;  %v12753_v16 = vrot.slane %v12751_v48, 1 }
 0x43a   : > { %24690 = vmatmul.mubr.msk.bf16.gmra.mrb[236].mxu0 %vm6294_vm6, %v10773_v25  ;;  %v10807_v25 = vrot.slane %v10805_v61, 3  ;;  %v12738_v53 = vsel %vm6155_vm5, %v12733_v52, %v12737_v31  ;;  %v30774_v61 = vld [vmem:[#allocation2 + $0x160] sm:$0xff]   ;;  %v12759_v31 = vshll.u32 %v30765_v44, 16  ;;  %v12749_v41 = vor.u32 %v12747_v13, %v12745_v34 }
 0x43b   : > { %24693 = vmatprep.mubr.msk.bf16.mxu0 %vm6294_vm6, %v10782_v20  ;;  %v27599_v20 = vld [vmem:[#allocation2 + $0x204] sm:$0xff]  }
 0x43c   : > { %24848 = vmatmul.mubr.msk.bf16.gmra.mrb[108].mxu1 %vm6294_vm6, %v12722_v10  ;;  %v18728_v10 = vrot.slane %v27599_v20, 1  ;;  %v10808_v35 = vor.u32 %v10807_v25, %v10804_v62  ;;  %v12755_v20 = vshrl.u32 %v30747_v38, 16  ;;  %v12761_v52 = vrot.slane %v12759_v31, 1  ;;  %v30785_v62 = vld [vmem:[#allocation2 + $0x168] sm:$0xff]  }
 0x43d   : > { %24851 = vmatprep.mubr.msk.bf16.mxu1 %vm6294_vm6, %v12730_v56  ;;  %v21891_v56 = vcombine.low %v11057_v2, %v30374_v54  ;;  %v12754_v25 = vsel %vm6155_vm5, %v12749_v41, %v12753_v16  ;;  %v18730_v2 = vrot.slane %v27602_v58, 1  ;;  %v30803_v58 = vld [vmem:[#allocation5 + $0x38] sm:$0xff]  }
 0x43e   : > { %v30770_v17 = vsel %vm6710_vm8, %v18726_v39, %v18728_v10  ;;  %v11064_v39 = vrot.slane %v30386_v21, 3  ;;  %v12757_v15 = vor.u32 %v12755_v20, %v12753_v16  ;;  %v12771_v16 = vshrl.u32 %v30774_v61, 16 }
 0x43f   : > { %v11063_v54 = vrot.slane %v21891_v56, 3  ;;  %v30791_v56 = vld [vmem:[#allocation2 + $0x170] sm:$0xff]   ;;  %v30796_v34 = vsel %vm6710_vm8, %v18728_v10, %v18730_v2  ;;  %v12763_v20 = vshrl.u32 %v30765_v44, 16 }
 0x440   : > { %v12762_v21 = vsel %vm6155_vm5, %v12757_v15, %v12761_v52  ;;  %v12783_v13 = vshll.u32 %v30791_v56, 16 }
 0x441   : > { %v11065_v48 = vsel %vm483_vm1, %v11063_v54, %v11064_v39  ;;  %v27603_v54 = vld [vmem:[#allocation2 + $0x214] sm:$0xff]  }
 0x442   : > { %24694 = vmatmul.mubr.msk.bf16.gmra.mrb[240].mxu0 %vm6294_vm6, %v10791_v14  ;;  %v10809_v14 = vsel %vm7397_vm9, %v10799_v46, %v10808_v35  ;;  %v11066_v46 = vrot.slane %v30430_v28, 3  ;;  %v12775_v35 = vshll.u32 %v30785_v62, 16  ;;  %v12765_v28 = vor.u32 %v12763_v20, %v12761_v52  ;;  %v27607_v52 = vld [vmem:[#allocation2 + $0x21c] sm:$0xff]  }
 0x443   : > { %24697 = vmatprep.mubr.msk.bf16.mxu0 %vm6294_vm6, %v10800_v9  ;;  %v18734_v20 = vrot.slane %v27607_v52, 1 }
 0x444   : > { %24852 = vmatmul.mubr.msk.bf16.gmra.mrb[112].mxu1 %vm6294_vm6, %v12738_v53  ;;  %v12767_v53 = vshll.u32 %v30774_v61, 16  ;;  %v11067_v15 = vsel %vm483_vm1, %v11064_v39, %v11066_v46  ;;  %v12785_v39 = vrot.slane %v12783_v13, 1 }
 0x445   : > { %24855 = vmatprep.mubr.msk.bf16.mxu1 %vm6294_vm6, %v12746_v36  ;;  %v11068_v36 = vrot.slane %v30458_v45, 3  ;;  %v12777_v45 = vrot.slane %v12775_v35, 1  ;;  %v27608_v35 = vld [vmem:[#allocation2 + $0x224] ss:$0 sps:$4 sm:$0x11]  }
 0x446   : > { %v12769_v9 = vrot.slane %v12767_v53, 1  ;;  %v30808_v53 = vld [vmem:[#allocation2 + $0x178] sm:$0xff]  }
 0x447   : > { %v11069_v10 = vsel %vm483_vm1, %v11066_v46, %v11068_v36  ;;  %v12787_v46 = vshrl.u32 %v30791_v56, 16 }
 0x448   : > { %v12773_v31 = vor.u32 %v12771_v16, %v12769_v9  ;;  %v12770_v41 = vsel %vm6155_vm5, %v12765_v28, %v12769_v9  ;;  %v11072_v9 = vrot.slane %v30500_v55, 3  ;;  %v12779_v16 = vshrl.u32 %v30785_v62, 16 }
 0x44a   : > { %24698 = vmatmul.mubr.msk.bf16.gmra.mrb[244].mxu0 %vm6294_vm6, %v10809_v14  ;;  %v18732_v14 = vrot.slane %v27603_v54, 1  ;;  %v12789_v54 = vor.u32 %v12787_v46, %v12785_v39  ;;  %v12781_v13 = vor.u32 %v12779_v16, %v12777_v45 }
 0x44b   : > { %24703 = vmatprep.mubr.msk.bf16.mxu0 %vm6294_vm6, %v11065_v48  ;;  %v12778_v48 = vsel %vm6155_vm5, %v12773_v31, %v12777_v45  ;;  %v11074_v45 = vrot.slane %v30516_v19, 3  ;;  %v11078_v19 = vrot.slane %v30533_v50, 3  ;;  %v11082_v50 = vrot.slane %v30547_v24, 3 }
 0x44c   : > { %24856 = vmatmul.mubr.msk.bf16.gmra.mrb[116].mxu1 %vm6294_vm6, %v12754_v25  ;;  %v30817_v25 = vsel %vm6710_vm8, %v18730_v2, %v18732_v14  ;;  %v30826_v2 = vld [vmem:[#allocation2 + $0x180] ss:$0 sps:$4 sm:$0x11]   ;;  %v30831_v55 = vsel %vm6710_vm8, %v18732_v14, %v18734_v20  ;;  %v12786_v28 = vsel %vm6155_vm5, %v12781_v13, %v12785_v39  ;;  %v11076_v39 = vrot.slane %v30520_v18, 3 }
 0x44d   : > { %24859 = vmatprep.mubr.msk.bf16.mxu1 %vm6294_vm6, %v12762_v21  ;;  %v11070_v21 = vrot.slane %v30495_v3, 3  ;;  %v11080_v18 = vrot.slane %v30537_v5, 3  ;;  %v11084_v5 = vrot.slane %v30551_v8, 3  ;;  %v11086_v24 = vrot.slane %v30565_v42, 3 }
 0x44e   : > { %v11088_v8 = vrot.slane %v30569_v12, 3  ;;  %v11090_v13 = vrot.slane %v30579_v26, 3  ;;  %v11092_v42 = vrot.slane %v30583_v27, 3  ;;  %v27395_v27 = vld [vmem:[#allocation2 + $0xac] sm:$0xff]  }
 0x44f   : > { %v11071_v31 = vsel %vm483_vm1, %v11068_v36, %v11070_v21  ;;  %v11073_v3 = vsel %vm483_vm1, %v11070_v21, %v11072_v9  ;;  %v11075_v21 = vsel %vm483_vm1, %v11072_v9, %v11074_v45  ;;  %v11079_v9 = vsel %vm483_vm1, %v11076_v39, %v11078_v19 }
 0x450   : > { %v11091_v12 = vsel %vm483_vm1, %v11088_v8, %v11090_v13 }
 0x452   : > { %24704 = vmatmul.mubr.msk.bf16.vlgmr.msra.gmra.mrb[216].mxu0 %vm6294_vm6, %v11067_v15 }
 0x453   : > { %24707 = vmatprep.mubr.msk.bf16.mxu0 %vm6294_vm6, %v11069_v10  ;;  %24736 = vmatpush3.bf16.msra.mxu0 %v30620_v37  ;;  %v12791_v37 = vshll.u32 %v30808_v53, 16  ;;  %v18736_v10 = vrot.slane %v27608_v35, 1  ;;  %v11081_v35 = vsel %vm483_vm1, %v11078_v19, %v11080_v18  ;;  %v27404_v19 = vld [vmem:[#allocation2 + $0xe4] sm:$0xff]  }
 0x454   : > { %24860 = vmatmul.mubr.msk.bf16.gmra.mrb[120].mxu1 %vm6294_vm6, %v12770_v41  ;;  %24769 = vmatprep.subr.bf16.mxu0 %v30803_v58  ;;  %v12795_v41 = vshrl.u32 %v30808_v53, 16 }
 0x455   : > { %24863 = vmatprep.mubr.msk.bf16.mxu1 %vm6294_vm6, %v12778_v48  ;;  %v12793_v15 = vrot.slane %v12791_v37, 1  ;;  %v12799_v48 = vshll.u32 %v30826_v2, 16  ;;  %v30842_v14 = vsel %vm6710_vm8, %v18734_v20, %v18736_v10  ;;  %v11077_v37 = vsel %vm483_vm1, %v11074_v45, %v11076_v39  ;;  %v30905_v10 = vld [vmem:[#allocation5 + $0x40] sm:$0xff]  }
 0x456   : > { %v11085_v20 = vsel %vm483_vm1, %v11082_v50, %v11084_v5  ;;  %v27399_v45 = vld [vmem:[#allocation2 + $0xc4] sm:$0xff]  }
 0x457   : > { %v12794_v36 = vsel %vm6155_vm5, %v12789_v54, %v12793_v15  ;;  %v12797_v52 = vor.u32 %v12795_v41, %v12793_v15  ;;  %v12801_v46 = vrot.slane %v12799_v48, 1  ;;  %v30858_v54 = vld [vmem:[#allocation5 + $0x18] sm:$0xff]   ;;  %v11094_v15 = vrot.slane %v30737_v7, 3  ;;  %v27400_v48 = vld [vmem:[#allocation2 + $0xcc] sm:$0xff]  }
 0x458   : > { %v27398_v7 = vld [vmem:[#allocation2 + $0xbc] sm:$0xff]  }
 0x459   : > { %v12802_v16 = vsel %vm6155_vm5, %v12797_v52, %v12801_v46  ;;  %v11095_v26 = vsel %vm483_vm1, %v11092_v42, %v11094_v15  ;;  %v13217_v41 = vld [vmem:[#allocation2 + $0x100] sm:$0xe]  ;;  %v27401_v52 = vld [vmem:[#allocation2 + $0xd4] sm:$0xff]   ;;  %v27410_v15 = vld [vmem:[#allocation2 + $0x10c] sm:$0xff]  }
 0x45a   : > { %24708 = vmatmul.mubr.msk.bf16.gmra.mrb[220].mxu0 %vm6294_vm6, %v11071_v31  ;;  %v11089_v31 = vsel %vm483_vm1, %v11086_v24, %v11088_v8 }
 0x45b   : > { %24711 = vmatprep.mubr.msk.bf16.mxu0 %vm6294_vm6, %v11073_v3  ;;  %v11093_v3 = vsel %vm483_vm1, %v11090_v13, %v11092_v42  ;;  %v13238_v42 = vrot.slane %v30724_v22, 1 }
 0x45c   : > { %24864 = vmatmul.mubr.msk.bf16.gmra.mrb[124].mxu1 %vm6294_vm6, %v12786_v28  ;;  %v27394_v28 = vld [vmem:[#allocation2 + $0xa4] sm:$0xff]  }
 0x45d   : > { %24867 = vmatprep.mubr.msk.bf16.mxu1 %vm6294_vm6, %v12794_v36  ;;  %v27397_v36 = vld [vmem:[#allocation2 + $0xb4] sm:$0xff]  }
 0x462   : > { %24712 = vmatmul.mubr.msk.bf16.gmra.mrb[224].mxu0 %vm6294_vm6, %v11075_v21  ;;  %v13224_v21 = vrot.slane %v30645_v4, 1 }
 0x463   : > { %24715 = vmatprep.mubr.msk.bf16.mxu0 %vm6294_vm6, %v11077_v37  ;;  %v27403_v37 = vld [vmem:[#allocation2 + $0xdc] sm:$0xff]  }
 0x464   : > { %24868 = vmatmul.mubr.msk.bf16.gmra.mrb[128].mxu1 %vm6294_vm6, %v12802_v16  ;;  %v13228_v16 = vrot.slane %v30664_v51, 1 }
 0x465   : > { %24873 = vmatprep.mubr.msk.bf16.mxu1 %vm6294_vm6, %v30634_v43  ;;  %v11083_v43 = vsel %vm483_vm1, %v11080_v18, %v11082_v50  ;;  %v30932_v18 = vld [vmem:[#allocation5 + $0x20] sm:$0xff]   ;;  %v27407_v50 = vld [vmem:[#allocation2 + $0xf4] sm:$0xff]  }
 0x46a   : > { %24716 = vmatmul.mubr.msk.bf16.gmra.mrb[228].mxu0 %vm6294_vm6, %v11079_v9 }
 0x46b   : > { %24719 = vmatprep.mubr.msk.bf16.mxu0 %vm6294_vm6, %v11081_v35  ;;  %v13232_v35 = vrot.slane %v30689_v23, 1 }
 0x46c   : > { %24874 = vmatmul.mubr.msk.bf16.vlgmr.msra.gmra.mrb[100].mxu1 %vm6294_vm6, %v30645_v4 }
 0x46d   : > { %24877 = vmatprep.mubr.msk.bf16.mxu1 %vm6294_vm6, %v30650_v57  ;;  %24906 = vmatpush3.bf16.msra.mxu1 %v30691_v11  ;;  %v11087_v11 = vsel %vm483_vm1, %v11084_v5, %v11086_v24  ;;  %v11704_v24 = vld [vmem:[#allocation2 + $0xa4] sm:$0xf] }
 0x46e   : > { %24939 = vmatprep.subr.bf16.mxu1 %v30858_v54 }
 0x472   : > { %24720 = vmatmul.mubr.msk.bf16.gmra.mrb[232].mxu0 %vm6294_vm6, %v11083_v43 }
 0x473   : > { %24723 = vmatprep.mubr.msk.bf16.mxu0 %vm6294_vm6, %v11085_v20  ;;  %v13236_v20 = vrot.slane %v30716_v30, 1 }
 0x474   : > { %24878 = vmatmul.mubr.msk.bf16.gmra.mrb[104].mxu1 %vm6294_vm6, %v30664_v51  ;;  %v13230_v51 = vrot.slane %v30672_v6, 1 }
 0x475   : > { %24881 = vmatprep.mubr.msk.bf16.mxu1 %vm6294_vm6, %v30672_v6  ;;  %v27408_v6 = vld [vmem:[#allocation2 + $0xfc] sm:$0xff]  }
 0x476   : > { %v13231_v5 = vsel %vm6710_vm8, %v13228_v16, %v13230_v51  ;;  %v13233_v43 = vsel %vm6710_vm8, %v13230_v51, %v13232_v35  ;;  %v13244_v51 = vrot.slane %v30765_v44, 1 }
 0x47a   : > { %24724 = vmatmul.mubr.msk.bf16.gmra.mrb[236].mxu0 %vm6294_vm6, %v11087_v11 }
 0x47b   : > { %24727 = vmatprep.mubr.msk.bf16.mxu0 %vm6294_vm6, %v11089_v31  ;;  %v27679_v31 = vld [vmem:[#allocation2 + $0xa8] sm:$0xf] }
 0x47c   : > { %24882 = vmatmul.mubr.msk.bf16.gmra.mrb[108].mxu1 %vm6294_vm6, %v30689_v23  ;;  %v27409_v23 = vld [vmem:[#allocation2 + $0x104] sm:$0xff]   ;;  %v21942_v13 = vcombine.low %v11704_v24, %v27679_v31 }
 0x47d   : > { %24885 = vmatprep.mubr.msk.bf16.mxu1 %vm6294_vm6, %v30699_v59 }
 0x482   : > { %24728 = vmatmul.mubr.msk.bf16.gmra.mrb[240].mxu0 %vm6294_vm6, %v11091_v12 }
 0x483   : > { %24731 = vmatprep.mubr.msk.bf16.mxu0 %vm6294_vm6, %v11093_v3 }
 0x484   : > { %24886 = vmatmul.mubr.msk.bf16.gmra.mrb[112].mxu1 %vm6294_vm6, %v30716_v30 }
 0x485   : > { %24889 = vmatprep.mubr.msk.bf16.mxu1 %vm6294_vm6, %v30724_v22  ;;  %v27680_v22 = vld [vmem:[#allocation2 + $0xac] sm:$0xff]  }
 0x486   : > { %v11834_v24 = vshrl.u32 %v27680_v22, 16 }
 0x48a   : > { %24732 = vmatmul.mubr.msk.bf16.gmra.mrb[244].mxu0 %vm6294_vm6, %v11095_v26  ;;  %v13240_v26 = vrot.slane %v30741_v0, 1 }
 0x48b   : > { %24737 = vmatprep.mubr.msk.bf16.mxu0 %vm6294_vm6, %v27394_v28  ;;  %v11825_v28 = vshll.u32 %v21942_v13, 16 }
 0x48c   : > { %24890 = vmatmul.mubr.msk.bf16.gmra.mrb[116].mxu1 %vm6294_vm6, %v30741_v0  ;;  %v13239_v0 = vsel %vm6710_vm8, %v13236_v20, %v13238_v42 }
 0x48d   : > { %24893 = vmatprep.mubr.msk.bf16.mxu1 %vm6294_vm6, %v30747_v38 }
 0x492   : > { %24738 = vmatmul.mubr.msk.bf16.vlgmr.msra.gmra.mrb[216].mxu0 %vm6294_vm6, %v27395_v27 }
 0x493   : > { %24741 = vmatprep.mubr.msk.bf16.mxu0 %vm6294_vm6, %v27397_v36  ;;  %24770 = vmatpush3.bf16.msra.mxu0 %v30803_v58  ;;  %v22045_v58 = vcombine.low %v13217_v41, %v30623_v60  ;;  %v13226_v60 = vrot.slane %v30650_v57, 1  ;;  %v27405_v57 = vld [vmem:[#allocation2 + $0xec] sm:$0xff]  }
 0x494   : > { %24894 = vmatmul.mubr.msk.bf16.gmra.mrb[120].mxu1 %vm6294_vm6, %v30765_v44  ;;  %24803 = vmatprep.subr.bf16.mxu0 %v30905_v10 }
 0x495   : > { %24897 = vmatprep.mubr.msk.bf16.mxu1 %vm6294_vm6, %v30774_v61  ;;  %v13223_v39 = vrot.slane %v22045_v58, 1  ;;  %v13227_v4 = vsel %vm6710_vm8, %v13224_v21, %v13226_v60  ;;  %v13229_v9 = vsel %vm6710_vm8, %v13226_v60, %v13228_v16  ;;  %v11830_v58 = vshll.u32 %v27680_v22, 16 }
 0x497   : > { %v13225_v46 = vsel %vm6710_vm8, %v13223_v39, %v13224_v21  ;;  %v13241_v39 = vsel %vm6710_vm8, %v13238_v42, %v13240_v26  ;;  %v11823_v21 = vshrl.u32 %v21942_v13, 16 }
 0x49a   : > { %24742 = vmatmul.mubr.msk.bf16.gmra.mrb[220].mxu0 %vm6294_vm6, %v27398_v7  ;;  %v27411_v7 = vld [vmem:[#allocation2 + $0x114] sm:$0xff]  }
 0x49b   : > { %24745 = vmatprep.mubr.msk.bf16.mxu0 %vm6294_vm6, %v27399_v45 }
 0x49c   : > { %24898 = vmatmul.mubr.msk.bf16.gmra.mrb[124].mxu1 %vm6294_vm6, %v30785_v62 }
 0x49d   : > { %24901 = vmatprep.mubr.msk.bf16.mxu1 %vm6294_vm6, %v30791_v56 }
 0x4a2   : > { %24746 = vmatmul.mubr.msk.bf16.gmra.mrb[224].mxu0 %vm6294_vm6, %v27400_v48 }
 0x4a3   : > { %24749 = vmatprep.mubr.msk.bf16.mxu0 %vm6294_vm6, %v27401_v52  ;;  %v11827_v52 = vrot.slane %v11825_v28, 1  ;;  %v13248_v28 = vrot.slane %v30785_v62, 1 }
 0x4a4   : > { %24902 = vmatmul.mubr.msk.bf16.gmra.mrb[128].mxu1 %vm6294_vm6, %v30808_v53 }
 0x4a5   : > { %24907 = vmatprep.mubr.msk.bf16.mxu1 %vm6294_vm6, %v13225_v46  ;;  %v11832_v46 = vrot.slane %v11830_v58, 1 }
 0x4a7   : > { %v11836_v31 = vor.u32 %v11834_v24, %v11832_v46 }
 0x4aa   : > { %24750 = vmatmul.mubr.msk.bf16.gmra.mrb[228].mxu0 %vm6294_vm6, %v27403_v37  ;;  %v13242_v37 = vrot.slane %v30747_v38, 1 }
 0x4ab   : > { %24753 = vmatprep.mubr.msk.bf16.mxu0 %vm6294_vm6, %v27404_v19 }
 0x4ac   : > { %24908 = vmatmul.mubr.msk.bf16.vlgmr.msra.gmra.mrb[100].mxu1 %vm6294_vm6, %v13227_v4  ;;  %v27412_v4 = vld [vmem:[#allocation2 + $0x11c] sm:$0xff]  }
 0x4ad   : > { %24911 = vmatprep.mubr.msk.bf16.mxu1 %vm6294_vm6, %v13229_v9  ;;  %24940 = vmatpush3.bf16.msra.mxu1 %v30858_v54  ;;  %v13234_v54 = vrot.slane %v30699_v59, 1  ;;  %v30958_v59 = vld [vmem:[#allocation7] ss:$0 sm:$0xff]  ;;  %v11828_v9 = vor.u32 %v11827_v52, %v11823_v21 }
 0x4ae   : > { %24973 = vmatprep.subr.bf16.mxu1 %v30932_v18 }
 0x4af   : > { %v13235_v8 = vsel %vm6710_vm8, %v13232_v35, %v13234_v54  ;;  %v13237_v11 = vsel %vm6710_vm8, %v13234_v54, %v13236_v20  ;;  %v11833_v54 = vsel %vm6155_vm5, %v11828_v9, %v11832_v46 }
 0x4b2   : > { %24754 = vmatmul.mubr.msk.bf16.gmra.mrb[232].mxu0 %vm6294_vm6, %v27405_v57  ;;  %v27681_v57 = vld [vmem:[#allocation2 + $0xb4] sm:$0xff]  }
 0x4b3   : > { %24757 = vmatprep.mubr.msk.bf16.mxu0 %vm6294_vm6, %v27407_v50  ;;  %v11838_v35 = vshll.u32 %v27681_v57, 16  ;;  %v11842_v13 = vshrl.u32 %v27681_v57, 16 }
 0x4b4   : > { %24912 = vmatmul.mubr.msk.bf16.gmra.mrb[104].mxu1 %vm6294_vm6, %v13231_v5 }
 0x4b5   : > { %24915 = vmatprep.mubr.msk.bf16.mxu1 %vm6294_vm6, %v13233_v43 }
 0x4ba   : > { %24758 = vmatmul.mubr.msk.bf16.gmra.mrb[236].mxu0 %vm6294_vm6, %v27408_v6  ;;  %v27682_v6 = vld [vmem:[#allocation2 + $0xbc] sm:$0xff]  }
 0x4bb   : > { %24761 = vmatprep.mubr.msk.bf16.mxu0 %vm6294_vm6, %v27409_v23  ;;  %v11846_v20 = vshll.u32 %v27682_v6, 16  ;;  %v13243_v23 = vsel %vm6710_vm8, %v13240_v26, %v13242_v37  ;;  %v11850_v21 = vshrl.u32 %v27682_v6, 16  ;;  %v31037_v6 = vld [vmem:[#allocation2 + $0x114] sm:$0xf] }
 0x4bc   : > { %24916 = vmatmul.mubr.msk.bf16.gmra.mrb[108].mxu1 %vm6294_vm6, %v13235_v8  ;;  %v13245_v8 = vsel %vm6710_vm8, %v13242_v37, %v13244_v51 }
 0x4bd   : > { %24919 = vmatprep.mubr.msk.bf16.mxu1 %vm6294_vm6, %v13237_v11  ;;  %v11840_v11 = vrot.slane %v11838_v35, 1  ;;  %v13252_v35 = vrot.slane %v30808_v53, 1 }
 0x4bf   : > { %v24501_v30 = vpop.f32.mrb[68].mxu1  ;;  %v11844_v26 = vor.u32 %v11842_v13, %v11840_v11  ;;  %v11841_v22 = vsel %vm6155_vm5, %v11836_v31, %v11840_v11  ;;  %v13503_v31 = vld [vmem:[#allocation2 + $0x110] sm:$0xc] }
 0x4c0   : > { %v9240_v12 = vadd.f32 %v24501_v30, %v30958_v59  ;;  %v9073_v3 = vpop.f32.mrb[69].mxu1  ;;  %v11848_v30 = vrot.slane %v11846_v20, 1 }
 0x4c1   : > { %v9238_v27 = vadd.f32 %v30958_v59, %v9073_v3  ;;  %v24502_v36 = vpop.f32.mrb[70].mxu1 }
 0x4c2   : > { %9272 = vst.msk [vmem:[%s30963_s11 + $0x10] sm:$0xff] %vm6294_vm6, %v9240_v12  ;;  %v9241_v45 = vadd.f32 %v24502_v36, %v30958_v59  ;;  %v9076_v41 = vpop.f32.mrb[71].mxu1  ;;  %24762 = vmatmul.mubr.msk.bf16.gmra.mrb[240].mxu0 %vm6294_vm6, %v27410_v15  ;;  %v13246_v12 = vrot.slane %v30774_v61, 1  ;;  %v11849_v62 = vsel %vm6155_vm5, %v11844_v26, %v11848_v30  ;;  %v11852_v37 = vor.u32 %v11850_v21, %v11848_v30  ;;  %v31059_v26 = vld [vmem:[#allocation2 + $0x118] sm:$0xff]  }
 0x4c3   : > { %9270 = vst.msk [vmem:[%s30963_s11] sm:$0xff] %vm6294_vm6, %v9238_v27  ;;  %v9239_v48 = vadd.f32 %v30958_v59, %v9076_v41  ;;  %24765 = vmatprep.mubr.msk.bf16.mxu0 %vm6294_vm6, %v27411_v7  ;;  %v27683_v27 = vld [vmem:[#allocation2 + $0xc4] sm:$0xff]   ;;  %v31009_v7 = vld [vmem:[#allocation5 + $0x8] sm:$0xff]  }
 0x4c4   : > { %9273 = vst.msk [vmem:[%s30963_s11 + $0x18] sm:$0xff] %vm6294_vm6, %v9241_v45  ;;  %24920 = vmatmul.mubr.msk.bf16.gmra.mrb[112].mxu1 %vm6294_vm6, %v13239_v0  ;;  %v11854_v36 = vshll.u32 %v27683_v27, 16  ;;  %v13247_v52 = vsel %vm6710_vm8, %v13244_v51, %v13246_v12  ;;  %v13249_v46 = vsel %vm6710_vm8, %v13246_v12, %v13248_v28 }
 0x4c5   : > { %9271 = vst.msk [vmem:[%s30963_s11 + $0x8] sm:$0xff] %vm6294_vm6, %v9239_v48  ;;  %24923 = vmatprep.mubr.msk.bf16.mxu1 %vm6294_vm6, %v13241_v39  ;;  %v27684_v48 = vld [vmem:[#allocation2 + $0xcc] sm:$0xff]  }
 0x4c6   : > { %v11862_v0 = vshll.u32 %v27684_v48, 16  ;;  %v11866_v11 = vshrl.u32 %v27684_v48, 16 }
 0x4c7   : > { %v24505_v60 = vpop.f32.mrb[72].mxu1 }
 0x4c8   : > { %v9244_v16 = vadd.f32 %v24505_v60, %v30958_v59  ;;  %v9089_v19 = vpop.f32.mrb[73].mxu1  ;;  %v11856_v60 = vrot.slane %v11854_v36, 1 }
 0x4c9   : > { %v9242_v50 = vadd.f32 %v30958_v59, %v9089_v19  ;;  %v24506_v5 = vpop.f32.mrb[74].mxu1  ;;  %v11864_v19 = vrot.slane %v11862_v0, 1  ;;  %v13254_v0 = vrot.slane %v30826_v2, 1 }
 0x4ca   : > { %9276 = vst.msk [vmem:[%s30963_s11 + $0x30] sm:$0xff] %vm6294_vm6, %v9244_v16  ;;  %v9245_v43 = vadd.f32 %v24506_v5, %v30958_v59  ;;  %v9092_v38 = vpop.f32.mrb[75].mxu1  ;;  %24766 = vmatmul.mubr.msk.bf16.gmra.mrb[244].mxu0 %vm6294_vm6, %v27412_v4  ;;  %v11858_v16 = vshrl.u32 %v27683_v27, 16 }
 0x4cb   : > { %9274 = vst.msk [vmem:[%s30963_s11 + $0x20] sm:$0xff] %vm6294_vm6, %v9242_v50  ;;  %v9243_v44 = vadd.f32 %v30958_v59, %v9092_v38  ;;  %24771 = vmatprep.mubr.msk.bf16.mxu0 %vm6294_vm6, %v11833_v54  ;;  %v27685_v50 = vld [vmem:[#allocation2 + $0xd4] sm:$0xff]   ;;  %v11857_v54 = vsel %vm6155_vm5, %v11852_v37, %v11856_v60  ;;  %v11868_v12 = vor.u32 %v11866_v11, %v11864_v19 }
 0x4cc   : > { %9277 = vst.msk [vmem:[%s30963_s11 + $0x38] sm:$0xff] %vm6294_vm6, %v9245_v43  ;;  %24924 = vmatmul.mubr.msk.bf16.gmra.mrb[116].mxu1 %vm6294_vm6, %v13243_v23  ;;  %v11860_v57 = vor.u32 %v11858_v16, %v11856_v60  ;;  %v11870_v5 = vshll.u32 %v27685_v50, 16  ;;  %v27688_v60 = vld [vmem:[#allocation2 + $0xec] sm:$0xff]   ;;  %v13255_v2 = vsel %vm6710_vm8, %v13252_v35, %v13254_v0 }
 0x4cd   : > { %9275 = vst.msk [vmem:[%s30963_s11 + $0x28] sm:$0xff] %vm6294_vm6, %v9243_v44  ;;  %24927 = vmatprep.mubr.msk.bf16.mxu1 %vm6294_vm6, %v13245_v8  ;;  %v27686_v44 = vld [vmem:[#allocation2 + $0xdc] sm:$0xff]   ;;  %v11894_v37 = vshll.u32 %v27688_v60, 16 }
 0x4ce   : > { %v11865_v53 = vsel %vm6155_vm5, %v11860_v57, %v11864_v19  ;;  %v11878_v23 = vshll.u32 %v27686_v44, 16  ;;  %v11872_v30 = vrot.slane %v11870_v5, 1  ;;  %v11882_v19 = vshrl.u32 %v27686_v44, 16 }
 0x4cf   : > { %v24509_v42 = vpop.f32.mrb[76].mxu1 }
 0x4d0   : > { %v9248_v3 = vadd.f32 %v24509_v42, %v30958_v59  ;;  %v9105_v15 = vpop.f32.mrb[77].mxu1  ;;  %v31054_v42 = vcombine.low %v13503_v31, %v31037_v6  ;;  %v11873_v48 = vsel %vm6155_vm5, %v11868_v12, %v11872_v30 }
 0x4d1   : > { %v9246_v45 = vadd.f32 %v30958_v59, %v9105_v15  ;;  %v24510_v41 = vpop.f32.mrb[78].mxu1  ;;  %v11880_v15 = vrot.slane %v11878_v23, 1 }
 0x4d2   : > { %9280 = vst.msk [vmem:[%s30963_s11 + $0x50] sm:$0xff] %vm6294_vm6, %v9248_v3  ;;  %v9249_v61 = vadd.f32 %v24510_v41, %v30958_v59  ;;  %v9108_v58 = vpop.f32.mrb[79].mxu1  ;;  %24772 = vmatmul.mubr.msk.bf16.vlgmr.msra.gmra.mrb[216].mxu0 %vm6294_vm6, %v11841_v22  ;;  %v11874_v3 = vshrl.u32 %v27685_v50, 16  ;;  %v13621_v41 = vrot.slane %v31054_v42, 2  ;;  %v27687_v22 = vld [vmem:[#allocation2 + $0xe4] sm:$0xff]   ;;  %v11896_v50 = vrot.slane %v11894_v37, 1 }
 0x4d3   : > { %9278 = vst.msk [vmem:[%s30963_s11 + $0x40] sm:$0xff] %vm6294_vm6, %v9246_v45  ;;  %v9247_v39 = vadd.f32 %v30958_v59, %v9108_v58  ;;  %24775 = vmatprep.mubr.msk.bf16.mxu0 %vm6294_vm6, %v11849_v62  ;;  %24804 = vmatpush3.bf16.msra.mxu0 %v30905_v10  ;;  %v13250_v10 = vrot.slane %v30791_v56, 1  ;;  %v11884_v57 = vor.u32 %v11882_v19, %v11880_v15 }
 0x4d4   : > { %9281 = vst.msk [vmem:[%s30963_s11 + $0x58] sm:$0xff] %vm6294_vm6, %v9249_v61  ;;  %24928 = vmatmul.mubr.msk.bf16.gmra.mrb[120].mxu1 %vm6294_vm6, %v13247_v52  ;;  %25143 = vmatprep.subr.bf16.mxu0 %v31009_v7  ;;  %v11876_v45 = vor.u32 %v11874_v3, %v11872_v30  ;;  %v11886_v61 = vshll.u32 %v27687_v22, 16  ;;  %v27690_v30 = vld [vmem:[#allocation2 + $0xfc] sm:$0xff]   ;;  %v31098_v3 = vld [vmem:[#allocation5 + $0x28] sm:$0xff]  }
 0x4d5   : > { %9279 = vst.msk [vmem:[%s30963_s11 + $0x48] sm:$0xff] %vm6294_vm6, %v9247_v39  ;;  %24931 = vmatprep.mubr.msk.bf16.mxu1 %vm6294_vm6, %v13249_v46  ;;  %v13251_v8 = vsel %vm6710_vm8, %v13248_v28, %v13250_v10  ;;  %v13253_v13 = vsel %vm6710_vm8, %v13250_v10, %v13252_v35  ;;  %v13622_v46 = vrot.slane %v31059_v26, 2  ;;  %v11890_v35 = vshrl.u32 %v27687_v22, 16 }
 0x4d6   : > { %v11881_v21 = vsel %vm6155_vm5, %v11876_v45, %v11880_v15  ;;  %v11910_v12 = vshll.u32 %v27690_v30, 16 }
 0x4d7   : > { %v24513_v4 = vpop.f32.mrb[80].mxu1  ;;  %v13623_v10 = vsel %vm394_vm2, %v13621_v41, %v13622_v46 }
 0x4d8   : > { %v9252_v9 = vadd.f32 %v24513_v4, %v30958_v59  ;;  %v9121_v51 = vpop.f32.mrb[81].mxu1  ;;  %v31077_v4 = vld [vmem:[#allocation2 + $0x120] sm:$0xff]  }
 0x4d9   : > { %v9250_v43 = vadd.f32 %v30958_v59, %v9121_v51  ;;  %v24514_v38 = vpop.f32.mrb[82].mxu1  ;;  %v31083_v51 = vld [vmem:[#allocation2 + $0x128] sm:$0xff]  }
 0x4da   : > { %9284 = vst.msk [vmem:[%s30963_s11 + $0x70] sm:$0xff] %vm6294_vm6, %v9252_v9  ;;  %v9253_v56 = vadd.f32 %v24514_v38, %v30958_v59  ;;  %v9124_v20 = vpop.f32.mrb[83].mxu1  ;;  %24776 = vmatmul.mubr.msk.bf16.gmra.mrb[220].mxu0 %vm6294_vm6, %v11857_v54  ;;  %v11888_v9 = vrot.slane %v11886_v61, 1  ;;  %v11912_v61 = vrot.slane %v11910_v12, 1  ;;  %v27697_v12 = vld [vmem:[#allocation2 + $0x114] sm:$0xff]  }
 0x4db   : > { %9282 = vst.msk [vmem:[%s30963_s11 + $0x60] sm:$0xff] %vm6294_vm6, %v9250_v43  ;;  %v9251_v24 = vadd.f32 %v30958_v59, %v9124_v20  ;;  %24779 = vmatprep.mubr.msk.bf16.mxu0 %vm6294_vm6, %v11865_v53  ;;  %v13624_v43 = vrot.slane %v31077_v4, 2  ;;  %v13626_v20 = vrot.slane %v31083_v51, 2  ;;  %v27689_v53 = vld [vmem:[#allocation2 + $0xf4] sm:$0xff]  }
 0x4dc   : > { %9285 = vst.msk [vmem:[%s30963_s11 + $0x78] sm:$0xff] %vm6294_vm6, %v9253_v56  ;;  %24932 = vmatmul.mubr.msk.bf16.gmra.mrb[124].mxu1 %vm6294_vm6, %v13251_v8  ;;  %v11892_v56 = vor.u32 %v11890_v35, %v11888_v9  ;;  %v11902_v44 = vshll.u32 %v27689_v53, 16  ;;  %v11889_v8 = vsel %vm6155_vm5, %v11884_v57, %v11888_v9  ;;  %v11906_v22 = vshrl.u32 %v27689_v53, 16  ;;  %v27694_v57 = vld [vmem:[#allocation2 + $0x10c] sm:$0xff]  }
 0x4dd   : > { %9283 = vst.msk [vmem:[%s30963_s11 + $0x68] sm:$0xff] %vm6294_vm6, %v9251_v24  ;;  %24935 = vmatprep.mubr.msk.bf16.mxu1 %vm6294_vm6, %v13253_v13  ;;  %v11926_v35 = vshll.u32 %v27694_v57, 16 }
 0x4de   : > { %v11897_v13 = vsel %vm6155_vm5, %v11892_v56, %v11896_v50  ;;  %v11904_v45 = vrot.slane %v11902_v44, 1 }
 0x4df   : > { %v24517_v28 = vpop.f32.mrb[84].mxu1  ;;  %v11928_v44 = vrot.slane %v11926_v35, 1 }
 0x4e0   : > { %v9256_v27 = vadd.f32 %v24517_v28, %v30958_v59  ;;  %v9137_v36 = vpop.f32.mrb[85].mxu1  ;;  %v13625_v28 = vsel %vm394_vm2, %v13622_v46, %v13624_v43 }
 0x4e1   : > { %v9254_v58 = vadd.f32 %v30958_v59, %v9137_v36  ;;  %v24518_v62 = vpop.f32.mrb[86].mxu1  ;;  %v13627_v36 = vsel %vm394_vm2, %v13624_v43, %v13626_v20  ;;  %v11914_v43 = vshrl.u32 %v27690_v30, 16 }
 0x4e2   : > { %9288 = vst.msk [vmem:[%s30963_s11 + $0x90] sm:$0xff] %vm6294_vm6, %v9256_v27  ;;  %v9257_v39 = vadd.f32 %v24518_v62, %v30958_v59  ;;  %v9140_v52 = vpop.f32.mrb[87].mxu1  ;;  %24780 = vmatmul.mubr.msk.bf16.gmra.mrb[224].mxu0 %vm6294_vm6, %v11873_v48  ;;  %v11898_v27 = vshrl.u32 %v27688_v60, 16  ;;  %v31114_v62 = vld [vmem:[#allocation2 + $0x130] sm:$0xff]  }
 0x4e3   : > { %9286 = vst.msk [vmem:[%s30963_s11 + $0x80] sm:$0xff] %vm6294_vm6, %v9254_v58  ;;  %v9255_v16 = vadd.f32 %v30958_v59, %v9140_v52  ;;  %24783 = vmatprep.mubr.msk.bf16.mxu0 %vm6294_vm6, %v11881_v21  ;;  %v13628_v48 = vrot.slane %v31114_v62, 2  ;;  %v11908_v52 = vor.u32 %v11906_v22, %v11904_v45  ;;  %v31118_v21 = vld [vmem:[#allocation2 + $0x138] sm:$0xff]   ;;  %v11916_v56 = vor.u32 %v11914_v43, %v11912_v61 }
 0x4e4   : > { %9289 = vst.msk [vmem:[%s30963_s11 + $0x98] sm:$0xff] %vm6294_vm6, %v9257_v39  ;;  %24936 = vmatmul.mubr.msk.bf16.gmra.mrb[128].mxu1 %vm6294_vm6, %v13255_v2  ;;  %v11900_v41 = vor.u32 %v11898_v27, %v11896_v50  ;;  %v13630_v46 = vrot.slane %v31118_v21, 2 }
 0x4e5   : > { %9287 = vst.msk [vmem:[%s30963_s11 + $0x88] sm:$0xff] %vm6294_vm6, %v9255_v16  ;;  %24941 = vmatprep.mubr.msk.bf16.mxu1 %vm6294_vm6, %v13623_v10  ;;  %v11913_v9 = vsel %vm6155_vm5, %v11908_v52, %v11912_v61  ;;  %v27698_v61 = vld [vmem:[#allocation2 + $0x11c] sm:$0xff]  }
 0x4e6   : > { %v11905_v2 = vsel %vm6155_vm5, %v11900_v41, %v11904_v45  ;;  %v11946_v43 = vshrl.u32 %v27698_v61, 16 }
 0x4e7   : > { %v24521_v5 = vpop.f32.mrb[88].mxu1 }
 0x4e8   : > { %v9260_v38 = vadd.f32 %v24521_v5, %v30958_v59  ;;  %v9153_v54 = vpop.f32.mrb[89].mxu1  ;;  %v13629_v5 = vsel %vm394_vm2, %v13626_v20, %v13628_v48  ;;  %v31140_v20 = vld [vmem:[#allocation2 + $0x140] sm:$0xff]  }
 0x4e9   : > { %v9258_v23 = vadd.f32 %v30958_v59, %v9153_v54  ;;  %v24522_v24 = vpop.f32.mrb[90].mxu1 }
 0x4ea   : > { %9292 = vst.msk [vmem:[%s30963_s11 + $0xb0] sm:$0xff] %vm6294_vm6, %v9260_v38  ;;  %v9261_v11 = vadd.f32 %v24522_v24, %v30958_v59  ;;  %v9156_v31 = vpop.f32.mrb[91].mxu1  ;;  %24784 = vmatmul.mubr.msk.bf16.gmra.mrb[228].mxu0 %vm6294_vm6, %v11889_v8  ;;  %v13631_v38 = vsel %vm394_vm2, %v13628_v48, %v13630_v46  ;;  %v13632_v24 = vrot.slane %v31140_v20, 2 }
 0x4eb   : > { %9290 = vst.msk [vmem:[%s30963_s11 + $0xa0] sm:$0xff] %vm6294_vm6, %v9258_v23  ;;  %v9259_v15 = vadd.f32 %v30958_v59, %v9156_v31  ;;  %24787 = vmatprep.mubr.msk.bf16.mxu0 %vm6294_vm6, %v11897_v13  ;;  %v31144_v13 = vld [vmem:[#allocation2 + $0x148] sm:$0xff]  }
 0x4ec   : > { %9293 = vst.msk [vmem:[%s30963_s11 + $0xb8] sm:$0xff] %vm6294_vm6, %v9261_v11  ;;  %24942 = vmatmul.mubr.msk.bf16.vlgmr.msra.gmra.mrb[100].mxu1 %vm6294_vm6, %v13625_v28  ;;  %v13634_v30 = vrot.slane %v31144_v13, 2 }
 0x4ed   : > { %9291 = vst.msk [vmem:[%s30963_s11 + $0xa8] sm:$0xff] %vm6294_vm6, %v9259_v15  ;;  %24945 = vmatprep.mubr.msk.bf16.mxu1 %vm6294_vm6, %v13627_v36  ;;  %24974 = vmatpush3.bf16.msra.mxu1 %v30932_v18  ;;  %v27693_v18 = vld [vmem:[#allocation2 + $0x104] sm:$0xff]   ;;  %v11934_v15 = vshll.u32 %v27697_v12, 16 }
 0x4ee   : > { %25007 = vmatprep.subr.bf16.mxu1 %v31098_v3  ;;  %v11918_v60 = vshll.u32 %v27693_v18, 16  ;;  %v11922_v53 = vshrl.u32 %v27693_v18, 16  ;;  %v13635_v52 = vsel %vm394_vm2, %v13632_v24, %v13634_v30 }
 0x4ef   : > { %v24525_v58 = vpop.f32.mrb[92].mxu1  ;;  %v11936_v18 = vrot.slane %v11934_v15, 1 }
 0x4f0   : > { %v9264_v0 = vadd.f32 %v24525_v58, %v30958_v59  ;;  %v9169_v39 = vpop.f32.mrb[93].mxu1  ;;  %v11920_v54 = vrot.slane %v11918_v60, 1  ;;  %v11942_v58 = vshll.u32 %v27698_v61, 16 }
 0x4f1   : > { %v9262_v37 = vadd.f32 %v30958_v59, %v9169_v39  ;;  %v24526_v16 = vpop.f32.mrb[94].mxu1  ;;  %v11930_v39 = vshrl.u32 %v27694_v57, 16  ;;  %v27701_v57 = vld [vmem:[#allocation2 + $0x124] ss:$0 sps:$4 sm:$0x11]  }
 0x4f2   : > { %9296 = vst.msk [vmem:[%s30963_s11 + $0xd0] sm:$0xff] %vm6294_vm6, %v9264_v0  ;;  %v9265_v19 = vadd.f32 %v24526_v16, %v30958_v59  ;;  %v9172_v10 = vpop.f32.mrb[95].mxu1  ;;  %24788 = vmatmul.mubr.msk.bf16.gmra.mrb[232].mxu0 %vm6294_vm6, %v11905_v2  ;;  %v11924_v31 = vor.u32 %v11922_v53, %v11920_v54  ;;  %v11921_v36 = vsel %vm6155_vm5, %v11916_v56, %v11920_v54  ;;  %v11944_v16 = vrot.slane %v11942_v58, 1  ;;  %v31180_v53 = vld [vmem:[#allocation2 + $0x160] sm:$0xff]  }
 0x4f3   : > { %9294 = vst.msk [vmem:[%s30963_s11 + $0xc0] sm:$0xff] %vm6294_vm6, %v9262_v37  ;;  %v9263_v50 = vadd.f32 %v30958_v59, %v9172_v10  ;;  %24791 = vmatprep.mubr.msk.bf16.mxu0 %vm6294_vm6, %v11913_v9  ;;  %v13633_v0 = vsel %vm394_vm2, %v13630_v46, %v13632_v24  ;;  %v11932_v60 = vor.u32 %v11930_v39, %v11928_v44  ;;  %v11938_v37 = vshrl.u32 %v27697_v12, 16  ;;  %v31194_v12 = vld [vmem:[#allocation2 + $0x170] sm:$0xff]   ;;  %v31210_v58 = vld [vmem:[#allocation2 + $0x180] sm:$0xff]  }
 0x4f4   : > { %9297 = vst.msk [vmem:[%s30963_s11 + $0xd8] sm:$0xff] %vm6294_vm6, %v9265_v19  ;;  %24946 = vmatmul.mubr.msk.bf16.gmra.mrb[104].mxu1 %vm6294_vm6, %v13629_v5  ;;  %v11929_v22 = vsel %vm6155_vm5, %v11924_v31, %v11928_v44  ;;  %v31169_v19 = vld [vmem:[#allocation2 + $0x158] sm:$0xff]   ;;  %v11950_v35 = vshll.u32 %v27701_v57, 16  ;;  %v11948_v54 = vor.u32 %v11946_v43, %v11944_v16  ;;  %v13640_v44 = vrot.slane %v31180_v53, 2  ;;  %v32726_v31 = vld [vmem:[#allocation36_spill] sm:$0xff] }
 0x4f5   : > { %9295 = vst.msk [vmem:[%s30963_s11 + $0xc8] sm:$0xff] %vm6294_vm6, %v9263_v50  ;;  %24949 = vmatprep.mubr.msk.bf16.mxu1 %vm6294_vm6, %v13631_v38  ;;  %v11940_v2 = vor.u32 %v11938_v37, %v11936_v18  ;;  %v13638_v10 = vrot.slane %v31169_v19, 2  ;;  %v11937_v9 = vsel %vm6155_vm5, %v11932_v60, %v11936_v18  ;;  %v13644_v15 = vrot.slane %v31194_v12, 2  ;;  %v32729_v18 = vld [vmem:[#allocation38_spill] sm:$0xff] }
 0x4f6   : > { %v11952_v56 = vrot.slane %v11950_v35, 1  ;;  %v13916_v60 = vshrl.u32 %v31059_v26, 16  ;;  %v13919_v37 = vshll.u32 %v31059_v26, 16  ;;  %v13928_v43 = vshll.u32 %v31077_v4, 16 }
 0x4f7   : > { %v24529_v23 = vpop.f32.mrb[96].mxu1  ;;  %v11945_v50 = vsel %vm6155_vm5, %v11940_v2, %v11944_v16  ;;  %v27449_v2 = vld [vmem:[#allocation2 + $0x190] ss:$0 sps:$4 sm:$0x33]  }
 0x4f8   : > { %v9268_v8 = vadd.f32 %v24529_v23, %v30958_v59  ;;  %v9185_v11 = vpop.f32.mrb[97].mxu1  ;;  %v31183_v23 = vld [vmem:[#allocation2 + $0x168] sm:$0xff]   ;;  %v13921_v35 = vrot.slane %v13919_v37, 3  ;;  %v32734_v37 = vld [vmem:[#allocation43_spill] sm:$0xff] }
 0x4f9   : > { %v9266_v28 = vadd.f32 %v30958_v59, %v9185_v11  ;;  %v24530_v27 = vpop.f32.mrb[98].mxu1  ;;  %v13642_v24 = vrot.slane %v31183_v23, 2  ;;  %v13641_v11 = vsel %vm394_vm2, %v13638_v10, %v13640_v44 }
 0x4fa   : > { %9300 = vst.msk [vmem:[%s30963_s11 + $0xf0] sm:$0xff] %vm6294_vm6, %v9268_v8  ;;  %v9269_v45 = vadd.f32 %v24530_v27, %v30958_v59  ;;  %v9188_v41 = vpop.f32.mrb[99].mxu1  ;;  %24792 = vmatmul.mubr.msk.bf16.gmra.mrb[236].mxu0 %vm6294_vm6, %v11921_v36  ;;  %v11953_v8 = vsel %vm6155_vm5, %v11948_v54, %v11952_v56  ;;  %v31200_v36 = vld [vmem:[#allocation5] sm:$0xff]   ;;  %v13934_v54 = vshrl.u32 %v31083_v51, 16  ;;  %v13937_v56 = vshll.u32 %v31083_v51, 16 }
 0x4fb   : > { %9298 = vst.msk [vmem:[%s30963_s11 + $0xe0] sm:$0xff] %vm6294_vm6, %v9266_v28  ;;  %v9267_v48 = vadd.f32 %v30958_v59, %v9188_v41  ;;  %24795 = vmatprep.mubr.msk.bf16.mxu0 %vm6294_vm6, %v11929_v22  ;;  %v31166_v59 = vld [vmem:[#allocation2 + $0x150] sm:$0xff]   ;;  %v31197_v28 = vld [vmem:[#allocation2 + $0x178] sm:$0xff]   ;;  %v13645_v41 = vsel %vm394_vm2, %v13642_v24, %v13644_v15  ;;  %v32728_v22 = vld [vmem:[#allocation37_spill] sm:$0xff] }
 0x4fc   : > { %9301 = vst.msk [vmem:[%s30963_s11 + $0xf8] sm:$0xff] %vm6294_vm6, %v9269_v45  ;;  %24950 = vmatmul.mubr.msk.bf16.gmra.mrb[108].mxu1 %vm6294_vm6, %v13633_v0  ;;  %v13636_v46 = vrot.slane %v31166_v59, 2  ;;  %v13646_v27 = vrot.slane %v31197_v28, 2  ;;  %v32727_v45 = vld [vmem:[#allocation35_spill] sm:$0xff]  ;;  %v13648_v0 = vrot.slane %v31210_v58, 2 }
 0x4fd   : > { %9299 = vst.msk [vmem:[%s30963_s11 + $0xe8] sm:$0xff] %vm6294_vm6, %v9267_v48  ;;  %24953 = vmatprep.mubr.msk.bf16.mxu1 %vm6294_vm6, %v13635_v52  ;;  %v31212_v48 = vld [vmem:[#allocation2 + $0x188] sm:$0xff]   ;;  %v13908_v52 = vshrl.u32 %v31054_v42, 16 }
 0x4fe   : > { %v13637_v5 = vsel %vm394_vm2, %v13634_v30, %v13636_v46  ;;  %v13639_v38 = vsel %vm394_vm2, %v13636_v46, %v13638_v10  ;;  %v13643_v30 = vsel %vm394_vm2, %v13640_v44, %v13642_v24  ;;  %v13647_v61 = vsel %vm394_vm2, %v13644_v15, %v13646_v27  ;;  %v32730_v46 = vld [vmem:[#allocation39_spill] sm:$0xff]  ;;  %v32731_v44 = vld [vmem:[#allocation40_spill] sm:$0xff] }
 0x4ff   : > { %v13650_v39 = vrot.slane %v31212_v48, 2  ;;  %v13649_v16 = vsel %vm394_vm2, %v13646_v27, %v13648_v0  ;;  %v13936_v27 = vrot.slane %v13934_v54, 2 }
 0x501   : > { %v13651_v10 = vsel %vm394_vm2, %v13648_v0, %v13650_v39 }
 0x502   : > { %24796 = vmatmul.mubr.msk.bf16.gmra.mrb[240].mxu0 %vm6294_vm6, %v11937_v9  ;;  %v13910_v9 = vrot.slane %v13908_v52, 2  ;;  %v13955_v52 = vshll.u32 %v31118_v21, 16 }
 0x503   : > { %24799 = vmatprep.mubr.msk.bf16.mxu0 %vm6294_vm6, %v11945_v50  ;;  %v13652_v50 = vrot.slane %v27449_v2, 2 }
 0x504   : > { %24954 = vmatmul.mubr.msk.bf16.gmra.mrb[112].mxu1 %vm6294_vm6, %v13637_v5  ;;  %v13925_v5 = vshrl.u32 %v31077_v4, 16 }
 0x505   : > { %24957 = vmatprep.mubr.msk.bf16.mxu1 %vm6294_vm6, %v13639_v38 }
 0x50a   : > { %24800 = vmatmul.mubr.msk.bf16.gmra.mrb[244].mxu0 %vm6294_vm6, %v11953_v8  ;;  %v13653_v8 = vsel %vm394_vm2, %v13650_v39, %v13652_v50  ;;  %v13952_v39 = vshrl.u32 %v31118_v21, 16  ;;  %v13973_v50 = vshll.u32 %v31144_v13, 16 }
 0x50b   : > { %24805 = vmatprep.mubr.msk.bf16.mxu0 %vm6294_vm6, %v32726_v31  ;;  %v13927_v31 = vrot.slane %v13925_v5, 2  ;;  %v32735_v5 = vld [vmem:[#allocation44_spill] sm:$0xff] }
 0x50c   : > { %24958 = vmatmul.mubr.msk.bf16.gmra.mrb[116].mxu1 %vm6294_vm6, %v13641_v11  ;;  %v32732_v11 = vld [vmem:[#allocation41_spill] sm:$0xff]  ;;  %v13954_v2 = vrot.slane %v13952_v39, 2 }
 0x50d   : > { %24961 = vmatprep.mubr.msk.bf16.mxu1 %vm6294_vm6, %v13643_v30  ;;  %v13930_v30 = vrot.slane %v13928_v43, 3 }
 0x512   : > { %24806 = vmatmul.mubr.msk.bf16.vlgmr.msra.gmra.mrb[216].mxu0 %vm6294_vm6, %v32727_v45  ;;  %v13939_v45 = vrot.slane %v13937_v56, 3 }
 0x513   : > { %24809 = vmatprep.mubr.msk.bf16.mxu0 %vm6294_vm6, %v32728_v22  ;;  %25144 = vmatpush3.bf16.msra.mxu0 %v31009_v7  ;;  %v13911_v7 = vshll.u32 %v31054_v42, 16  ;;  %v13918_v42 = vrot.slane %v13916_v60, 2  ;;  %v13943_v22 = vshrl.u32 %v31114_v62, 16 }
 0x514   : > { %24962 = vmatmul.mubr.msk.bf16.gmra.mrb[120].mxu1 %vm6294_vm6, %v13645_v41  ;;  %25177 = vmatprep.subr.bf16.mxu0 %v31200_v36  ;;  %v13931_v41 = vor.u32 %v13930_v30, %v13927_v31  ;;  %v13940_v0 = vor.u32 %v13939_v45, %v13936_v27  ;;  %v13988_v30 = vshrl.u32 %v31169_v19, 16  ;;  %v15800_v27 = vld [vmem:[#allocation2 + $0x180] sm:$0xf]  ;;  %v32737_v45 = vld [vmem:[#allocation51_spill] sm:$0xff] }
 0x515   : > { %24965 = vmatprep.mubr.msk.bf16.mxu1 %vm6294_vm6, %v13647_v61  ;;  %v13913_v57 = vrot.slane %v13911_v7, 3  ;;  %v13922_v24 = vor.u32 %v13921_v35, %v13918_v42  ;;  %v13946_v61 = vshll.u32 %v31114_v62, 16  ;;  %v32733_v7 = vld [vmem:[#allocation42_spill] sm:$0xff]  ;;  %v13970_v35 = vshrl.u32 %v31144_v13, 16 }
 0x516   : > { %v13941_v62 = vsel %vm7397_vm9, %v13931_v41, %v13940_v0  ;;  %v13979_v13 = vshrl.u32 %v31166_v59, 16 }
 0x517   : > { %v13914_v38 = vor.u32 %v13913_v57, %v13910_v9  ;;  %v13932_v60 = vsel %vm7397_vm9, %v13922_v24, %v13931_v41  ;;  %v13961_v9 = vshrl.u32 %v31140_v20, 16  ;;  %v13964_v57 = vshll.u32 %v31140_v20, 16 }
 0x518   : > { %v13972_v20 = vrot.slane %v13970_v35, 2 }
 0x519   : > { %v13923_v15 = vsel %vm7397_vm9, %v13914_v38, %v13922_v24  ;;  %v32736_v38 = vld [vmem:[#allocation49_spill] sm:$0xff]  ;;  %v13966_v54 = vrot.slane %v13964_v57, 3  ;;  %v31296_v57 = vld [vmem:[#allocation2 + $0x190] sm:$0xff]  }
 0x51a   : > { %24810 = vmatmul.mubr.msk.bf16.gmra.mrb[220].mxu0 %vm6294_vm6, %v32729_v18  ;;  %v31248_v18 = vld [vmem:[#allocation5 + $0x30] sm:$0xff]  }
 0x51b   : > { %24813 = vmatprep.mubr.msk.bf16.mxu0 %vm6294_vm6, %v32730_v46  ;;  %v13948_v46 = vrot.slane %v13946_v61, 3  ;;  %v32738_v61 = vld [vmem:[#allocation53_spill] sm:$0xff] }
 0x51c   : > { %24966 = vmatmul.mubr.msk.bf16.gmra.mrb[124].mxu1 %vm6294_vm6, %v13649_v16  ;;  %v13945_v16 = vrot.slane %v13943_v22, 2 }
 0x51d   : > { %24969 = vmatprep.mubr.msk.bf16.mxu1 %vm6294_vm6, %v13651_v10  ;;  %v13957_v10 = vrot.slane %v13955_v52, 3  ;;  %v13990_v52 = vrot.slane %v13988_v30, 2 }
 0x51e   : > { %v13949_v21 = vor.u32 %v13948_v46, %v13945_v16  ;;  %v14000_v16 = vshll.u32 %v31180_v53, 16 }
 0x51f   : > { %v13958_v42 = vor.u32 %v13957_v10, %v13954_v2  ;;  %v14009_v2 = vshll.u32 %v31183_v23, 16  ;;  %v31292_v10 = vld [vmem:[#allocation2 + $0x188] sm:$0xff]  }
 0x520   : > { %v13950_v43 = vsel %vm7397_vm9, %v13940_v0, %v13949_v21 }
 0x521   : > { %v13959_v56 = vsel %vm7397_vm9, %v13949_v21, %v13958_v42  ;;  %v32739_v21 = vld [vmem:[#allocation54_spill] sm:$0xff] }
 0x522   : > { %24814 = vmatmul.mubr.msk.bf16.gmra.mrb[224].mxu0 %vm6294_vm6, %v32731_v44  ;;  %v13975_v44 = vrot.slane %v13973_v50, 3 }
 0x523   : > { %24817 = vmatprep.mubr.msk.bf16.mxu0 %vm6294_vm6, %v32732_v11  ;;  %v31272_v11 = vld [vmem:[#allocation2 + $0x184] sm:$0xf] }
 0x524   : > { %24970 = vmatmul.mubr.msk.bf16.gmra.mrb[128].mxu1 %vm6294_vm6, %v13653_v8  ;;  %v13982_v8 = vshll.u32 %v31166_v59, 16  ;;  %v13976_v31 = vor.u32 %v13975_v44, %v13972_v20  ;;  %v31279_v41 = vcombine.low %v15800_v27, %v31272_v11  ;;  %v13981_v59 = vrot.slane %v13979_v13, 2  ;;  %v31316_v27 = vld [vmem:[#allocation2 + $0x1a0] sm:$0xff]  }
 0x525   : > { %24975 = vmatprep.mubr.msk.bf16.mxu1 %vm6294_vm6, %v13923_v15  ;;  %v13991_v15 = vshll.u32 %v31169_v19, 16  ;;  %v14018_v20 = vshll.u32 %v31194_v12, 16  ;;  %v14024_v13 = vshrl.u32 %v31197_v28, 16 }
 0x526   : > { %v13984_v0 = vrot.slane %v13982_v8, 3  ;;  %v15921_v50 = vshrl.u32 %v31279_v41, 16  ;;  %v14027_v8 = vshll.u32 %v31197_v28, 16 }
 0x527   : > { %v13993_v19 = vrot.slane %v13991_v15, 3 }
 0x529   : > { %v13994_v46 = vor.u32 %v13993_v19, %v13990_v52  ;;  %v14033_v19 = vshrl.u32 %v31210_v58, 16 }
 0x52a   : > { %24818 = vmatmul.mubr.msk.bf16.gmra.mrb[228].mxu0 %vm6294_vm6, %v32733_v7  ;;  %v15923_v7 = vshll.u32 %v31279_v41, 16 }
 0x52b   : > { %24821 = vmatprep.mubr.msk.bf16.mxu0 %vm6294_vm6, %v32734_v37  ;;  %v13997_v37 = vshrl.u32 %v31180_v53, 16  ;;  %v14002_v53 = vrot.slane %v14000_v16, 3  ;;  %v14036_v16 = vshll.u32 %v31210_v58, 16 }
 0x52c   : > { %24976 = vmatmul.mubr.msk.bf16.vlgmr.msra.gmra.mrb[100].mxu1 %vm6294_vm6, %v13932_v60  ;;  %v13985_v60 = vor.u32 %v13984_v0, %v13981_v59  ;;  %v14026_v59 = vrot.slane %v14024_v13, 2  ;;  %v14029_v0 = vrot.slane %v14027_v8, 3 }
 0x52d   : > { %24979 = vmatprep.mubr.msk.bf16.mxu1 %vm6294_vm6, %v13941_v62  ;;  %25008 = vmatpush3.bf16.msra.mxu1 %v31098_v3  ;;  %v13963_v3 = vrot.slane %v13961_v9, 2  ;;  %v14006_v62 = vshrl.u32 %v31183_v23, 16  ;;  %v15925_v9 = vrot.slane %v15923_v7, 1  ;;  %v13999_v35 = vrot.slane %v13997_v37, 2 }
 0x52e   : > { %25041 = vmatprep.subr.bf16.mxu1 %v31248_v18  ;;  %v13995_v23 = vsel %vm7397_vm9, %v13985_v60, %v13994_v46  ;;  %v15952_v7 = vshll.u32 %v31316_v27, 16 }
 0x52f   : > { %v13967_v24 = vor.u32 %v13966_v54, %v13963_v3  ;;  %v15926_v3 = vor.u32 %v15925_v9, %v15921_v50  ;;  %v15936_v54 = vshll.u32 %v31296_v57, 16  ;;  %v31331_v9 = vld [vmem:[#allocation2 + $0x1a8] sm:$0xff]  }
 0x530   : > { %v15954_v50 = vrot.slane %v15952_v7, 1  ;;  %v14306_v7 = vld [vmem:[#allocation2 + $0x110] sm:$0x8] }
 0x531   : > { %v13968_v22 = vsel %vm7397_vm9, %v13958_v42, %v13967_v24  ;;  %v13977_v39 = vsel %vm7397_vm9, %v13967_v24, %v13976_v31  ;;  %v13986_v42 = vsel %vm7397_vm9, %v13976_v31, %v13985_v60  ;;  %v31311_v31 = vld [vmem:[#allocation2 + $0x198] sm:$0xff]   ;;  %v15938_v15 = vrot.slane %v15936_v54, 1  ;;  %v31343_v54 = vld [vmem:[#allocation2 + $0x190] ss:$0 sps:$4 sm:$0x77]  }
 0x532   : > { %24822 = vmatmul.mubr.msk.bf16.gmra.mrb[232].mxu0 %vm6294_vm6, %v32735_v5  ;;  %v14008_v5 = vrot.slane %v14006_v62, 2  ;;  %v14030_v62 = vor.u32 %v14029_v0, %v14026_v59 }
 0x533   : > { %24825 = vmatprep.mubr.msk.bf16.mxu0 %vm6294_vm6, %v32736_v38  ;;  %v15928_v38 = vshll.u32 %v31292_v10, 16 }
 0x534   : > { %24980 = vmatmul.mubr.msk.bf16.gmra.mrb[104].mxu1 %vm6294_vm6, %v13950_v43  ;;  %v14011_v43 = vrot.slane %v14009_v2, 3 }
 0x535   : > { %24983 = vmatprep.mubr.msk.bf16.mxu1 %vm6294_vm6, %v13959_v56  ;;  %v14003_v56 = vor.u32 %v14002_v53, %v13999_v35  ;;  %v15930_v24 = vrot.slane %v15928_v38, 1  ;;  %v14038_v38 = vrot.slane %v14036_v16, 3 }
 0x536   : > { %v14012_v44 = vor.u32 %v14011_v43, %v14008_v5  ;;  %v14035_v43 = vrot.slane %v14033_v19, 2 }
 0x537   : > { %v15931_v30 = vsel %vm6155_vm5, %v15926_v3, %v15930_v24 }
 0x538   : > { %v14013_v28 = vsel %vm7397_vm9, %v14003_v56, %v14012_v44 }
 0x53a   : > { %24826 = vmatmul.mubr.msk.bf16.gmra.mrb[236].mxu0 %vm6294_vm6, %v32737_v45  ;;  %v14004_v45 = vsel %vm7397_vm9, %v13994_v46, %v14003_v56  ;;  %v14042_v46 = vshrl.u32 %v31212_v48, 16 }
 0x53b   : > { %24829 = vmatprep.mubr.msk.bf16.mxu0 %vm6294_vm6, %v32738_v61  ;;  %v15940_v61 = vshrl.u32 %v31296_v57, 16 }
 0x53c   : > { %24984 = vmatmul.mubr.msk.bf16.gmra.mrb[108].mxu1 %vm6294_vm6, %v13968_v22  ;;  %v14020_v22 = vrot.slane %v14018_v20, 3  ;;  %v14044_v3 = vrot.slane %v14042_v46, 2  ;;  %v15956_v20 = vshrl.u32 %v31316_v27, 16 }
 0x53d   : > { %24987 = vmatprep.mubr.msk.bf16.mxu1 %vm6294_vm6, %v13977_v39  ;;  %v15932_v39 = vshrl.u32 %v31292_v10, 16  ;;  %v15942_v52 = vor.u32 %v15940_v61, %v15938_v15  ;;  %v31355_v61 = vld [vmem:[#allocation2 + $0x1b8] sm:$0xff]  }
 0x53e   : > { %v15976_v46 = vshll.u32 %v31355_v61, 16 }
 0x53f   : > { %v15934_v60 = vor.u32 %v15932_v39, %v15930_v24  ;;  %v15960_v24 = vshll.u32 %v31331_v9, 16 }
 0x541   : > { %v15939_v35 = vsel %vm6155_vm5, %v15934_v60, %v15938_v15  ;;  %v14054_v15 = vshll.u32 %v31343_v54, 16 }
 0x542   : > { %24830 = vmatmul.mubr.msk.bf16.gmra.mrb[240].mxu0 %vm6294_vm6, %v32739_v21  ;;  %v14045_v21 = vshll.u32 %v31212_v48, 16 }
 0x543   : > { %24833 = vmatprep.mubr.msk.bf16.mxu0 %vm6294_vm6, %v29876_v40  ;;  %v14015_v40 = vshrl.u32 %v31194_v12, 16  ;;  %v14056_v19 = vrot.slane %v14054_v15, 3  ;;  %v14315_v15 = vrot.slane %v31077_v4, 3 }
 0x544   : > { %24988 = vmatmul.mubr.msk.bf16.gmra.mrb[112].mxu1 %vm6294_vm6, %v13986_v42  ;;  %v31333_v42 = vld [vmem:[#allocation5 + $0x10] sm:$0xff]  }
 0x545   : > { %24991 = vmatprep.mubr.msk.bf16.mxu1 %vm6294_vm6, %v13995_v23  ;;  %v14017_v12 = vrot.slane %v14015_v40, 2  ;;  %v31338_v23 = vld [vmem:[#allocation2 + $0x1b0] sm:$0xff]   ;;  %v14047_v40 = vrot.slane %v14045_v21, 3 }
 0x546   : > { %v15968_v13 = vshll.u32 %v31338_v23, 16  ;;  %v15972_v16 = vshrl.u32 %v31338_v23, 16 }
 0x547   : > { %v14021_v37 = vor.u32 %v14020_v22, %v14017_v12  ;;  %v14048_v12 = vor.u32 %v14047_v40, %v14044_v3  ;;  %v15962_v22 = vrot.slane %v15960_v24, 1  ;;  %v31378_v40 = vld [vmem:[#allocation2 + $0x1d0] sm:$0xff]  }
 0x548   : > { %v15970_v0 = vrot.slane %v15968_v13, 1 }
 0x549   : > { %v14022_v5 = vsel %vm7397_vm9, %v14012_v44, %v14021_v37  ;;  %v14031_v56 = vsel %vm7397_vm9, %v14021_v37, %v14030_v62  ;;  %v15958_v44 = vor.u32 %v15956_v20, %v15954_v50  ;;  %v22115_v37 = vcombine.low %v14306_v7, %v31037_v6 }
 0x54a   : > { %24834 = vmatmul.mubr.msk.bf16.gmra.mrb[244].mxu0 %vm6294_vm6, %v29883_v32  ;;  %v15944_v32 = vshll.u32 %v31311_v31, 16  ;;  %v14313_v6 = vrot.slane %v31059_v26, 3  ;;  %v15980_v26 = vshrl.u32 %v31355_v61, 16 }
 0x54b   : > { %25145 = vmatprep.mubr.msk.bf16.mxu0 %vm6294_vm6, %v15931_v30  ;;  %v14051_v30 = vshrl.u32 %v31343_v54, 16  ;;  %v15963_v59 = vsel %vm6155_vm5, %v15958_v44, %v15962_v22 }
 0x54c   : > { %24992 = vmatmul.mubr.msk.bf16.gmra.mrb[116].mxu1 %vm6294_vm6, %v14004_v45  ;;  %v15946_v2 = vrot.slane %v15944_v32, 1  ;;  %v14039_v45 = vor.u32 %v14038_v38, %v14035_v43  ;;  %v31360_v32 = vld [vmem:[#allocation2 + $0x1c0] sm:$0xff]   ;;  %v31372_v43 = vld [vmem:[#allocation2 + $0x1c8] sm:$0xff]  }
 0x54d   : > { %24995 = vmatprep.mubr.msk.bf16.mxu1 %vm6294_vm6, %v14013_v28  ;;  %v15984_v21 = vshll.u32 %v31360_v32, 16  ;;  %v15992_v44 = vshll.u32 %v31372_v43, 16 }
 0x54e   : > { %v15947_v53 = vsel %vm6155_vm5, %v15942_v52, %v15946_v2  ;;  %v14040_v39 = vsel %vm7397_vm9, %v14030_v62, %v14039_v45  ;;  %v14053_v52 = vrot.slane %v14051_v30, 2  ;;  %v14049_v60 = vsel %vm7397_vm9, %v14039_v45, %v14048_v12 }
 0x54f   : > { %v15974_v62 = vor.u32 %v15972_v16, %v15970_v0  ;;  %v14317_v45 = vrot.slane %v31083_v51, 3  ;;  %v16004_v51 = vshrl.u32 %v31378_v40, 16 }
 0x551   : > { %v14318_v4 = vsel %vm483_vm1, %v14315_v15, %v14317_v45 }
 0x552   : > { %25146 = vmatmul.mubr.msk.bf16.vlgmr.msra.gmra.mrb[248].mxu0 %vm6294_vm6, %v15939_v35 }
 0x553   : > { %25149 = vmatprep.mubr.msk.bf16.mxu0 %vm6294_vm6, %v15947_v53  ;;  %25178 = vmatpush3.bf16.msra.mxu0 %v31200_v36  ;;  %v15948_v36 = vshrl.u32 %v31311_v31, 16  ;;  %v14057_v53 = vor.u32 %v14056_v19, %v14053_v52  ;;  %v31398_v52 = vld [vmem:[#allocation5 + $0x38] sm:$0xff]   ;;  %v14316_v19 = vsel %vm483_vm1, %v14313_v6, %v14315_v15 }
 0x554   : > { %24996 = vmatmul.mubr.msk.bf16.gmra.mrb[120].mxu1 %vm6294_vm6, %v14022_v5  ;;  %25211 = vmatprep.subr.bf16.mxu0 %v31333_v42  ;;  %v15978_v5 = vrot.slane %v15976_v46, 1 }
 0x555   : > { %24999 = vmatprep.mubr.msk.bf16.mxu1 %vm6294_vm6, %v14031_v56  ;;  %v15950_v8 = vor.u32 %v15948_v36, %v15946_v2  ;;  %v15964_v2 = vshrl.u32 %v31331_v9, 16  ;;  %v15986_v56 = vrot.slane %v15984_v21, 1  ;;  %v14058_v20 = vsel %vm7397_vm9, %v14048_v12, %v14057_v53 }
 0x556   : > { %v15979_v3 = vsel %vm6155_vm5, %v15974_v62, %v15978_v5  ;;  %v15988_v36 = vshrl.u32 %v31360_v32, 16  ;;  %v15982_v30 = vor.u32 %v15980_v26, %v15978_v5  ;;  %v15994_v12 = vrot.slane %v15992_v44, 1  ;;  %v31411_v62 = vld [vmem:[#allocation2 + $0x1e8] sm:$0xff]   ;;  %v31429_v44 = vld [vmem:[#allocation2 + $0x1f8] sm:$0xff]  }
 0x557   : > { %v15955_v28 = vsel %vm6155_vm5, %v15950_v8, %v15954_v50  ;;  %v15966_v35 = vor.u32 %v15964_v2, %v15962_v22  ;;  %v14312_v50 = vrot.slane %v22115_v37, 3  ;;  %v16000_v8 = vshll.u32 %v31378_v40, 16  ;;  %v31391_v22 = vld [vmem:[#allocation2 + $0x1d8] sm:$0xff]  }
 0x558   : > { %v15990_v13 = vor.u32 %v15988_v36, %v15986_v56  ;;  %v16008_v7 = vshll.u32 %v31391_v22, 16 }
 0x559   : > { %v15971_v38 = vsel %vm6155_vm5, %v15966_v35, %v15970_v0  ;;  %v14314_v24 = vsel %vm483_vm1, %v14312_v50, %v14313_v6  ;;  %v16002_v0 = vrot.slane %v16000_v8, 1  ;;  %v31416_v50 = vld [vmem:[#allocation2 + $0x1f0] sm:$0xff]   ;;  %v16024_v6 = vshll.u32 %v31411_v62, 16 }
 0x55a   : > { %25150 = vmatmul.mubr.msk.bf16.gmra.mrb[252].mxu0 %vm6294_vm6, %v15955_v28  ;;  %v15987_v28 = vsel %vm6155_vm5, %v15982_v30, %v15986_v56  ;;  %v16010_v2 = vrot.slane %v16008_v7, 1  ;;  %v16012_v56 = vshrl.u32 %v31391_v22, 16  ;;  %v32742_v30 = vld [vmem:[#allocation11_spill] sm:$0xff]  ;;  %v16036_v15 = vshrl.u32 %v31416_v50, 16 }
 0x55b   : > { %25153 = vmatprep.mubr.msk.bf16.mxu0 %vm6294_vm6, %v15963_v59  ;;  %v15995_v59 = vsel %vm6155_vm5, %v15990_v13, %v15994_v12  ;;  %v16006_v37 = vor.u32 %v16004_v51, %v16002_v0 }
 0x55c   : > { %25000 = vmatmul.mubr.msk.bf16.gmra.mrb[124].mxu1 %vm6294_vm6, %v14040_v39  ;;  %v31396_v39 = vld [vmem:[#allocation2 + $0x1e0] sm:$0xff]   ;;  %v16014_v36 = vor.u32 %v16012_v56, %v16010_v2  ;;  %v32750_v56 = vld [vmem:[#allocation13_spill] sm:$0xff] }
 0x55d   : > { %25003 = vmatprep.mubr.msk.bf16.mxu1 %vm6294_vm6, %v14049_v60  ;;  %v15996_v60 = vshrl.u32 %v31372_v43, 16  ;;  %v16016_v16 = vshll.u32 %v31396_v39, 16  ;;  %v16011_v35 = vsel %vm6155_vm5, %v16006_v37, %v16010_v2  ;;  %v32744_v37 = vld [vmem:[#allocation55_spill] sm:$0xff] }
 0x55f   : > { %v15998_v46 = vor.u32 %v15996_v60, %v15994_v12  ;;  %v16018_v53 = vrot.slane %v16016_v16, 1  ;;  %v32743_v12 = vld [vmem:[#allocation12_spill] sm:$0xff] }
 0x560   : > { %v32745_v16 = vld [vmem:[#allocation56_spill] sm:$0xff] }
 0x561   : > { %v16003_v21 = vsel %vm6155_vm5, %v15998_v46, %v16002_v0  ;;  %v16019_v26 = vsel %vm6155_vm5, %v16014_v36, %v16018_v53  ;;  %v16044_v46 = vshrl.u32 %v31429_v44, 16  ;;  %v27472_v36 = vld [vmem:[#allocation2 + $0x124] sm:$0xff]  }
 0x562   : > { %25154 = vmatmul.mubr.msk.bf16.gmra.mrb[0].mxu0 %vm6294_vm6, %v15971_v38  ;;  %v16020_v38 = vshrl.u32 %v31396_v39, 16 }
 0x563   : > { %25157 = vmatprep.mubr.msk.bf16.mxu0 %vm6294_vm6, %v15979_v3  ;;  %v32741_v3 = vld [vmem:[#allocation10_spill] sm:$0xff] }
 0x564   : > { %25004 = vmatmul.mubr.msk.bf16.gmra.mrb[128].mxu1 %vm6294_vm6, %v14058_v20  ;;  %v16022_v20 = vor.u32 %v16020_v38, %v16018_v53  ;;  %v32746_v53 = vld [vmem:[#allocation14_spill] sm:$0xff]  ;;  %v32748_v38 = vld [vmem:[#allocation57_spill] sm:$0xff] }
 0x565   : > { %25009 = vmatprep.mubr.msk.bf16.mxu1 %vm6294_vm6, %v14314_v24  ;;  %v16032_v24 = vshll.u32 %v31416_v50, 16 }
 0x567   : > { %v16034_v8 = vrot.slane %v16032_v24, 1 }
 0x569   : > { %v16038_v0 = vor.u32 %v16036_v15, %v16034_v8  ;;  %v27479_v15 = vld [vmem:[#allocation2 + $0x154] sm:$0xff]  }
 0x56a   : > { %25158 = vmatmul.mubr.msk.bf16.gmra.mrb[4].mxu0 %vm6294_vm6, %v15987_v28  ;;  %v16028_v28 = vshrl.u32 %v31411_v62, 16 }
 0x56b   : > { %25161 = vmatprep.mubr.msk.bf16.mxu0 %vm6294_vm6, %v15995_v59  ;;  %v31442_v59 = vld [vmem:[#allocation2 + $0x200] ss:$0 sps:$4 sm:$0x11]  }
 0x56c   : > { %25010 = vmatmul.mubr.msk.bf16.vlgmr.msra.gmra.mrb[100].mxu1 %vm6294_vm6, %v14316_v19  ;;  %v16048_v7 = vshll.u32 %v31442_v59, 16 }
 0x56d   : > { %25013 = vmatprep.mubr.msk.bf16.mxu1 %vm6294_vm6, %v14318_v4  ;;  %25042 = vmatpush3.bf16.msra.mxu1 %v31248_v18  ;;  %v32740_v18 = vrot.slane %v29986_v29, 3  ;;  %v16026_v29 = vrot.slane %v16024_v6, 1  ;;  %v14339_v6 = vrot.slane %v31210_v58, 3  ;;  %v14343_v58 = vrot.slane %v31343_v54, 3  ;;  %v27474_v54 = vld [vmem:[#allocation2 + $0x134] sm:$0xff]  }
 0x56e   : > { %25075 = vmatprep.subr.bf16.mxu1 %v31398_v52  ;;  %v16050_v2 = vrot.slane %v16048_v7, 1  ;;  %v27483_v7 = vld [vmem:[#allocation2 + $0x174] sm:$0xff]  }
 0x56f   : > { %v14320_v5 = vsel %vm483_vm1, %v14317_v45, %v32740_v18  ;;  %v16027_v13 = vsel %vm6155_vm5, %v16022_v20, %v16026_v29  ;;  %v16040_v45 = vshll.u32 %v31429_v44, 16  ;;  %v16030_v19 = vor.u32 %v16028_v28, %v16026_v29  ;;  %v32747_v18 = vld [vmem:[#allocation15_spill] sm:$0xff]  ;;  %v27473_v29 = vld [vmem:[#allocation2 + $0x12c] sm:$0xff]   ;;  %v27481_v28 = vld [vmem:[#allocation2 + $0x164] sm:$0xff]  }
 0x570   : > { %v32751_v20 = vrot.slane %v32750_v56, 3 }
 0x571   : > { %v16042_v4 = vrot.slane %v16040_v45, 1  ;;  %v16035_v51 = vsel %vm6155_vm5, %v16030_v19, %v16034_v8  ;;  %v27477_v8 = vld [vmem:[#allocation2 + $0x144] sm:$0xff]   ;;  %v27480_v45 = vld [vmem:[#allocation2 + $0x15c] sm:$0xff]   ;;  %v16473_v19 = vrot.slane %v31292_v10, 1 }
 0x572   : > { %25162 = vmatmul.mubr.msk.bf16.gmra.mrb[8].mxu0 %vm6294_vm6, %v16003_v21  ;;  %v14340_v24 = vsel %vm483_vm1, %v32751_v20, %v14339_v6  ;;  %v16485_v20 = vrot.slane %v31355_v61, 1 }
 0x573   : > { %25165 = vmatprep.mubr.msk.bf16.mxu0 %vm6294_vm6, %v16011_v35  ;;  %v16043_v60 = vsel %vm6155_vm5, %v16038_v0, %v16042_v4  ;;  %v16046_v21 = vor.u32 %v16044_v46, %v16042_v4  ;;  %v27482_v4 = vld [vmem:[#allocation2 + $0x16c] sm:$0xff]  }
 0x574   : > { %25014 = vmatmul.mubr.msk.bf16.gmra.mrb[104].mxu1 %vm6294_vm6, %v14320_v5  ;;  %v31462_v5 = vld [vmem:[#allocation5 + $0x18] sm:$0xff]  }
 0x575   : > { %25017 = vmatprep.mubr.msk.bf16.mxu1 %vm6294_vm6, %v32741_v3  ;;  %v16051_v35 = vsel %vm6155_vm5, %v16046_v21, %v16050_v2  ;;  %v14341_v3 = vrot.slane %v31212_v48, 3  ;;  %v27487_v2 = vld [vmem:[#allocation2 + $0x184] sm:$0xff]  }
 0x576   : > { %v14953_v21 = vld [vmem:[#allocation2 + $0x124] sm:$0xf] }
 0x577   : > { %v14344_v48 = vsel %vm483_vm1, %v14341_v3, %v14343_v58 }
 0x57a   : > { %25166 = vmatmul.mubr.msk.bf16.gmra.mrb[12].mxu0 %vm6294_vm6, %v16019_v26  ;;  %v31496_v26 = vld [vmem:[#allocation5 + $0x40] sm:$0xff]  }
 0x57b   : > { %25169 = vmatprep.mubr.msk.bf16.mxu0 %vm6294_vm6, %v16027_v13  ;;  %v27475_v13 = vld [vmem:[#allocation2 + $0x13c] sm:$0xff]  }
 0x57c   : > { %25018 = vmatmul.mubr.msk.bf16.gmra.mrb[108].mxu1 %vm6294_vm6, %v32742_v30  ;;  %v27478_v30 = vld [vmem:[#allocation2 + $0x14c] sm:$0xff]  }
 0x57d   : > { %25021 = vmatprep.mubr.msk.bf16.mxu1 %vm6294_vm6, %v32743_v12 }
 0x582   : > { %25170 = vmatmul.mubr.msk.bf16.gmra.mrb[16].mxu0 %vm6294_vm6, %v16035_v51 }
 0x583   : > { %25173 = vmatprep.mubr.msk.bf16.mxu0 %vm6294_vm6, %v16043_v60  ;;  %v16477_v60 = vrot.slane %v31311_v31, 1 }
 0x584   : > { %25022 = vmatmul.mubr.msk.bf16.gmra.mrb[112].mxu1 %vm6294_vm6, %v32744_v37  ;;  %v31532_v37 = vld [vmem:[#allocation5 + $0x20] sm:$0xff]  }
 0x585   : > { %25025 = vmatprep.mubr.msk.bf16.mxu1 %vm6294_vm6, %v32745_v16  ;;  %v27485_v16 = vld [vmem:[#allocation2 + $0x17c] sm:$0xff]  }
 0x58a   : > { %25174 = vmatmul.mubr.msk.bf16.gmra.mrb[20].mxu0 %vm6294_vm6, %v16051_v35  ;;  %v27706_v35 = vld [vmem:[#allocation2 + $0x128] sm:$0xf] }
 0x58b   : > { %25179 = vmatprep.mubr.msk.bf16.mxu0 %vm6294_vm6, %v31279_v41  ;;  %v32749_v41 = vld [vmem:[#allocation58_spill] sm:$0xff] }
 0x58c   : > { %25026 = vmatmul.mubr.msk.bf16.gmra.mrb[116].mxu1 %vm6294_vm6, %v32746_v53  ;;  %v22166_v53 = vcombine.low %v14953_v21, %v27706_v35  ;;  %v27711_v21 = vld [vmem:[#allocation2 + $0x144] sm:$0xff]  }
 0x58d   : > { %25029 = vmatprep.mubr.msk.bf16.mxu1 %vm6294_vm6, %v32747_v18 }
 0x592   : > { %25180 = vmatmul.mubr.msk.bf16.vlgmr.msra.gmra.mrb[248].mxu0 %vm6294_vm6, %v31292_v10 }
 0x593   : > { %25183 = vmatprep.mubr.msk.bf16.mxu0 %vm6294_vm6, %v31296_v57  ;;  %25212 = vmatpush3.bf16.msra.mxu0 %v31333_v42  ;;  %v14342_v42 = vsel %vm483_vm1, %v14339_v6, %v14341_v3  ;;  %v27489_v6 = vld [vmem:[#allocation2 + $0x194] sm:$0xff]   ;;  %v27707_v3 = vld [vmem:[#allocation2 + $0x12c] sm:$0xff]  }
 0x594   : > { %25030 = vmatmul.mubr.msk.bf16.gmra.mrb[120].mxu1 %vm6294_vm6, %v32748_v38  ;;  %25245 = vmatprep.subr.bf16.mxu0 %v31462_v5  ;;  %v27488_v38 = vld [vmem:[#allocation2 + $0x18c] sm:$0xff]   ;;  %v15079_v56 = vshll.u32 %v27707_v3, 16 }
 0x595   : > { %25033 = vmatprep.mubr.msk.bf16.mxu1 %vm6294_vm6, %v32749_v41  ;;  %v15074_v41 = vshll.u32 %v22166_v53, 16 }
 0x59a   : > { %25184 = vmatmul.mubr.msk.bf16.gmra.mrb[252].mxu0 %vm6294_vm6, %v31311_v31  ;;  %v16481_v31 = vrot.slane %v31331_v9, 1 }
 0x59b   : > { %25187 = vmatprep.mubr.msk.bf16.mxu0 %vm6294_vm6, %v31316_v27 }
 0x59c   : > { %25034 = vmatmul.mubr.msk.bf16.gmra.mrb[124].mxu1 %vm6294_vm6, %v14340_v24  ;;  %v15072_v24 = vshrl.u32 %v22166_v53, 16 }
 0x59d   : > { %25037 = vmatprep.mubr.msk.bf16.mxu1 %vm6294_vm6, %v14342_v42  ;;  %v15081_v42 = vrot.slane %v15079_v56, 1 }
 0x5a2   : > { %25188 = vmatmul.mubr.msk.bf16.gmra.mrb[0].mxu0 %vm6294_vm6, %v31331_v9  ;;  %v15076_v9 = vrot.slane %v15074_v41, 1 }
 0x5a3   : > { %25191 = vmatprep.mubr.msk.bf16.mxu0 %vm6294_vm6, %v31338_v23 }
 0x5a4   : > { %25038 = vmatmul.mubr.msk.bf16.gmra.mrb[128].mxu1 %vm6294_vm6, %v14344_v48  ;;  %v27490_v48 = vld [vmem:[#allocation2 + $0x19c] sm:$0xff]  }
 0x5a5   : > { %25043 = vmatprep.mubr.msk.bf16.mxu1 %vm6294_vm6, %v27472_v36  ;;  %v15077_v36 = vor.u32 %v15076_v9, %v15072_v24  ;;  %v16493_v9 = vrot.slane %v31391_v22, 1 }
 0x5aa   : > { %25192 = vmatmul.mubr.msk.bf16.gmra.mrb[4].mxu0 %vm6294_vm6, %v31355_v61  ;;  %v27709_v61 = vld [vmem:[#allocation2 + $0x13c] sm:$0xff]  }
 0x5ab   : > { %25195 = vmatprep.mubr.msk.bf16.mxu0 %vm6294_vm6, %v31360_v32 }
 0x5ac   : > { %25044 = vmatmul.mubr.msk.bf16.vlgmr.msra.gmra.mrb[100].mxu1 %vm6294_vm6, %v27473_v29 }
 0x5ad   : > { %25047 = vmatprep.mubr.msk.bf16.mxu1 %vm6294_vm6, %v27474_v54  ;;  %25076 = vmatpush3.bf16.msra.mxu1 %v31398_v52  ;;  %v16466_v52 = vld [vmem:[#allocation2 + $0x180] sm:$0xe]  ;;  %v27708_v54 = vld [vmem:[#allocation2 + $0x134] sm:$0xff]  }
 0x5ae   : > { %25109 = vmatprep.subr.bf16.mxu1 %v31496_v26  ;;  %v22269_v12 = vcombine.low %v16466_v52, %v31272_v11  ;;  %v16475_v11 = vrot.slane %v31296_v57, 1  ;;  %v16479_v57 = vrot.slane %v31316_v27, 1  ;;  %v16483_v27 = vrot.slane %v31338_v23, 1 }
 0x5af   : > { %v15082_v23 = vsel %vm6155_vm5, %v15077_v36, %v15081_v42 }
 0x5b0   : > { %v16472_v0 = vrot.slane %v22269_v12, 1  ;;  %v16476_v10 = vsel %vm6710_vm8, %v16473_v19, %v16475_v11  ;;  %v16478_v46 = vsel %vm6710_vm8, %v16475_v11, %v16477_v60  ;;  %v16480_v18 = vsel %vm6710_vm8, %v16477_v60, %v16479_v57 }
 0x5b1   : > { %v16484_v58 = vsel %vm6710_vm8, %v16481_v31, %v16483_v27  ;;  %v16486_v29 = vsel %vm6710_vm8, %v16483_v27, %v16485_v20  ;;  %v15091_v60 = vshrl.u32 %v27708_v54, 16 }
 0x5b2   : > { %25196 = vmatmul.mubr.msk.bf16.gmra.mrb[8].mxu0 %vm6294_vm6, %v31372_v43  ;;  %v16474_v51 = vsel %vm6710_vm8, %v16472_v0, %v16473_v19  ;;  %v16489_v19 = vrot.slane %v31372_v43, 1 }
 0x5b3   : > { %25199 = vmatprep.mubr.msk.bf16.mxu0 %vm6294_vm6, %v31378_v40 }
 0x5b4   : > { %25048 = vmatmul.mubr.msk.bf16.gmra.mrb[104].mxu1 %vm6294_vm6, %v27475_v13  ;;  %v15087_v13 = vshll.u32 %v27708_v54, 16 }
 0x5b5   : > { %25051 = vmatprep.mubr.msk.bf16.mxu1 %vm6294_vm6, %v27477_v8  ;;  %v15095_v8 = vshll.u32 %v27709_v61, 16 }
 0x5b6   : > { %v15089_v0 = vrot.slane %v15087_v13, 1  ;;  %v27713_v13 = vld [vmem:[#allocation2 + $0x154] sm:$0xff]  }
 0x5b8   : > { %v15093_v43 = vor.u32 %v15091_v60, %v15089_v0 }
 0x5ba   : > { %25200 = vmatmul.mubr.msk.bf16.gmra.mrb[12].mxu0 %vm6294_vm6, %v31391_v22 }
 0x5bb   : > { %25203 = vmatprep.mubr.msk.bf16.mxu0 %vm6294_vm6, %v31396_v39 }
 0x5bc   : > { %25052 = vmatmul.mubr.msk.bf16.gmra.mrb[108].mxu1 %vm6294_vm6, %v27478_v30  ;;  %v15083_v30 = vshrl.u32 %v27707_v3, 16 }
 0x5bd   : > { %25055 = vmatprep.mubr.msk.bf16.mxu1 %vm6294_vm6, %v27479_v15  ;;  %v16487_v15 = vrot.slane %v31360_v32, 1 }
 0x5c2   : > { %25204 = vmatmul.mubr.msk.bf16.gmra.mrb[16].mxu0 %vm6294_vm6, %v31411_v62 }
 0x5c3   : > { %25207 = vmatprep.mubr.msk.bf16.mxu0 %vm6294_vm6, %v31416_v50 }
 0x5c4   : > { %25056 = vmatmul.mubr.msk.bf16.gmra.mrb[112].mxu1 %vm6294_vm6, %v27480_v45  ;;  %v31560_v45 = vld [vmem:[#allocation7] ss:$0 sm:$0xff] }
 0x5c5   : > { %25059 = vmatprep.mubr.msk.bf16.mxu1 %vm6294_vm6, %v27481_v28 }
 0x5ca   : > { %25208 = vmatmul.mubr.msk.bf16.gmra.mrb[20].mxu0 %vm6294_vm6, %v31429_v44 }
 0x5cb   : > { %25213 = vmatprep.mubr.msk.bf16.mxu0 %vm6294_vm6, %v16474_v51 }
 0x5cc   : > { %25060 = vmatmul.mubr.msk.bf16.gmra.mrb[116].mxu1 %vm6294_vm6, %v27482_v4  ;;  %v15085_v4 = vor.u32 %v15083_v30, %v15081_v42  ;;  %v27714_v30 = vld [vmem:[#allocation2 + $0x15c] sm:$0xff]  }
 0x5cd   : > { %25063 = vmatprep.mubr.msk.bf16.mxu1 %vm6294_vm6, %v27483_v7 }
 0x5ce   : > { %v15090_v35 = vsel %vm6155_vm5, %v15085_v4, %v15089_v0 }
 0x5d2   : > { %25214 = vmatmul.mubr.msk.bf16.vlgmr.msra.gmra.mrb[248].mxu0 %vm6294_vm6, %v16476_v10  ;;  %v15097_v10 = vrot.slane %v15095_v8, 1 }
 0x5d3   : > { %25217 = vmatprep.mubr.msk.bf16.mxu0 %vm6294_vm6, %v16478_v46  ;;  %25246 = vmatpush3.bf16.msra.mxu0 %v31462_v5  ;;  %v16482_v5 = vsel %vm6710_vm8, %v16479_v57, %v16481_v31  ;;  %v15103_v57 = vshll.u32 %v27711_v21, 16  ;;  %v31576_v31 = vld [vmem:[#allocation5 + $0x8] sm:$0xff]  }
 0x5d4   : > { %25064 = vmatmul.mubr.msk.bf16.gmra.mrb[120].mxu1 %vm6294_vm6, %v27485_v16  ;;  %25279 = vmatprep.subr.bf16.mxu0 %v31532_v37  ;;  %v16488_v16 = vsel %vm6710_vm8, %v16485_v20, %v16487_v15  ;;  %v15098_v53 = vsel %vm6155_vm5, %v15093_v43, %v15097_v10 }
 0x5d5   : > { %25067 = vmatprep.mubr.msk.bf16.mxu1 %vm6294_vm6, %v27487_v2  ;;  %v16490_v2 = vsel %vm6710_vm8, %v16487_v15, %v16489_v19  ;;  %v15105_v27 = vrot.slane %v15103_v57, 1  ;;  %v15127_v15 = vshll.u32 %v27714_v30, 16 }
 0x5da   : > { %25218 = vmatmul.mubr.msk.bf16.gmra.mrb[252].mxu0 %vm6294_vm6, %v16480_v18  ;;  %v27712_v18 = vld [vmem:[#allocation2 + $0x14c] sm:$0xff]  }
 0x5db   : > { %25221 = vmatprep.mubr.msk.bf16.mxu0 %vm6294_vm6, %v16482_v5  ;;  %v16491_v5 = vrot.slane %v31378_v40, 1 }
 0x5dc   : > { %25068 = vmatmul.mubr.msk.bf16.gmra.mrb[124].mxu1 %vm6294_vm6, %v27488_v38  ;;  %v15111_v38 = vshll.u32 %v27712_v18, 16 }
 0x5dd   : > { %25071 = vmatprep.mubr.msk.bf16.mxu1 %vm6294_vm6, %v27489_v6  ;;  %v15099_v6 = vshrl.u32 %v27709_v61, 16  ;;  %v16492_v36 = vsel %vm6710_vm8, %v16489_v19, %v16491_v5  ;;  %v16494_v54 = vsel %vm6710_vm8, %v16491_v5, %v16493_v9  ;;  %v16499_v5 = vrot.slane %v31416_v50, 1 }
 0x5df   : > { %v15101_v42 = vor.u32 %v15099_v6, %v15097_v10  ;;  %v15123_v10 = vshrl.u32 %v27713_v13, 16  ;;  %v15131_v6 = vshrl.u32 %v27714_v30, 16 }
 0x5e1   : > { %v15106_v61 = vsel %vm6155_vm5, %v15101_v42, %v15105_v27 }
 0x5e2   : > { %25222 = vmatmul.mubr.msk.bf16.gmra.mrb[0].mxu0 %vm6294_vm6, %v16484_v58 }
 0x5e3   : > { %25225 = vmatprep.mubr.msk.bf16.mxu0 %vm6294_vm6, %v16486_v29 }
 0x5e4   : > { %25072 = vmatmul.mubr.msk.bf16.gmra.mrb[128].mxu1 %vm6294_vm6, %v27490_v48  ;;  %v15113_v48 = vrot.slane %v15111_v38, 1 }
 0x5e5   : > { %25077 = vmatprep.mubr.msk.bf16.mxu1 %vm6294_vm6, %v15082_v23  ;;  %v24807_v52 = vpop.f32.mrb[216].mxu0  ;;  %v15119_v23 = vshll.u32 %v27713_v13, 16 }
 0x5e6   : > { %v12489_v12 = vadd.f32 %v31560_v45, %v24807_v52  ;;  %v12328_v28 = vpop.f32.mrb[217].mxu0  ;;  %v16495_v52 = vrot.slane %v31396_v39, 1 }
 0x5e7   : > { %v12487_v51 = vadd.f32 %v31560_v45, %v12328_v28  ;;  %v24808_v7 = vpop.f32.mrb[218].mxu0  ;;  %v15115_v28 = vshrl.u32 %v27712_v18, 16  ;;  %v15121_v4 = vrot.slane %v15119_v23, 1  ;;  %v27716_v18 = vld [vmem:[#allocation2 + $0x16c] sm:$0xff]   ;;  %v27718_v23 = vld [vmem:[#allocation2 + $0x194] sm:$0xf] }
 0x5e8   : > { %12521 = vst.msk [vmem:[%s30963_s11 + $0x110] sm:$0xff] %vm6294_vm6, %v12489_v12  ;;  %v12490_v32 = vadd.f32 %v31560_v45, %v24808_v7  ;;  %v12331_v11 = vpop.f32.mrb[219].mxu0  ;;  %v15143_v38 = vshll.u32 %v27716_v18, 16 }
 0x5e9   : > { %12519 = vst.msk [vmem:[%s30963_s11 + $0x100] sm:$0xff] %vm6294_vm6, %v12487_v51  ;;  %v12488_v46 = vadd.f32 %v31560_v45, %v12331_v11  ;;  %v16497_v51 = vrot.slane %v31411_v62, 1  ;;  %v15117_v11 = vor.u32 %v15115_v28, %v15113_v48  ;;  %v15125_v62 = vor.u32 %v15123_v10, %v15121_v4 }
 0x5ea   : > { %12522 = vst.msk [vmem:[%s30963_s11 + $0x118] sm:$0xff] %vm6294_vm6, %v12490_v32  ;;  %25226 = vmatmul.mubr.msk.bf16.gmra.mrb[4].mxu0 %vm6294_vm6, %v16488_v16  ;;  %v15129_v16 = vrot.slane %v15127_v15, 1  ;;  %v15147_v28 = vshrl.u32 %v27716_v18, 16 }
 0x5eb   : > { %12520 = vst.msk [vmem:[%s30963_s11 + $0x108] sm:$0xff] %vm6294_vm6, %v12488_v46  ;;  %25229 = vmatprep.mubr.msk.bf16.mxu0 %vm6294_vm6, %v16490_v2  ;;  %v16496_v46 = vsel %vm6710_vm8, %v16493_v9, %v16495_v52  ;;  %v16498_v2 = vsel %vm6710_vm8, %v16495_v52, %v16497_v51  ;;  %v16501_v9 = vrot.slane %v31429_v44, 1  ;;  %v16503_v52 = vrot.slane %v31442_v59, 1 }
 0x5ec   : > { %25078 = vmatmul.mubr.msk.bf16.vlgmr.msra.gmra.mrb[100].mxu1 %vm6294_vm6, %v15090_v35  ;;  %v15122_v35 = vsel %vm6155_vm5, %v15117_v11, %v15121_v4  ;;  %v15133_v42 = vor.u32 %v15131_v6, %v15129_v16 }
 0x5ed   : > { %25081 = vmatprep.mubr.msk.bf16.mxu1 %vm6294_vm6, %v15098_v53  ;;  %v24811_v41 = vpop.f32.mrb[220].mxu0  ;;  %25110 = vmatpush3.bf16.msra.mxu1 %v31496_v26  ;;  %v15107_v26 = vshrl.u32 %v27711_v21, 16  ;;  %v27715_v21 = vld [vmem:[#allocation2 + $0x164] sm:$0xff]   ;;  %v15130_v53 = vsel %vm6155_vm5, %v15125_v62, %v15129_v16  ;;  %v16502_v13 = vsel %vm6710_vm8, %v16499_v5, %v16501_v9  ;;  %v16504_v62 = vsel %vm6710_vm8, %v16501_v9, %v16503_v52 }
 0x5ee   : > { %v12493_v3 = vadd.f32 %v31560_v45, %v24811_v41  ;;  %v12344_v56 = vpop.f32.mrb[221].mxu0  ;;  %25449 = vmatprep.subr.bf16.mxu1 %v31576_v31  ;;  %v15135_v57 = vshll.u32 %v27715_v21, 16 }
 0x5ef   : > { %v12491_v20 = vadd.f32 %v31560_v45, %v12344_v56  ;;  %v24812_v24 = vpop.f32.mrb[222].mxu0  ;;  %v15109_v29 = vor.u32 %v15107_v26, %v15105_v27  ;;  %v15145_v26 = vrot.slane %v15143_v38, 1 }
 0x5f0   : > { %12525 = vst.msk [vmem:[%s30963_s11 + $0x130] sm:$0xff] %vm6294_vm6, %v12493_v3  ;;  %v12494_v40 = vadd.f32 %v31560_v45, %v24812_v24  ;;  %v12347_v58 = vpop.f32.mrb[223].mxu0  ;;  %v15137_v27 = vrot.slane %v15135_v57, 1 }
 0x5f1   : > { %12523 = vst.msk [vmem:[%s30963_s11 + $0x120] sm:$0xff] %vm6294_vm6, %v12491_v20  ;;  %v12492_v22 = vadd.f32 %v31560_v45, %v12347_v58  ;;  %v15114_v8 = vsel %vm6155_vm5, %v15109_v29, %v15113_v48  ;;  %v15139_v58 = vshrl.u32 %v27715_v21, 16  ;;  %v27717_v48 = vld [vmem:[#allocation2 + $0x174] sm:$0xff]   ;;  %v16752_v29 = vld [vmem:[#allocation2 + $0x190] sm:$0xc] }
 0x5f2   : > { %12526 = vst.msk [vmem:[%s30963_s11 + $0x138] sm:$0xff] %vm6294_vm6, %v12494_v40  ;;  %25230 = vmatmul.mubr.msk.bf16.gmra.mrb[8].mxu0 %vm6294_vm6, %v16492_v36  ;;  %v15151_v36 = vshll.u32 %v27717_v48, 16  ;;  %v15155_v4 = vshrl.u32 %v27717_v48, 16 }
 0x5f3   : > { %12524 = vst.msk [vmem:[%s30963_s11 + $0x128] sm:$0xff] %vm6294_vm6, %v12492_v22  ;;  %25233 = vmatprep.mubr.msk.bf16.mxu0 %vm6294_vm6, %v16494_v54  ;;  %v16500_v22 = vsel %vm6710_vm8, %v16497_v51, %v16499_v5  ;;  %v15141_v54 = vor.u32 %v15139_v58, %v15137_v27  ;;  %v27719_v51 = vld [vmem:[#allocation2 + $0x17c] sm:$0xff]   ;;  %v27722_v5 = vld [vmem:[#allocation2 + $0x18c] sm:$0xff]  }
 0x5f4   : > { %25082 = vmatmul.mubr.msk.bf16.gmra.mrb[104].mxu1 %vm6294_vm6, %v15106_v61  ;;  %v31646_v61 = vcombine.low %v16752_v29, %v27718_v23  ;;  %v15153_v15 = vrot.slane %v15151_v36, 1  ;;  %v31691_v29 = vld [vmem:[#allocation5 + $0x28] sm:$0xff]  }
 0x5f5   : > { %25085 = vmatprep.mubr.msk.bf16.mxu1 %vm6294_vm6, %v15114_v8  ;;  %v24815_v12 = vpop.f32.mrb[224].mxu0  ;;  %v15138_v8 = vsel %vm6155_vm5, %v15133_v42, %v15137_v27  ;;  %v15146_v30 = vsel %vm6155_vm5, %v15141_v54, %v15145_v26  ;;  %v31684_v42 = vld [vmem:[#allocation2 + $0x1a8] sm:$0xff]  }
 0x5f6   : > { %v12497_v0 = vadd.f32 %v31560_v45, %v24815_v12  ;;  %v12360_v19 = vpop.f32.mrb[225].mxu0  ;;  %v15157_v16 = vor.u32 %v15155_v4, %v15153_v15  ;;  %v15179_v4 = vshrl.u32 %v27722_v5, 16 }
 0x5f7   : > { %v12495_v7 = vadd.f32 %v31560_v45, %v12360_v19  ;;  %v24816_v32 = vpop.f32.mrb[226].mxu0 }
 0x5f8   : > { %12529 = vst.msk [vmem:[%s30963_s11 + $0x150] sm:$0xff] %vm6294_vm6, %v12497_v0  ;;  %v12498_v60 = vadd.f32 %v31560_v45, %v24816_v32  ;;  %v12363_v39 = vpop.f32.mrb[227].mxu0  ;;  %v16870_v32 = vrot.slane %v31646_v61, 2 }
 0x5f9   : > { %12527 = vst.msk [vmem:[%s30963_s11 + $0x140] sm:$0xff] %vm6294_vm6, %v12495_v7  ;;  %v12496_v43 = vadd.f32 %v31560_v45, %v12363_v39  ;;  %v15159_v7 = vshll.u32 %v27719_v51, 16  ;;  %v15149_v39 = vor.u32 %v15147_v28, %v15145_v26  ;;  %v27726_v28 = vld [vmem:[#allocation2 + $0x19c] sm:$0xff]  }
 0x5fa   : > { %12530 = vst.msk [vmem:[%s30963_s11 + $0x158] sm:$0xff] %vm6294_vm6, %v12498_v60  ;;  %25234 = vmatmul.mubr.msk.bf16.gmra.mrb[12].mxu0 %vm6294_vm6, %v16496_v46  ;;  %v31662_v46 = vld [vmem:[#allocation2 + $0x198] sm:$0xff]  }
 0x5fb   : > { %12528 = vst.msk [vmem:[%s30963_s11 + $0x148] sm:$0xff] %vm6294_vm6, %v12496_v43  ;;  %25237 = vmatprep.mubr.msk.bf16.mxu0 %vm6294_vm6, %v16498_v2  ;;  %v16871_v43 = vrot.slane %v31662_v46, 2  ;;  %v15161_v21 = vrot.slane %v15159_v7, 1  ;;  %v15154_v18 = vsel %vm6155_vm5, %v15149_v39, %v15153_v15 }
 0x5fc   : > { %25086 = vmatmul.mubr.msk.bf16.gmra.mrb[108].mxu1 %vm6294_vm6, %v15122_v35  ;;  %v27721_v35 = vld [vmem:[#allocation2 + $0x184] sm:$0xff]  }
 0x5fd   : > { %25089 = vmatprep.mubr.msk.bf16.mxu1 %vm6294_vm6, %v15130_v53  ;;  %v24819_v41 = vpop.f32.mrb[228].mxu0  ;;  %v16872_v57 = vsel %vm394_vm2, %v16870_v32, %v16871_v43  ;;  %v15167_v53 = vshll.u32 %v27721_v35, 16  ;;  %v15162_v38 = vsel %vm6155_vm5, %v15157_v16, %v15161_v21 }
 0x5fe   : > { %v12501_v3 = vadd.f32 %v31560_v45, %v24819_v41  ;;  %v12376_v56 = vpop.f32.mrb[229].mxu0  ;;  %v15175_v41 = vshll.u32 %v27722_v5, 16  ;;  %v27729_v5 = vld [vmem:[#allocation2 + $0x1a4] ss:$0 sps:$4 sm:$0x11]  }
 0x5ff   : > { %v12499_v20 = vadd.f32 %v31560_v45, %v12376_v56  ;;  %v24820_v24 = vpop.f32.mrb[230].mxu0  ;;  %v31680_v56 = vld [vmem:[#allocation2 + $0x1a0] sm:$0xff]  }
 0x600   : > { %12533 = vst.msk [vmem:[%s30963_s11 + $0x170] sm:$0xff] %vm6294_vm6, %v12501_v3  ;;  %v12502_v40 = vadd.f32 %v31560_v45, %v24820_v24  ;;  %v12379_v50 = vpop.f32.mrb[231].mxu0  ;;  %v15163_v3 = vshrl.u32 %v27719_v51, 16  ;;  %v16873_v27 = vrot.slane %v31680_v56, 2  ;;  %v15169_v24 = vrot.slane %v15167_v53, 1  ;;  %v31710_v51 = vld [vmem:[#allocation2 + $0x1b0] sm:$0xff]  }
 0x601   : > { %12531 = vst.msk [vmem:[%s30963_s11 + $0x160] sm:$0xff] %vm6294_vm6, %v12499_v20  ;;  %v12500_v44 = vadd.f32 %v31560_v45, %v12379_v50  ;;  %v16877_v7 = vrot.slane %v31710_v51, 2 }
 0x602   : > { %12534 = vst.msk [vmem:[%s30963_s11 + $0x178] sm:$0xff] %vm6294_vm6, %v12502_v40  ;;  %25238 = vmatmul.mubr.msk.bf16.gmra.mrb[16].mxu0 %vm6294_vm6, %v16500_v22  ;;  %v16875_v40 = vrot.slane %v31684_v42, 2  ;;  %v15165_v26 = vor.u32 %v15163_v3, %v15161_v21  ;;  %v15171_v22 = vshrl.u32 %v27721_v35, 16  ;;  %v31736_v3 = vld [vmem:[#allocation2 + $0x1c0] sm:$0xff]  }
 0x603   : > { %12532 = vst.msk [vmem:[%s30963_s11 + $0x168] sm:$0xff] %vm6294_vm6, %v12500_v44  ;;  %25241 = vmatprep.mubr.msk.bf16.mxu0 %vm6294_vm6, %v16502_v13  ;;  %v15177_v44 = vrot.slane %v15175_v41, 1  ;;  %v16874_v13 = vsel %vm394_vm2, %v16871_v43, %v16873_v27  ;;  %v15199_v41 = vshll.u32 %v27729_v5, 16  ;;  %v17165_v5 = vshrl.u32 %v31662_v46, 16 }
 0x604   : > { %25090 = vmatmul.mubr.msk.bf16.gmra.mrb[112].mxu1 %vm6294_vm6, %v15138_v8  ;;  %v15173_v23 = vor.u32 %v15171_v22, %v15169_v24  ;;  %v16876_v8 = vsel %vm394_vm2, %v16873_v27, %v16875_v40  ;;  %v15170_v52 = vsel %vm6155_vm5, %v15165_v26, %v15169_v24  ;;  %v16878_v35 = vsel %vm394_vm2, %v16875_v40, %v16877_v7 }
 0x605   : > { %25093 = vmatprep.mubr.msk.bf16.mxu1 %vm6294_vm6, %v15146_v30  ;;  %v24823_v12 = vpop.f32.mrb[232].mxu0  ;;  %v27725_v30 = vld [vmem:[#allocation2 + $0x194] sm:$0xff]   ;;  %v15181_v16 = vor.u32 %v15179_v4, %v15177_v44  ;;  %v16881_v27 = vrot.slane %v31736_v3, 2  ;;  %v15201_v22 = vrot.slane %v15199_v41, 1  ;;  %v31771_v4 = vld [vmem:[#allocation5] sm:$0xff]   ;;  %v17168_v41 = vshll.u32 %v31662_v46, 16 }
 0x606   : > { %v12505_v0 = vadd.f32 %v31560_v45, %v24823_v12  ;;  %v12392_v19 = vpop.f32.mrb[233].mxu0  ;;  %v15183_v15 = vshll.u32 %v27725_v30, 16  ;;  %v15178_v12 = vsel %vm6155_vm5, %v15173_v23, %v15177_v44 }
 0x607   : > { %v12503_v11 = vadd.f32 %v31560_v45, %v12392_v19  ;;  %v24824_v60 = vpop.f32.mrb[234].mxu0 }
 0x608   : > { %12537 = vst.msk [vmem:[%s30963_s11 + $0x190] sm:$0xff] %vm6294_vm6, %v12505_v0  ;;  %v12506_v59 = vadd.f32 %v31560_v45, %v24824_v60  ;;  %v12395_v10 = vpop.f32.mrb[235].mxu0  ;;  %v15191_v0 = vshll.u32 %v27726_v28, 16  ;;  %v31714_v60 = vld [vmem:[#allocation2 + $0x1b8] sm:$0xff]  }
 0x609   : > { %12535 = vst.msk [vmem:[%s30963_s11 + $0x180] sm:$0xff] %vm6294_vm6, %v12503_v11  ;;  %v12504_v2 = vadd.f32 %v31560_v45, %v12395_v10  ;;  %v15185_v11 = vrot.slane %v15183_v15, 1  ;;  %v16879_v39 = vrot.slane %v31714_v60, 2  ;;  %v32752_v15 = vld [vmem:[#allocation16_spill] sm:$0xff] }
 0x60a   : > { %12538 = vst.msk [vmem:[%s30963_s11 + $0x198] sm:$0xff] %vm6294_vm6, %v12506_v59  ;;  %25242 = vmatmul.mubr.msk.bf16.gmra.mrb[20].mxu0 %vm6294_vm6, %v16504_v62  ;;  %v15193_v21 = vrot.slane %v15191_v0, 1 }
 0x60b   : > { %12536 = vst.msk [vmem:[%s30963_s11 + $0x188] sm:$0xff] %vm6294_vm6, %v12504_v2  ;;  %25247 = vmatprep.mubr.msk.bf16.mxu0 %vm6294_vm6, %v16872_v57  ;;  %v15187_v2 = vshrl.u32 %v27725_v30, 16 }
 0x60c   : > { %25094 = vmatmul.mubr.msk.bf16.gmra.mrb[116].mxu1 %vm6294_vm6, %v15154_v18  ;;  %v16880_v18 = vsel %vm394_vm2, %v16877_v7, %v16879_v39  ;;  %v32753_v7 = vld [vmem:[#allocation17_spill] sm:$0xff] }
 0x60d   : > { %25097 = vmatprep.mubr.msk.bf16.mxu1 %vm6294_vm6, %v15162_v38  ;;  %v24827_v6 = vpop.f32.mrb[236].mxu0  ;;  %v15189_v53 = vor.u32 %v15187_v2, %v15185_v11  ;;  %v15186_v38 = vsel %vm6155_vm5, %v15181_v16, %v15185_v11 }
 0x60e   : > { %v12509_v9 = vadd.f32 %v31560_v45, %v24827_v6  ;;  %v12408_v20 = vpop.f32.mrb[237].mxu0 }
 0x60f   : > { %v12507_v50 = vadd.f32 %v31560_v45, %v12408_v20  ;;  %v24828_v58 = vpop.f32.mrb[238].mxu0  ;;  %v15194_v6 = vsel %vm6155_vm5, %v15189_v53, %v15193_v21  ;;  %v15195_v20 = vshrl.u32 %v27726_v28, 16 }
 0x610   : > { %12541 = vst.msk [vmem:[%s30963_s11 + $0x1b0] sm:$0xff] %vm6294_vm6, %v12509_v9  ;;  %v12510_v48 = vadd.f32 %v31560_v45, %v24828_v58  ;;  %v12411_v36 = vpop.f32.mrb[239].mxu0 }
 0x611   : > { %12539 = vst.msk [vmem:[%s30963_s11 + $0x1a0] sm:$0xff] %vm6294_vm6, %v12507_v50  ;;  %v12508_v54 = vadd.f32 %v31560_v45, %v12411_v36  ;;  %v31740_v50 = vld [vmem:[#allocation2 + $0x1c8] sm:$0xff]   ;;  %v15197_v36 = vor.u32 %v15195_v20, %v15193_v21 }
 0x612   : > { %12542 = vst.msk [vmem:[%s30963_s11 + $0x1b8] sm:$0xff] %vm6294_vm6, %v12510_v48  ;;  %25248 = vmatmul.mubr.msk.bf16.vlgmr.msra.gmra.mrb[248].mxu0 %vm6294_vm6, %v16874_v13  ;;  %v16883_v58 = vrot.slane %v31740_v50, 2  ;;  %v16882_v13 = vsel %vm394_vm2, %v16879_v39, %v16881_v27  ;;  %v31782_v39 = vld [vmem:[#allocation2 + $0x1e8] sm:$0xff]  }
 0x613   : > { %12540 = vst.msk [vmem:[%s30963_s11 + $0x1a8] sm:$0xff] %vm6294_vm6, %v12508_v54  ;;  %25251 = vmatprep.mubr.msk.bf16.mxu0 %vm6294_vm6, %v16876_v8  ;;  %25280 = vmatpush3.bf16.msra.mxu0 %v31532_v37  ;;  %v15202_v30 = vsel %vm6155_vm5, %v15197_v36, %v15201_v22  ;;  %v32755_v20 = vld [vmem:[#allocation45_spill] sm:$0xff]  ;;  %v17183_v36 = vshrl.u32 %v31684_v42, 16  ;;  %v17186_v22 = vshll.u32 %v31684_v42, 16 }
 0x614   : > { %25098 = vmatmul.mubr.msk.bf16.gmra.mrb[120].mxu1 %vm6294_vm6, %v15170_v52  ;;  %25313 = vmatprep.subr.bf16.mxu0 %v31691_v29  ;;  %v16884_v8 = vsel %vm394_vm2, %v16881_v27, %v16883_v58  ;;  %v31762_v52 = vld [vmem:[#allocation2 + $0x1d0] sm:$0xff]  }
 0x615   : > { %25101 = vmatprep.mubr.msk.bf16.mxu1 %vm6294_vm6, %v15178_v12  ;;  %v24831_v19 = vpop.f32.mrb[240].mxu0  ;;  %v31765_v12 = vld [vmem:[#allocation2 + $0x1d8] sm:$0xff]  }
 0x616   : > { %v12513_v37 = vadd.f32 %v31560_v45, %v24831_v19  ;;  %v12424_v32 = vpop.f32.mrb[241].mxu0  ;;  %v16887_v28 = vrot.slane %v31765_v12, 2 }
 0x617   : > { %v12511_v59 = vadd.f32 %v31560_v45, %v12424_v32  ;;  %v24832_v10 = vpop.f32.mrb[242].mxu0  ;;  %v31778_v32 = vld [vmem:[#allocation2 + $0x1e0] sm:$0xff]  }
 0x618   : > { %12545 = vst.msk [vmem:[%s30963_s11 + $0x1d0] sm:$0xff] %vm6294_vm6, %v12513_v37  ;;  %v12514_v43 = vadd.f32 %v31560_v45, %v24832_v10  ;;  %v12427_v62 = vpop.f32.mrb[243].mxu0  ;;  %v32754_v37 = vld [vmem:[#allocation18_spill] sm:$0xff]  ;;  %v16889_v11 = vrot.slane %v31778_v32, 2 }
 0x619   : > { %12543 = vst.msk [vmem:[%s30963_s11 + $0x1c0] sm:$0xff] %vm6294_vm6, %v12511_v59  ;;  %v12512_v57 = vadd.f32 %v31560_v45, %v12427_v62  ;;  %v16891_v59 = vrot.slane %v31782_v39, 2  ;;  %v31797_v62 = vld [vmem:[#allocation2 + $0x1f8] sm:$0xff]  }
 0x61a   : > { %12546 = vst.msk [vmem:[%s30963_s11 + $0x1d8] sm:$0xff] %vm6294_vm6, %v12514_v43  ;;  %25252 = vmatmul.mubr.msk.bf16.gmra.mrb[252].mxu0 %vm6294_vm6, %v16878_v35  ;;  %v16890_v10 = vsel %vm394_vm2, %v16887_v28, %v16889_v11  ;;  %v16895_v2 = vrot.slane %v31797_v62, 2  ;;  %v31811_v35 = vld [vmem:[#allocation2 + $0x208] sm:$0xff]  }
 0x61b   : > { %12544 = vst.msk [vmem:[%s30963_s11 + $0x1c8] sm:$0xff] %vm6294_vm6, %v12512_v57  ;;  %25255 = vmatprep.mubr.msk.bf16.mxu0 %vm6294_vm6, %v16880_v18  ;;  %v16892_v16 = vsel %vm394_vm2, %v16889_v11, %v16891_v59  ;;  %v16899_v53 = vrot.slane %v31811_v35, 2  ;;  %v17157_v18 = vshrl.u32 %v31646_v61, 16  ;;  %v31842_v11 = vld [vmem:[#allocation5 + $0x30] sm:$0xff]  }
 0x61c   : > { %25102 = vmatmul.mubr.msk.bf16.gmra.mrb[124].mxu1 %vm6294_vm6, %v15186_v38  ;;  %v17160_v38 = vshll.u32 %v31646_v61, 16  ;;  %v17170_v61 = vrot.slane %v17168_v41, 3 }
 0x61d   : > { %25105 = vmatprep.mubr.msk.bf16.mxu1 %vm6294_vm6, %v15194_v6  ;;  %v24835_v9 = vpop.f32.mrb[244].mxu0  ;;  %v27527_v6 = vld [vmem:[#allocation2 + $0x210] ss:$0 sps:$4 sm:$0x33]   ;;  %v17159_v27 = vrot.slane %v17157_v18, 2  ;;  %v17213_v18 = vshll.u32 %v31736_v3, 16 }
 0x61e   : > { %v12517_v24 = vadd.f32 %v31560_v45, %v24835_v9  ;;  %v12440_v40 = vpop.f32.mrb[245].mxu0  ;;  %v17162_v9 = vrot.slane %v17160_v38, 3  ;;  %v16901_v46 = vrot.slane %v27527_v6, 2  ;;  %v17219_v38 = vshrl.u32 %v31740_v50, 16 }
 0x61f   : > { %v12515_v26 = vadd.f32 %v31560_v45, %v12440_v40  ;;  %v24836_v48 = vpop.f32.mrb[246].mxu0  ;;  %v32756_v40 = vld [vmem:[#allocation46_spill] sm:$0xff] }
 0x620   : > { %12549 = vst.msk [vmem:[%s30963_s11 + $0x1f0] sm:$0xff] %vm6294_vm6, %v12517_v24  ;;  %v12518_v44 = vadd.f32 %v31560_v45, %v24836_v48  ;;  %v12443_v54 = vpop.f32.mrb[247].mxu0  ;;  %v17167_v24 = vrot.slane %v17165_v5, 2  ;;  %v17163_v48 = vor.u32 %v17162_v9, %v17159_v27  ;;  %v17222_v5 = vshll.u32 %v31740_v50, 16  ;;  %v32761_v50 = vld [vmem:[#allocation59_spill] sm:$0xff] }
 0x621   : > { %12547 = vst.msk [vmem:[%s30963_s11 + $0x1e0] sm:$0xff] %vm6294_vm6, %v12515_v26  ;;  %v12516_v23 = vadd.f32 %v31560_v45, %v12443_v54  ;;  %v16885_v45 = vrot.slane %v31762_v52, 2  ;;  %v17177_v26 = vshll.u32 %v31680_v56, 16  ;;  %v16902_v54 = vsel %vm394_vm2, %v16899_v53, %v16901_v46 }
 0x622   : > { %12550 = vst.msk [vmem:[%s30963_s11 + $0x1f8] sm:$0xff] %vm6294_vm6, %v12518_v44  ;;  %25256 = vmatmul.mubr.msk.bf16.gmra.mrb[0].mxu0 %vm6294_vm6, %v16882_v13  ;;  %v17171_v44 = vor.u32 %v17170_v61, %v17167_v24  ;;  %v17215_v9 = vrot.slane %v17213_v18, 3  ;;  %v17224_v24 = vrot.slane %v17222_v5, 3  ;;  %v17231_v46 = vshll.u32 %v31762_v52, 16 }
 0x623   : > { %12548 = vst.msk [vmem:[%s30963_s11 + $0x1e8] sm:$0xff] %vm6294_vm6, %v12516_v23  ;;  %25259 = vmatprep.mubr.msk.bf16.mxu0 %vm6294_vm6, %v16884_v8  ;;  %v16886_v0 = vsel %vm394_vm2, %v16883_v58, %v16885_v45  ;;  %v16888_v19 = vsel %vm394_vm2, %v16885_v45, %v16887_v28  ;;  %v17174_v58 = vshrl.u32 %v31680_v56, 16  ;;  %v17179_v23 = vrot.slane %v17177_v26, 3  ;;  %v32757_v45 = vld [vmem:[#allocation47_spill] sm:$0xff]  ;;  %v32758_v56 = vld [vmem:[#allocation48_spill] sm:$0xff] }
 0x624   : > { %25106 = vmatmul.mubr.msk.bf16.gmra.mrb[128].mxu1 %vm6294_vm6, %v15202_v30  ;;  %v17172_v8 = vsel %vm7397_vm9, %v17163_v48, %v17171_v44  ;;  %v17185_v30 = vrot.slane %v17183_v36, 2  ;;  %v17192_v28 = vshrl.u32 %v31710_v51, 16  ;;  %v32762_v26 = vld [vmem:[#allocation60_spill] sm:$0xff] }
 0x625   : > { %25111 = vmatprep.mubr.msk.bf16.mxu1 %vm6294_vm6, %v32752_v15  ;;  %v17176_v13 = vrot.slane %v17174_v58, 2  ;;  %v17188_v15 = vrot.slane %v17186_v22, 3 }
 0x627   : > { %v17180_v42 = vor.u32 %v17179_v23, %v17176_v13  ;;  %v17240_v13 = vshll.u32 %v31765_v12, 16 }
 0x62a   : > { %25260 = vmatmul.mubr.msk.bf16.gmra.mrb[4].mxu0 %vm6294_vm6, %v16886_v0  ;;  %v17195_v0 = vshll.u32 %v31710_v51, 16  ;;  %v31849_v51 = vld [vmem:[#allocation2 + $0x204] sm:$0xf] }
 0x62b   : > { %25263 = vmatprep.mubr.msk.bf16.mxu0 %vm6294_vm6, %v16888_v19  ;;  %v17189_v19 = vor.u32 %v17188_v15, %v17185_v30 }
 0x62c   : > { %25112 = vmatmul.mubr.msk.bf16.vlgmr.msra.gmra.mrb[100].mxu1 %vm6294_vm6, %v32753_v7  ;;  %v17201_v7 = vshrl.u32 %v31714_v60, 16 }
 0x62d   : > { %25115 = vmatprep.mubr.msk.bf16.mxu1 %vm6294_vm6, %v32754_v37  ;;  %25450 = vmatpush3.bf16.msra.mxu1 %v31576_v31  ;;  %v31794_v31 = vld [vmem:[#allocation2 + $0x1f0] sm:$0xff]   ;;  %v17204_v37 = vshll.u32 %v31714_v60, 16  ;;  %v17210_v60 = vshrl.u32 %v31736_v3, 16 }
 0x62e   : > { %25467 = vmatprep.subr.bf16.mxu1 %v31771_v4  ;;  %v16893_v43 = vrot.slane %v31794_v31, 2 }
 0x62f   : > { %v17212_v6 = vrot.slane %v17210_v60, 2  ;;  %v31898_v60 = vld [vmem:[#allocation2 + $0x220] sm:$0xff]  }
 0x630   : > { %v16894_v21 = vsel %vm394_vm2, %v16891_v59, %v16893_v43  ;;  %v16896_v57 = vsel %vm394_vm2, %v16893_v43, %v16895_v2  ;;  %v17181_v59 = vsel %vm7397_vm9, %v17171_v44, %v17180_v42  ;;  %v17190_v43 = vsel %vm7397_vm9, %v17180_v42, %v17189_v19  ;;  %v31877_v44 = vld [vmem:[#allocation2 + $0x210] sm:$0xff]  }
 0x631   : > { %v17216_v48 = vor.u32 %v17215_v9, %v17212_v6 }
 0x632   : > { %25264 = vmatmul.mubr.msk.bf16.gmra.mrb[8].mxu0 %vm6294_vm6, %v16890_v10  ;;  %v17194_v10 = vrot.slane %v17192_v28, 2  ;;  %v19126_v28 = vshll.u32 %v31877_v44, 16 }
 0x633   : > { %25267 = vmatprep.mubr.msk.bf16.mxu0 %vm6294_vm6, %v16892_v16  ;;  %v17197_v16 = vrot.slane %v17195_v0, 3 }
 0x634   : > { %25116 = vmatmul.mubr.msk.bf16.gmra.mrb[104].mxu1 %vm6294_vm6, %v30137_v49 }
 0x635   : > { %25119 = vmatprep.mubr.msk.bf16.mxu1 %vm6294_vm6, %v30140_v1  ;;  %v31808_v1 = vld [vmem:[#allocation2 + $0x200] sm:$0xff]  }
 0x636   : > { %v16897_v49 = vrot.slane %v31808_v1, 2 }
 0x63a   : > { %25268 = vmatmul.mubr.msk.bf16.gmra.mrb[12].mxu0 %vm6294_vm6, %v16894_v21  ;;  %v17206_v21 = vrot.slane %v17204_v37, 3 }
 0x63b   : > { %25271 = vmatprep.mubr.msk.bf16.mxu0 %vm6294_vm6, %v16896_v57  ;;  %v32759_v57 = vld [vmem:[#allocation50_spill] sm:$0xff] }
 0x63c   : > { %25120 = vmatmul.mubr.msk.bf16.gmra.mrb[108].mxu1 %vm6294_vm6, %v30148_v47  ;;  %v16898_v47 = vsel %vm394_vm2, %v16895_v2, %v16897_v49  ;;  %v17203_v2 = vrot.slane %v17201_v7, 2 }
 0x63d   : > { %25123 = vmatprep.mubr.msk.bf16.mxu1 %vm6294_vm6, %v30151_v63  ;;  %v16900_v63 = vsel %vm394_vm2, %v16897_v49, %v16899_v53  ;;  %v32760_v49 = vld [vmem:[#allocation52_spill] sm:$0xff]  ;;  %v17198_v53 = vor.u32 %v17197_v16, %v17194_v10  ;;  %v17249_v16 = vshll.u32 %v31778_v32, 16 }
 0x63e   : > { %v17207_v41 = vor.u32 %v17206_v21, %v17203_v2  ;;  %v17258_v2 = vshll.u32 %v31782_v39, 16  ;;  %v19128_v21 = vrot.slane %v19126_v28, 1 }
 0x63f   : > { %v17199_v27 = vsel %vm7397_vm9, %v17189_v19, %v17198_v53  ;;  %v17242_v19 = vrot.slane %v17240_v13, 3  ;;  %v17276_v13 = vshll.u32 %v31797_v62, 16 }
 0x640   : > { %v17208_v3 = vsel %vm7397_vm9, %v17198_v53, %v17207_v41 }
 0x642   : > { %25272 = vmatmul.mubr.msk.bf16.gmra.mrb[16].mxu0 %vm6294_vm6, %v16898_v47 }
 0x643   : > { %25275 = vmatprep.mubr.msk.bf16.mxu0 %vm6294_vm6, %v16900_v63  ;;  %v31863_v63 = vld [vmem:[#allocation2 + $0x208] sm:$0xff]  }
 0x644   : > { %25124 = vmatmul.mubr.msk.bf16.gmra.mrb[112].mxu1 %vm6294_vm6, %v32755_v20  ;;  %v17221_v20 = vrot.slane %v17219_v38, 2  ;;  %v19118_v58 = vshll.u32 %v31863_v63, 16  ;;  %v19130_v38 = vshrl.u32 %v31877_v44, 16 }
 0x645   : > { %25127 = vmatprep.mubr.msk.bf16.mxu1 %vm6294_vm6, %v32756_v40  ;;  %v17228_v40 = vshrl.u32 %v31762_v52, 16  ;;  %v31882_v52 = vld [vmem:[#allocation2 + $0x218] sm:$0xff]  }
 0x646   : > { %v17225_v36 = vor.u32 %v17224_v24, %v17221_v20  ;;  %v19120_v15 = vrot.slane %v19118_v58, 1  ;;  %v19134_v10 = vshll.u32 %v31882_v52, 16  ;;  %v19132_v9 = vor.u32 %v19130_v38, %v19128_v21  ;;  %v31908_v24 = vld [vmem:[#allocation5 + $0x10] sm:$0xff]  }
 0x647   : > { %v17230_v23 = vrot.slane %v17228_v40, 2  ;;  %v19142_v20 = vshll.u32 %v31898_v60, 16 }
 0x648   : > { %v19136_v5 = vrot.slane %v19134_v10, 1 }
 0x64a   : > { %25276 = vmatmul.mubr.msk.bf16.gmra.mrb[20].mxu0 %vm6294_vm6, %v16902_v54  ;;  %v17237_v54 = vshrl.u32 %v31765_v12, 16  ;;  %v32763_v12 = vld [vmem:[#allocation61_spill] sm:$0xff] }
 0x64b   : > { %25281 = vmatprep.mubr.msk.bf16.mxu0 %vm6294_vm6, %v17172_v8  ;;  %v17233_v8 = vrot.slane %v17231_v46, 3 }
 0x64c   : > { %25128 = vmatmul.mubr.msk.bf16.gmra.mrb[116].mxu1 %vm6294_vm6, %v32757_v45  ;;  %v17217_v45 = vsel %vm7397_vm9, %v17207_v41, %v17216_v48  ;;  %v17239_v0 = vrot.slane %v17237_v54, 2  ;;  %v17273_v54 = vshrl.u32 %v31797_v62, 16 }
 0x64d   : > { %25131 = vmatprep.mubr.msk.bf16.mxu1 %vm6294_vm6, %v32758_v56  ;;  %v17226_v56 = vsel %vm7397_vm9, %v17216_v48, %v17225_v36  ;;  %v17234_v7 = vor.u32 %v17233_v8, %v17230_v23  ;;  %v19067_v48 = vld [vmem:[#allocation2 + $0x23c] sm:$0x7]  ;;  %v19138_v23 = vshrl.u32 %v31882_v52, 16  ;;  %v31925_v8 = vld [vmem:[#allocation2 + $0x238] sm:$0xf] }
 0x64f   : > { %v17235_v53 = vsel %vm7397_vm9, %v17225_v36, %v17234_v7  ;;  %v19144_v36 = vrot.slane %v19142_v20, 1 }
 0x652   : > { %25282 = vmatmul.mubr.msk.bf16.vlgmr.msra.gmra.mrb[248].mxu0 %vm6294_vm6, %v17181_v59  ;;  %v17246_v59 = vshrl.u32 %v31778_v32, 16  ;;  %v17251_v32 = vrot.slane %v17249_v16, 3  ;;  %v17282_v16 = vshrl.u32 %v31808_v1, 16 }
 0x653   : > { %25285 = vmatprep.mubr.msk.bf16.mxu0 %vm6294_vm6, %v17190_v43  ;;  %25314 = vmatpush3.bf16.msra.mxu0 %v31691_v29  ;;  %v19049_v29 = vld [vmem:[#allocation2 + $0x200] sm:$0xf]  ;;  %v17255_v43 = vshrl.u32 %v31782_v39, 16 }
 0x654   : > { %25132 = vmatmul.mubr.msk.bf16.gmra.mrb[120].mxu1 %vm6294_vm6, %v32759_v57  ;;  %25347 = vmatprep.subr.bf16.mxu0 %v31842_v11  ;;  %v31861_v47 = vcombine.low %v19049_v29, %v31849_v51  ;;  %v17243_v57 = vor.u32 %v17242_v19, %v17239_v0  ;;  %v17248_v18 = vrot.slane %v17246_v59, 2  ;;  %v31903_v29 = vld [vmem:[#allocation2 + $0x228] sm:$0xff]   ;;  %v17275_v19 = vrot.slane %v17273_v54, 2 }
 0x655   : > { %25135 = vmatprep.mubr.msk.bf16.mxu1 %vm6294_vm6, %v32760_v49  ;;  %v19122_v49 = vshrl.u32 %v31863_v63, 16  ;;  %v17257_v6 = vrot.slane %v17255_v43, 2  ;;  %v19150_v40 = vshll.u32 %v31903_v29, 16  ;;  %v17285_v43 = vshll.u32 %v31808_v1, 16 }
 0x656   : > { %v19113_v61 = vshll.u32 %v31861_v47, 16  ;;  %v19111_v30 = vshrl.u32 %v31861_v47, 16  ;;  %v17244_v39 = vsel %vm7397_vm9, %v17234_v7, %v17243_v57  ;;  %v17252_v46 = vor.u32 %v17251_v32, %v17248_v18 }
 0x657   : > { %v19124_v41 = vor.u32 %v19122_v49, %v19120_v15  ;;  %v17294_v49 = vshll.u32 %v31811_v35, 16  ;;  %v17284_v32 = vrot.slane %v17282_v16, 2  ;;  %v27552_v16 = vld [vmem:[#allocation5 + $0x20] sm:$0xff]  }
 0x658   : > { %v19115_v22 = vrot.slane %v19113_v61, 1  ;;  %v19137_v61 = vsel %vm6155_vm5, %v19132_v9, %v19136_v5 }
 0x659   : > { %v17296_v9 = vrot.slane %v17294_v49, 3  ;;  %v32774_v49 = vld [vmem:[#allocation72_spill] sm:$0xff] }
 0x65a   : > { %25286 = vmatmul.mubr.msk.bf16.gmra.mrb[252].mxu0 %vm6294_vm6, %v17199_v27  ;;  %v19116_v42 = vor.u32 %v19115_v22, %v19111_v30  ;;  %v17260_v27 = vrot.slane %v17258_v2, 3  ;;  %v31919_v22 = vld [vmem:[#allocation2 + $0x230] sm:$0xff]  }
 0x65b   : > { %25289 = vmatprep.mubr.msk.bf16.mxu0 %vm6294_vm6, %v17208_v3  ;;  %v19129_v3 = vsel %vm6155_vm5, %v19124_v41, %v19128_v21  ;;  %v19158_v0 = vshll.u32 %v31919_v22, 16  ;;  %v19162_v18 = vshrl.u32 %v31919_v22, 16 }
 0x65c   : > { %25136 = vmatmul.mubr.msk.bf16.gmra.mrb[124].mxu1 %vm6294_vm6, %v32761_v50  ;;  %v19121_v37 = vsel %vm6155_vm5, %v19116_v42, %v19120_v15  ;;  %v17264_v50 = vshrl.u32 %v31794_v31, 16  ;;  %v17261_v58 = vor.u32 %v17260_v27, %v17257_v6  ;;  %v19146_v15 = vshrl.u32 %v31898_v60, 16 }
 0x65d   : > { %25139 = vmatprep.mubr.msk.bf16.mxu1 %vm6294_vm6, %v32762_v26  ;;  %v17267_v26 = vshll.u32 %v31794_v31, 16  ;;  %v19152_v31 = vrot.slane %v19150_v40, 1  ;;  %v19160_v2 = vrot.slane %v19158_v0, 1  ;;  %v17287_v6 = vrot.slane %v17285_v43, 3  ;;  %v32772_v43 = vld [vmem:[#allocation70_spill] sm:$0xff] }
 0x65e   : > { %v17266_v30 = vrot.slane %v17264_v50, 2  ;;  %v17262_v42 = vsel %vm7397_vm9, %v17252_v46, %v17261_v58  ;;  %v19148_v62 = vor.u32 %v19146_v15, %v19144_v36  ;;  %v27543_v15 = vld [vmem:[#allocation5 + $0x18] sm:$0xff]   ;;  %v19430_v0 = vrot.slane %v31863_v63, 1 }
 0x65f   : > { %v17269_v28 = vrot.slane %v17267_v26, 3  ;;  %v19164_v27 = vor.u32 %v19162_v18, %v19160_v2  ;;  %v19440_v18 = vrot.slane %v31919_v22, 1 }
 0x661   : > { %v17270_v10 = vor.u32 %v17269_v28, %v17266_v30 }
 0x662   : > { %25290 = vmatmul.mubr.msk.bf16.gmra.mrb[0].mxu0 %vm6294_vm6, %v17217_v45  ;;  %v17253_v45 = vsel %vm7397_vm9, %v17243_v57, %v17252_v46  ;;  %v17291_v57 = vshrl.u32 %v31811_v35, 16 }
 0x663   : > { %25293 = vmatprep.mubr.msk.bf16.mxu0 %vm6294_vm6, %v17226_v56  ;;  %v19140_v56 = vor.u32 %v19138_v23, %v19136_v5  ;;  %v17271_v5 = vsel %vm7397_vm9, %v17261_v58, %v17270_v10 }
 0x664   : > { %25140 = vmatmul.mubr.msk.bf16.gmra.mrb[128].mxu1 %vm6294_vm6, %v32763_v12  ;;  %v17278_v12 = vrot.slane %v17276_v13, 3 }
 0x665   : > { %25451 = vmatprep.mubr.msk.bf16.mxu1 %vm6294_vm6, %v19121_v37  ;;  %v19145_v7 = vsel %vm6155_vm5, %v19140_v56, %v19144_v36  ;;  %v19153_v37 = vsel %vm6155_vm5, %v19148_v62, %v19152_v31  ;;  %v32766_v56 = vld [vmem:[#allocation64_spill] sm:$0xff]  ;;  %v19064_v62 = vld [vmem:[#allocation2 + $0x23c] sm:$0x3] }
 0x666   : > { %v17279_v21 = vor.u32 %v17278_v12, %v17275_v19  ;;  %v32769_v19 = vld [vmem:[#allocation67_spill] sm:$0xff]  ;;  %v22459_v12 = vcombine.low %v31925_v8, %v19064_v62 }
 0x668   : > { %v17280_v1 = vsel %vm7397_vm9, %v17270_v10, %v17279_v21  ;;  %v19434_v10 = vrot.slane %v31882_v52, 1 }
 0x66a   : > { %25294 = vmatmul.mubr.msk.bf16.gmra.mrb[4].mxu0 %vm6294_vm6, %v17235_v53  ;;  %v19154_v53 = vshrl.u32 %v31903_v29, 16 }
 0x66b   : > { %25297 = vmatprep.mubr.msk.bf16.mxu0 %vm6294_vm6, %v17244_v39  ;;  %v17293_v39 = vrot.slane %v17291_v57, 2 }
 0x66c   : > { %25452 = vmatmul.mubr.msk.bf16.vlgmr.msra.gmra.mrb[132].mxu1 %vm6294_vm6, %v19129_v3  ;;  %v19156_v41 = vor.u32 %v19154_v53, %v19152_v31  ;;  %v17288_v3 = vor.u32 %v17287_v6, %v17284_v32  ;;  %v32764_v31 = vld [vmem:[#allocation62_spill] sm:$0xff]  ;;  %v27545_v32 = vld [vmem:[#allocation2 + $0x218] sm:$0xff]  }
 0x66d   : > { %25455 = vmatprep.mubr.msk.bf16.mxu1 %vm6294_vm6, %v19137_v61  ;;  %25468 = vmatpush3.bf16.msra.mxu1 %v31771_v4  ;;  %v31929_v4 = vcombine.low %v31925_v8, %v19067_v48  ;;  %v27740_v61 = vld [vmem:[#allocation2 + $0x210] ss:$0 sps:$4 sm:$0x77]   ;;  %v17297_v46 = vor.u32 %v17296_v9, %v17293_v39  ;;  %v27544_v6 = vld [vmem:[#allocation2 + $0x210] sm:$0xfc]   ;;  %v27546_v39 = vld [vmem:[#allocation2 + $0x220] sm:$0xff]  }
 0x66e   : > { %25485 = vmatprep.subr.bf16.mxu1 %v31908_v24  ;;  %v19161_v20 = vsel %vm6155_vm5, %v19156_v41, %v19160_v2  ;;  %v17300_v50 = vshrl.u32 %v27740_v61, 16  ;;  %v17303_v40 = vshll.u32 %v27740_v61, 16  ;;  %v17289_v26 = vsel %vm7397_vm9, %v17279_v21, %v17288_v3  ;;  %v32773_v21 = vld [vmem:[#allocation71_spill] sm:$0xff]  ;;  %v27547_v61 = vld [vmem:[#allocation2 + $0x1a4] sm:$0xff]  }
 0x66f   : > { %v19166_v59 = vshll.u32 %v31929_v4, 16  ;;  %v19170_v58 = vshrl.u32 %v31929_v4, 16  ;;  %v17298_v13 = vsel %vm7397_vm9, %v17288_v3, %v17297_v46 }
 0x670   : > { %v17302_v48 = vrot.slane %v17300_v50, 2  ;;  %v17305_v36 = vrot.slane %v17303_v40, 3  ;;  %v32041_v50 = vld [vmem:[#allocation5 + $0x28] sm:$0xff]  }
 0x671   : > { %v19168_v38 = vrot.slane %v19166_v59, 1 }
 0x672   : > { %25298 = vmatmul.mubr.msk.bf16.gmra.mrb[8].mxu0 %vm6294_vm6, %v17253_v45  ;;  %v17306_v23 = vor.u32 %v17305_v36, %v17302_v48  ;;  %v31972_v45 = vld [vmem:[#allocation5 + $0x38] sm:$0xff]   ;;  %v27549_v36 = vld [vmem:[#allocation2 + $0x1ac] sm:$0xff]  }
 0x673   : > { %25301 = vmatprep.mubr.msk.bf16.mxu0 %vm6294_vm6, %v17262_v42  ;;  %v19169_v35 = vsel %vm6155_vm5, %v19164_v27, %v19168_v38  ;;  %v19172_v54 = vor.u32 %v19170_v58, %v19168_v38  ;;  %v32768_v42 = vld [vmem:[#allocation66_spill] sm:$0xff]  ;;  %v32775_v38 = vld [vmem:[#allocation73_spill] sm:$0xff]  ;;  %v32778_v27 = vld [vmem:[#allocation19_spill] sm:$0xff] }
 0x674   : > { %25456 = vmatmul.mubr.msk.bf16.gmra.mrb[136].mxu1 %vm6294_vm6, %v19145_v7  ;;  %v17307_v30 = vsel %vm7397_vm9, %v17297_v46, %v17306_v23  ;;  %v27551_v46 = vld [vmem:[#allocation2 + $0x230] sm:$0xff]  }
 0x675   : > { %25459 = vmatprep.mubr.msk.bf16.mxu1 %vm6294_vm6, %v19153_v37  ;;  %v32770_v37 = vld [vmem:[#allocation68_spill] sm:$0xff]  ;;  %v19652_v48 = vrot.slane %v27551_v46, 2 }
 0x67a   : > { %25302 = vmatmul.mubr.msk.bf16.gmra.mrb[12].mxu0 %vm6294_vm6, %v17271_v5  ;;  %v32776_v5 = vld [vmem:[#allocation74_spill] sm:$0xff] }
 0x67b   : > { %25305 = vmatprep.mubr.msk.bf16.mxu0 %vm6294_vm6, %v17280_v1  ;;  %v19646_v1 = vrot.slane %v27545_v32, 2 }
 0x67c   : > { %25460 = vmatmul.mubr.msk.bf16.gmra.mrb[140].mxu1 %vm6294_vm6, %v19161_v20  ;;  %v27548_v20 = vld [vmem:[#allocation2 + $0x228] sm:$0xff]  }
 0x67d   : > { %25463 = vmatprep.mubr.msk.bf16.mxu1 %vm6294_vm6, %v19169_v35  ;;  %v19648_v35 = vrot.slane %v27546_v39, 2  ;;  %v19650_v3 = vrot.slane %v27548_v20, 2 }
 0x67f   : > { %v19649_v40 = vsel %vm394_vm2, %v19646_v1, %v19648_v35  ;;  %v19651_v58 = vsel %vm394_vm2, %v19648_v35, %v19650_v3  ;;  %v19653_v23 = vsel %vm394_vm2, %v19650_v3, %v19652_v48  ;;  %v27565_v35 = vld [vmem:[#allocation2 + $0x1e4] sm:$0xff]   ;;  %v32094_v3 = vld [vmem:[#allocation5 + $0x30] sm:$0xff]  }
 0x682   : > { %25306 = vmatmul.mubr.msk.bf16.gmra.mrb[16].mxu0 %vm6294_vm6, %v17289_v26  ;;  %v27554_v26 = vld [vmem:[#allocation2 + $0x238] sm:$0xff]  }
 0x683   : > { %25309 = vmatprep.mubr.msk.bf16.mxu0 %vm6294_vm6, %v17298_v13  ;;  %v27553_v13 = vld [vmem:[#allocation2 + $0x1b4] sm:$0xff]  }
 0x684   : > { %25464 = vmatmul.mubr.msk.bf16.gmra.mrb[144].mxu1 %vm6294_vm6, %v19172_v54  ;;  %v32049_v54 = vld [vmem:[#allocation5 + $0x40] sm:$0xff]  }
 0x685   : > { %25469 = vmatprep.mubr.msk.bf16.mxu1 %vm6294_vm6, %v31861_v47  ;;  %v32765_v47 = vld [vmem:[#allocation63_spill] sm:$0xff] }
 0x68a   : > { %25310 = vmatmul.mubr.msk.bf16.gmra.mrb[20].mxu0 %vm6294_vm6, %v17307_v30  ;;  %v27556_v30 = vld [vmem:[#allocation2 + $0x240] sm:$0xff]  }
 0x68b   : > { %25315 = vmatprep.mubr.msk.bf16.mxu0 %vm6294_vm6, %v32764_v31 }
 0x68c   : > { %25470 = vmatmul.mubr.msk.bf16.vlgmr.msra.gmra.mrb[132].mxu1 %vm6294_vm6, %v31863_v63  ;;  %v32771_v63 = vld [vmem:[#allocation69_spill] sm:$0xff] }
 0x68d   : > { %25473 = vmatprep.mubr.msk.bf16.mxu1 %vm6294_vm6, %v31877_v44  ;;  %25486 = vmatpush3.bf16.msra.mxu1 %v31908_v24  ;;  %v32767_v24 = vld [vmem:[#allocation65_spill] sm:$0xff] }
 0x68e   : > { %25503 = vmatprep.subr.bf16.mxu1 %v27543_v15 }
 0x692   : > { %25316 = vmatmul.mubr.msk.bf16.vlgmr.msra.gmra.mrb[248].mxu0 %vm6294_vm6, %v32765_v47  ;;  %v27558_v47 = vld [vmem:[#allocation2 + $0x248] sm:$0xff]  }
 0x693   : > { %25319 = vmatprep.mubr.msk.bf16.mxu0 %vm6294_vm6, %v32766_v56  ;;  %25348 = vmatpush3.bf16.msra.mxu0 %v31842_v11  ;;  %v19423_v11 = vld [vmem:[#allocation2 + $0x200] sm:$0xe]  ;;  %v32059_v56 = vld [vmem:[#allocation2 + $0x218] sm:$0xff]  }
 0x694   : > { %25474 = vmatmul.mubr.msk.bf16.gmra.mrb[136].mxu1 %vm6294_vm6, %v31882_v52  ;;  %25381 = vmatprep.subr.bf16.mxu0 %v31972_v45  ;;  %v22469_v28 = vcombine.low %v19423_v11, %v31849_v51  ;;  %v19432_v51 = vrot.slane %v31877_v44, 1  ;;  %v19436_v44 = vrot.slane %v31898_v60, 1  ;;  %v19438_v52 = vrot.slane %v31903_v29, 1 }
 0x695   : > { %25477 = vmatprep.mubr.msk.bf16.mxu1 %vm6294_vm6, %v31898_v60  ;;  %v19442_v60 = vrot.slane %v31929_v4, 1  ;;  %v19645_v4 = vrot.slane %v27544_v6, 2  ;;  %v19656_v11 = vrot.slane %v27556_v30, 2  ;;  %v19874_v62 = vshrl.u32 %v32059_v56, 16  ;;  %v32086_v6 = vld [vmem:[#allocation2 + $0x238] sm:$0xff]  }
 0x696   : > { %v19429_v7 = vrot.slane %v22469_v28, 1  ;;  %v19433_v8 = vsel %vm6710_vm8, %v19430_v0, %v19432_v51  ;;  %v19435_v2 = vsel %vm6710_vm8, %v19432_v51, %v19434_v10  ;;  %v19437_v57 = vsel %vm6710_vm8, %v19434_v10, %v19436_v44  ;;  %v27555_v28 = vld [vmem:[#allocation2 + $0x1bc] sm:$0xff]  }
 0x697   : > { %v19439_v53 = vsel %vm6710_vm8, %v19436_v44, %v19438_v52  ;;  %v19443_v41 = vsel %vm6710_vm8, %v19440_v18, %v19442_v60  ;;  %v19647_v9 = vsel %vm394_vm2, %v19645_v4, %v19646_v1  ;;  %v19876_v10 = vrot.slane %v19874_v62, 2 }
 0x698   : > { %v19431_v59 = vsel %vm6710_vm8, %v19429_v7, %v19430_v0  ;;  %v19877_v0 = vshll.u32 %v32059_v56, 16  ;;  %v19913_v20 = vshll.u32 %v32086_v6, 16 }
 0x69a   : > { %25320 = vmatmul.mubr.msk.bf16.gmra.mrb[252].mxu0 %vm6294_vm6, %v32767_v24  ;;  %v19803_v24 = vld [vmem:[#allocation2 + $0x210] sm:$0xc] }
 0x69b   : > { %25323 = vmatprep.mubr.msk.bf16.mxu0 %vm6294_vm6, %v32768_v42 }
 0x69c   : > { %25478 = vmatmul.mubr.msk.bf16.gmra.mrb[140].mxu1 %vm6294_vm6, %v31903_v29  ;;  %v19441_v29 = vsel %vm6710_vm8, %v19438_v52, %v19440_v18  ;;  %v27559_v52 = vld [vmem:[#allocation2 + $0x1cc] sm:$0xff]  }
 0x69d   : > { %25481 = vmatprep.mubr.msk.bf16.mxu1 %vm6294_vm6, %v31919_v22  ;;  %v32777_v22 = vld [vmem:[#allocation20_spill] sm:$0xff] }
 0x6a2   : > { %25324 = vmatmul.mubr.msk.bf16.gmra.mrb[0].mxu0 %vm6294_vm6, %v32769_v19  ;;  %v27557_v19 = vld [vmem:[#allocation2 + $0x1c4] sm:$0xff]  }
 0x6a3   : > { %25327 = vmatprep.mubr.msk.bf16.mxu0 %vm6294_vm6, %v32770_v37 }
 0x6a4   : > { %25482 = vmatmul.mubr.msk.bf16.gmra.mrb[144].mxu1 %vm6294_vm6, %v22459_v12 }
 0x6a5   : > { %25487 = vmatprep.mubr.msk.bf16.mxu1 %vm6294_vm6, %v19431_v59  ;;  %v32069_v59 = vld [vmem:[#allocation2 + $0x220] sm:$0xff]  }
 0x6a6   : > { %v19886_v44 = vshll.u32 %v32069_v59, 16 }
 0x6aa   : > { %25328 = vmatmul.mubr.msk.bf16.gmra.mrb[4].mxu0 %vm6294_vm6, %v32771_v63  ;;  %v19879_v63 = vrot.slane %v19877_v0, 3 }
 0x6ab   : > { %25331 = vmatprep.mubr.msk.bf16.mxu0 %vm6294_vm6, %v32772_v43 }
 0x6ac   : > { %25488 = vmatmul.mubr.msk.bf16.vlgmr.msra.gmra.mrb[132].mxu1 %vm6294_vm6, %v19433_v8 }
 0x6ad   : > { %25491 = vmatprep.mubr.msk.bf16.mxu1 %vm6294_vm6, %v19435_v2  ;;  %25504 = vmatpush3.bf16.msra.mxu1 %v27543_v15  ;;  %v32055_v15 = vld [vmem:[#allocation2 + $0x214] sm:$0xf]  ;;  %v19883_v2 = vshrl.u32 %v32069_v59, 16 }
 0x6ae   : > { %25521 = vmatprep.subr.bf16.mxu1 %v27552_v16  ;;  %v22496_v42 = vcombine.low %v19803_v24, %v32055_v15 }
 0x6b0   : > { %v19866_v12 = vshrl.u32 %v22496_v42, 16  ;;  %v19869_v7 = vshll.u32 %v22496_v42, 16 }
 0x6b2   : > { %25332 = vmatmul.mubr.msk.bf16.gmra.mrb[8].mxu0 %vm6294_vm6, %v32773_v21  ;;  %v19868_v8 = vrot.slane %v19866_v12, 2  ;;  %v19871_v43 = vrot.slane %v19869_v7, 3  ;;  %v19880_v21 = vor.u32 %v19879_v63, %v19876_v10  ;;  %v32117_v7 = vld [vmem:[#allocation2 + $0x250] ss:$0 sps:$4 sm:$0x11]   ;;  %v27574_v10 = vld [vmem:[#allocation2 + $0x204] sm:$0xff]  }
 0x6b3   : > { %25335 = vmatprep.mubr.msk.bf16.mxu0 %vm6294_vm6, %v32774_v49  ;;  %v18202_v63 = vld [vmem:[#allocation2 + $0x1a4] sm:$0xf] }
 0x6b4   : > { %25492 = vmatmul.mubr.msk.bf16.gmra.mrb[136].mxu1 %vm6294_vm6, %v19437_v57  ;;  %v19872_v18 = vor.u32 %v19871_v43, %v19868_v8  ;;  %v19937_v43 = vshll.u32 %v32117_v7, 16 }
 0x6b5   : > { %25495 = vmatprep.mubr.msk.bf16.mxu1 %vm6294_vm6, %v19439_v53  ;;  %v27560_v53 = vld [vmem:[#allocation2 + $0x1d4] sm:$0xff]  }
 0x6ba   : > { %25336 = vmatmul.mubr.msk.bf16.gmra.mrb[12].mxu0 %vm6294_vm6, %v32775_v38  ;;  %v19888_v38 = vrot.slane %v19886_v44, 3  ;;  %v27741_v44 = vld [vmem:[#allocation2 + $0x1a8] sm:$0xf] }
 0x6bb   : > { %25339 = vmatprep.mubr.msk.bf16.mxu0 %vm6294_vm6, %v32776_v5  ;;  %v19881_v5 = vsel %vm7397_vm9, %v19872_v18, %v19880_v21  ;;  %v32127_v18 = vld [vmem:[#allocation7] ss:$0 sm:$0xff] }
 0x6bc   : > { %25496 = vmatmul.mubr.msk.bf16.gmra.mrb[140].mxu1 %vm6294_vm6, %v19441_v29  ;;  %v32082_v29 = vld [vmem:[#allocation2 + $0x230] sm:$0xff]  }
 0x6bd   : > { %25499 = vmatprep.mubr.msk.bf16.mxu1 %vm6294_vm6, %v19443_v41  ;;  %v19904_v4 = vshll.u32 %v32082_v29, 16 }
 0x6bf   : > { %v19906_v46 = vrot.slane %v19904_v4, 3  ;;  %v27578_v4 = vld [vmem:[#allocation2 + $0x214] sm:$0xff]  }
 0x6c2   : > { %25340 = vmatmul.mubr.msk.bf16.gmra.mrb[16].mxu0 %vm6294_vm6, %v32777_v22  ;;  %v19901_v22 = vshrl.u32 %v32082_v29, 16 }
 0x6c3   : > { %25343 = vmatprep.mubr.msk.bf16.mxu0 %vm6294_vm6, %v32778_v27  ;;  %v27563_v27 = vld [vmem:[#allocation2 + $0x1dc] sm:$0xff]  }
 0x6c4   : > { %25500 = vmatmul.mubr.msk.bf16.gmra.mrb[144].mxu1 %vm6294_vm6, %v19442_v60  ;;  %v19885_v60 = vrot.slane %v19883_v2, 2 }
 0x6c5   : > { %25505 = vmatprep.mubr.msk.bf16.mxu1 %vm6294_vm6, %v19647_v9  ;;  %v19910_v9 = vshrl.u32 %v32086_v6, 16 }
 0x6c6   : > { %v19889_v1 = vor.u32 %v19888_v38, %v19885_v60 }
 0x6ca   : > { %25344 = vmatmul.mubr.msk.bf16.gmra.mrb[20].mxu0 %vm6294_vm6, %v30733_v33  ;;  %v19654_v33 = vrot.slane %v27554_v26, 2 }
 0x6cb   : > { %25349 = vmatprep.mubr.msk.bf16.mxu0 %vm6294_vm6, %v27547_v61  ;;  %v19890_v61 = vsel %vm7397_vm9, %v19880_v21, %v19889_v1  ;;  %v20084_v21 = vld [vmem:[#allocation2 + $0x210] sm:$0x8] }
 0x6cc   : > { %25506 = vmatmul.mubr.msk.bf16.vlgmr.msra.gmra.mrb[132].mxu1 %vm6294_vm6, %v19649_v40  ;;  %v19655_v31 = vsel %vm394_vm2, %v19652_v48, %v19654_v33  ;;  %v19657_v37 = vsel %vm394_vm2, %v19654_v33, %v19656_v11  ;;  %v19903_v40 = vrot.slane %v19901_v22, 2  ;;  %v19912_v48 = vrot.slane %v19910_v9, 2  ;;  %v32102_v33 = vld [vmem:[#allocation2 + $0x248] sm:$0xff]  }
 0x6cd   : > { %25509 = vmatprep.mubr.msk.bf16.mxu1 %vm6294_vm6, %v19651_v58  ;;  %25522 = vmatpush3.bf16.msra.mxu1 %v27552_v16  ;;  %v32073_v16 = vld [vmem:[#allocation2 + $0x228] sm:$0xff]   ;;  %v32098_v58 = vld [vmem:[#allocation2 + $0x240] sm:$0xff]   ;;  %v19928_v24 = vshrl.u32 %v32102_v33, 16  ;;  %v19931_v42 = vshll.u32 %v32102_v33, 16 }
 0x6ce   : > { %25539 = vmatprep.subr.bf16.mxu1 %v32041_v50  ;;  %v19892_v57 = vshrl.u32 %v32073_v16, 16  ;;  %v19895_v49 = vshll.u32 %v32073_v16, 16  ;;  %v19922_v30 = vshll.u32 %v32098_v58, 16  ;;  %v27743_v9 = vld [vmem:[#allocation2 + $0x1ac] sm:$0xff]  }
 0x6cf   : > { %v19930_v0 = vrot.slane %v19928_v24, 2  ;;  %v27744_v24 = vld [vmem:[#allocation2 + $0x1b4] sm:$0xff]  }
 0x6d0   : > { %v19894_v41 = vrot.slane %v19892_v57, 2  ;;  %v19897_v32 = vrot.slane %v19895_v49, 3  ;;  %v22514_v57 = vcombine.low %v20084_v21, %v32055_v15 }
 0x6d2   : > { %25350 = vmatmul.mubr.msk.bf16.vlgmr.msra.gmra.mrb[248].mxu0 %vm6294_vm6, %v27549_v36  ;;  %v19898_v39 = vor.u32 %v19897_v32, %v19894_v41  ;;  %v19915_v36 = vrot.slane %v19913_v20, 3  ;;  %v20091_v41 = vrot.slane %v32059_v56, 3  ;;  %v18328_v20 = vshll.u32 %v27743_v9, 16 }
 0x6d3   : > { %25353 = vmatprep.mubr.msk.bf16.mxu0 %vm6294_vm6, %v27553_v13  ;;  %25382 = vmatpush3.bf16.msra.mxu0 %v31972_v45  ;;  %v19658_v45 = vrot.slane %v27558_v47, 2  ;;  %v19907_v13 = vor.u32 %v19906_v46, %v19903_v40 }
 0x6d4   : > { %25510 = vmatmul.mubr.msk.bf16.gmra.mrb[136].mxu1 %vm6294_vm6, %v19653_v23  ;;  %25415 = vmatprep.subr.bf16.mxu0 %v32049_v54  ;;  %v19899_v26 = vsel %vm7397_vm9, %v19889_v1, %v19898_v39  ;;  %v19919_v23 = vshrl.u32 %v32098_v58, 16  ;;  %v19916_v47 = vor.u32 %v19915_v36, %v19912_v48  ;;  %v20093_v36 = vrot.slane %v32069_v59, 3 }
 0x6d5   : > { %25513 = vmatprep.mubr.msk.bf16.mxu1 %vm6294_vm6, %v19655_v31  ;;  %v19659_v51 = vsel %vm394_vm2, %v19656_v11, %v19658_v45  ;;  %v27567_v31 = vld [vmem:[#allocation2 + $0x1ec] sm:$0xff]   ;;  %v27570_v11 = vld [vmem:[#allocation2 + $0x1f4] sm:$0xff]  }
 0x6d6   : > { %v19917_v62 = vsel %vm7397_vm9, %v19907_v13, %v19916_v47 }
 0x6da   : > { %25354 = vmatmul.mubr.msk.bf16.gmra.mrb[252].mxu0 %vm6294_vm6, %v27555_v28  ;;  %v19908_v28 = vsel %vm7397_vm9, %v19898_v39, %v19907_v13  ;;  %v20090_v39 = vrot.slane %v22514_v57, 3 }
 0x6db   : > { %25357 = vmatprep.mubr.msk.bf16.mxu0 %vm6294_vm6, %v27557_v19  ;;  %v19933_v19 = vrot.slane %v19931_v42, 3  ;;  %v18336_v42 = vshll.u32 %v27744_v24, 16 }
 0x6dc   : > { %25514 = vmatmul.mubr.msk.bf16.gmra.mrb[140].mxu1 %vm6294_vm6, %v19657_v37  ;;  %v27572_v37 = vld [vmem:[#allocation2 + $0x1fc] sm:$0xff]  }
 0x6dd   : > { %25517 = vmatprep.mubr.msk.bf16.mxu1 %vm6294_vm6, %v19659_v51  ;;  %v19934_v51 = vor.u32 %v19933_v19, %v19930_v0  ;;  %v32157_v19 = vld [vmem:[#allocation5 + $0x38] sm:$0xff]  }
 0x6e2   : > { %25358 = vmatmul.mubr.msk.bf16.gmra.mrb[0].mxu0 %vm6294_vm6, %v27559_v52  ;;  %v22390_v52 = vcombine.low %v18202_v63, %v27741_v44  ;;  %v20097_v44 = vrot.slane %v32082_v29, 3 }
 0x6e3   : > { %25361 = vmatprep.mubr.msk.bf16.mxu0 %vm6294_vm6, %v27560_v53  ;;  %v19939_v53 = vrot.slane %v19937_v43, 3 }
 0x6e4   : > { %25518 = vmatmul.mubr.msk.bf16.gmra.mrb[144].mxu1 %vm6294_vm6, %v19658_v45  ;;  %v19924_v45 = vrot.slane %v19922_v30, 3  ;;  %v18323_v32 = vshll.u32 %v22390_v52, 16  ;;  %v18321_v46 = vshrl.u32 %v22390_v52, 16  ;;  %v27579_v30 = vld [vmem:[#allocation2 + $0x21c] sm:$0xff]  }
 0x6e5   : > { %25523 = vmatprep.mubr.msk.bf16.mxu1 %vm6294_vm6, %v19881_v5  ;;  %v27576_v5 = vld [vmem:[#allocation2 + $0x20c] sm:$0xff]  }
 0x6e6   : > { %v18325_v40 = vrot.slane %v18323_v32, 1 }
 0x6ea   : > { %25362 = vmatmul.mubr.msk.bf16.gmra.mrb[4].mxu0 %vm6294_vm6, %v27563_v27 }
 0x6eb   : > { %25365 = vmatprep.mubr.msk.bf16.mxu0 %vm6294_vm6, %v27565_v35  ;;  %v19940_v35 = vsel %vm7397_vm9, %v19934_v51, %v19939_v53  ;;  %v27746_v53 = vld [vmem:[#allocation2 + $0x1c4] sm:$0xff]  }
 0x6ec   : > { %25524 = vmatmul.mubr.msk.bf16.vlgmr.msra.gmra.mrb[132].mxu1 %vm6294_vm6, %v19890_v61  ;;  %v20092_v61 = vsel %vm483_vm1, %v20090_v39, %v20091_v41 }
 0x6ed   : > { %25527 = vmatprep.mubr.msk.bf16.mxu1 %vm6294_vm6, %v19899_v26  ;;  %25540 = vmatpush3.bf16.msra.mxu1 %v32041_v50  ;;  %v19921_v50 = vrot.slane %v19919_v23, 2  ;;  %v18330_v26 = vrot.slane %v18328_v20, 1  ;;  %v18356_v20 = vshrl.u32 %v27746_v53, 16 }
 0x6ee   : > { %25557 = vmatprep.subr.bf16.mxu1 %v32094_v3 }
 0x6ef   : > { %v19925_v12 = vor.u32 %v19924_v45, %v19921_v50 }
 0x6f1   : > { %v19926_v8 = vsel %vm7397_vm9, %v19916_v47, %v19925_v12  ;;  %v19935_v2 = vsel %vm7397_vm9, %v19925_v12, %v19934_v51  ;;  %v20095_v47 = vrot.slane %v32073_v16, 3  ;;  %v20094_v12 = vsel %vm483_vm1, %v20091_v41, %v20093_v36 }
 0x6f2   : > { %25366 = vmatmul.mubr.msk.bf16.gmra.mrb[8].mxu0 %vm6294_vm6, %v27567_v31  ;;  %v18326_v31 = vor.u32 %v18325_v40, %v18321_v46 }
 0x6f3   : > { %25369 = vmatprep.mubr.msk.bf16.mxu0 %vm6294_vm6, %v27570_v11  ;;  %v20096_v51 = vsel %vm483_vm1, %v20093_v36, %v20095_v47  ;;  %v20103_v36 = vrot.slane %v32102_v33, 3 }
 0x6f4   : > { %25528 = vmatmul.mubr.msk.bf16.gmra.mrb[136].mxu1 %vm6294_vm6, %v19908_v28  ;;  %v18331_v45 = vsel %vm6155_vm5, %v18326_v31, %v18330_v26 }
 0x6f5   : > { %25531 = vmatprep.mubr.msk.bf16.mxu1 %vm6294_vm6, %v19917_v62  ;;  %v27745_v62 = vld [vmem:[#allocation2 + $0x1bc] sm:$0xff]  }
 0x6f6   : > { %v18344_v0 = vshll.u32 %v27745_v62, 16 }
 0x6f8   : > { %v18346_v43 = vrot.slane %v18344_v0, 1 }
 0x6fa   : > { %25370 = vmatmul.mubr.msk.bf16.gmra.mrb[12].mxu0 %vm6294_vm6, %v27572_v37  ;;  %v18332_v37 = vshrl.u32 %v27743_v9, 16 }
 0x6fb   : > { %25373 = vmatprep.mubr.msk.bf16.mxu0 %vm6294_vm6, %v27574_v10  ;;  %v18338_v10 = vrot.slane %v18336_v42, 1 }
 0x6fc   : > { %25532 = vmatmul.mubr.msk.bf16.gmra.mrb[140].mxu1 %vm6294_vm6, %v19926_v8  ;;  %v18334_v63 = vor.u32 %v18332_v37, %v18330_v26  ;;  %v18340_v8 = vshrl.u32 %v27744_v24, 16  ;;  %v27748_v26 = vld [vmem:[#allocation2 + $0x1d4] sm:$0xff]   ;;  %v27749_v24 = vld [vmem:[#allocation2 + $0x1dc] sm:$0xff]  }
 0x6fd   : > { %25535 = vmatprep.mubr.msk.bf16.mxu1 %vm6294_vm6, %v19935_v2  ;;  %v18376_v42 = vshll.u32 %v27749_v24, 16 }
 0x6fe   : > { %v18342_v57 = vor.u32 %v18340_v8, %v18338_v10 }
 0x6ff   : > { %v25113_v49 = vpop.f32.mrb[100].mxu1  ;;  %v18378_v0 = vrot.slane %v18376_v42, 1 }
 0x700   : > { %v15738_v60 = vadd.f32 %v32127_v18, %v25113_v49  ;;  %v15577_v38 = vpop.f32.mrb[101].mxu1  ;;  %v20099_v49 = vrot.slane %v32086_v6, 3  ;;  %v18347_v32 = vsel %vm6155_vm5, %v18342_v57, %v18346_v43 }
 0x701   : > { %v15736_v1 = vadd.f32 %v32127_v18, %v15577_v38  ;;  %v25114_v22 = vpop.f32.mrb[102].mxu1 }
 0x702   : > { %15770 = vst.msk [vmem:[%s30963_s11 + $0x210] sm:$0xff] %vm6294_vm6, %v15738_v60  ;;  %v15739_v15 = vadd.f32 %v32127_v18, %v25114_v22  ;;  %v15580_v27 = vpop.f32.mrb[103].mxu1  ;;  %25374 = vmatmul.mubr.msk.bf16.gmra.mrb[16].mxu0 %vm6294_vm6, %v27576_v5  ;;  %v18352_v60 = vshll.u32 %v27746_v53, 16  ;;  %v18339_v5 = vsel %vm6155_vm5, %v18334_v63, %v18338_v10  ;;  %v27750_v63 = vld [vmem:[#allocation2 + $0x1e4] sm:$0xff]   ;;  %v27751_v53 = vld [vmem:[#allocation2 + $0x1ec] sm:$0xff]  }
 0x703   : > { %15768 = vst.msk [vmem:[%s30963_s11 + $0x200] sm:$0xff] %vm6294_vm6, %v15736_v1  ;;  %v15737_v56 = vadd.f32 %v32127_v18, %v15580_v27  ;;  %25377 = vmatprep.mubr.msk.bf16.mxu0 %vm6294_vm6, %v27578_v4  ;;  %v27747_v1 = vld [vmem:[#allocation2 + $0x1cc] sm:$0xff]   ;;  %v20098_v4 = vsel %vm483_vm1, %v20095_v47, %v20097_v44  ;;  %v20100_v27 = vsel %vm483_vm1, %v20097_v44, %v20099_v49  ;;  %v18384_v8 = vshll.u32 %v27750_v63, 16 }
 0x704   : > { %15771 = vst.msk [vmem:[%s30963_s11 + $0x218] sm:$0xff] %vm6294_vm6, %v15739_v15  ;;  %25536 = vmatmul.mubr.msk.bf16.gmra.mrb[144].mxu1 %vm6294_vm6, %v19940_v35  ;;  %v18360_v6 = vshll.u32 %v27747_v1, 16  ;;  %v18348_v15 = vshrl.u32 %v27745_v62, 16  ;;  %v18354_v39 = vrot.slane %v18352_v60, 1  ;;  %v18372_v62 = vshrl.u32 %v27748_v26, 16 }
 0x705   : > { %15769 = vst.msk [vmem:[%s30963_s11 + $0x208] sm:$0xff] %vm6294_vm6, %v15737_v56  ;;  %25541 = vmatprep.mubr.msk.bf16.mxu1 %vm6294_vm6, %v20092_v61  ;;  %v20101_v61 = vrot.slane %v32098_v58, 3  ;;  %v18392_v60 = vshll.u32 %v27751_v53, 16 }
 0x706   : > { %v18350_v9 = vor.u32 %v18348_v15, %v18346_v43  ;;  %v18362_v56 = vrot.slane %v18360_v6, 1  ;;  %v18358_v46 = vor.u32 %v18356_v20, %v18354_v39  ;;  %v32220_v43 = vld [vmem:[#allocation2 + $0x228] sm:$0xf] }
 0x707   : > { %v25117_v48 = vpop.f32.mrb[104].mxu1  ;;  %v18394_v6 = vrot.slane %v18392_v60, 1 }
 0x708   : > { %v15742_v13 = vadd.f32 %v32127_v18, %v25117_v48  ;;  %v15593_v23 = vpop.f32.mrb[105].mxu1  ;;  %v18368_v48 = vshll.u32 %v27748_v26, 16  ;;  %v18363_v47 = vsel %vm6155_vm5, %v18358_v46, %v18362_v56  ;;  %v27753_v26 = vld [vmem:[#allocation2 + $0x1fc] sm:$0xff]  }
 0x709   : > { %v15740_v11 = vadd.f32 %v32127_v18, %v15593_v23  ;;  %v25118_v28 = vpop.f32.mrb[106].mxu1 }
 0x70a   : > { %15774 = vst.msk [vmem:[%s30963_s11 + $0x230] sm:$0xff] %vm6294_vm6, %v15742_v13  ;;  %v15743_v50 = vadd.f32 %v32127_v18, %v25118_v28  ;;  %v15596_v59 = vpop.f32.mrb[107].mxu1  ;;  %25378 = vmatmul.mubr.msk.bf16.gmra.mrb[20].mxu0 %vm6294_vm6, %v27579_v30  ;;  %v18355_v30 = vsel %vm6155_vm5, %v18350_v9, %v18354_v39  ;;  %v18364_v28 = vshrl.u32 %v27747_v1, 16  ;;  %v18388_v1 = vshrl.u32 %v27750_v63, 16  ;;  %v27752_v39 = vld [vmem:[#allocation2 + $0x1f4] sm:$0xff]  }
 0x70b   : > { %15772 = vst.msk [vmem:[%s30963_s11 + $0x220] sm:$0xff] %vm6294_vm6, %v15740_v11  ;;  %v15741_v16 = vadd.f32 %v32127_v18, %v15596_v59  ;;  %25383 = vmatprep.mubr.msk.bf16.mxu0 %vm6294_vm6, %v18331_v45  ;;  %v20102_v11 = vsel %vm483_vm1, %v20099_v49, %v20101_v61  ;;  %v20104_v59 = vsel %vm483_vm1, %v20101_v61, %v20103_v36  ;;  %v20250_v49 = vld [vmem:[#allocation2 + $0x224] sm:$0xf]  ;;  %v18400_v9 = vshll.u32 %v27752_v39, 16 }
 0x70c   : > { %15775 = vst.msk [vmem:[%s30963_s11 + $0x238] sm:$0xff] %vm6294_vm6, %v15743_v50  ;;  %25542 = vmatmul.mubr.msk.bf16.vlgmr.msra.gmra.mrb[132].mxu1 %vm6294_vm6, %v20094_v12  ;;  %v18370_v50 = vrot.slane %v18368_v48, 1  ;;  %v18366_v45 = vor.u32 %v18364_v28, %v18362_v56  ;;  %v20105_v12 = vrot.slane %v32117_v7, 3  ;;  %v18408_v48 = vshll.u32 %v27753_v26, 16 }
 0x70d   : > { %15773 = vst.msk [vmem:[%s30963_s11 + $0x228] sm:$0xff] %vm6294_vm6, %v15741_v16  ;;  %25545 = vmatprep.mubr.msk.bf16.mxu1 %vm6294_vm6, %v20096_v51  ;;  %25558 = vmatpush3.bf16.msra.mxu1 %v32094_v3 }
 0x70e   : > { %25575 = vmatprep.subr.bf16.mxu1 %v32157_v19  ;;  %v18374_v10 = vor.u32 %v18372_v62, %v18370_v50 }
 0x70f   : > { %v25121_v2 = vpop.f32.mrb[108].mxu1 }
 0x710   : > { %v15746_v52 = vadd.f32 %v32127_v18, %v25121_v2  ;;  %v15609_v21 = vpop.f32.mrb[109].mxu1  ;;  %v18371_v2 = vsel %vm6155_vm5, %v18366_v45, %v18370_v50  ;;  %v18379_v57 = vsel %vm6155_vm5, %v18374_v10, %v18378_v0  ;;  %v27754_v50 = vld [vmem:[#allocation2 + $0x204] sm:$0xff]  }
 0x711   : > { %v15744_v38 = vadd.f32 %v32127_v18, %v15609_v21  ;;  %v25122_v3 = vpop.f32.mrb[110].mxu1 }
 0x712   : > { %15778 = vst.msk [vmem:[%s30963_s11 + $0x250] sm:$0xff] %vm6294_vm6, %v15746_v52  ;;  %v15747_v41 = vadd.f32 %v32127_v18, %v25122_v3  ;;  %v15612_v29 = vpop.f32.mrb[111].mxu1  ;;  %25384 = vmatmul.mubr.msk.bf16.vlgmr.msra.gmra.mrb[248].mxu0 %vm6294_vm6, %v18339_v5  ;;  %v20106_v3 = vsel %vm483_vm1, %v20103_v36, %v20105_v12  ;;  %v18380_v5 = vshrl.u32 %v27749_v24, 16  ;;  %v32254_v36 = vld [vmem:[#allocation5 + $0x40] sm:$0xff]   ;;  %v18410_v24 = vrot.slane %v18408_v48, 1  ;;  %v32279_v12 = vld [vmem:[#allocation2 + $0x23c] sm:$0xff]  }
 0x713   : > { %15776 = vst.msk [vmem:[%s30963_s11 + $0x240] sm:$0xff] %vm6294_vm6, %v15744_v38  ;;  %v15745_v22 = vadd.f32 %v32127_v18, %v15612_v29  ;;  %25387 = vmatprep.mubr.msk.bf16.mxu0 %vm6294_vm6, %v18347_v32  ;;  %25416 = vmatpush3.bf16.msra.mxu0 %v32049_v54  ;;  %v18386_v29 = vrot.slane %v18384_v8, 1  ;;  %v32286_v8 = vld [vmem:[#allocation2 + $0x244] sm:$0xff]  }
 0x714   : > { %15779 = vst.msk [vmem:[%s30963_s11 + $0x258] sm:$0xff] %vm6294_vm6, %v15747_v41  ;;  %25546 = vmatmul.mubr.msk.bf16.gmra.mrb[136].mxu1 %vm6294_vm6, %v20098_v4  ;;  %v32235_v41 = vcombine.low %v20250_v49, %v32220_v43  ;;  %v18382_v32 = vor.u32 %v18380_v5, %v18378_v0 }
 0x715   : > { %15777 = vst.msk [vmem:[%s30963_s11 + $0x248] sm:$0xff] %vm6294_vm6, %v15745_v22  ;;  %25549 = vmatprep.mubr.msk.bf16.mxu1 %vm6294_vm6, %v20100_v27  ;;  %v18390_v27 = vor.u32 %v18388_v1, %v18386_v29 }
 0x716   : > { %v18387_v20 = vsel %vm6155_vm5, %v18382_v32, %v18386_v29 }
 0x717   : > { %v25125_v35 = vpop.f32.mrb[112].mxu1  ;;  %v18395_v46 = vsel %vm6155_vm5, %v18390_v27, %v18394_v6 }
 0x718   : > { %v15750_v54 = vadd.f32 %v32127_v18, %v25125_v35  ;;  %v15625_v40 = vpop.f32.mrb[113].mxu1 }
 0x719   : > { %v15748_v13 = vadd.f32 %v32127_v18, %v15625_v40  ;;  %v25126_v23 = vpop.f32.mrb[114].mxu1  ;;  %v32251_v40 = vld [vmem:[#allocation2 + $0x22c] sm:$0xff]  }
 0x71a   : > { %15782 = vst.msk [vmem:[%s30963_s11 + $0x270] sm:$0xff] %vm6294_vm6, %v15750_v54  ;;  %v15751_v58 = vadd.f32 %v32127_v18, %v25126_v23  ;;  %v15628_v31 = vpop.f32.mrb[115].mxu1  ;;  %25388 = vmatmul.mubr.msk.bf16.gmra.mrb[252].mxu0 %vm6294_vm6, %v18355_v30  ;;  %v18396_v23 = vshrl.u32 %v27751_v53, 16  ;;  %v32260_v30 = vld [vmem:[#allocation2 + $0x234] sm:$0xff]  }
 0x71b   : > { %15780 = vst.msk [vmem:[%s30963_s11 + $0x260] sm:$0xff] %vm6294_vm6, %v15748_v13  ;;  %v15749_v33 = vadd.f32 %v32127_v18, %v15628_v31  ;;  %25391 = vmatprep.mubr.msk.bf16.mxu0 %vm6294_vm6, %v18363_v47  ;;  %v18404_v47 = vshrl.u32 %v27752_v39, 16  ;;  %v20459_v39 = vshll.u32 %v32235_v41, 16 }
 0x71c   : > { %15783 = vst.msk [vmem:[%s30963_s11 + $0x278] sm:$0xff] %vm6294_vm6, %v15751_v58  ;;  %25550 = vmatmul.mubr.msk.bf16.gmra.mrb[140].mxu1 %vm6294_vm6, %v20102_v11  ;;  %v18402_v58 = vrot.slane %v18400_v9, 1  ;;  %v18398_v31 = vor.u32 %v18396_v23, %v18394_v6 }
 0x71d   : > { %15781 = vst.msk [vmem:[%s30963_s11 + $0x268] sm:$0xff] %vm6294_vm6, %v15749_v33  ;;  %25553 = vmatprep.mubr.msk.bf16.mxu1 %vm6294_vm6, %v20104_v59  ;;  %v18416_v59 = vshll.u32 %v27754_v50, 16 }
 0x71e   : > { %v18406_v28 = vor.u32 %v18404_v47, %v18402_v58  ;;  %v18403_v45 = vsel %vm6155_vm5, %v18398_v31, %v18402_v58  ;;  %v20457_v58 = vshrl.u32 %v32235_v41, 16 }
 0x71f   : > { %v25129_v16 = vpop.f32.mrb[116].mxu1 }
 0x720   : > { %v15754_v37 = vadd.f32 %v32127_v18, %v25129_v16  ;;  %v15641_v51 = vpop.f32.mrb[117].mxu1 }
 0x721   : > { %v15752_v44 = vadd.f32 %v32127_v18, %v15641_v51  ;;  %v25130_v52 = vpop.f32.mrb[118].mxu1  ;;  %v27755_v51 = vld [vmem:[#allocation2 + $0x20c] sm:$0xff]  }
 0x722   : > { %15786 = vst.msk [vmem:[%s30963_s11 + $0x290] sm:$0xff] %vm6294_vm6, %v15754_v37  ;;  %v15755_v21 = vadd.f32 %v32127_v18, %v25130_v52  ;;  %v15644_v7 = vpop.f32.mrb[119].mxu1  ;;  %25392 = vmatmul.mubr.msk.bf16.gmra.mrb[0].mxu0 %vm6294_vm6, %v18371_v2  ;;  %v18411_v37 = vsel %vm6155_vm5, %v18406_v28, %v18410_v24  ;;  %v18424_v10 = vshll.u32 %v27755_v51, 16  ;;  %v18418_v2 = vrot.slane %v18416_v59, 1 }
 0x723   : > { %15784 = vst.msk [vmem:[%s30963_s11 + $0x280] sm:$0xff] %vm6294_vm6, %v15752_v44  ;;  %v15753_v38 = vadd.f32 %v32127_v18, %v15644_v7  ;;  %25395 = vmatprep.mubr.msk.bf16.mxu0 %vm6294_vm6, %v18379_v57  ;;  %v18412_v44 = vshrl.u32 %v27753_v26, 16  ;;  %v18420_v52 = vshrl.u32 %v27754_v50, 16  ;;  %v20461_v26 = vrot.slane %v20459_v39, 1 }
 0x724   : > { %15787 = vst.msk [vmem:[%s30963_s11 + $0x298] sm:$0xff] %vm6294_vm6, %v15755_v21  ;;  %25554 = vmatmul.mubr.msk.bf16.gmra.mrb[144].mxu1 %vm6294_vm6, %v20106_v3  ;;  %v18426_v21 = vrot.slane %v18424_v10, 1  ;;  %v20470_v59 = vshll.u32 %v32260_v30, 16 }
 0x725   : > { %15785 = vst.msk [vmem:[%s30963_s11 + $0x288] sm:$0xff] %vm6294_vm6, %v15753_v38  ;;  %25559 = vmatprep.mubr.msk.bf16.mxu1 %vm6294_vm6, %v32235_v41  ;;  %v18414_v7 = vor.u32 %v18412_v44, %v18410_v24  ;;  %v18422_v60 = vor.u32 %v18420_v52, %v18418_v2  ;;  %v27756_v38 = vld [vmem:[#allocation2 + $0x214] sm:$0xff]   ;;  %v20264_v24 = vld [vmem:[#allocation2 + $0x25c] sm:$0xf]  ;;  %v20462_v50 = vor.u32 %v20461_v26, %v20457_v58  ;;  %v20484_v52 = vshll.u32 %v32286_v8, 16 }
 0x726   : > { %v18432_v3 = vshll.u32 %v27756_v38, 16  ;;  %v20656_v58 = vld [vmem:[#allocation2 + $0x224] sm:$0xe] }
 0x727   : > { %v25133_v22 = vpop.f32.mrb[120].mxu1  ;;  %v18419_v5 = vsel %vm6155_vm5, %v18414_v7, %v18418_v2  ;;  %v32779_v7 = vld [vmem:[#allocation75_spill] sm:$0xff] }
 0x728   : > { %v15758_v4 = vadd.f32 %v32127_v18, %v25133_v22  ;;  %v15657_v15 = vpop.f32.mrb[121].mxu1  ;;  %v32303_v22 = vld [vmem:[#allocation2 + $0x24c] sm:$0xff]  }
 0x729   : > { %v15756_v56 = vadd.f32 %v32127_v18, %v15657_v15  ;;  %v25134_v35 = vpop.f32.mrb[122].mxu1  ;;  %v27757_v15 = vld [vmem:[#allocation2 + $0x21c] sm:$0xff]  }
 0x72a   : > { %15790 = vst.msk [vmem:[%s30963_s11 + $0x2b0] sm:$0xff] %vm6294_vm6, %v15758_v4  ;;  %v15759_v61 = vadd.f32 %v32127_v18, %v25134_v35  ;;  %v15660_v54 = vpop.f32.mrb[123].mxu1  ;;  %25396 = vmatmul.mubr.msk.bf16.gmra.mrb[4].mxu0 %vm6294_vm6, %v18387_v20  ;;  %v18427_v4 = vsel %vm6155_vm5, %v18422_v60, %v18426_v21  ;;  %v18440_v27 = vshll.u32 %v27757_v15, 16  ;;  %v32311_v20 = vld [vmem:[#allocation2 + $0x254] sm:$0xff]   ;;  %v20463_v35 = vshll.u32 %v32251_v40, 16 }
 0x72b   : > { %15788 = vst.msk [vmem:[%s30963_s11 + $0x2a0] sm:$0xff] %vm6294_vm6, %v15756_v56  ;;  %v15757_v13 = vadd.f32 %v32127_v18, %v15660_v54  ;;  %25399 = vmatprep.mubr.msk.bf16.mxu0 %vm6294_vm6, %v18395_v46  ;;  %v18434_v56 = vrot.slane %v18432_v3, 1  ;;  %v18436_v54 = vshrl.u32 %v27756_v38, 16  ;;  %v20486_v60 = vrot.slane %v20484_v52, 1 }
 0x72c   : > { %15791 = vst.msk [vmem:[%s30963_s11 + $0x2b8] sm:$0xff] %vm6294_vm6, %v15759_v61  ;;  %25560 = vmatmul.mubr.msk.bf16.vlgmr.msra.gmra.mrb[132].mxu1 %vm6294_vm6, %v32251_v40  ;;  %v18428_v61 = vshrl.u32 %v27755_v51, 16  ;;  %v18442_v46 = vrot.slane %v18440_v27, 1  ;;  %v20465_v31 = vrot.slane %v20463_v35, 1  ;;  %v20474_v51 = vshrl.u32 %v32260_v30, 16  ;;  %v32781_v27 = vld [vmem:[#allocation77_spill] sm:$0xff] }
 0x72d   : > { %15789 = vst.msk [vmem:[%s30963_s11 + $0x2a8] sm:$0xff] %vm6294_vm6, %v15757_v13  ;;  %25563 = vmatprep.mubr.msk.bf16.mxu1 %vm6294_vm6, %v32260_v30  ;;  %25576 = vmatpush3.bf16.msra.mxu1 %v32157_v19  ;;  %v20265_v13 = vld [vmem:[#allocation2 + $0x260] sm:$0x3]  ;;  %v18438_v23 = vor.u32 %v18436_v54, %v18434_v56  ;;  %v20481_v38 = vshrl.u32 %v32279_v12, 16  ;;  %v20502_v35 = vshrl.u32 %v32311_v20, 16 }
 0x72e   : > { %25593 = vmatprep.subr.bf16.mxu1 %v32254_v36  ;;  %v18430_v48 = vor.u32 %v18428_v61, %v18426_v21  ;;  %v20466_v41 = vsel %vm6155_vm5, %v20462_v50, %v20465_v31 }
 0x72f   : > { %v25137_v42 = vpop.f32.mrb[124].mxu1  ;;  %v18443_v28 = vsel %vm6155_vm5, %v18438_v23, %v18442_v46 }
 0x730   : > { %v15762_v33 = vadd.f32 %v32127_v18, %v25137_v42  ;;  %v15673_v11 = vpop.f32.mrb[125].mxu1  ;;  %v18435_v47 = vsel %vm6155_vm5, %v18430_v48, %v18434_v56  ;;  %v27758_v42 = vld [vmem:[#allocation2 + $0x224] ss:$0 sps:$4 sm:$0x11]   ;;  %v20495_v56 = vshrl.u32 %v32303_v22, 16 }
 0x731   : > { %v15760_v62 = vadd.f32 %v32127_v18, %v15673_v11  ;;  %v25138_v0 = vpop.f32.mrb[126].mxu1  ;;  %v22531_v11 = vcombine.low %v20264_v24, %v20265_v13  ;;  %v32783_v13 = vld [vmem:[#allocation79_spill] sm:$0xff] }
 0x732   : > { %15794 = vst.msk [vmem:[%s30963_s11 + $0x2d0] sm:$0xff] %vm6294_vm6, %v15762_v33  ;;  %v15763_v19 = vadd.f32 %v32127_v18, %v25138_v0  ;;  %v15676_v16 = vpop.f32.mrb[127].mxu1  ;;  %25400 = vmatmul.mubr.msk.bf16.gmra.mrb[8].mxu0 %vm6294_vm6, %v18403_v45  ;;  %v18448_v33 = vshll.u32 %v27758_v42, 16  ;;  %v18444_v45 = vshrl.u32 %v27757_v15, 16  ;;  %v32784_v42 = vld [vmem:[#allocation80_spill] sm:$0xff] }
 0x733   : > { %15792 = vst.msk [vmem:[%s30963_s11 + $0x2c0] sm:$0xff] %vm6294_vm6, %v15760_v62  ;;  %v15761_v63 = vadd.f32 %v32127_v18, %v15676_v16  ;;  %25403 = vmatprep.mubr.msk.bf16.mxu0 %vm6294_vm6, %v18411_v37  ;;  %v20477_v62 = vshll.u32 %v32279_v12, 16  ;;  %v20472_v16 = vrot.slane %v20470_v59, 1  ;;  %v20467_v37 = vshrl.u32 %v32251_v40, 16 }
 0x734   : > { %15795 = vst.msk [vmem:[%s30963_s11 + $0x2d8] sm:$0xff] %vm6294_vm6, %v15763_v19  ;;  %25564 = vmatmul.mubr.msk.bf16.gmra.mrb[136].mxu1 %vm6294_vm6, %v32279_v12  ;;  %v18446_v0 = vor.u32 %v18444_v45, %v18442_v46  ;;  %v18450_v19 = vrot.slane %v18448_v33, 1  ;;  %v32782_v46 = vld [vmem:[#allocation78_spill] sm:$0xff]  ;;  %v20667_v59 = vrot.slane %v32279_v12, 1 }
 0x735   : > { %15793 = vst.msk [vmem:[%s30963_s11 + $0x2c8] sm:$0xff] %vm6294_vm6, %v15761_v63  ;;  %25567 = vmatprep.mubr.msk.bf16.mxu1 %vm6294_vm6, %v32286_v8  ;;  %v20479_v10 = vrot.slane %v20477_v62, 1  ;;  %v20469_v2 = vor.u32 %v20467_v37, %v20465_v31  ;;  %v20476_v44 = vor.u32 %v20474_v51, %v20472_v16  ;;  %v22551_v31 = vcombine.low %v20656_v58, %v32220_v43  ;;  %v32786_v45 = vld [vmem:[#allocation82_spill] sm:$0xff] }
 0x736   : > { %v18451_v63 = vsel %vm6155_vm5, %v18446_v0, %v18450_v19  ;;  %v20665_v43 = vrot.slane %v32260_v30, 1  ;;  %v20669_v0 = vrot.slane %v32286_v8, 1  ;;  %v20671_v30 = vrot.slane %v32303_v22, 1  ;;  %v32788_v19 = vld [vmem:[#allocation84_spill] sm:$0xff] }
 0x737   : > { %v25141_v57 = vpop.f32.mrb[128].mxu1  ;;  %v20473_v21 = vsel %vm6155_vm5, %v20469_v2, %v20472_v16  ;;  %v32789_v16 = vld [vmem:[#allocation21_spill] sm:$0xff]  ;;  %v20673_v51 = vrot.slane %v32311_v20, 1 }
 0x738   : > { %v15766_v49 = vadd.f32 %v32127_v18, %v25141_v57  ;;  %v15689_v53 = vpop.f32.mrb[129].mxu1  ;;  %v20480_v57 = vsel %vm6155_vm5, %v20476_v44, %v20479_v10  ;;  %v20668_v62 = vsel %vm6710_vm8, %v20665_v43, %v20667_v59  ;;  %v20670_v12 = vsel %vm6710_vm8, %v20667_v59, %v20669_v0 }
 0x739   : > { %v15764_v29 = vadd.f32 %v32127_v18, %v15689_v53  ;;  %v25142_v32 = vpop.f32.mrb[130].mxu1  ;;  %v20451_v53 = vld [vmem:[#allocation2 + $0x260] sm:$0x7]  ;;  %v20672_v37 = vsel %vm6710_vm8, %v20669_v0, %v20671_v30 }
 0x73a   : > { %15798 = vst.msk [vmem:[%s30963_s11 + $0x2f0] sm:$0xff] %vm6294_vm6, %v15766_v49  ;;  %v15767_v1 = vadd.f32 %v32127_v18, %v25142_v32  ;;  %v15692_v6 = vpop.f32.mrb[131].mxu1  ;;  %25404 = vmatmul.mubr.msk.bf16.gmra.mrb[12].mxu0 %vm6294_vm6, %v18419_v5  ;;  %v20491_v49 = vshll.u32 %v32303_v22, 16  ;;  %v32346_v3 = vcombine.low %v20264_v24, %v20451_v53  ;;  %v20488_v5 = vshrl.u32 %v32286_v8, 16 }
 0x73b   : > { %15796 = vst.msk [vmem:[%s30963_s11 + $0x2e0] sm:$0xff] %vm6294_vm6, %v15764_v29  ;;  %v15765_v9 = vadd.f32 %v32127_v18, %v15692_v6  ;;  %25407 = vmatprep.mubr.msk.bf16.mxu0 %vm6294_vm6, %v18427_v4  ;;  %v20483_v32 = vor.u32 %v20481_v38, %v20479_v10  ;;  %v20498_v4 = vshll.u32 %v32311_v20, 16  ;;  %v20663_v24 = vrot.slane %v32251_v40, 1 }
 0x73c   : > { %15799 = vst.msk [vmem:[%s30963_s11 + $0x2f8] sm:$0xff] %vm6294_vm6, %v15767_v1  ;;  %25568 = vmatmul.mubr.msk.bf16.gmra.mrb[140].mxu1 %vm6294_vm6, %v32303_v22  ;;  %v20493_v29 = vrot.slane %v20491_v49, 1  ;;  %v32780_v1 = vld [vmem:[#allocation76_spill] sm:$0xff]  ;;  %v20490_v6 = vor.u32 %v20488_v5, %v20486_v60  ;;  %v20506_v39 = vshll.u32 %v32346_v3, 16  ;;  %v20675_v8 = vrot.slane %v32346_v3, 1 }
 0x73d   : > { %15797 = vst.msk [vmem:[%s30963_s11 + $0x2e8] sm:$0xff] %vm6294_vm6, %v15765_v9  ;;  %25571 = vmatprep.mubr.msk.bf16.mxu1 %vm6294_vm6, %v32311_v20  ;;  %v20487_v15 = vsel %vm6155_vm5, %v20483_v32, %v20486_v60  ;;  %v20500_v9 = vrot.slane %v20498_v4, 1  ;;  %v20666_v40 = vsel %vm6710_vm8, %v20663_v24, %v20665_v43  ;;  %v20674_v22 = vsel %vm6710_vm8, %v20671_v30, %v20673_v51 }
 0x73e   : > { %v20508_v61 = vrot.slane %v20506_v39, 1  ;;  %v20497_v54 = vor.u32 %v20495_v56, %v20493_v29  ;;  %v20676_v10 = vsel %vm6710_vm8, %v20673_v51, %v20675_v8 }
 0x73f   : > { %v20504_v26 = vor.u32 %v20502_v35, %v20500_v9 }
 0x740   : > { %v20501_v48 = vsel %vm6155_vm5, %v20497_v54, %v20500_v9 }
 0x741   : > { %v20509_v23 = vsel %vm6155_vm5, %v20504_v26, %v20508_v61 }
 0x742   : > { %25408 = vmatmul.mubr.msk.bf16.gmra.mrb[16].mxu0 %vm6294_vm6, %v18435_v47  ;;  %v20510_v47 = vshrl.u32 %v32346_v3, 16 }
 0x743   : > { %25411 = vmatprep.mubr.msk.bf16.mxu0 %vm6294_vm6, %v18443_v28  ;;  %v32785_v28 = vld [vmem:[#allocation81_spill] sm:$0xff] }
 0x744   : > { %25572 = vmatmul.mubr.msk.bf16.gmra.mrb[144].mxu1 %vm6294_vm6, %v22531_v11  ;;  %v20512_v33 = vor.u32 %v20510_v47, %v20508_v61  ;;  %v20662_v11 = vrot.slane %v22551_v31, 1 }
 0x745   : > { %25577 = vmatprep.mubr.msk.bf16.mxu1 %vm6294_vm6, %v20466_v41  ;;  %v32787_v41 = vld [vmem:[#allocation83_spill] sm:$0xff] }
 0x746   : > { %v20664_v50 = vsel %vm6710_vm8, %v20662_v11, %v20663_v24 }
 0x74a   : > { %25412 = vmatmul.mubr.msk.bf16.gmra.mrb[20].mxu0 %vm6294_vm6, %v18451_v63 }
 0x74b   : > { %25417 = vmatprep.mubr.msk.bf16.mxu0 %vm6294_vm6, %v32779_v7 }
 0x74c   : > { %25578 = vmatmul.mubr.msk.bf16.vlgmr.msra.gmra.mrb[132].mxu1 %vm6294_vm6, %v20473_v21 }
 0x74d   : > { %25581 = vmatprep.mubr.msk.bf16.mxu1 %vm6294_vm6, %v20480_v57  ;;  %25594 = vmatpush3.bf16.msra.mxu1 %v32254_v36  ;;  %v20494_v36 = vsel %vm6155_vm5, %v20490_v6, %v20493_v29 }
 0x752   : > { %25418 = vmatmul.mubr.msk.bf16.vlgmr.msra.gmra.mrb[248].mxu0 %vm6294_vm6, %v32780_v1 }
 0x753   : > { %25421 = vmatprep.mubr.msk.bf16.mxu0 %vm6294_vm6, %v32781_v27 }
 0x754   : > { %25582 = vmatmul.mubr.msk.bf16.gmra.mrb[136].mxu1 %vm6294_vm6, %v20487_v15 }
 0x755   : > { %25585 = vmatprep.mubr.msk.bf16.mxu1 %vm6294_vm6, %v20494_v36 }
 0x75a   : > { %25422 = vmatmul.mubr.msk.bf16.gmra.mrb[252].mxu0 %vm6294_vm6, %v32782_v46 }
 0x75b   : > { %25425 = vmatprep.mubr.msk.bf16.mxu0 %vm6294_vm6, %v32783_v13 }
 0x75c   : > { %25586 = vmatmul.mubr.msk.bf16.gmra.mrb[140].mxu1 %vm6294_vm6, %v20501_v48 }
 0x75d   : > { %25589 = vmatprep.mubr.msk.bf16.mxu1 %vm6294_vm6, %v20509_v23 }
 0x762   : > { %25426 = vmatmul.mubr.msk.bf16.gmra.mrb[0].mxu0 %vm6294_vm6, %v32784_v42 }
 0x763   : > { %25429 = vmatprep.mubr.msk.bf16.mxu0 %vm6294_vm6, %v32785_v28 }
 0x764   : > { %25590 = vmatmul.mubr.msk.bf16.gmra.mrb[144].mxu1 %vm6294_vm6, %v20512_v33 }
 0x765   : > { %25595 = vmatprep.mubr.msk.bf16.mxu1 %vm6294_vm6, %v20664_v50 }
 0x76a   : > { %25430 = vmatmul.mubr.msk.bf16.gmra.mrb[4].mxu0 %vm6294_vm6, %v32786_v45 }
 0x76b   : > { %25433 = vmatprep.mubr.msk.bf16.mxu0 %vm6294_vm6, %v32787_v41 }
 0x76c   : > { %25596 = vmatmul.mubr.msk.bf16.vlgmr.msra.gmra.mrb[132].mxu1 %vm6294_vm6, %v20666_v40 }
 0x76d   : > { %25599 = vmatprep.mubr.msk.bf16.mxu1 %vm6294_vm6, %v20668_v62 }
 0x772   : > { %25434 = vmatmul.mubr.msk.bf16.gmra.mrb[8].mxu0 %vm6294_vm6, %v32788_v19 }
 0x773   : > { %25437 = vmatprep.mubr.msk.bf16.mxu0 %vm6294_vm6, %v32789_v16 }
 0x774   : > { %25600 = vmatmul.mubr.msk.bf16.gmra.mrb[136].mxu1 %vm6294_vm6, %v20670_v12 }
 0x775   : > { %25603 = vmatprep.mubr.msk.bf16.mxu1 %vm6294_vm6, %v20672_v37 }
 0x77a   : > { %25438 = vmatmul.mubr.msk.bf16.gmra.mrb[12].mxu0 %vm6294_vm6, %v30770_v17 }
 0x77b   : > { %25441 = vmatprep.mubr.msk.bf16.mxu0 %vm6294_vm6, %v30796_v34 }
 0x77c   : > { %25604 = vmatmul.mubr.msk.bf16.gmra.mrb[140].mxu1 %vm6294_vm6, %v20674_v22 }
 0x77d   : > { %25607 = vmatprep.mubr.msk.bf16.mxu1 %vm6294_vm6, %v20676_v10 }
 0x782   : > { %25442 = vmatmul.mubr.msk.bf16.gmra.mrb[16].mxu0 %vm6294_vm6, %v30817_v25 }
 0x783   : > { %25445 = vmatprep.mubr.msk.bf16.mxu0 %vm6294_vm6, %v30831_v55 }
 0x784   : > { %25608 = vmatmul.mubr.msk.bf16.gmra.mrb[144].mxu1 %vm6294_vm6, %v20675_v8 }
 0x78a   : > { %25446 = vmatmul.mubr.msk.bf16.gmra.mrb[20].mxu0 %vm6294_vm6, %v30842_v14 }
 0x825   : > { %v25419_v17 = vpop.f32.mrb[248].mxu0 }
 0x826   : > { %v18987_v34 = vadd.f32 %v32127_v18, %v25419_v17  ;;  %v18826_v20 = vpop.f32.mrb[249].mxu0 }
 0x827   : > { %v18985_v63 = vadd.f32 %v32127_v18, %v18826_v20  ;;  %v25420_v2 = vpop.f32.mrb[250].mxu0 }
 0x828   : > { %19019 = vst.msk [vmem:[%s30963_s11 + $0x310] sm:$0xff] %vm6294_vm6, %v18987_v34  ;;  %v18988_v25 = vadd.f32 %v32127_v18, %v25420_v2  ;;  %v18829_v55 = vpop.f32.mrb[251].mxu0 }
 0x829   : > { %19017 = vst.msk [vmem:[%s30963_s11 + $0x300] sm:$0xff] %vm6294_vm6, %v18985_v63  ;;  %v18986_v14 = vadd.f32 %v32127_v18, %v18829_v55 }
 0x82a   : > { %19020 = vst.msk [vmem:[%s30963_s11 + $0x318] sm:$0xff] %vm6294_vm6, %v18988_v25 }
 0x82b   : > { %19018 = vst.msk [vmem:[%s30963_s11 + $0x308] sm:$0xff] %vm6294_vm6, %v18986_v14 }
 0x82d   : > { %v25423_v44 = vpop.f32.mrb[252].mxu0 }
 0x82e   : > { %v18991_v52 = vadd.f32 %v32127_v18, %v25423_v44  ;;  %v18842_v21 = vpop.f32.mrb[253].mxu0 }
 0x82f   : > { %v18989_v7 = vadd.f32 %v32127_v18, %v18842_v21  ;;  %v25424_v57 = vpop.f32.mrb[254].mxu0 }
 0x830   : > { %19023 = vst.msk [vmem:[%s30963_s11 + $0x330] sm:$0xff] %vm6294_vm6, %v18991_v52  ;;  %v18992_v49 = vadd.f32 %v32127_v18, %v25424_v57  ;;  %v18845_v53 = vpop.f32.mrb[255].mxu0 }
 0x831   : > { %19021 = vst.msk [vmem:[%s30963_s11 + $0x320] sm:$0xff] %vm6294_vm6, %v18989_v7  ;;  %v18990_v60 = vadd.f32 %v32127_v18, %v18845_v53 }
 0x832   : > { %19024 = vst.msk [vmem:[%s30963_s11 + $0x338] sm:$0xff] %vm6294_vm6, %v18992_v49 }
 0x833   : > { %19022 = vst.msk [vmem:[%s30963_s11 + $0x328] sm:$0xff] %vm6294_vm6, %v18990_v60 }
 0x835   : > { %v25427_v38 = vpop.f32.mrb[0].mxu0 }
 0x836   : > { %v18995_v3 = vadd.f32 %v32127_v18, %v25427_v38  ;;  %v18858_v5 = vpop.f32.mrb[1].mxu0 }
 0x837   : > { %v18993_v29 = vadd.f32 %v32127_v18, %v18858_v5  ;;  %v25428_v32 = vpop.f32.mrb[2].mxu0 }
 0x838   : > { %19027 = vst.msk [vmem:[%s30963_s11 + $0x350] sm:$0xff] %vm6294_vm6, %v18995_v3  ;;  %v18996_v1 = vadd.f32 %v32127_v18, %v25428_v32  ;;  %v18861_v6 = vpop.f32.mrb[3].mxu0 }
 0x839   : > { %19025 = vst.msk [vmem:[%s30963_s11 + $0x340] sm:$0xff] %vm6294_vm6, %v18993_v29  ;;  %v18994_v4 = vadd.f32 %v32127_v18, %v18861_v6 }
 0x83a   : > { %19028 = vst.msk [vmem:[%s30963_s11 + $0x358] sm:$0xff] %vm6294_vm6, %v18996_v1 }
 0x83b   : > { %19026 = vst.msk [vmem:[%s30963_s11 + $0x348] sm:$0xff] %vm6294_vm6, %v18994_v4 }
 0x83d   : > { %v25431_v15 = vpop.f32.mrb[4].mxu0 }
 0x83e   : > { %v18999_v27 = vadd.f32 %v32127_v18, %v25431_v15  ;;  %v18874_v36 = vpop.f32.mrb[5].mxu0 }
 0x83f   : > { %v25597_v39 = vpop.f32.mrb[132].mxu1  ;;  %v18997_v9 = vadd.f32 %v32127_v18, %v18874_v36  ;;  %v25432_v56 = vpop.f32.mrb[6].mxu0 }
 0x840   : > { %19031 = vst.msk [vmem:[%s30963_s11 + $0x370] sm:$0xff] %vm6294_vm6, %v18999_v27  ;;  %v20822_v35 = vadd.f32 %v32127_v18, %v25597_v39  ;;  %v20741_v61 = vpop.f32.mrb[133].mxu1  ;;  %v19000_v54 = vadd.f32 %v32127_v18, %v25432_v56  ;;  %v18877_v46 = vpop.f32.mrb[7].mxu0 }
 0x841   : > { %19029 = vst.msk [vmem:[%s30963_s11 + $0x360] sm:$0xff] %vm6294_vm6, %v18997_v9  ;;  %v20820_v26 = vadd.f32 %v32127_v18, %v20741_v61  ;;  %v25598_v48 = vpop.f32.mrb[134].mxu1  ;;  %v18998_v13 = vadd.f32 %v32127_v18, %v18877_v46 }
 0x842   : > { %20838 = vst.msk [vmem:[%s30963_s11 + $0x410] sm:$0xff] %vm6294_vm6, %v20822_v35  ;;  %19032 = vst.msk [vmem:[%s30963_s11 + $0x378] sm:$0xff] %vm6294_vm6, %v19000_v54  ;;  %v20823_v23 = vadd.f32 %v32127_v18, %v25598_v48  ;;  %v20744_v58 = vpop.f32.mrb[135].mxu1 }
 0x843   : > { %20836 = vst.msk [vmem:[%s30963_s11 + $0x400] sm:$0xff] %vm6294_vm6, %v20820_v26  ;;  %19030 = vst.msk [vmem:[%s30963_s11 + $0x368] sm:$0xff] %vm6294_vm6, %v18998_v13  ;;  %v20821_v31 = vadd.f32 %v32127_v18, %v20744_v58 }
 0x844   : > { %20839 = vst.msk [vmem:[%s30963_s11 + $0x418] sm:$0xff] %vm6294_vm6, %v20823_v23 }
 0x845   : > { %20837 = vst.msk [vmem:[%s30963_s11 + $0x408] sm:$0xff] %vm6294_vm6, %v20821_v31  ;;  %v25435_v47 = vpop.f32.mrb[8].mxu0 }
 0x846   : > { %v19003_v24 = vadd.f32 %v32127_v18, %v25435_v47  ;;  %v18890_v42 = vpop.f32.mrb[9].mxu0 }
 0x847   : > { %v25601_v33 = vpop.f32.mrb[136].mxu1  ;;  %v19001_v11 = vadd.f32 %v32127_v18, %v18890_v42  ;;  %v25436_v28 = vpop.f32.mrb[10].mxu0 }
 0x848   : > { %19035 = vst.msk [vmem:[%s30963_s11 + $0x390] sm:$0xff] %vm6294_vm6, %v19003_v24  ;;  %v20826_v50 = vadd.f32 %v32127_v18, %v25601_v33  ;;  %v20757_v43 = vpop.f32.mrb[137].mxu1  ;;  %v19004_v59 = vadd.f32 %v32127_v18, %v25436_v28  ;;  %v18893_v45 = vpop.f32.mrb[11].mxu0 }
 0x849   : > { %19033 = vst.msk [vmem:[%s30963_s11 + $0x380] sm:$0xff] %vm6294_vm6, %v19001_v11  ;;  %v20824_v40 = vadd.f32 %v32127_v18, %v20757_v43  ;;  %v25602_v41 = vpop.f32.mrb[138].mxu1  ;;  %v19002_v62 = vadd.f32 %v32127_v18, %v18893_v45 }
 0x84a   : > { %20842 = vst.msk [vmem:[%s30963_s11 + $0x430] sm:$0xff] %vm6294_vm6, %v20826_v50  ;;  %19036 = vst.msk [vmem:[%s30963_s11 + $0x398] sm:$0xff] %vm6294_vm6, %v19004_v59  ;;  %v20827_v0 = vadd.f32 %v32127_v18, %v25602_v41  ;;  %v20760_v30 = vpop.f32.mrb[139].mxu1 }
 0x84b   : > { %20840 = vst.msk [vmem:[%s30963_s11 + $0x420] sm:$0xff] %vm6294_vm6, %v20824_v40  ;;  %19034 = vst.msk [vmem:[%s30963_s11 + $0x388] sm:$0xff] %vm6294_vm6, %v19002_v62  ;;  %v20825_v19 = vadd.f32 %v32127_v18, %v20760_v30 }
 0x84c   : > { %20843 = vst.msk [vmem:[%s30963_s11 + $0x438] sm:$0xff] %vm6294_vm6, %v20827_v0 }
 0x84d   : > { %20841 = vst.msk [vmem:[%s30963_s11 + $0x428] sm:$0xff] %vm6294_vm6, %v20825_v19  ;;  %v25439_v12 = vpop.f32.mrb[12].mxu0 }
 0x84e   : > { %v19007_v16 = vadd.f32 %v32127_v18, %v25439_v12  ;;  %v18906_v37 = vpop.f32.mrb[13].mxu0 }
 0x84f   : > { %v25605_v51 = vpop.f32.mrb[140].mxu1  ;;  %v19005_v8 = vadd.f32 %v32127_v18, %v18906_v37  ;;  %v25440_v22 = vpop.f32.mrb[14].mxu0 }
 0x850   : > { %19039 = vst.msk [vmem:[%s30963_s11 + $0x3b0] sm:$0xff] %vm6294_vm6, %v19007_v16  ;;  %v20830_v10 = vadd.f32 %v32127_v18, %v25605_v51  ;;  %v20773_v17 = vpop.f32.mrb[141].mxu1  ;;  %v19008_v34 = vadd.f32 %v32127_v18, %v25440_v22  ;;  %v18909_v20 = vpop.f32.mrb[15].mxu0 }
 0x851   : > { %19037 = vst.msk [vmem:[%s30963_s11 + $0x3a0] sm:$0xff] %vm6294_vm6, %v19005_v8  ;;  %v20828_v63 = vadd.f32 %v32127_v18, %v20773_v17  ;;  %v25606_v2 = vpop.f32.mrb[142].mxu1  ;;  %v19006_v25 = vadd.f32 %v32127_v18, %v18909_v20 }
 0x852   : > { %20846 = vst.msk [vmem:[%s30963_s11 + $0x450] sm:$0xff] %vm6294_vm6, %v20830_v10  ;;  %19040 = vst.msk [vmem:[%s30963_s11 + $0x3b8] sm:$0xff] %vm6294_vm6, %v19008_v34  ;;  %v20831_v55 = vadd.f32 %v32127_v18, %v25606_v2  ;;  %v20776_v14 = vpop.f32.mrb[143].mxu1 }
 0x853   : > { %20844 = vst.msk [vmem:[%s30963_s11 + $0x440] sm:$0xff] %vm6294_vm6, %v20828_v63  ;;  %19038 = vst.msk [vmem:[%s30963_s11 + $0x3a8] sm:$0xff] %vm6294_vm6, %v19006_v25  ;;  %v20829_v44 = vadd.f32 %v32127_v18, %v20776_v14 }
 0x854   : > { %20847 = vst.msk [vmem:[%s30963_s11 + $0x458] sm:$0xff] %vm6294_vm6, %v20831_v55 }
 0x855   : > { %20845 = vst.msk [vmem:[%s30963_s11 + $0x448] sm:$0xff] %vm6294_vm6, %v20829_v44  ;;  %v25443_v52 = vpop.f32.mrb[16].mxu0 }
 0x856   : > { %v19011_v21 = vadd.f32 %v32127_v18, %v25443_v52  ;;  %v18922_v7 = vpop.f32.mrb[17].mxu0 }
 0x857   : > { %v25609_v57 = vpop.f32.mrb[144].mxu1  ;;  %v19009_v49 = vadd.f32 %v32127_v18, %v18922_v7  ;;  %v25444_v53 = vpop.f32.mrb[18].mxu0 }
 0x858   : > { %19043 = vst.msk [vmem:[%s30963_s11 + $0x3d0] sm:$0xff] %vm6294_vm6, %v19011_v21  ;;  %v20834_v60 = vadd.f32 %v32127_v18, %v25609_v57  ;;  %v20789_v38 = vpop.f32.mrb[145].mxu1  ;;  %v19012_v3 = vadd.f32 %v32127_v18, %v25444_v53  ;;  %v18925_v5 = vpop.f32.mrb[19].mxu0 }
 0x859   : > { %19041 = vst.msk [vmem:[%s30963_s11 + $0x3c0] sm:$0xff] %vm6294_vm6, %v19009_v49  ;;  %v20832_v29 = vadd.f32 %v32127_v18, %v20789_v38  ;;  %v25610_v32 = vpop.f32.mrb[146].mxu1  ;;  %v19010_v1 = vadd.f32 %v32127_v18, %v18925_v5 }
 0x85a   : > { %20850 = vst.msk [vmem:[%s30963_s11 + $0x470] sm:$0xff] %vm6294_vm6, %v20834_v60  ;;  %19044 = vst.msk [vmem:[%s30963_s11 + $0x3d8] sm:$0xff] %vm6294_vm6, %v19012_v3  ;;  %v20835_v6 = vadd.f32 %v32127_v18, %v25610_v32  ;;  %v20792_v4 = vpop.f32.mrb[147].mxu1 }
 0x85b   : > { %20848 = vst.msk [vmem:[%s30963_s11 + $0x460] sm:$0xff] %vm6294_vm6, %v20832_v29  ;;  %19042 = vst.msk [vmem:[%s30963_s11 + $0x3c8] sm:$0xff] %vm6294_vm6, %v19010_v1  ;;  %v20833_v15 = vadd.f32 %v32127_v18, %v20792_v4 }
 0x85c   : > { %20851 = vst.msk [vmem:[%s30963_s11 + $0x478] sm:$0xf] %vm1442_vm4, %v20835_v6 }
 0x85d   : > { %20849 = vst.msk [vmem:[%s30963_s11 + $0x468] sm:$0xff] %vm6294_vm6, %v20833_v15  ;;  %v25447_v27 = vpop.f32.mrb[20].mxu0 }
 0x85e   : > { %v19015_v36 = vadd.f32 %v32127_v18, %v25447_v27  ;;  %v18938_v39 = vpop.f32.mrb[21].mxu0 }
 0x85f   : > { %v19013_v9 = vadd.f32 %v32127_v18, %v18938_v39  ;;  %v25448_v56 = vpop.f32.mrb[22].mxu0 }
 0x860   : > { %19047 = vst.msk [vmem:[%s30963_s11 + $0x3f0] sm:$0xff] %vm6294_vm6, %v19015_v36  ;;  %v19016_v35 = vadd.f32 %v32127_v18, %v25448_v56  ;;  %v18941_v61 = vpop.f32.mrb[23].mxu0 }
 0x861   : > { %19045 = vst.msk [vmem:[%s30963_s11 + $0x3e0] sm:$0xff] %vm6294_vm6, %v19013_v9  ;;  %v19014_v54 = vadd.f32 %v32127_v18, %v18941_v61 }
 0x862   : > { %19048 = vst.msk [vmem:[%s30963_s11 + $0x3f8] sm:$0xff] %vm6294_vm6, %v19016_v35 }
 0x863   : > { %19046 = vst.msk [vmem:[%s30963_s11 + $0x3e8] sm:$0xff] %vm6294_vm6, %v19014_v54 }
 0x864 PF: > { %s17_s18 = sadd.s32 1, %s27857_s18  }
 0x865   : > { %p14_p2 = scmp.ge.s32.totalorder %s17_s18, 4  }
 0x867   :  { %16 = sbr.rel (!%p14_p2) target bundleno = 2 (0x2), region = 93 }
 0x86e   :  { %20873 = vsyncpa [#allocation4], 1 }
 0x86f   :  { %20875 = vsyncpa [#allocation4 + $0x1], 1 }
 0x870   :  { %20876 = vsyncpa [#allocation6], 1 }

</bundles_post_ra>
